<compile_context>
chip_gen: v5e
topology: v5e:2x2
jax: 0.10.0
libtpu: 0.0.40
codegen_flags: <defaults>
</compile_context>

<pallas_src>
import jax
import jax.numpy as jnp
import numpy as np
from jax.experimental import pallas as pl
from jax.experimental.pallas import tpu as pltpu


def upsample_conv_kernel(x_ref, w_ref, b_ref, o_ref):
    """One (batch, row-tile) grid step.

    x_ref: (1, H+2, W+2, C)    1-padded ORIGINAL-resolution input, bf16
    w_ref: (2, 2, 4C, C)       per-phase fused 2x2-tap weight slabs, bf16
    b_ref: (1, C)              bias, f32
    o_ref: (1, 2, 2, TH, W, C) phase-separated output row tile
    """
    _, _, _, th, w, c = o_ref.shape
    r = pl.program_id(1)
    row0 = pl.multiple_of(r * th, th)
    bias = b_ref[...]                                    # (1, C) f32

    for a in range(2):          # output row parity
        for p in range(2):      # output col parity
            # im2col strip: the 2x2 original-resolution taps of this phase,
            # concatenated along channels -> a single deep-K matmul.
            taps = [
                x_ref[0, pl.ds(row0 + a + dy, th), pl.ds(p + dx, w), :]
                for dy in range(2) for dx in range(2)
            ]
            strip = jnp.concatenate(taps, axis=-1)       # (th, W, 4C) bf16
            # Leading-dim collapse only (free when W % 8 == 0).
            acc = jnp.dot(strip.reshape(th * w, 4 * c), w_ref[a, p],
                          preferred_element_type=jnp.float32)   # (th*W, C) f32
            acc = acc + bias
            o_ref[0, a, p, :, :, :] = acc.reshape(th, w, c).astype(o_ref.dtype)


def _phase_weight_slabs(w_oihw):
    """Fold conv3x3-on-2x-upsampled into 4 phase-specific 2x2 convs.

    Output pixel (2i+a, 2j+p) of conv(upsample2x(x), w, pad=1) reads padded
    original rows {i+a+dy} / cols {j+p+dx}, dy,dx in {0,1}, with weights that
    are sums of the original 3x3 taps.  Returns (2, 2, 4*Cin, Cout), f32.
    """
    w_hwio = jnp.transpose(w_oihw, (2, 3, 1, 0)).astype(jnp.float32)  # (3,3,Ci,Co)
    # dy (resp. dx) that tap ky (resp. kx) falls on, per phase a (resp. p).
    tap_map = ((0, 1, 1), (0, 0, 1))
    slabs_a = []
    for a in range(2):
        slabs_p = []
        for p in range(2):
            pieces = []
            for dy in range(2):
                for dx in range(2):
                    m = None
                    for ky in range(3):
                        for kx in range(3):
                            if tap_map[a][ky] == dy and tap_map[p][kx] == dx:
                                m = w_hwio[ky, kx] if m is None else m + w_hwio[ky, kx]
                    pieces.append(m)
            slabs_p.append(jnp.concatenate(pieces, axis=0))   # (4Ci, Co)
        slabs_a.append(jnp.stack(slabs_p))
    return jnp.stack(slabs_a)                                 # (2, 2, 4Ci, Co)


def _pick_row_tile(h, target=8):
    """Largest divisor of h that is <= target (output rows per tile / 2)."""
    for th in range(min(h, target), 0, -1):
        if h % th == 0:
            return th
    return h


def upsample_forward(x_nchw, w_oihw, bias, *, row_tile=None):
    """Upsample.forward: F.interpolate(scale=2, nearest) then Conv2d(C, C, 3, pad=1)."""
    bsz, c, h, w = x_nchw.shape
    out_dtype = x_nchw.dtype

    # --- glue (plain JAX, fused by XLA): NCHW->NHWC, 1-pixel zero pad, bf16.
    # TODO(synk): in an NHWC/bf16 end-to-end model these layout casts fuse into
    # the surrounding producers/consumers and disappear.
    x = jnp.transpose(x_nchw, (0, 2, 3, 1))
    x_pad = jnp.pad(x, ((0, 0), (1, 1), (1, 1), (0, 0))).astype(jnp.bfloat16)

    wslab = _phase_weight_slabs(w_oihw).astype(jnp.bfloat16)   # (2, 2, 4C, C)
    b_2d = bias.reshape(1, c).astype(jnp.float32)

    th = row_tile if row_tile is not None else _pick_row_tile(h)
    assert h % th == 0, (h, th)

    phases = pl.pallas_call(
        upsample_conv_kernel,
        out_shape=jax.ShapeDtypeStruct((bsz, 2, 2, h, w, c), out_dtype),
        grid=(bsz, h // th),
        in_specs=[
            pl.BlockSpec((1, h + 2, w + 2, c), lambda bi, ri: (bi, 0, 0, 0)),
            pl.BlockSpec((2, 2, 4 * c, c), lambda bi, ri: (0, 0, 0, 0)),
            pl.BlockSpec((1, c), lambda bi, ri: (0, 0)),
        ],
        out_specs=pl.BlockSpec((1, 2, 2, th, w, c),
                               lambda bi, ri: (bi, 0, 0, ri, 0, 0)),
        compiler_params=pltpu.CompilerParams(
            dimension_semantics=("parallel", "parallel"),
            vmem_limit_bytes=64 * 1024 * 1024),
    )(x_pad, wslab, b_2d)

    # phases[b, a, p, i, j, c] == out[b, 2i+a, 2j+p, c]; one transpose to the
    # NCHW interface (same single output transpose as before), reshape is free.
    out = jnp.transpose(phases, (0, 5, 3, 1, 4, 2)).reshape(bsz, c, 2 * h, 2 * w)
    return out


def reference_forward(x_nchw, w_oihw, bias):
    """Pure-JAX f32 reference (mirrors F.interpolate(nearest, 2x) + Conv2d)."""
    x_up = jnp.repeat(jnp.repeat(x_nchw, 2, axis=2), 2, axis=3)
    out = jax.lax.conv_general_dilated(
        x_up, w_oihw,
        window_strides=(1, 1),
        padding=((1, 1), (1, 1)),
        dimension_numbers=("NCHW", "OIHW", "NCHW"),
    )
    return out + bias.reshape(1, -1, 1, 1)


if __name__ == "__main__":
    key = jax.random.PRNGKey(0)
    k_x, k_w, k_b = jax.random.split(key, 3)

    # Small stand-in for the model's Upsample blocks (real C is 640 / 1280);
    # C kept a multiple of 128 so the channel (lane) dim stays dense.
    B, C, H, W = 2, 256, 16, 16
    x = jax.random.normal(k_x, (B, C, H, W), dtype=jnp.float32)

    # Deterministic parameter init (Conv2d(C, C, kernel_size=3) shapes).
    fan_in = C * 3 * 3
    bound = 1.0 / np.sqrt(fan_in)
    w = jax.random.uniform(k_w, (C, C, 3, 3), jnp.float32, -bound, bound)
    b = jax.random.uniform(k_b, (C,), jnp.float32, -bound, bound)

    out = jax.block_until_ready(upsample_forward(x, w, b))
    ref = reference_forward(x, w, b)

    assert out.shape == (B, C, 2 * H, 2 * W), out.shape
    # bf16 MXU inputs vs f32 reference -> loosened tolerance.
    np.testing.assert_allclose(np.asarray(out), np.asarray(ref),
                               rtol=3e-2, atol=3e-2)

    print("KERNEL_OK")
</pallas_src>

<mosaic_0001>
module attributes {stable_mosaic.version = 11 : i64} {
  func.func @upsample_conv_kernel(%arg0: i32, %arg1: i32, %arg2: memref<1x18x18x256xbf16, #tpu.memory_space<vmem>>, %arg3: memref<2x2x1024x256xbf16, #tpu.memory_space<vmem>>, %arg4: memref<1x256xf32, #tpu.memory_space<vmem>>, %arg5: memref<1x2x2x8x16x256xf32, #tpu.memory_space<vmem>>) attributes {dimension_semantics = [#tpu.dimension_semantics<parallel>, #tpu.dimension_semantics<parallel>], iteration_bounds = array<i64: 2, 2>, scalar_prefetch = 0 : i64, scratch_operands = 0 : i64, tpu.core_type = #tpu.core_type<tc>, window_params = [{transform_indices = @transform_0, window_bounds = array<i64: 1, 18, 18, 256>}, {pipeline_mode = #tpu.pipeline_mode<synchronous>, transform_indices = @transform_1, window_bounds = array<i64: 2, 2, 1024, 256>}, {pipeline_mode = #tpu.pipeline_mode<synchronous>, transform_indices = @transform_2, window_bounds = array<i64: 1, 256>}, {transform_indices = @transform_3, window_bounds = array<i64: 1, 2, 2, 8, 16, 256>}]} {
    %c8_i32 = arith.constant 8 : i32
    %0 = arith.muli %arg1, %c8_i32 : i32
    %1 = tpu.assume_multiple %0, 8 : i32
    %c0 = arith.constant 0 : index
    %c0_0 = arith.constant 0 : index
    %2 = vector.load %arg4[%c0, %c0_0] : memref<1x256xf32, #tpu.memory_space<vmem>>, vector<1x256xf32>
    %c0_i32 = arith.constant 0 : i32
    %3 = arith.addi %1, %c0_i32 : i32
    %c0_i32_1 = arith.constant 0 : i32
    %4 = arith.addi %3, %c0_i32_1 : i32
    %c0_2 = arith.constant 0 : index
    %5 = arith.index_cast %4 : i32 to index
    %c0_3 = arith.constant 0 : index
    %c0_4 = arith.constant 0 : index
    %6 = vector.load %arg2[%c0_2, %5, %c0_3, %c0_4] : memref<1x18x18x256xbf16, #tpu.memory_space<vmem>>, vector<1x8x16x256xbf16>
    %7 = vector.shape_cast %6 : vector<1x8x16x256xbf16> to vector<8x16x256xbf16>
    %c0_i32_5 = arith.constant 0 : i32
    %8 = arith.addi %1, %c0_i32_5 : i32
    %c0_i32_6 = arith.constant 0 : i32
    %9 = arith.addi %8, %c0_i32_6 : i32
    %c0_7 = arith.constant 0 : index
    %10 = arith.index_cast %9 : i32 to index
    %c1 = arith.constant 1 : index
    %c0_8 = arith.constant 0 : index
    %11 = vector.load %arg2[%c0_7, %10, %c1, %c0_8] : memref<1x18x18x256xbf16, #tpu.memory_space<vmem>>, vector<1x8x16x256xbf16>
    %12 = vector.shape_cast %11 : vector<1x8x16x256xbf16> to vector<8x16x256xbf16>
    %c0_i32_9 = arith.constant 0 : i32
    %13 = arith.addi %1, %c0_i32_9 : i32
    %c1_i32 = arith.constant 1 : i32
    %14 = arith.addi %13, %c1_i32 : i32
    %c0_10 = arith.constant 0 : index
    %15 = arith.index_cast %14 : i32 to index
    %c0_11 = arith.constant 0 : index
    %c0_12 = arith.constant 0 : index
    %16 = vector.load %arg2[%c0_10, %15, %c0_11, %c0_12] : memref<1x18x18x256xbf16, #tpu.memory_space<vmem>>, vector<1x8x16x256xbf16>
    %17 = vector.shape_cast %16 : vector<1x8x16x256xbf16> to vector<8x16x256xbf16>
    %c0_i32_13 = arith.constant 0 : i32
    %18 = arith.addi %1, %c0_i32_13 : i32
    %c1_i32_14 = arith.constant 1 : i32
    %19 = arith.addi %18, %c1_i32_14 : i32
    %c0_15 = arith.constant 0 : index
    %20 = arith.index_cast %19 : i32 to index
    %c1_16 = arith.constant 1 : index
    %c0_17 = arith.constant 0 : index
    %21 = vector.load %arg2[%c0_15, %20, %c1_16, %c0_17] : memref<1x18x18x256xbf16, #tpu.memory_space<vmem>>, vector<1x8x16x256xbf16>
    %22 = vector.shape_cast %21 : vector<1x8x16x256xbf16> to vector<8x16x256xbf16>
    %23 = tpu.concatenate %7, %12, %17, %22 in 2 : vector<8x16x256xbf16>, vector<8x16x256xbf16>, vector<8x16x256xbf16>, vector<8x16x256xbf16> -> vector<8x16x1024xbf16>
    %24 = vector.shape_cast %23 : vector<8x16x1024xbf16> to vector<128x1024xbf16>
    %c0_18 = arith.constant 0 : index
    %c0_19 = arith.constant 0 : index
    %c0_20 = arith.constant 0 : index
    %c0_21 = arith.constant 0 : index
    %25 = vector.load %arg3[%c0_18, %c0_19, %c0_20, %c0_21] : memref<2x2x1024x256xbf16, #tpu.memory_space<vmem>>, vector<1x1x1024x256xbf16>
    %26 = vector.shape_cast %25 : vector<1x1x1024x256xbf16> to vector<1024x256xbf16>
    %cst = arith.constant dense<0.000000e+00> : vector<128x256xf32>
    %27 = tpu.matmul %24, %26, %cst {dimension_numbers = #tpu.dot_dimension_numbers<[1], [0], [0], [1], [0, 0, 1, 1], [], []>} : vector<128x1024xbf16>, vector<1024x256xbf16>, vector<128x256xf32> -> vector<128x256xf32>
    %28 = vector.broadcast %2 : vector<1x256xf32> to vector<128x256xf32>
    %29 = arith.addf %27, %28 : vector<128x256xf32>
    %30 = vector.shape_cast %29 : vector<128x256xf32> to vector<8x16x256xf32>
    %c0_22 = arith.constant 0 : index
    %c0_23 = arith.constant 0 : index
    %c0_24 = arith.constant 0 : index
    %c0_25 = arith.constant 0 : index
    %c0_26 = arith.constant 0 : index
    %c0_27 = arith.constant 0 : index
    %31 = vector.load %arg5[%c0_22, %c0_23, %c0_24, %c0_25, %c0_26, %c0_27] : memref<1x2x2x8x16x256xf32, #tpu.memory_space<vmem>>, vector<1x1x1x8x16x256xf32>
    %32 = vector.shape_cast %31 : vector<1x1x1x8x16x256xf32> to vector<8x16x256xf32>
    %33 = vector.shape_cast %30 : vector<8x16x256xf32> to vector<1x1x1x8x16x256xf32>
    tpu.vector_store %arg5[%c0_22, %c0_23, %c0_24, %c0_25, %c0_26, %c0_27], %33 {strides = array<i32>} : memref<1x2x2x8x16x256xf32, #tpu.memory_space<vmem>>, vector<1x1x1x8x16x256xf32>,
    %c0_i32_28 = arith.constant 0 : i32
    %34 = arith.addi %1, %c0_i32_28 : i32
    %c0_i32_29 = arith.constant 0 : i32
    %35 = arith.addi %34, %c0_i32_29 : i32
    %c0_30 = arith.constant 0 : index
    %36 = arith.index_cast %35 : i32 to index
    %c1_31 = arith.constant 1 : index
    %c0_32 = arith.constant 0 : index
    %37 = vector.load %arg2[%c0_30, %36, %c1_31, %c0_32] : memref<1x18x18x256xbf16, #tpu.memory_space<vmem>>, vector<1x8x16x256xbf16>
    %38 = vector.shape_cast %37 : vector<1x8x16x256xbf16> to vector<8x16x256xbf16>
    %c0_i32_33 = arith.constant 0 : i32
    %39 = arith.addi %1, %c0_i32_33 : i32
    %c0_i32_34 = arith.constant 0 : i32
    %40 = arith.addi %39, %c0_i32_34 : i32
    %c0_35 = arith.constant 0 : index
    %41 = arith.index_cast %40 : i32 to index
    %c2 = arith.constant 2 : index
    %c0_36 = arith.constant 0 : index
    %42 = vector.load %arg2[%c0_35, %41, %c2, %c0_36] : memref<1x18x18x256xbf16, #tpu.memory_space<vmem>>, vector<1x8x16x256xbf16>
    %43 = vector.shape_cast %42 : vector<1x8x16x256xbf16> to vector<8x16x256xbf16>
    %c0_i32_37 = arith.constant 0 : i32
    %44 = arith.addi %1, %c0_i32_37 : i32
    %c1_i32_38 = arith.constant 1 : i32
    %45 = arith.addi %44, %c1_i32_38 : i32
    %c0_39 = arith.constant 0 : index
    %46 = arith.index_cast %45 : i32 to index
    %c1_40 = arith.constant 1 : index
    %c0_41 = arith.constant 0 : index
    %47 = vector.load %arg2[%c0_39, %46, %c1_40, %c0_41] : memref<1x18x18x256xbf16, #tpu.memory_space<vmem>>, vector<1x8x16x256xbf16>
    %48 = vector.shape_cast %47 : vector<1x8x16x256xbf16> to vector<8x16x256xbf16>
    %c0_i32_42 = arith.constant 0 : i32
    %49 = arith.addi %1, %c0_i32_42 : i32
    %c1_i32_43 = arith.constant 1 : i32
    %50 = arith.addi %49, %c1_i32_43 : i32
    %c0_44 = arith.constant 0 : index
    %51 = arith.index_cast %50 : i32 to index
    %c2_45 = arith.constant 2 : index
    %c0_46 = arith.constant 0 : index
    %52 = vector.load %arg2[%c0_44, %51, %c2_45, %c0_46] : memref<1x18x18x256xbf16, #tpu.memory_space<vmem>>, vector<1x8x16x256xbf16>
    %53 = vector.shape_cast %52 : vector<1x8x16x256xbf16> to vector<8x16x256xbf16>
    %54 = tpu.concatenate %38, %43, %48, %53 in 2 : vector<8x16x256xbf16>, vector<8x16x256xbf16>, vector<8x16x256xbf16>, vector<8x16x256xbf16> -> vector<8x16x1024xbf16>
    %55 = vector.shape_cast %54 : vector<8x16x1024xbf16> to vector<128x1024xbf16>
    %c0_47 = arith.constant 0 : index
    %c1_48 = arith.constant 1 : index
    %c0_49 = arith.constant 0 : index
    %c0_50 = arith.constant 0 : index
    %56 = vector.load %arg3[%c0_47, %c1_48, %c0_49, %c0_50] : memref<2x2x1024x256xbf16, #tpu.memory_space<vmem>>, vector<1x1x1024x256xbf16>
    %57 = vector.shape_cast %56 : vector<1x1x1024x256xbf16> to vector<1024x256xbf16>
    %cst_51 = arith.constant dense<0.000000e+00> : vector<128x256xf32>
    %58 = tpu.matmul %55, %57, %cst_51 {dimension_numbers = #tpu.dot_dimension_numbers<[1], [0], [0], [1], [0, 0, 1, 1], [], []>} : vector<128x1024xbf16>, vector<1024x256xbf16>, vector<128x256xf32> -> vector<128x256xf32>
    %59 = vector.broadcast %2 : vector<1x256xf32> to vector<128x256xf32>
    %60 = arith.addf %58, %59 : vector<128x256xf32>
    %61 = vector.shape_cast %60 : vector<128x256xf32> to vector<8x16x256xf32>
    %c0_52 = arith.constant 0 : index
    %c0_53 = arith.constant 0 : index
    %c1_54 = arith.constant 1 : index
    %c0_55 = arith.constant 0 : index
    %c0_56 = arith.constant 0 : index
    %c0_57 = arith.constant 0 : index
    %62 = vector.load %arg5[%c0_52, %c0_53, %c1_54, %c0_55, %c0_56, %c0_57] : memref<1x2x2x8x16x256xf32, #tpu.memory_space<vmem>>, vector<1x1x1x8x16x256xf32>
    %63 = vector.shape_cast %62 : vector<1x1x1x8x16x256xf32> to vector<8x16x256xf32>
    %64 = vector.shape_cast %61 : vector<8x16x256xf32> to vector<1x1x1x8x16x256xf32>
    tpu.vector_store %arg5[%c0_52, %c0_53, %c1_54, %c0_55, %c0_56, %c0_57], %64 {strides = array<i32>} : memref<1x2x2x8x16x256xf32, #tpu.memory_space<vmem>>, vector<1x1x1x8x16x256xf32>,
    %c1_i32_58 = arith.constant 1 : i32
    %65 = arith.addi %1, %c1_i32_58 : i32
    %c0_i32_59 = arith.constant 0 : i32
    %66 = arith.addi %65, %c0_i32_59 : i32
    %c0_60 = arith.constant 0 : index
    %67 = arith.index_cast %66 : i32 to index
    %c0_61 = arith.constant 0 : index
    %c0_62 = arith.constant 0 : index
    %68 = vector.load %arg2[%c0_60, %67, %c0_61, %c0_62] : memref<1x18x18x256xbf16, #tpu.memory_space<vmem>>, vector<1x8x16x256xbf16>
    %69 = vector.shape_cast %68 : vector<1x8x16x256xbf16> to vector<8x16x256xbf16>
    %c1_i32_63 = arith.constant 1 : i32
    %70 = arith.addi %1, %c1_i32_63 : i32
    %c0_i32_64 = arith.constant 0 : i32
    %71 = arith.addi %70, %c0_i32_64 : i32
    %c0_65 = arith.constant 0 : index
    %72 = arith.index_cast %71 : i32 to index
    %c1_66 = arith.constant 1 : index
    %c0_67 = arith.constant 0 : index
    %73 = vector.load %arg2[%c0_65, %72, %c1_66, %c0_67] : memref<1x18x18x256xbf16, #tpu.memory_space<vmem>>, vector<1x8x16x256xbf16>
    %74 = vector.shape_cast %73 : vector<1x8x16x256xbf16> to vector<8x16x256xbf16>
    %c1_i32_68 = arith.constant 1 : i32
    %75 = arith.addi %1, %c1_i32_68 : i32
    %c1_i32_69 = arith.constant 1 : i32
    %76 = arith.addi %75, %c1_i32_69 : i32
    %c0_70 = arith.constant 0 : index
    %77 = arith.index_cast %76 : i32 to index
    %c0_71 = arith.constant 0 : index
    %c0_72 = arith.constant 0 : index
    %78 = vector.load %arg2[%c0_70, %77, %c0_71, %c0_72] : memref<1x18x18x256xbf16, #tpu.memory_space<vmem>>, vector<1x8x16x256xbf16>
    %79 = vector.shape_cast %78 : vector<1x8x16x256xbf16> to vector<8x16x256xbf16>
    %c1_i32_73 = arith.constant 1 : i32
    %80 = arith.addi %1, %c1_i32_73 : i32
    %c1_i32_74 = arith.constant 1 : i32
    %81 = arith.addi %80, %c1_i32_74 : i32
    %c0_75 = arith.constant 0 : index
    %82 = arith.index_cast %81 : i32 to index
    %c1_76 = arith.constant 1 : index
    %c0_77 = arith.constant 0 : index
    %83 = vector.load %arg2[%c0_75, %82, %c1_76, %c0_77] : memref<1x18x18x256xbf16, #tpu.memory_space<vmem>>, vector<1x8x16x256xbf16>
    %84 = vector.shape_cast %83 : vector<1x8x16x256xbf16> to vector<8x16x256xbf16>
    %85 = tpu.concatenate %69, %74, %79, %84 in 2 : vector<8x16x256xbf16>, vector<8x16x256xbf16>, vector<8x16x256xbf16>, vector<8x16x256xbf16> -> vector<8x16x1024xbf16>
    %86 = vector.shape_cast %85 : vector<8x16x1024xbf16> to vector<128x1024xbf16>
    %c1_78 = arith.constant 1 : index
    %c0_79 = arith.constant 0 : index
    %c0_80 = arith.constant 0 : index
    %c0_81 = arith.constant 0 : index
    %87 = vector.load %arg3[%c1_78, %c0_79, %c0_80, %c0_81] : memref<2x2x1024x256xbf16, #tpu.memory_space<vmem>>, vector<1x1x1024x256xbf16>
    %88 = vector.shape_cast %87 : vector<1x1x1024x256xbf16> to vector<1024x256xbf16>
    %cst_82 = arith.constant dense<0.000000e+00> : vector<128x256xf32>
    %89 = tpu.matmul %86, %88, %cst_82 {dimension_numbers = #tpu.dot_dimension_numbers<[1], [0], [0], [1], [0, 0, 1, 1], [], []>} : vector<128x1024xbf16>, vector<1024x256xbf16>, vector<128x256xf32> -> vector<128x256xf32>
    %90 = vector.broadcast %2 : vector<1x256xf32> to vector<128x256xf32>
    %91 = arith.addf %89, %90 : vector<128x256xf32>
    %92 = vector.shape_cast %91 : vector<128x256xf32> to vector<8x16x256xf32>
    %c0_83 = arith.constant 0 : index
    %c1_84 = arith.constant 1 : index
    %c0_85 = arith.constant 0 : index
    %c0_86 = arith.constant 0 : index
    %c0_87 = arith.constant 0 : index
    %c0_88 = arith.constant 0 : index
    %93 = vector.load %arg5[%c0_83, %c1_84, %c0_85, %c0_86, %c0_87, %c0_88] : memref<1x2x2x8x16x256xf32, #tpu.memory_space<vmem>>, vector<1x1x1x8x16x256xf32>
    %94 = vector.shape_cast %93 : vector<1x1x1x8x16x256xf32> to vector<8x16x256xf32>
    %95 = vector.shape_cast %92 : vector<8x16x256xf32> to vector<1x1x1x8x16x256xf32>
    tpu.vector_store %arg5[%c0_83, %c1_84, %c0_85, %c0_86, %c0_87, %c0_88], %95 {strides = array<i32>} : memref<1x2x2x8x16x256xf32, #tpu.memory_space<vmem>>, vector<1x1x1x8x16x256xf32>,
    %c1_i32_89 = arith.constant 1 : i32
    %96 = arith.addi %1, %c1_i32_89 : i32
    %c0_i32_90 = arith.constant 0 : i32
    %97 = arith.addi %96, %c0_i32_90 : i32
    %c0_91 = arith.constant 0 : index
    %98 = arith.index_cast %97 : i32 to index
    %c1_92 = arith.constant 1 : index
    %c0_93 = arith.constant 0 : index
    %99 = vector.load %arg2[%c0_91, %98, %c1_92, %c0_93] : memref<1x18x18x256xbf16, #tpu.memory_space<vmem>>, vector<1x8x16x256xbf16>
    %100 = vector.shape_cast %99 : vector<1x8x16x256xbf16> to vector<8x16x256xbf16>
    %c1_i32_94 = arith.constant 1 : i32
    %101 = arith.addi %1, %c1_i32_94 : i32
    %c0_i32_95 = arith.constant 0 : i32
    %102 = arith.addi %101, %c0_i32_95 : i32
    %c0_96 = arith.constant 0 : index
    %103 = arith.index_cast %102 : i32 to index
    %c2_97 = arith.constant 2 : index
    %c0_98 = arith.constant 0 : index
    %104 = vector.load %arg2[%c0_96, %103, %c2_97, %c0_98] : memref<1x18x18x256xbf16, #tpu.memory_space<vmem>>, vector<1x8x16x256xbf16>
    %105 = vector.shape_cast %104 : vector<1x8x16x256xbf16> to vector<8x16x256xbf16>
    %c1_i32_99 = arith.constant 1 : i32
    %106 = arith.addi %1, %c1_i32_99 : i32
    %c1_i32_100 = arith.constant 1 : i32
    %107 = arith.addi %106, %c1_i32_100 : i32
    %c0_101 = arith.constant 0 : index
    %108 = arith.index_cast %107 : i32 to index
    %c1_102 = arith.constant 1 : index
    %c0_103 = arith.constant 0 : index
    %109 = vector.load %arg2[%c0_101, %108, %c1_102, %c0_103] : memref<1x18x18x256xbf16, #tpu.memory_space<vmem>>, vector<1x8x16x256xbf16>
    %110 = vector.shape_cast %109 : vector<1x8x16x256xbf16> to vector<8x16x256xbf16>
    %c1_i32_104 = arith.constant 1 : i32
    %111 = arith.addi %1, %c1_i32_104 : i32
    %c1_i32_105 = arith.constant 1 : i32
    %112 = arith.addi %111, %c1_i32_105 : i32
    %c0_106 = arith.constant 0 : index
    %113 = arith.index_cast %112 : i32 to index
    %c2_107 = arith.constant 2 : index
    %c0_108 = arith.constant 0 : index
    %114 = vector.load %arg2[%c0_106, %113, %c2_107, %c0_108] : memref<1x18x18x256xbf16, #tpu.memory_space<vmem>>, vector<1x8x16x256xbf16>
    %115 = vector.shape_cast %114 : vector<1x8x16x256xbf16> to vector<8x16x256xbf16>
    %116 = tpu.concatenate %100, %105, %110, %115 in 2 : vector<8x16x256xbf16>, vector<8x16x256xbf16>, vector<8x16x256xbf16>, vector<8x16x256xbf16> -> vector<8x16x1024xbf16>
    %117 = vector.shape_cast %116 : vector<8x16x1024xbf16> to vector<128x1024xbf16>
    %c1_109 = arith.constant 1 : index
    %c1_110 = arith.constant 1 : index
    %c0_111 = arith.constant 0 : index
    %c0_112 = arith.constant 0 : index
    %118 = vector.load %arg3[%c1_109, %c1_110, %c0_111, %c0_112] : memref<2x2x1024x256xbf16, #tpu.memory_space<vmem>>, vector<1x1x1024x256xbf16>
    %119 = vector.shape_cast %118 : vector<1x1x1024x256xbf16> to vector<1024x256xbf16>
    %cst_113 = arith.constant dense<0.000000e+00> : vector<128x256xf32>
    %120 = tpu.matmul %117, %119, %cst_113 {dimension_numbers = #tpu.dot_dimension_numbers<[1], [0], [0], [1], [0, 0, 1, 1], [], []>} : vector<128x1024xbf16>, vector<1024x256xbf16>, vector<128x256xf32> -> vector<128x256xf32>
    %121 = vector.broadcast %2 : vector<1x256xf32> to vector<128x256xf32>
    %122 = arith.addf %120, %121 : vector<128x256xf32>
    %123 = vector.shape_cast %122 : vector<128x256xf32> to vector<8x16x256xf32>
    %c0_114 = arith.constant 0 : index
    %c1_115 = arith.constant 1 : index
    %c1_116 = arith.constant 1 : index
    %c0_117 = arith.constant 0 : index
    %c0_118 = arith.constant 0 : index
    %c0_119 = arith.constant 0 : index
    %124 = vector.load %arg5[%c0_114, %c1_115, %c1_116, %c0_117, %c0_118, %c0_119] : memref<1x2x2x8x16x256xf32, #tpu.memory_space<vmem>>, vector<1x1x1x8x16x256xf32>
    %125 = vector.shape_cast %124 : vector<1x1x1x8x16x256xf32> to vector<8x16x256xf32>
    %126 = vector.shape_cast %123 : vector<8x16x256xf32> to vector<1x1x1x8x16x256xf32>
    tpu.vector_store %arg5[%c0_114, %c1_115, %c1_116, %c0_117, %c0_118, %c0_119], %126 {strides = array<i32>} : memref<1x2x2x8x16x256xf32, #tpu.memory_space<vmem>>, vector<1x1x1x8x16x256xf32>,
    return
  }
  func.func @transform_0(%arg0: i32, %arg1: i32) -> (i32, i32, i32, i32) {
    %c0_i32 = arith.constant 0 : i32
    %c0_i32_0 = arith.constant 0 : i32
    %c0_i32_1 = arith.constant 0 : i32
    %c0_i32_2 = arith.constant 0 : i32
    return %arg0, %c0_i32, %c0_i32_0, %c0_i32_1 : i32, i32, i32, i32
  }
  func.func @transform_1(%arg0: i32, %arg1: i32) -> (i32, i32, i32, i32) {
    %c0_i32 = arith.constant 0 : i32
    %c0_i32_0 = arith.constant 0 : i32
    %c0_i32_1 = arith.constant 0 : i32
    %c0_i32_2 = arith.constant 0 : i32
    %c0_i32_3 = arith.constant 0 : i32
    return %c0_i32, %c0_i32_0, %c0_i32_1, %c0_i32_2 : i32, i32, i32, i32
  }
  func.func @transform_2(%arg0: i32, %arg1: i32) -> (i32, i32) {
    %c0_i32 = arith.constant 0 : i32
    %c0_i32_0 = arith.constant 0 : i32
    %c0_i32_1 = arith.constant 0 : i32
    return %c0_i32, %c0_i32_0 : i32, i32
  }
  func.func @transform_3(%arg0: i32, %arg1: i32) -> (i32, i32, i32, i32, i32, i32) {
    %c0_i32 = arith.constant 0 : i32
    %c0_i32_0 = arith.constant 0 : i32
    %c0_i32_1 = arith.constant 0 : i32
    %c0_i32_2 = arith.constant 0 : i32
    %c0_i32_3 = arith.constant 0 : i32
    return %arg0, %c0_i32, %c0_i32_0, %arg1, %c0_i32_1, %c0_i32_2 : i32, i32, i32, i32, i32, i32
  }
}

</mosaic_0001>

<bundles_post_ra>
// kernel: tpu_custom_call.1
= control target key start
LH: loop header
LB: loop body
LE: loop exit
PB: predicated region body
PF: predicated region fallthrough
CT: control target
= control target key end

     0   :  { %8 = vsyncpa [#allocation3], 0  ;;  %s18494_s0 = inlined_call_operand.vmem [shape: bf16[2,18,18,256], index: 0, kind: input, shape index: {}]   ;;  %s18495_s1 = inlined_call_operand.hbm [shape: bf16[2,2,1024,256], index: 1, kind: input, shape index: {}]   ;;  %s18496_s2 = inlined_call_operand.hbm [shape: f32[1,256], index: 2, kind: input, shape index: {}]   ;;  %s18497_s3 = inlined_call_operand.hbm [shape: f32[2,2,2,16,16,256], index: 3, kind: output, shape index: {}]  }
   0x1   :  { %9 = vsyncpa [#allocation6], 0 }
   0x2   :  { %10 = vsyncpa [#allocation4], 0 }
   0x3   :  { %12 = vsyncpa [#allocation4 + $0x1], 0  ;;  %s14588_s12 = smov 0   ;;  %s14590_s13 = smov 0  }
   0x4   :  { %s14592_s14 = smov 0   ;;  %s14594_s15 = smov 0  }
   0x5   :  { %s14596_s16 = smov 0   ;;  %s14598_s17 = smov 0  }
   0x6   :  { %s14600_s18 = smov 0   ;;  %s14602_s19 = smov 0  }
   0x7 LB: > { %s11143_s20 = sadd.s32 4294967295, %s14556_s19   ;;  %s11144_s21 = sadd.s32 4294967294, %s14556_s19   ;;  %s14556_s19 = sphi %s14602_s19, %s18_s19   ;;  %s14552_s18 = sphi %s14600_s18, %s19057_s18   ;;  %s14548_s17 = sphi %s14598_s17, %s19056_s17   ;;  %s14544_s16 = sphi %s14596_s16, %s19055_s16   ;;  %s14540_s15 = sphi %s14594_s15, %s19054_s15   ;;  %s14536_s14 = sphi %s14592_s14, %s19053_s14   ;;  %s14532_s13 = sphi %s14590_s13, %s19052_s13   ;;  %s14528_s12 = sphi %s14588_s12, %s19051_s12  }
   0x8   : > { %s27_s22 = sadd.s32 1, %s14548_s17  ;;  %s30_s23 = sadd.s32 1, %s14552_s18 }
   0x9   : > { %p28_p0 = scmp.ge.s32.totalorder %s27_s22, 2  ;;  %s107_s24 = sadd.s32 1, %s14536_s14 }
   0xa   : > { %p117_p1 = scmp.ne.s32.totalorder %s14536_s14, %s14532_s13  ;;  %p118_p2 = scmp.eq.s32.totalorder %s11143_s20, 3 }
   0xb   : > { %s19059_s22 = smov (%p28_p0, %s27_s22), 0  ;;  %s19061_s23 = smov (!%p28_p0, %s30_s23), %s14552_s18 }
   0xc   : > { %s103_s25 = ssub.s32 %s14548_s17, %s19059_s22  ;;  %p14640_p3 = por %p118_p2, %p117_p1 }
   0xd   : > { %p32_p4 = scmp.ge.s32.totalorder %s19061_s23, 2  ;;  %p123_p5 = scmp.ne.s32.totalorder %s14532_s13, %s14528_s12 }
   0xe   : > { %p124_p6 = scmp.eq.s32.totalorder %s11144_s21, 3  ;;  %p11145_p7 = scmp.ge.s32.totalorder %s14556_s19, 1 }
   0xf   : > { %s19063_s23 = smov (%p32_p4, %s19061_s23), 0  ;;  %p131_p9 = scmp.lt.s32.totalorder %s14556_s19, 5 }
  0x10   : > { %18674 = sst [smem:[#allocation13_spill]] %s19063_s23  ;;  %p14649_p8 = por %p124_p6, %p123_p5 }
  0x11   : > { %s102_s28 = ssub.s32 %s14552_s18, %s19063_s23  ;;  %p14656_p10 = pnand %p11145_p7, %p131_p9 }
  0x12   : > { %s104_s29 = sor.u32 %s103_s25, %s102_s28  ;;  %p14660_p12 = scmp.eq.s32.totalorder %s11143_s20, 0 }
  0x13   : > { %p105_p11 = scmp.eq.s32.totalorder %s104_s29, 0  ;;  %p14331_p13 = pneg %p14656_p10 }
  0x14   : > { %s142_s7 = sshll.u32 %s18495_s1, 4  ;;  %s14558_s9 = smov [#allocation2]   ;;  %s143_s7 = int_to_ptr.hbm [resolvable:$true] %s142_s7 }
  0x15   : > { %s14670_s8 = scalar_select %p105_p11, %s14536_s14, %s107_s24  }
  0x16   : > { %s144_s10 = sshll.u32 %s14558_s9, 4  ;;  %p14332_p0 = pnand %p14660_p12, %p14331_p13  ;;  %s145_s10 = int_to_ptr.vmem [resolvable:$true] %s144_s10 }
  0x17   : > { %s14559_s11 = smov 128   ;;  %s14560_s20 = smov 8  }
  0x18   : > { %14334 = dma.hbm_to_vmem [thread:$0]  (!%p14332_p0), %s143_s7, 65536, %s145_s10, [#allocation3], %s14559_s11, %s14559_s11, %s14560_s20  }
  0x19   : > { %s157_s28 = sshll.u32 %s18496_s2, 4  ;;  %s14561_s29 = smov [#allocation5]   ;;  %s158_s28 = int_to_ptr.hbm [resolvable:$true] %s157_s28 }
  0x1a   : > { %s159_s23 = sshll.u32 %s14561_s29, 4  ;;  %180 = sbr.rel (%p14656_p10) target bundleno = 2259 (0x8d3), region = 32  ;;  %s160_s23 = int_to_ptr.vmem [resolvable:$true] %s159_s23 }
  0x1b   : > { %14337 = dma.hbm_to_vmem [thread:$0]  (!%p14332_p0), %s158_s28, 32, %s160_s23, [#allocation6]  }
  0x1f   : > { %14515 = dma.done.wait (%p14660_p12), [#allocation3], 65536  }
  0x20   : > { %14517 = vsyncadd (%p14660_p12), [#allocation3], 4294901760 }
  0x21   : > { %14519 = dma.done.wait (%p14660_p12), [#allocation6], 32  }
  0x22   : > { %14521 = vsyncadd (%p14660_p12), [#allocation6], 4294967264  ;;  %p210_p1 = scmp.lt.s32.totalorder %s14544_s16, 1  ;;  %v11369_v0 = vld [vmem:[#allocation2 + $0x70] sm:$0xf]  ;;  %s13736_s30 = smul.u32 192, %s14540_s15 }
  0x23   : > { %v13784_v1 = vld [vmem:[#allocation2 + $0x74] sm:$0xf0]  ;;  %v11433_v2 = vld [vmem:[#allocation2 + $0xf0] sm:$0xf]  ;;  %v11361_v11 = vld [vmem:[#allocation2 + $0x60] sm:$0xf] }
  0x24   : > { %s14689_s24 = scalar_select %p210_p1, %s14544_s16, 1  ;;  %v11370_v3 = vor.u32 %v13784_v1, %v11369_v0  ;;  %v13800_v4 = vld [vmem:[#allocation2 + $0xf4] sm:$0xf0]  ;;  %v11497_v5 = vld [vmem:[#allocation2 + $0x170] sm:$0xf] }
  0x25   : > { %v13816_v6 = vld [vmem:[#allocation2 + $0x174] sm:$0xf0]  ;;  %v11434_v7 = vor.u32 %v13800_v4, %v11433_v2  ;;  %v11561_v9 = vld [vmem:[#allocation2 + $0x1f0] sm:$0xf]  ;;  %v13782_v13 = vld [vmem:[#allocation2 + $0x64] sm:$0xf0] }
  0x26   : > { %v11498_v8 = vor.u32 %v13816_v6, %v11497_v5  ;;  %v13832_v10 = vld [vmem:[#allocation2 + $0x1f4] sm:$0xf0]  ;;  %1703 = vmatpush.bf16.msra.mxu0 %v11370_v3  ;;  %v11425_v14 = vld [vmem:[#allocation2 + $0xe0] sm:$0xf]  ;;  %v13798_v15 = vld [vmem:[#allocation2 + $0xe4] sm:$0xf0]  ;;  %v11362_v16 = vor.u32 %v13782_v13, %v11361_v11 }
  0x27   : > { %v11562_v12 = vor.u32 %v13832_v10, %v11561_v9  ;;  %1752 = vmatpush.bf16.msra.mxu1 %v11434_v7  ;;  %v11426_v17 = vor.u32 %v13798_v15, %v11425_v14  ;;  %v11489_v18 = vld [vmem:[#allocation2 + $0x160] sm:$0xf]  ;;  %v13814_v19 = vld [vmem:[#allocation2 + $0x164] sm:$0xf0]  ;;  %v11353_v23 = vld [vmem:[#allocation2 + $0x50] sm:$0xf] }
  0x28   : > { %1801 = vmatpush.bf16.msra.mxu2 %v11498_v8  ;;  %v11553_v20 = vld [vmem:[#allocation2 + $0x1e0] sm:$0xf]  ;;  %v11490_v21 = vor.u32 %v13814_v19, %v11489_v18  ;;  %v13830_v22 = vld [vmem:[#allocation2 + $0x1e4] sm:$0xf0]  ;;  %v13780_v24 = vld [vmem:[#allocation2 + $0x54] sm:$0xf0] }
  0x29   : > { %1850 = vmatpush.bf16.msra.mxu3 %v11562_v12  ;;  %v11554_v25 = vor.u32 %v13830_v22, %v11553_v20  ;;  %v11417_v26 = vld [vmem:[#allocation2 + $0xd0] sm:$0xf]  ;;  %v13796_v27 = vld [vmem:[#allocation2 + $0xd4] sm:$0xf0]  ;;  %v11354_v29 = vor.u32 %v13780_v24, %v11353_v23  ;;  %v11345_v35 = vld [vmem:[#allocation2 + $0x40] sm:$0xf] }
  0x2a   : > { %v11481_v28 = vld [vmem:[#allocation2 + $0x150] sm:$0xf]  ;;  %1704 = vmatpush.bf16.msra.mxu0 %v11362_v16  ;;  %v13812_v30 = vld [vmem:[#allocation2 + $0x154] sm:$0xf0]  ;;  %v11418_v33 = vor.u32 %v13796_v27, %v11417_v26  ;;  %v13778_v36 = vld [vmem:[#allocation2 + $0x44] sm:$0xf0] }
  0x2b   : > { %v11545_v31 = vld [vmem:[#allocation2 + $0x1d0] sm:$0xf]  ;;  %v13828_v32 = vld [vmem:[#allocation2 + $0x1d4] sm:$0xf0]  ;;  %1753 = vmatpush.bf16.msra.mxu1 %v11426_v17  ;;  %v11482_v34 = vor.u32 %v13812_v30, %v11481_v28  ;;  %v11409_v37 = vld [vmem:[#allocation2 + $0xc0] sm:$0xf]  ;;  %v11346_v44 = vor.u32 %v13778_v36, %v11345_v35 }
  0x2c   : > { %1802 = vmatpush.bf16.msra.mxu2 %v11490_v21  ;;  %v11546_v38 = vor.u32 %v13828_v32, %v11545_v31  ;;  %v13794_v39 = vld [vmem:[#allocation2 + $0xc4] sm:$0xf0]  ;;  %v11473_v40 = vld [vmem:[#allocation2 + $0x140] sm:$0xf]  ;;  %s14314_s23 = smul.u32 432, %s14689_s24  ;;  %s207_s9 = sand.u32 1, %s14532_s13  }
  0x2d   : > { %1851 = vmatpush.bf16.msra.mxu3 %v11554_v25  ;;  %v13810_v41 = vld [vmem:[#allocation2 + $0x144] sm:$0xf0]  ;;  %v11537_v42 = vld [vmem:[#allocation2 + $0x1c0] sm:$0xf]  ;;  %v11410_v45 = vor.u32 %v13794_v39, %v11409_v37  ;;  %v11337_v47 = vld [vmem:[#allocation2 + $0x30] sm:$0xf] }
  0x2e   : > { %v13826_v43 = vld [vmem:[#allocation2 + $0x1c4] sm:$0xf0]  ;;  %1705 = vmatpush.bf16.msra.mxu0 %v11354_v29  ;;  %v11474_v46 = vor.u32 %v13810_v41, %v11473_v40  ;;  %v13776_v48 = vld [vmem:[#allocation2 + $0x34] sm:$0xf0]  ;;  %v11401_v49 = vld [vmem:[#allocation2 + $0xb0] sm:$0xf]  ;;  %s214_s6 = scalar_lea.vmem %s18494_s0, %s14314_s23 }
  0x2f   : > { %1754 = vmatpush.bf16.msra.mxu1 %v11418_v33  ;;  %v11538_v50 = vor.u32 %v13826_v43, %v11537_v42  ;;  %v13792_v51 = vld [vmem:[#allocation2 + $0xb4] sm:$0xf0]  ;;  %v11465_v52 = vld [vmem:[#allocation2 + $0x130] sm:$0xf]  ;;  %v11338_v56 = vor.u32 %v13776_v48, %v11337_v47  ;;  %v11329_v57 = vld [vmem:[#allocation2 + $0x20] sm:$0xf]  ;;  %s14696_s7 = scalar_lea.vmem %s214_s6, %s13736_s30 }
  0x30   : > { %1803 = vmatpush.bf16.msra.mxu2 %v11482_v34  ;;  %v13808_v53 = vld [vmem:[#allocation2 + $0x134] sm:$0xf0]  ;;  %v11529_v54 = vld [vmem:[#allocation2 + $0x1b0] sm:$0xf]  ;;  %v11402_v58 = vor.u32 %v13792_v51, %v11401_v49  ;;  %v13774_v60 = vld [vmem:[#allocation2 + $0x24] sm:$0xf0] }
  0x31   : > { %1852 = vmatpush.bf16.msra.mxu3 %v11546_v38  ;;  %v13824_v55 = vld [vmem:[#allocation2 + $0x1b4] sm:$0xf0]  ;;  %v11466_v59 = vor.u32 %v13808_v53, %v11465_v52  ;;  %v11393_v61 = vld [vmem:[#allocation2 + $0xa0] sm:$0xf]  ;;  %v13790_v62 = vld [vmem:[#allocation2 + $0xa4] sm:$0xf0]  ;;  %v11330_v6 = vor.u32 %v13774_v60, %v11329_v57 }
  0x32   : > { %1706 = vmatpush.bf16.msra.mxu0 %v11346_v44  ;;  %v11530_v63 = vor.u32 %v13824_v55, %v11529_v54  ;;  %v11457_v0 = vld [vmem:[#allocation2 + $0x120] sm:$0xf]  ;;  %v13806_v1 = vld [vmem:[#allocation2 + $0x124] sm:$0xf0]  ;;  %v11321_v4 = vld [vmem:[#allocation2 + $0x10] sm:$0xf]  ;;  %v11394_v10 = vor.u32 %v13790_v62, %v11393_v61 }
  0x33   : > { %1755 = vmatpush.bf16.msra.mxu1 %v11410_v45  ;;  %v11521_v2 = vld [vmem:[#allocation2 + $0x1a0] sm:$0xf]  ;;  %v13822_v3 = vld [vmem:[#allocation2 + $0x1a4] sm:$0xf0]  ;;  %v13772_v5 = vld [vmem:[#allocation2 + $0x14] sm:$0xf0]  ;;  %v11458_v11 = vor.u32 %v13806_v1, %v11457_v0 }
  0x34   : > { %1804 = vmatpush.bf16.msra.mxu2 %v11474_v46  ;;  %v11385_v7 = vld [vmem:[#allocation2 + $0x90] sm:$0xf]  ;;  %v13788_v8 = vld [vmem:[#allocation2 + $0x94] sm:$0xf0]  ;;  %v11522_v15 = vor.u32 %v13822_v3, %v11521_v2  ;;  %v14698_v16 = vld [vmem:[#allocation2] sm:$0xf]  ;;  %v11322_v20 = vor.u32 %v13772_v5, %v11321_v4 }
  0x35   : > { %1853 = vmatpush.bf16.msra.mxu3 %v11538_v50  ;;  %v11449_v9 = vld [vmem:[#allocation2 + $0x110] sm:$0xf]  ;;  %v13804_v12 = vld [vmem:[#allocation2 + $0x114] sm:$0xf0]  ;;  %v14700_v17 = vld [vmem:[#allocation2 + $0x4] sm:$0xf0]  ;;  %v11386_v21 = vor.u32 %v13788_v8, %v11385_v7 }
  0x36   : > { %1707 = vmatpush.bf16.msra.mxu0 %v11338_v56  ;;  %v11513_v13 = vld [vmem:[#allocation2 + $0x190] sm:$0xf]  ;;  %v13820_v14 = vld [vmem:[#allocation2 + $0x194] sm:$0xf0]  ;;  %v11185_v18 = vld [vmem:[%s14696_s7] sm:$0xf]  ;;  %v11450_v28 = vor.u32 %v13804_v12, %v11449_v9  ;;  %v11314_v45 = vor.u32 %v14700_v17, %v14698_v16 }
  0x37   : > { %1756 = vmatpush.bf16.msra.mxu1 %v11402_v58  ;;  %v13738_v19 = vld [vmem:[%s14696_s7 + $0x4] sm:$0xf0]  ;;  %v14704_v22 = vld [vmem:[#allocation2 + $0x80] sm:$0xf]  ;;  %v13737_v25 = vld [vmem:[%s14696_s7 + $0x4] sm:$0xf]  ;;  %v11514_v35 = vor.u32 %v13820_v14, %v11513_v13 }
  0x38   : > { %1805 = vmatpush.bf16.msra.mxu2 %v11466_v59  ;;  %v13786_v23 = vld [vmem:[#allocation2 + $0x84] sm:$0xf0]  ;;  %v14706_v24 = vor.u32 %v13738_v19, %v11185_v18  ;;  %v11187_v26 = vld [vmem:[%s14696_s7 + $0x8] sm:$0xf0]  ;;  %v237_v27 = vld [vmem:[%s14696_s7 + $0x10] sm:$0x11] }
  0x39   : > { %1854 = vmatpush.bf16.msra.mxu3 %v11530_v63  ;;  %v11441_v29 = vld [vmem:[#allocation2 + $0x100] sm:$0xf]  ;;  %v13802_v30 = vld [vmem:[#allocation2 + $0x104] sm:$0xf0]  ;;  %v14711_v32 = vor.u32 %v13737_v25, %v11187_v26  ;;  %v361_v33 = vunpack.c.l.b16 %v237_v27  ;;  %v362_v34 = vunpack.c.h.b16 %v237_v27  ;;  %vm393_vm0 = vsmask.f32 7424 }
  0x3a   : > { %1708 = vmatpush.bf16.msra.mxu0 %v11330_v6  ;;  %v11505_v31 = vld [vmem:[#allocation2 + $0x180] sm:$0xf]  ;;  %v13818_v36 = vld [vmem:[#allocation2 + $0x184] sm:$0xf0]  ;;  %v395_v37 = vshrl.u32 %v14706_v24, 16  ;;  %v397_v38 = vshll.u32 %v14706_v24, 16  ;;  %v11378_v51 = vor.u32 %v13786_v23, %v14704_v22  ;;  %v11442_v56 = vor.u32 %v13802_v30, %v11441_v29 }
  0x3b   : > { %1757 = vmatpush.bf16.msra.mxu1 %v11394_v10  ;;  %v377_v39 = vpack.c.b16 %v361_v33, %v361_v33  ;;  %v378_v40 = vpack.c.b16 %v362_v34, %v362_v34  ;;  %v407_v41 = vshrl.u32 %v14711_v32, 16  ;;  %v409_v42 = vshll.u32 %v14711_v32, 16  ;;  %v11753_v43 = vld [vmem:[#allocation2 + $0x370] sm:$0xf]  ;;  %v13880_v44 = vld [vmem:[#allocation2 + $0x374] sm:$0xf0] }
  0x3c   : > { %1806 = vmatpush.bf16.msra.mxu2 %v11458_v11  ;;  %v399_v46 = vrot.slane %v397_v38, 1  ;;  %v11625_v47 = vld [vmem:[#allocation2 + $0x270] sm:$0xf]  ;;  %v13848_v48 = vld [vmem:[#allocation2 + $0x274] sm:$0xf0]  ;;  %v11506_v57 = vor.u32 %v13818_v36, %v11505_v31  ;;  %v11754_v1 = vor.u32 %v13880_v44, %v11753_v43  ;;  %s11152_s10 = sshll.u32 %s207_s9, 10 }
  0x3d   : > { %1855 = vmatpush.bf16.msra.mxu3 %v11522_v15  ;;  %v11817_v49 = vld [vmem:[#allocation2 + $0x3f0] sm:$0xf]  ;;  %v13896_v50 = vld [vmem:[#allocation2 + $0x3f4] sm:$0xf0]  ;;  %v402_v52 = vshll.u32 %v377_v39, 16  ;;  %v411_v53 = vrot.slane %v409_v42, 1  ;;  %v11626_v8 = vor.u32 %v13848_v48, %v11625_v47 }
  0x3e   : > { %1709 = vmatpush.bf16.msra.mxu0 %v11322_v20  ;;  %v414_v54 = vshll.u32 %v378_v40, 16  ;;  %v11689_v55 = vld [vmem:[#allocation2 + $0x2f0] sm:$0xf]  ;;  %v400_v58 = vor.u32 %v399_v46, %v395_v37  ;;  %v13864_v59 = vld [vmem:[#allocation2 + $0x2f4] sm:$0xf0]  ;;  %v11818_v4 = vor.u32 %v13896_v50, %v11817_v49  ;;  %s15134_s11 = scalar_lea.vmem [#allocation7], %s11152_s10 }
  0x3f   : > { %1758 = vmatpush.bf16.msra.mxu1 %v11386_v21  ;;  %v11193_v60 = vld [vmem:[%s14696_s7 + $0x18] sm:$0xf]  ;;  %v13740_v61 = vld [vmem:[%s14696_s7 + $0x1c] sm:$0xf0]  ;;  %v404_v62 = vrot.slane %v402_v52, 1  ;;  %v412_v63 = vor.u32 %v411_v53, %v407_v41  ;;  %v11690_v12 = vor.u32 %v13864_v59, %v11689_v55  ;;  %s10994_s20 = scalar_lea.sflag [#allocation4], %s207_s9 }
  0x40   : > { %1807 = vmatpush.bf16.msra.mxu2 %v11450_v28  ;;  %v416_v0 = vrot.slane %v414_v54, 1  ;;  %v13739_v2 = vld [vmem:[%s14696_s7 + $0x1c] sm:$0xf]  ;;  %v238_v3 = vld [vmem:[%s14696_s7 + $0x28] sm:$0x11]  ;;  %v14728_v13 = vor.u32 %v13740_v61, %v11193_v60 }
  0x41   : > { %1856 = vmatpush.bf16.msra.mxu3 %v11514_v35  ;;  %v11195_v5 = vld [vmem:[%s14696_s7 + $0x20] sm:$0xf0]  ;;  %v11745_v6 = vld [vmem:[#allocation2 + $0x360] sm:$0xf]  ;;  %v13878_v7 = vld [vmem:[#allocation2 + $0x364] sm:$0xf0]  ;;  %v14726_v11 = vsel %vm393_vm0, %v400_v58, %v404_v62  ;;  %v363_v14 = vunpack.c.l.b16 %v238_v3  ;;  %v364_v17 = vunpack.c.h.b16 %v238_v3 }
  0x42   : > { %1710 = vmatpush.bf16.msra.mxu0 %v11314_v45  ;;  %v11809_v9 = vld [vmem:[#allocation2 + $0x3e0] sm:$0xf]  ;;  %v13894_v10 = vld [vmem:[#allocation2 + $0x3e4] sm:$0xf0]  ;;  %v14731_v15 = vsel %vm393_vm0, %v412_v63, %v416_v0  ;;  %v14733_v16 = vor.u32 %v13739_v2, %v11195_v5  ;;  %v11746_v18 = vor.u32 %v13878_v7, %v11745_v6  ;;  %v421_v26 = vshll.u32 %v14728_v13, 16 }
  0x43   : > { %1759 = vmatpush.bf16.msra.mxu1 %v11378_v51  ;;  %v11617_v19 = vld [vmem:[#allocation2 + $0x260] sm:$0xf]  ;;  %v13846_v20 = vld [vmem:[#allocation2 + $0x264] sm:$0xf0]  ;;  %v11810_v21 = vor.u32 %v13894_v10, %v11809_v9  ;;  %v379_v25 = vpack.c.b16 %v363_v14, %v363_v14  ;;  %v11737_v28 = vld [vmem:[#allocation2 + $0x350] sm:$0xf]  ;;  %v380_v30 = vpack.c.b16 %v364_v17, %v364_v17 }
  0x44   : > { %1808 = vmatpush.bf16.msra.mxu2 %v11442_v56  ;;  %v11681_v22 = vld [vmem:[#allocation2 + $0x2e0] sm:$0xf]  ;;  %v13862_v23 = vld [vmem:[#allocation2 + $0x2e4] sm:$0xf0]  ;;  %v11618_v27 = vor.u32 %v13846_v20, %v11617_v19  ;;  %v13876_v29 = vld [vmem:[#allocation2 + $0x354] sm:$0xf0] }
  0x45   : > { %1857 = vmatpush.bf16.msra.mxu3 %v11506_v57  ;;  %1711 = vmatmul.bf16.vlgmr.msra.gmra.mxu0 %v14706_v24  ;;  %v433_v31 = vshll.u32 %v14733_v16, 16  ;;  %v11682_v33 = vor.u32 %v13862_v23, %v11681_v22  ;;  %v11609_v34 = vld [vmem:[#allocation2 + $0x250] sm:$0xf]  ;;  %v13844_v35 = vld [vmem:[#allocation2 + $0x254] sm:$0xf0]  ;;  %v419_v38 = vshrl.u32 %v14728_v13, 16  ;;  %v11738_v39 = vor.u32 %v13876_v29, %v11737_v28 }
  0x46   : > { %1760 = vmatmul.bf16.vlgmr.msra.gmra.mxu1 %v14711_v32  ;;  %1899 = vmatpush.bf16.msrb.mxu0 %v11626_v8  ;;  %v11801_v36 = vld [vmem:[#allocation2 + $0x3d0] sm:$0xf]  ;;  %v13892_v37 = vld [vmem:[#allocation2 + $0x3d4] sm:$0xf0]  ;;  %v423_v42 = vrot.slane %v421_v26, 1  ;;  %v426_v43 = vshll.u32 %v379_v25, 16  ;;  %v11610_v44 = vor.u32 %v13844_v35, %v11609_v34 }
  0x47   : > { %1809 = vmatmul.bf16.vlgmr.msra.gmra.mxu2 %v14726_v11  ;;  %1948 = vmatpush.bf16.msrb.mxu1 %v11690_v12  ;;  %v11673_v40 = vld [vmem:[#allocation2 + $0x2d0] sm:$0xf]  ;;  %v13860_v41 = vld [vmem:[#allocation2 + $0x2d4] sm:$0xf0]  ;;  %v11802_v45 = vor.u32 %v13892_v37, %v11801_v36  ;;  %v431_v46 = vshrl.u32 %v14733_v16, 16  ;;  %v435_v47 = vrot.slane %v433_v31, 1 }
  0x48   : > { %1997 = vmatpush.bf16.msrb.mxu2 %v11754_v1  ;;  %1858 = vmatmul.bf16.vlgmr.msra.gmra.mxu3 %v14731_v15  ;;  %v438_v48 = vshll.u32 %v380_v30, 16  ;;  %v11674_v49 = vor.u32 %v13860_v41, %v11673_v40  ;;  %v11201_v50 = vld [vmem:[%s14696_s7 + $0x30] sm:$0xf]  ;;  %v13742_v51 = vld [vmem:[%s14696_s7 + $0x34] sm:$0xf0]  ;;  %v424_v52 = vor.u32 %v423_v42, %v419_v38  ;;  %v428_v53 = vrot.slane %v426_v43, 1 }
  0x49   : > { %2046 = vmatpush.bf16.msrb.mxu3 %v11818_v4  ;;  %v13741_v54 = vld [vmem:[%s14696_s7 + $0x34] sm:$0xf]  ;;  %v11203_v55 = vld [vmem:[%s14696_s7 + $0x38] sm:$0xf0]  ;;  %v436_v56 = vor.u32 %v435_v47, %v431_v46  ;;  %v239_v58 = vld [vmem:[%s14696_s7 + $0x40] sm:$0x11]  ;;  %v14748_v59 = vor.u32 %v13742_v51, %v11201_v50 }
  0x4a   : > { %1900 = vmatpush.bf16.msrb.mxu0 %v11618_v27  ;;  %v440_v57 = vrot.slane %v438_v48, 1  ;;  %v14750_v60 = vor.u32 %v13741_v54, %v11203_v55  ;;  %v14753_v61 = vsel %vm393_vm0, %v424_v52, %v428_v53  ;;  %v365_v62 = vunpack.c.l.b16 %v239_v58  ;;  %v11729_v4 = vld [vmem:[#allocation2 + $0x340] sm:$0xf]  ;;  %v13874_v5 = vld [vmem:[#allocation2 + $0x344] sm:$0xf0] }
  0x4b   : > { %1949 = vmatpush.bf16.msrb.mxu1 %v11682_v33  ;;  %v366_v0 = vunpack.c.h.b16 %v239_v58  ;;  %v445_v1 = vshll.u32 %v14748_v59, 16  ;;  %v11601_v6 = vld [vmem:[#allocation2 + $0x240] sm:$0xf]  ;;  %v11730_v8 = vor.u32 %v13874_v5, %v11729_v4  ;;  %v13842_v9 = vld [vmem:[#allocation2 + $0x244] sm:$0xf0] }
  0x4c   : > { %1998 = vmatpush.bf16.msrb.mxu2 %v11746_v18  ;;  %v14756_v63 = vsel %vm393_vm0, %v436_v56, %v440_v57  ;;  %v457_v2 = vshll.u32 %v14750_v60, 16  ;;  %v381_v3 = vpack.c.b16 %v365_v62, %v365_v62  ;;  %v11793_v10 = vld [vmem:[#allocation2 + $0x3c0] sm:$0xf]  ;;  %v13890_v12 = vld [vmem:[#allocation2 + $0x3c4] sm:$0xf0]  ;;  %v11602_v14 = vor.u32 %v13842_v9, %v11601_v6 }
  0x4d   : > { %2047 = vmatpush.bf16.msrb.mxu3 %v11810_v21  ;;  %v382_v7 = vpack.c.b16 %v366_v0, %v366_v0  ;;  %v11794_v17 = vor.u32 %v13890_v12, %v11793_v10  ;;  %v11665_v18 = vld [vmem:[#allocation2 + $0x2c0] sm:$0xf]  ;;  %v13858_v19 = vld [vmem:[#allocation2 + $0x2c4] sm:$0xf0]  ;;  %v443_v21 = vshrl.u32 %v14748_v59, 16  ;;  %v447_v22 = vrot.slane %v445_v1, 1 }
  0x4e   : > { %1901 = vmatpush.bf16.msrb.mxu0 %v11610_v44  ;;  %v11666_v20 = vor.u32 %v13858_v19, %v11665_v18  ;;  %v450_v23 = vshll.u32 %v381_v3, 16  ;;  %v455_v25 = vshrl.u32 %v14750_v60, 16  ;;  %v459_v26 = vrot.slane %v457_v2, 1  ;;  %v11209_v28 = vld [vmem:[%s14696_s7 + $0x48] sm:$0xf] }
  0x4f   : > { %1950 = vmatpush.bf16.msrb.mxu1 %v11674_v49  ;;  %v462_v27 = vshll.u32 %v382_v7, 16  ;;  %v13744_v29 = vld [vmem:[%s14696_s7 + $0x4c] sm:$0xf0]  ;;  %v13743_v30 = vld [vmem:[%s14696_s7 + $0x4c] sm:$0xf]  ;;  %v448_v31 = vor.u32 %v447_v22, %v443_v21 }
  0x50   : > { %1999 = vmatpush.bf16.msrb.mxu2 %v11738_v39  ;;  %v452_v33 = vrot.slane %v450_v23, 1  ;;  %v11211_v34 = vld [vmem:[%s14696_s7 + $0x50] sm:$0xf0]  ;;  %v240_v35 = vld [vmem:[%s14696_s7 + $0x58] sm:$0x11]  ;;  %v460_v36 = vor.u32 %v459_v26, %v455_v25  ;;  %v14771_v38 = vor.u32 %v13744_v29, %v11209_v28 }
  0x51   : > { %2048 = vmatpush.bf16.msrb.mxu3 %v11802_v45  ;;  %v464_v37 = vrot.slane %v462_v27, 1  ;;  %v14773_v39 = vor.u32 %v13743_v30, %v11211_v34  ;;  %v367_v40 = vunpack.c.l.b16 %v240_v35  ;;  %v368_v43 = vunpack.c.h.b16 %v240_v35  ;;  %v11721_v47 = vld [vmem:[#allocation2 + $0x330] sm:$0xf]  ;;  %v13872_v48 = vld [vmem:[#allocation2 + $0x334] sm:$0xf0] }
  0x52   : > { %1902 = vmatpush.bf16.msrb.mxu0 %v11602_v14  ;;  %v14776_v41 = vsel %vm393_vm0, %v448_v31, %v452_v33  ;;  %v469_v45 = vshll.u32 %v14771_v38, 16  ;;  %v11593_v49 = vld [vmem:[#allocation2 + $0x230] sm:$0xf]  ;;  %v11722_v51 = vor.u32 %v13872_v48, %v11721_v47  ;;  %v13840_v52 = vld [vmem:[#allocation2 + $0x234] sm:$0xf0]  ;;  %v467_v1 = vshrl.u32 %v14771_v38, 16 }
  0x53   : > { %1951 = vmatpush.bf16.msrb.mxu1 %v11666_v20  ;;  %v14779_v42 = vsel %vm393_vm0, %v460_v36, %v464_v37  ;;  %v383_v44 = vpack.c.b16 %v367_v40, %v367_v40  ;;  %v481_v46 = vshll.u32 %v14773_v39, 16  ;;  %v384_v50 = vpack.c.b16 %v368_v43, %v368_v43  ;;  %v11785_v53 = vld [vmem:[#allocation2 + $0x3b0] sm:$0xf]  ;;  %v13888_v54 = vld [vmem:[#allocation2 + $0x3b4] sm:$0xf0] }
  0x54   : > { %2000 = vmatpush.bf16.msrb.mxu2 %v11730_v8  ;;  %v11594_v55 = vor.u32 %v13840_v52, %v11593_v49  ;;  %v11786_v56 = vor.u32 %v13888_v54, %v11785_v53  ;;  %v11657_v57 = vld [vmem:[#allocation2 + $0x2b0] sm:$0xf]  ;;  %v13856_v58 = vld [vmem:[#allocation2 + $0x2b4] sm:$0xf0]  ;;  %v471_v2 = vrot.slane %v469_v45, 1  ;;  %v479_v3 = vshrl.u32 %v14773_v39, 16 }
  0x55   : > { %1716 = vmatmul.bf16.gmra.mxu0 %v14728_v13  ;;  %2049 = vmatpush.bf16.msrb.mxu3 %v11794_v17  ;;  %v474_v62 = vshll.u32 %v383_v44, 16  ;;  %v11658_v0 = vor.u32 %v13856_v58, %v11657_v57  ;;  %v483_v4 = vrot.slane %v481_v46, 1  ;;  %v486_v5 = vshll.u32 %v384_v50, 16  ;;  %v11217_v7 = vld [vmem:[%s14696_s7 + $0x60] sm:$0xf] }
  0x56   : > { %1765 = vmatmul.bf16.gmra.mxu1 %v14733_v16  ;;  %1903 = vmatpush.bf16.msrb.mxu0 %v11594_v55  ;;  %v13746_v8 = vld [vmem:[%s14696_s7 + $0x64] sm:$0xf0]  ;;  %v472_v9 = vor.u32 %v471_v2, %v467_v1  ;;  %v13745_v10 = vld [vmem:[%s14696_s7 + $0x64] sm:$0xf]  ;;  %v11219_v12 = vld [vmem:[%s14696_s7 + $0x68] sm:$0xf0] }
  0x57   : > { %1814 = vmatmul.bf16.gmra.mxu2 %v14753_v61  ;;  %1952 = vmatpush.bf16.msrb.mxu1 %v11658_v0  ;;  %v476_v6 = vrot.slane %v474_v62, 1  ;;  %v241_v14 = vld [vmem:[%s14696_s7 + $0x70] sm:$0x11]  ;;  %v484_v17 = vor.u32 %v483_v4, %v479_v3  ;;  %v488_v18 = vrot.slane %v486_v5, 1  ;;  %v14794_v19 = vor.u32 %v13746_v8, %v11217_v7  ;;  %v11713_v29 = vld [vmem:[#allocation2 + $0x320] sm:$0xf] }
  0x58   : > { %1863 = vmatmul.bf16.gmra.mxu3 %v14756_v63  ;;  %2001 = vmatpush.bf16.msrb.mxu2 %v11722_v51  ;;  %v14796_v20 = vor.u32 %v13745_v10, %v11219_v12  ;;  %v369_v21 = vunpack.c.l.b16 %v241_v14  ;;  %v370_v25 = vunpack.c.h.b16 %v241_v14  ;;  %v13870_v30 = vld [vmem:[#allocation2 + $0x324] sm:$0xf0]  ;;  %v11585_v31 = vld [vmem:[#allocation2 + $0x220] sm:$0xf]  ;;  %v11225_v54 = vld [vmem:[%s14696_s7 + $0x78] sm:$0xf] }
  0x59   : > { %2050 = vmatpush.bf16.msrb.mxu3 %v11786_v56  ;;  %v14799_v22 = vsel %vm393_vm0, %v472_v9, %v476_v6  ;;  %v14802_v23 = vsel %vm393_vm0, %v484_v17, %v488_v18  ;;  %v493_v27 = vshll.u32 %v14794_v19, 16  ;;  %v11714_v34 = vor.u32 %v13870_v30, %v11713_v29  ;;  %v13838_v35 = vld [vmem:[#allocation2 + $0x224] sm:$0xf0]  ;;  %v11777_v36 = vld [vmem:[#allocation2 + $0x3a0] sm:$0xf] }
  0x5a   : > { %v385_v26 = vpack.c.b16 %v369_v21, %v369_v21  ;;  %v505_v28 = vshll.u32 %v14796_v20, 16  ;;  %v386_v33 = vpack.c.b16 %v370_v25, %v370_v25  ;;  %v13886_v37 = vld [vmem:[#allocation2 + $0x3a4] sm:$0xf0]  ;;  %v11586_v40 = vor.u32 %v13838_v35, %v11585_v31  ;;  %v11649_v44 = vld [vmem:[#allocation2 + $0x2a0] sm:$0xf] }
  0x5b   : > { %v11778_v43 = vor.u32 %v13886_v37, %v11777_v36  ;;  %v13854_v45 = vld [vmem:[#allocation2 + $0x2a4] sm:$0xf0]  ;;  %v491_v48 = vshrl.u32 %v14794_v19, 16  ;;  %v495_v49 = vrot.slane %v493_v27, 1  ;;  %v503_v50 = vshrl.u32 %v14796_v20, 16 }
  0x5c   : > { %v498_v46 = vshll.u32 %v385_v26, 16  ;;  %2002 = vmatpush.bf16.msrb.mxu2 %v11714_v34  ;;  %v11650_v47 = vor.u32 %v13854_v45, %v11649_v44  ;;  %1904 = vmatpush.bf16.msrb.mxu0 %v11586_v40  ;;  %v507_v51 = vrot.slane %v505_v28, 1  ;;  %v510_v52 = vshll.u32 %v386_v33, 16  ;;  %v13748_v55 = vld [vmem:[%s14696_s7 + $0x7c] sm:$0xf0] }
  0x5d   : > { %2051 = vmatpush.bf16.msrb.mxu3 %v11778_v43  ;;  %v496_v56 = vor.u32 %v495_v49, %v491_v48  ;;  %v13747_v57 = vld [vmem:[%s14696_s7 + $0x7c] sm:$0xf]  ;;  %v11227_v58 = vld [vmem:[%s14696_s7 + $0x80] sm:$0xf0]  ;;  %v242_v62 = vld [vmem:[%s14696_s7 + $0x88] sm:$0x11]  ;;  %v14817_v2 = vor.u32 %v13748_v55, %v11225_v54 }
  0x5e   : > { %1953 = vmatpush.bf16.msrb.mxu1 %v11650_v47  ;;  %v500_v53 = vrot.slane %v498_v46, 1  ;;  %v508_v0 = vor.u32 %v507_v51, %v503_v50  ;;  %v512_v1 = vrot.slane %v510_v52, 1  ;;  %v14819_v3 = vor.u32 %v13747_v57, %v11227_v58  ;;  %v11705_v12 = vld [vmem:[#allocation2 + $0x310] sm:$0xf]  ;;  %v13868_v14 = vld [vmem:[#allocation2 + $0x314] sm:$0xf0] }
  0x5f   : > { %v371_v4 = vunpack.c.l.b16 %v242_v62  ;;  %v372_v7 = vunpack.c.h.b16 %v242_v62  ;;  %v517_v9 = vshll.u32 %v14817_v2, 16  ;;  %v11577_v17 = vld [vmem:[#allocation2 + $0x210] sm:$0xf]  ;;  %v11706_v21 = vor.u32 %v13868_v14, %v11705_v12  ;;  %v13836_v25 = vld [vmem:[#allocation2 + $0x214] sm:$0xf0] }
  0x60   : > { %v14822_v5 = vsel %vm393_vm0, %v496_v56, %v500_v53  ;;  %v14825_v6 = vsel %vm393_vm0, %v508_v0, %v512_v1  ;;  %v529_v10 = vshll.u32 %v14819_v3, 16  ;;  %v11769_v26 = vld [vmem:[#allocation2 + $0x390] sm:$0xf]  ;;  %v13884_v27 = vld [vmem:[#allocation2 + $0x394] sm:$0xf0]  ;;  %v11578_v28 = vor.u32 %v13836_v25, %v11577_v17 }
  0x61   : > { %v387_v8 = vpack.c.b16 %v371_v4, %v371_v4  ;;  %v388_v18 = vpack.c.b16 %v372_v7, %v372_v7  ;;  %v11770_v29 = vor.u32 %v13884_v27, %v11769_v26  ;;  %v11641_v30 = vld [vmem:[#allocation2 + $0x290] sm:$0xf]  ;;  %v13852_v31 = vld [vmem:[#allocation2 + $0x294] sm:$0xf0]  ;;  %2003 = vmatpush.bf16.msrb.mxu2 %v11706_v21  ;;  %v515_v35 = vshrl.u32 %v14817_v2, 16 }
  0x62   : > { %v11642_v34 = vor.u32 %v13852_v31, %v11641_v30  ;;  %v519_v36 = vrot.slane %v517_v9, 1  ;;  %1905 = vmatpush.bf16.msrb.mxu0 %v11578_v28  ;;  %v527_v37 = vshrl.u32 %v14819_v3, 16  ;;  %v531_v40 = vrot.slane %v529_v10, 1  ;;  %v11233_v45 = vld [vmem:[%s14696_s7 + $0x90] sm:$0xf] }
  0x63   : > { %v522_v33 = vshll.u32 %v387_v8, 16  ;;  %2052 = vmatpush.bf16.msrb.mxu3 %v11770_v29  ;;  %v534_v43 = vshll.u32 %v388_v18, 16  ;;  %v13750_v46 = vld [vmem:[%s14696_s7 + $0x94] sm:$0xf0]  ;;  %v13749_v48 = vld [vmem:[%s14696_s7 + $0x94] sm:$0xf] }
  0x64   : > { %1954 = vmatpush.bf16.msrb.mxu1 %v11642_v34  ;;  %v520_v47 = vor.u32 %v519_v36, %v515_v35  ;;  %v11235_v49 = vld [vmem:[%s14696_s7 + $0x98] sm:$0xf0]  ;;  %v243_v50 = vld [vmem:[%s14696_s7 + $0xa0] sm:$0x11]  ;;  %v532_v51 = vor.u32 %v531_v40, %v527_v37  ;;  %v14840_v53 = vor.u32 %v13750_v46, %v11233_v45  ;;  %v13866_v7 = vld [vmem:[#allocation2 + $0x304] sm:$0xf0] }
  0x65   : > { %1721 = vmatmul.bf16.gmra.mxu0 %v14748_v59  ;;  %v524_v44 = vrot.slane %v522_v33, 1  ;;  %v536_v52 = vrot.slane %v534_v43, 1  ;;  %v14842_v54 = vor.u32 %v13749_v48, %v11235_v49  ;;  %v373_v55 = vunpack.c.l.b16 %v243_v50  ;;  %v11697_v4 = vld [vmem:[#allocation2 + $0x300] sm:$0xf]  ;;  %v13834_v12 = vld [vmem:[#allocation2 + $0x204] sm:$0xf0] }
  0x66   : > { %1770 = vmatmul.bf16.gmra.mxu1 %v14750_v60  ;;  %18678 = vst [vmem:[#allocation14_spill] sm:$0xff] %v14840_v53  ;;  %v374_v58 = vunpack.c.h.b16 %v243_v50  ;;  %v541_v0 = vshll.u32 %v14840_v53, 16  ;;  %v11569_v8 = vld [vmem:[#allocation2 + $0x200] sm:$0xf]  ;;  %v11698_v10 = vor.u32 %v13866_v7, %v11697_v4  ;;  %v13882_v17 = vld [vmem:[#allocation2 + $0x384] sm:$0xf0] }
  0x67   : > { %1819 = vmatmul.bf16.gmra.mxu2 %v14776_v41  ;;  %18679 = vst [vmem:[#allocation15_spill] sm:$0xff] %v14842_v54  ;;  %v14845_v56 = vsel %vm393_vm0, %v520_v47, %v524_v44  ;;  %v14848_v57 = vsel %vm393_vm0, %v532_v51, %v536_v52  ;;  %v389_v62 = vpack.c.b16 %v373_v55, %v373_v55  ;;  %v553_v1 = vshll.u32 %v14842_v54, 16  ;;  %v11761_v14 = vld [vmem:[#allocation2 + $0x380] sm:$0xf]  ;;  %v13850_v26 = vld [vmem:[#allocation2 + $0x284] sm:$0xf0] }
  0x68   : > { %1868 = vmatmul.bf16.gmra.mxu3 %v14779_v42  ;;  %18680 = vst [vmem:[#allocation16_spill] sm:$0xff] %v14848_v57  ;;  %v390_v9 = vpack.c.b16 %v374_v58, %v374_v58  ;;  %v11570_v18 = vor.u32 %v13834_v12, %v11569_v8  ;;  %v11762_v21 = vor.u32 %v13882_v17, %v11761_v14  ;;  %v11633_v25 = vld [vmem:[#allocation2 + $0x280] sm:$0xf]  ;;  %v539_v29 = vshrl.u32 %v14840_v53, 16  ;;  %v11241_v36 = vld [vmem:[%s14696_s7 + $0xa8] sm:$0xf] }
  0x69   : > { %v546_v27 = vshll.u32 %v389_v62, 16  ;;  %2004 = vmatpush.bf16.msrb.mxu2 %v11698_v10  ;;  %v11634_v28 = vor.u32 %v13850_v26, %v11633_v25  ;;  %v543_v30 = vrot.slane %v541_v0, 1  ;;  %v551_v31 = vshrl.u32 %v14842_v54, 16  ;;  %v13752_v37 = vld [vmem:[%s14696_s7 + $0xac] sm:$0xf0] }
  0x6a   : > { %1906 = vmatpush.bf16.msrb.mxu0 %v11570_v18  ;;  %2053 = vmatpush.bf16.msrb.mxu3 %v11762_v21  ;;  %v555_v33 = vrot.slane %v553_v1, 1  ;;  %v558_v34 = vshll.u32 %v390_v9, 16  ;;  %v13751_v43 = vld [vmem:[%s14696_s7 + $0xac] sm:$0xf]  ;;  %v11243_v44 = vld [vmem:[%s14696_s7 + $0xb0] sm:$0xf0]  ;;  %v14863_v48 = vor.u32 %v13752_v37, %v11241_v36 }
  0x6b   : > { %1955 = vmatpush.bf16.msrb.mxu1 %v11634_v28  ;;  %v548_v35 = vrot.slane %v546_v27, 1  ;;  %v544_v40 = vor.u32 %v543_v30, %v539_v29  ;;  %v244_v45 = vld [vmem:[%s14696_s7 + $0xb8] sm:$0x11]  ;;  %v14865_v49 = vor.u32 %v13751_v43, %v11243_v44  ;;  %v13815_v1 = vld [vmem:[#allocation2 + $0x174] sm:$0xf] }
  0x6c   : > { %v556_v46 = vor.u32 %v555_v33, %v551_v31  ;;  %v560_v47 = vrot.slane %v558_v34, 1  ;;  %18681 = vst [vmem:[#allocation17_spill] sm:$0xff] %v14863_v48  ;;  %v375_v50 = vunpack.c.l.b16 %v244_v45  ;;  %v376_v55 = vunpack.c.h.b16 %v244_v45  ;;  %v11499_v4 = vld [vmem:[#allocation2 + $0x178] sm:$0xf0]  ;;  %v13783_v7 = vld [vmem:[#allocation2 + $0x74] sm:$0xf] }
  0x6d   : > { %18682 = vst [vmem:[#allocation18_spill] sm:$0xff] %v14865_v49  ;;  %v14868_v51 = vsel %vm393_vm0, %v544_v40, %v548_v35  ;;  %v565_v62 = vshll.u32 %v14863_v48, 16  ;;  %v577_v0 = vshll.u32 %v14865_v49, 16  ;;  %v11502_v9 = vor.u32 %v13815_v1, %v11499_v4  ;;  %v11371_v10 = vld [vmem:[#allocation2 + $0x78] sm:$0xf0] }
  0x6e   : > { %18683 = vst [vmem:[#allocation19_spill] sm:$0xff] %v14868_v51  ;;  %v14871_v52 = vsel %vm393_vm0, %v556_v46, %v560_v47  ;;  %v391_v58 = vpack.c.b16 %v375_v50, %v375_v50  ;;  %v392_v8 = vpack.c.b16 %v376_v55, %v376_v55  ;;  %v13831_v12 = vld [vmem:[#allocation2 + $0x1f4] sm:$0xf]  ;;  %v11563_v14 = vld [vmem:[#allocation2 + $0x1f8] sm:$0xf0]  ;;  %v11374_v17 = vor.u32 %v13783_v7, %v11371_v10 }
  0x6f   : > { %18684 = vst [vmem:[#allocation20_spill] sm:$0xff] %v14871_v52  ;;  %v11566_v18 = vor.u32 %v13831_v12, %v11563_v14  ;;  %2193 = vmatpush.bf16.msra.mxu2 %v11502_v9  ;;  %v563_v25 = vshrl.u32 %v14863_v48, 16  ;;  %v567_v26 = vrot.slane %v565_v62, 1  ;;  %v575_v27 = vshrl.u32 %v14865_v49, 16  ;;  %v13799_v30 = vld [vmem:[#allocation2 + $0xf4] sm:$0xf] }
  0x70   : > { %v570_v21 = vshll.u32 %v391_v58, 16  ;;  %2095 = vmatpush.bf16.msra.mxu0 %v11374_v17  ;;  %v579_v28 = vrot.slane %v577_v0, 1  ;;  %v582_v29 = vshll.u32 %v392_v8, 16  ;;  %v11435_v31 = vld [vmem:[#allocation2 + $0xf8] sm:$0xf0] }
  0x71   : > { %2242 = vmatpush.bf16.msra.mxu3 %v11566_v18  ;;  %v11438_v33 = vor.u32 %v13799_v30, %v11435_v31  ;;  %v11249_v35 = vld [vmem:[%s14696_s7 + $0x18] sm:$0xf]  ;;  %v13754_v36 = vld [vmem:[%s14696_s7 + $0x1c] sm:$0xf0]  ;;  %v568_v37 = vor.u32 %v567_v26, %v563_v25  ;;  %v13753_v40 = vld [vmem:[%s14696_s7 + $0x1c] sm:$0xf] }
  0x72   : > { %v572_v34 = vrot.slane %v570_v21, 1  ;;  %v11251_v43 = vld [vmem:[%s14696_s7 + $0x20] sm:$0xf0]  ;;  %v11175_v44 = vld [vmem:[%s14696_s7 + $0x28] sm:$0x11]  ;;  %v580_v45 = vor.u32 %v579_v28, %v575_v27  ;;  %v584_v46 = vrot.slane %v582_v29, 1  ;;  %v14886_v47 = vor.u32 %v13754_v36, %v11249_v35 }
  0x73   : > { %2144 = vmatpush.bf16.msra.mxu1 %v11438_v33  ;;  %v14888_v50 = vor.u32 %v13753_v40, %v11251_v43  ;;  %v690_v55 = vunpack.c.l.b16 %v11175_v44  ;;  %v691_v0 = vunpack.c.h.b16 %v11175_v44  ;;  %v13813_v8 = vld [vmem:[#allocation2 + $0x164] sm:$0xf]  ;;  %v11491_v9 = vld [vmem:[#allocation2 + $0x168] sm:$0xf0]  ;;  %v217_v28 = vld [vmem:[#allocation5] sm:$0x3] }
  0x74   : > { %18685 = vst [vmem:[#allocation21_spill] sm:$0xff] %v14886_v47  ;;  %v14891_v58 = vsel %vm393_vm0, %v568_v37, %v572_v34  ;;  %v14894_v62 = vsel %vm393_vm0, %v580_v45, %v584_v46  ;;  %v725_v4 = vshll.u32 %v14886_v47, 16  ;;  %v13781_v10 = vld [vmem:[#allocation2 + $0x64] sm:$0xf]  ;;  %v11494_v14 = vor.u32 %v13813_v8, %v11491_v9  ;;  %v11363_v17 = vld [vmem:[#allocation2 + $0x68] sm:$0xf0] }
  0x75   : > { %1726 = vmatmul.bf16.gmra.mxu0 %v14771_v38  ;;  %18686 = vst [vmem:[#allocation22_spill] sm:$0xff] %v14888_v50  ;;  %v706_v1 = vpack.c.b16 %v690_v55, %v690_v55  ;;  %v737_v7 = vshll.u32 %v14888_v50, 16  ;;  %v707_v12 = vpack.c.b16 %v691_v0, %v691_v0  ;;  %v13829_v18 = vld [vmem:[#allocation2 + $0x1e4] sm:$0xf]  ;;  %v11555_v21 = vld [vmem:[#allocation2 + $0x1e8] sm:$0xf0]  ;;  %v11366_v25 = vor.u32 %v13781_v10, %v11363_v17 }
  0x76   : > { %1775 = vmatmul.bf16.gmra.mxu1 %v14773_v39  ;;  %18687 = vst [vmem:[#allocation23_spill] sm:$0xff] %v14891_v58  ;;  %v11558_v26 = vor.u32 %v13829_v18, %v11555_v21  ;;  %2194 = vmatpush.bf16.msra.mxu2 %v11494_v14  ;;  %v723_v29 = vshrl.u32 %v14886_v47, 16  ;;  %v727_v30 = vrot.slane %v725_v4, 1  ;;  %v735_v31 = vshrl.u32 %v14888_v50, 16  ;;  %v13797_v35 = vld [vmem:[#allocation2 + $0xe4] sm:$0xf] }
  0x77   : > { %1824 = vmatmul.bf16.gmra.mxu2 %v14799_v22  ;;  %18688 = vst [vmem:[#allocation24_spill] sm:$0xff] %v14894_v62  ;;  %v730_v27 = vshll.u32 %v706_v1, 16  ;;  %2096 = vmatpush.bf16.msra.mxu0 %v11366_v25  ;;  %v739_v33 = vrot.slane %v737_v7, 1  ;;  %v742_v34 = vshll.u32 %v707_v12, 16  ;;  %v11427_v36 = vld [vmem:[#allocation2 + $0xe8] sm:$0xf0] }
  0x78   : > { %1873 = vmatmul.bf16.gmra.mxu3 %v14802_v23  ;;  %v11430_v37 = vor.u32 %v13797_v35, %v11427_v36  ;;  %v14904_v40 = vperm.slane %v217_v28, 0  ;;  %v11257_v44 = vld [vmem:[%s14696_s7 + $0x30] sm:$0xf]  ;;  %v13756_v45 = vld [vmem:[%s14696_s7 + $0x34] sm:$0xf0]  ;;  %v728_v46 = vor.u32 %v727_v30, %v723_v29 }
  0x79   : > { %2243 = vmatpush.bf16.msra.mxu3 %v11558_v26  ;;  %v732_v43 = vrot.slane %v730_v27, 1  ;;  %v13755_v55 = vld [vmem:[%s14696_s7 + $0x34] sm:$0xf]  ;;  %v11259_v0 = vld [vmem:[%s14696_s7 + $0x38] sm:$0xf0]  ;;  %v740_v4 = vor.u32 %v739_v33, %v735_v31  ;;  %v744_v8 = vrot.slane %v742_v34, 1  ;;  %v14911_v10 = vor.u32 %v13756_v45, %v11257_v44 }
  0x7a   : > { %v11176_v1 = vld [vmem:[%s14696_s7 + $0x40] sm:$0x11]  ;;  %2145 = vmatpush.bf16.msra.mxu1 %v11430_v37  ;;  %v14913_v7 = vor.u32 %v13755_v55, %v11259_v0  ;;  %v13811_v30 = vld [vmem:[#allocation2 + $0x154] sm:$0xf]  ;;  %v11483_v31 = vld [vmem:[#allocation2 + $0x158] sm:$0xf0] }
  0x7b   : > { %18689 = vst [vmem:[#allocation25_spill] sm:$0xff] %v14911_v10  ;;  %v692_v12 = vunpack.c.l.b16 %v11176_v1  ;;  %v14917_v18 = vsel %vm393_vm0, %v728_v46, %v732_v43  ;;  %v14920_v21 = vsel %vm393_vm0, %v740_v4, %v744_v8  ;;  %v693_v25 = vunpack.c.h.b16 %v11176_v1  ;;  %v13779_v33 = vld [vmem:[#allocation2 + $0x54] sm:$0xf]  ;;  %v11355_v36 = vld [vmem:[#allocation2 + $0x58] sm:$0xf0] }
  0x7c   : > { %18690 = vst [vmem:[#allocation26_spill] sm:$0xff] %v14913_v7  ;;  %v749_v28 = vshll.u32 %v14911_v10, 16  ;;  %v761_v29 = vshll.u32 %v14913_v7, 16  ;;  %v11486_v35 = vor.u32 %v13811_v30, %v11483_v31  ;;  %v13827_v37 = vld [vmem:[#allocation2 + $0x1d4] sm:$0xf]  ;;  %v11358_v45 = vor.u32 %v13779_v33, %v11355_v36 }
  0x7d   : > { %18691 = vst [vmem:[#allocation27_spill] sm:$0xff] %v14917_v18  ;;  %v708_v27 = vpack.c.b16 %v692_v12, %v692_v12  ;;  %v709_v34 = vpack.c.b16 %v693_v25, %v693_v25  ;;  %v11547_v43 = vld [vmem:[#allocation2 + $0x1d8] sm:$0xf0]  ;;  %v747_v12 = vshrl.u32 %v14911_v10, 16  ;;  %v13795_v30 = vld [vmem:[#allocation2 + $0xd4] sm:$0xf] }
  0x7e   : > { %18692 = vst [vmem:[#allocation28_spill] sm:$0xff] %v14920_v21  ;;  %v11550_v46 = vor.u32 %v13827_v37, %v11547_v43  ;;  %2195 = vmatpush.bf16.msra.mxu2 %v11486_v35  ;;  %2097 = vmatpush.bf16.msra.mxu0 %v11358_v45  ;;  %v11419_v31 = vld [vmem:[#allocation2 + $0xd8] sm:$0xf0]  ;;  %v11265_v37 = vld [vmem:[%s14696_s7 + $0x48] sm:$0xf] }
  0x7f   : > { %v754_v4 = vshll.u32 %v708_v27, 16  ;;  %v766_v27 = vshll.u32 %v709_v34, 16  ;;  %v11422_v35 = vor.u32 %v13795_v30, %v11419_v31  ;;  %v13758_v43 = vld [vmem:[%s14696_s7 + $0x4c] sm:$0xf0] }
  0x80   : > { %2244 = vmatpush.bf16.msra.mxu3 %v11550_v46 }
  0x81   : > { %v756_v36 = vrot.slane %v754_v4, 1  ;;  %2146 = vmatpush.bf16.msra.mxu1 %v11422_v35  ;;  %v13809_v35 = vld [vmem:[#allocation2 + $0x144] sm:$0xf] }
  0x85   : > { %1731 = vmatmul.bf16.gmra.mxu0 %v14794_v19 }
  0x86   : > { %1780 = vmatmul.bf16.gmra.mxu1 %v14796_v20 }
  0x87   : > { %1829 = vmatmul.bf16.gmra.mxu2 %v14822_v5 }
  0x88   : > { %1878 = vmatmul.bf16.gmra.mxu3 %v14825_v6 }
  0x95   : > { %1736 = vmatmul.bf16.gmra.mxu0 %v14817_v2 }
  0x96   : > { %1785 = vmatmul.bf16.gmra.mxu1 %v14819_v3 }
  0x97   : > { %1834 = vmatmul.bf16.gmra.mxu2 %v14845_v56 }
  0x98   : > { %1883 = vmatmul.bf16.gmra.mxu3 %v14848_v57 }
  0xa5   : > { %1741 = vmatmul.bf16.gmra.mxu0 %v14840_v53 }
  0xa6   : > { %1790 = vmatmul.bf16.gmra.mxu1 %v14842_v54 }
  0xa7   : > { %1839 = vmatmul.bf16.gmra.mxu2 %v14868_v51 }
  0xa8   : > { %1888 = vmatmul.bf16.gmra.mxu3 %v14871_v52 }
  0xb5   : > { %1746 = vmatmul.bf16.gmra.mxu0 %v14863_v48 }
  0xb6   : > { %1795 = vmatmul.bf16.gmra.mxu1 %v14865_v49 }
  0xb7   : > { %1844 = vmatmul.bf16.gmra.mxu2 %v14891_v58 }
  0xb8   : > { %1893 = vmatmul.bf16.gmra.mxu3 %v14894_v62 }
  0xc2   : > { %v1712_v9 = vpop.f32.mrf.mxu0 }
  0xc3   : > { %v1713_v14 = vadd.f32 %v1712_v9, %v14904_v40  ;;  %v1761_v17 = vpop.f32.mrf.mxu1 }
  0xc5   : > { %v1762_v26 = vadd.f32 %v1761_v17, %v1713_v14  ;;  %1907 = vmatmul.bf16.vlgmr.msrb.gmra.mxu0 %v14886_v47  ;;  %v751_v14 = vrot.slane %v749_v28, 1  ;;  %v759_v17 = vshrl.u32 %v14913_v7, 16  ;;  %v11267_v28 = vld [vmem:[%s14696_s7 + $0x50] sm:$0xf0] }
  0xc6   : > { %1956 = vmatmul.bf16.vlgmr.msrb.gmra.mxu1 %v14888_v50  ;;  %v768_v50 = vrot.slane %v766_v27, 1 }
  0xc7   : > { %2005 = vmatmul.bf16.vlgmr.msrb.gmra.mxu2 %v14917_v18 }
  0xc8   : > { %2054 = vmatmul.bf16.vlgmr.msrb.gmra.mxu3 %v14920_v21  ;;  %v11177_v21 = vld [vmem:[%s14696_s7 + $0x58] sm:$0x11] }
  0xca   : > { %v1810_v44 = vpop.f32.mrf.mxu2  ;;  %v1714_v1 = vpop.f32.mrf.mxu0 }
  0xcb   : > { %v1811_v55 = vadd.f32 %v1810_v44, %v1762_v26  ;;  %v1859_v0 = vpop.f32.mrf.mxu3  ;;  %v1715_v8 = vadd.f32 %v1714_v1, %v14904_v40  ;;  %v1763_v9 = vpop.f32.mrf.mxu1  ;;  %v763_v26 = vrot.slane %v761_v29, 1  ;;  %v752_v44 = vor.u32 %v751_v14, %v747_v12  ;;  %v13757_v1 = vld [vmem:[%s14696_s7 + $0x4c] sm:$0xf] }
  0xcc   : > { %v14938_v29 = vor.u32 %v13758_v43, %v11265_v37  ;;  %v14940_v34 = vor.u32 %v13757_v1, %v11267_v28  ;;  %v13777_v37 = vld [vmem:[#allocation2 + $0x44] sm:$0xf] }
  0xcd   : > { %v14931_v25 = vadd.f32 %v1859_v0, %v1811_v55  ;;  %v1764_v33 = vadd.f32 %v1763_v9, %v1715_v8  ;;  %v764_v18 = vor.u32 %v763_v26, %v759_v17  ;;  %v694_v8 = vunpack.c.l.b16 %v11177_v21  ;;  %v13825_v43 = vld [vmem:[#allocation2 + $0x1c4] sm:$0xf] }
  0xce   : > { %18693 = vst [vmem:[#allocation29_spill] sm:$0xff] %v14938_v29  ;;  %v14944_v12 = vsel %vm393_vm0, %v752_v44, %v756_v36  ;;  %v695_v26 = vunpack.c.h.b16 %v11177_v21  ;;  %v773_v31 = vshll.u32 %v14938_v29, 16  ;;  %v11475_v36 = vld [vmem:[#allocation2 + $0x148] sm:$0xf0] }
  0xcf   : > { %18694 = vst [vmem:[#allocation30_spill] sm:$0xff] %v14940_v34  ;;  %v14949_v17 = vsel %vm393_vm0, %v764_v18, %v768_v50  ;;  %v710_v30 = vpack.c.b16 %v694_v8, %v694_v8  ;;  %v11478_v18 = vor.u32 %v13809_v35, %v11475_v36  ;;  %v11347_v21 = vld [vmem:[#allocation2 + $0x48] sm:$0xf0]  ;;  %v783_v35 = vshrl.u32 %v14940_v34, 16 }
  0xd0   : > { %18695 = vst [vmem:[#allocation31_spill] sm:$0xff] %v14944_v12  ;;  %v711_v50 = vpack.c.b16 %v695_v26, %v695_v26  ;;  %v11539_v44 = vld [vmem:[#allocation2 + $0x1c8] sm:$0xf0]  ;;  %v11350_v28 = vor.u32 %v13777_v37, %v11347_v21  ;;  %v775_v26 = vrot.slane %v773_v31, 1  ;;  %v13793_v37 = vld [vmem:[#allocation2 + $0xc4] sm:$0xf] }
  0xd1   : > { %18696 = vst [vmem:[#allocation32_spill] sm:$0xff] %v14949_v17  ;;  %v778_v8 = vshll.u32 %v710_v30, 16  ;;  %2196 = vmatpush.bf16.msra.mxu2 %v11478_v18  ;;  %v11411_v18 = vld [vmem:[#allocation2 + $0xc8] sm:$0xf0] }
  0xd2   : > { %v1812_v45 = vpop.f32.mrf.mxu2  ;;  %v1717_v0 = vpop.f32.mrf.mxu0  ;;  %2098 = vmatpush.bf16.msra.mxu0 %v11350_v28  ;;  %v790_v30 = vshll.u32 %v711_v50, 16  ;;  %v11275_v31 = vld [vmem:[%s14696_s7 + $0x68] sm:$0xf0] }
  0xd3   : > { %v1813_v46 = vadd.f32 %v1812_v45, %v1764_v33  ;;  %v1861_v55 = vpop.f32.mrf.mxu3  ;;  %v1718_v4 = vadd.f32 %v1717_v0, %v14904_v40  ;;  %v1766_v9 = vpop.f32.mrf.mxu1  ;;  %v785_v33 = vshll.u32 %v14940_v34, 16  ;;  %v11542_v45 = vor.u32 %v13825_v43, %v11539_v44 }
  0xd4   : > { %v11414_v43 = vor.u32 %v13793_v37, %v11411_v18  ;;  %v780_v44 = vrot.slane %v778_v8, 1  ;;  %v792_v62 = vrot.slane %v790_v30, 1 }
  0xd5   : > { %v14946_v14 = vadd.f32 %v1861_v55, %v1813_v46  ;;  %v1767_v27 = vadd.f32 %v1766_v9, %v1718_v4  ;;  %1912 = vmatmul.bf16.gmra.mxu0 %v14911_v10  ;;  %2245 = vmatpush.bf16.msra.mxu3 %v11542_v45  ;;  %v787_v36 = vrot.slane %v785_v33, 1  ;;  %v11178_v10 = vld [vmem:[%s14696_s7 + $0x70] sm:$0x11] }
  0xd6   : > { %1961 = vmatmul.bf16.gmra.mxu1 %v14913_v7  ;;  %v13759_v7 = vld [vmem:[%s14696_s7 + $0x64] sm:$0xf] }
  0xd7   : > { %2010 = vmatmul.bf16.gmra.mxu2 %v14944_v12  ;;  %2147 = vmatpush.bf16.msra.mxu1 %v11414_v43  ;;  %v788_v47 = vor.u32 %v787_v36, %v783_v35  ;;  %v14969_v50 = vor.u32 %v13759_v7, %v11275_v31  ;;  %v697_v36 = vunpack.c.h.b16 %v11178_v10  ;;  %v13775_v43 = vld [vmem:[#allocation2 + $0x34] sm:$0xf] }
  0xd8   : > { %2059 = vmatmul.bf16.gmra.mxu3 %v14949_v17  ;;  %v771_v17 = vshrl.u32 %v14938_v29, 16 }
  0xd9   : > { %18698 = vst [vmem:[#allocation34_spill] sm:$0xff] %v14969_v50  ;;  %v14978_v35 = vsel %vm393_vm0, %v788_v47, %v792_v62  ;;  %v809_v18 = vshll.u32 %v14969_v50, 16  ;;  %v713_v47 = vpack.c.b16 %v697_v36, %v697_v36 }
  0xda   : > { %v1815_v1 = vpop.f32.mrf.mxu2  ;;  %v1719_v0 = vpop.f32.mrf.mxu0  ;;  %v776_v12 = vor.u32 %v775_v26, %v771_v17  ;;  %18700 = vst [vmem:[#allocation36_spill] sm:$0xff] %v14978_v35 }
  0xdb   : > { %v1816_v46 = vadd.f32 %v1815_v1, %v1767_v27  ;;  %v1864_v55 = vpop.f32.mrf.mxu3  ;;  %v1720_v4 = vadd.f32 %v1719_v0, %v14904_v40  ;;  %v1768_v9 = vpop.f32.mrf.mxu1  ;;  %v11273_v1 = vld [vmem:[%s14696_s7 + $0x60] sm:$0xf]  ;;  %v13760_v0 = vld [vmem:[%s14696_s7 + $0x64] sm:$0xf0] }
  0xdc   : > { %v14967_v33 = vor.u32 %v13760_v0, %v11273_v1  ;;  %v14973_v17 = vsel %vm393_vm0, %v776_v12, %v780_v44  ;;  %v13807_v12 = vld [vmem:[#allocation2 + $0x134] sm:$0xf]  ;;  %v11531_v1 = vld [vmem:[#allocation2 + $0x1b8] sm:$0xf0] }
  0xdd   : > { %v14960_v27 = vadd.f32 %v1864_v55, %v1816_v46  ;;  %v1769_v21 = vadd.f32 %v1768_v9, %v1720_v4  ;;  %v696_v4 = vunpack.c.l.b16 %v11178_v10  ;;  %18699 = vst [vmem:[#allocation35_spill] sm:$0xff] %v14973_v17  ;;  %v11339_v10 = vld [vmem:[#allocation2 + $0x38] sm:$0xf0]  ;;  %v13823_v44 = vld [vmem:[#allocation2 + $0x1b4] sm:$0xf] }
  0xde   : > { %18697 = vst [vmem:[#allocation33_spill] sm:$0xff] %v14967_v33  ;;  %v797_v37 = vshll.u32 %v14967_v33, 16  ;;  %v11342_v31 = vor.u32 %v13775_v43, %v11339_v10  ;;  %v13791_v43 = vld [vmem:[#allocation2 + $0xb4] sm:$0xf] }
  0xdf   : > { %v712_v7 = vpack.c.b16 %v696_v4, %v696_v4 }
  0xe0   : > { %v799_v36 = vrot.slane %v797_v37, 1  ;;  %2099 = vmatpush.bf16.msra.mxu0 %v11342_v31  ;;  %v11283_v37 = vld [vmem:[%s14696_s7 + $0x80] sm:$0xf0] }
  0xe1   : > { %v802_v4 = vshll.u32 %v712_v7, 16  ;;  %v814_v7 = vshll.u32 %v713_v47, 16 }
  0xe2   : > { %v1817_v28 = vpop.f32.mrf.mxu2  ;;  %v1722_v55 = vpop.f32.mrf.mxu0 }
  0xe3   : > { %v1818_v45 = vadd.f32 %v1817_v28, %v1769_v21  ;;  %v1866_v46 = vpop.f32.mrf.mxu3  ;;  %v1723_v8 = vadd.f32 %v1722_v55, %v14904_v40  ;;  %v1771_v9 = vpop.f32.mrf.mxu1  ;;  %v11467_v21 = vld [vmem:[#allocation2 + $0x138] sm:$0xf0]  ;;  %v11534_v28 = vor.u32 %v13823_v44, %v11531_v1  ;;  %v804_v1 = vrot.slane %v802_v4, 1 }
  0xe4   : > { %v11470_v62 = vor.u32 %v13807_v12, %v11467_v21  ;;  %v807_v12 = vshrl.u32 %v14969_v50, 16  ;;  %v811_v21 = vrot.slane %v809_v18, 1  ;;  %v816_v49 = vrot.slane %v814_v7, 1 }
  0xe5   : > { %v14975_v26 = vadd.f32 %v1866_v46, %v1818_v45  ;;  %v1772_v30 = vadd.f32 %v1771_v9, %v1723_v8  ;;  %1917 = vmatmul.bf16.gmra.mxu0 %v14938_v29  ;;  %2246 = vmatpush.bf16.msra.mxu3 %v11534_v28  ;;  %v11179_v29 = vld [vmem:[%s14696_s7 + $0x88] sm:$0x11] }
  0xe6   : > { %1966 = vmatmul.bf16.gmra.mxu1 %v14940_v34  ;;  %2197 = vmatpush.bf16.msra.mxu2 %v11470_v62  ;;  %v11403_v62 = vld [vmem:[#allocation2 + $0xb8] sm:$0xf0]  ;;  %v812_v58 = vor.u32 %v811_v21, %v807_v12  ;;  %v699_v21 = vunpack.c.h.b16 %v11179_v29 }
  0xe7   : > { %2015 = vmatmul.bf16.gmra.mxu2 %v14973_v17  ;;  %v11406_v44 = vor.u32 %v13791_v43, %v11403_v62  ;;  %v13761_v34 = vld [vmem:[%s14696_s7 + $0x7c] sm:$0xf] }
  0xe8   : > { %2064 = vmatmul.bf16.gmra.mxu3 %v14978_v35  ;;  %v795_v35 = vshrl.u32 %v14967_v33, 16  ;;  %v14998_v47 = vor.u32 %v13761_v34, %v11283_v37  ;;  %v15007_v12 = vsel %vm393_vm0, %v812_v58, %v816_v49  ;;  %v715_v49 = vpack.c.b16 %v699_v21, %v699_v21 }
  0xe9   : > { %2148 = vmatpush.bf16.msra.mxu1 %v11406_v44  ;;  %18704 = vst [vmem:[#allocation40_spill] sm:$0xff] %v15007_v12  ;;  %v13773_v44 = vld [vmem:[#allocation2 + $0x24] sm:$0xf] }
  0xea   : > { %v1820_v0 = vpop.f32.mrf.mxu2  ;;  %v1724_v55 = vpop.f32.mrf.mxu0  ;;  %v800_v17 = vor.u32 %v799_v36, %v795_v35  ;;  %18702 = vst [vmem:[#allocation38_spill] sm:$0xff] %v14998_v47  ;;  %v833_v62 = vshll.u32 %v14998_v47, 16 }
  0xeb   : > { %v1821_v45 = vadd.f32 %v1820_v0, %v1772_v30  ;;  %v1869_v46 = vpop.f32.mrf.mxu3  ;;  %v1725_v8 = vadd.f32 %v1724_v55, %v14904_v40  ;;  %v1773_v9 = vpop.f32.mrf.mxu1  ;;  %v11281_v0 = vld [vmem:[%s14696_s7 + $0x78] sm:$0xf]  ;;  %v13762_v55 = vld [vmem:[%s14696_s7 + $0x7c] sm:$0xf0] }
  0xec   : > { %v14996_v18 = vor.u32 %v13762_v55, %v11281_v0  ;;  %v15002_v35 = vsel %vm393_vm0, %v800_v17, %v804_v1  ;;  %v13805_v17 = vld [vmem:[#allocation2 + $0x124] sm:$0xf]  ;;  %v11523_v0 = vld [vmem:[#allocation2 + $0x1a8] sm:$0xf0] }
  0xed   : > { %v14989_v30 = vadd.f32 %v1869_v46, %v1821_v45  ;;  %v1774_v10 = vadd.f32 %v1773_v9, %v1725_v8  ;;  %v698_v8 = vunpack.c.l.b16 %v11179_v29  ;;  %18703 = vst [vmem:[#allocation39_spill] sm:$0xff] %v15002_v35  ;;  %v11331_v29 = vld [vmem:[#allocation2 + $0x28] sm:$0xf0]  ;;  %v13821_v1 = vld [vmem:[#allocation2 + $0x1a4] sm:$0xf] }
  0xee   : > { %18701 = vst [vmem:[#allocation37_spill] sm:$0xff] %v14996_v18  ;;  %v821_v43 = vshll.u32 %v14996_v18, 16  ;;  %v11334_v37 = vor.u32 %v13773_v44, %v11331_v29  ;;  %v13789_v44 = vld [vmem:[#allocation2 + $0xa4] sm:$0xf] }
  0xef   : > { %v714_v34 = vpack.c.b16 %v698_v8, %v698_v8 }
  0xf0   : > { %v823_v21 = vrot.slane %v821_v43, 1  ;;  %2100 = vmatpush.bf16.msra.mxu0 %v11334_v37  ;;  %v11291_v43 = vld [vmem:[%s14696_s7 + $0x98] sm:$0xf0] }
  0xf1   : > { %v826_v8 = vshll.u32 %v714_v34, 16  ;;  %v838_v34 = vshll.u32 %v715_v49, 16 }
  0xf2   : > { %v1822_v31 = vpop.f32.mrf.mxu2  ;;  %v1727_v46 = vpop.f32.mrf.mxu0 }
  0xf3   : > { %v1823_v28 = vadd.f32 %v1822_v31, %v1774_v10  ;;  %v1871_v45 = vpop.f32.mrf.mxu3  ;;  %v1728_v4 = vadd.f32 %v1727_v46, %v14904_v40  ;;  %v1776_v9 = vpop.f32.mrf.mxu1  ;;  %v11459_v10 = vld [vmem:[#allocation2 + $0x128] sm:$0xf0]  ;;  %v11526_v31 = vor.u32 %v13821_v1, %v11523_v0  ;;  %v828_v0 = vrot.slane %v826_v8, 1 }
  0xf4   : > { %v11462_v58 = vor.u32 %v13805_v17, %v11459_v10  ;;  %v831_v17 = vshrl.u32 %v14998_v47, 16  ;;  %v835_v10 = vrot.slane %v833_v62, 1  ;;  %v840_v52 = vrot.slane %v838_v34, 1 }
  0xf5   : > { %v15004_v36 = vadd.f32 %v1871_v45, %v1823_v28  ;;  %v1777_v7 = vadd.f32 %v1776_v9, %v1728_v4  ;;  %1922 = vmatmul.bf16.gmra.mxu0 %v14967_v33  ;;  %2247 = vmatpush.bf16.msra.mxu3 %v11526_v31  ;;  %v11180_v33 = vld [vmem:[%s14696_s7 + $0xa0] sm:$0x11] }
  0xf6   : > { %1971 = vmatmul.bf16.gmra.mxu1 %v14969_v50  ;;  %2198 = vmatpush.bf16.msra.mxu2 %v11462_v58  ;;  %v11395_v58 = vld [vmem:[#allocation2 + $0xa8] sm:$0xf0]  ;;  %v13763_v50 = vld [vmem:[%s14696_s7 + $0x94] sm:$0xf]  ;;  %v836_v48 = vor.u32 %v835_v10, %v831_v17  ;;  %v701_v10 = vunpack.c.h.b16 %v11180_v33 }
  0xf7   : > { %2020 = vmatmul.bf16.gmra.mxu2 %v15002_v35  ;;  %v11398_v1 = vor.u32 %v13789_v44, %v11395_v58  ;;  %v15027_v49 = vor.u32 %v13763_v50, %v11291_v43 }
  0xf8   : > { %2069 = vmatmul.bf16.gmra.mxu3 %v15007_v12  ;;  %v819_v12 = vshrl.u32 %v14996_v18, 16  ;;  %v15036_v17 = vsel %vm393_vm0, %v836_v48, %v840_v52  ;;  %v717_v48 = vpack.c.b16 %v701_v10, %v701_v10 }
  0xf9   : > { %2149 = vmatpush.bf16.msra.mxu1 %v11398_v1  ;;  %18706 = vst [vmem:[#allocation42_spill] sm:$0xff] %v15027_v49  ;;  %v857_v58 = vshll.u32 %v15027_v49, 16  ;;  %v13771_v1 = vld [vmem:[#allocation2 + $0x14] sm:$0xf] }
  0xfa   : > { %v1825_v55 = vpop.f32.mrf.mxu2  ;;  %v1729_v46 = vpop.f32.mrf.mxu0  ;;  %v824_v35 = vor.u32 %v823_v21, %v819_v12  ;;  %18708 = vst [vmem:[#allocation44_spill] sm:$0xff] %v15036_v17 }
  0xfb   : > { %v1826_v28 = vadd.f32 %v1825_v55, %v1777_v7  ;;  %v1874_v45 = vpop.f32.mrf.mxu3  ;;  %v1730_v4 = vadd.f32 %v1729_v46, %v14904_v40  ;;  %v1778_v9 = vpop.f32.mrf.mxu1  ;;  %v11289_v55 = vld [vmem:[%s14696_s7 + $0x90] sm:$0xf]  ;;  %v13764_v46 = vld [vmem:[%s14696_s7 + $0x94] sm:$0xf0] }
  0xfc   : > { %v15025_v62 = vor.u32 %v13764_v46, %v11289_v55  ;;  %v15031_v12 = vsel %vm393_vm0, %v824_v35, %v828_v0  ;;  %v13803_v35 = vld [vmem:[#allocation2 + $0x114] sm:$0xf]  ;;  %v11515_v55 = vld [vmem:[#allocation2 + $0x198] sm:$0xf0] }
  0xfd   : > { %v15018_v7 = vadd.f32 %v1874_v45, %v1826_v28  ;;  %v1779_v29 = vadd.f32 %v1778_v9, %v1730_v4  ;;  %v700_v4 = vunpack.c.l.b16 %v11180_v33  ;;  %18707 = vst [vmem:[#allocation43_spill] sm:$0xff] %v15031_v12  ;;  %v11323_v33 = vld [vmem:[#allocation2 + $0x18] sm:$0xf0]  ;;  %v13819_v0 = vld [vmem:[#allocation2 + $0x194] sm:$0xf] }
  0xfe   : > { %18705 = vst [vmem:[#allocation41_spill] sm:$0xff] %v15025_v62  ;;  %v845_v44 = vshll.u32 %v15025_v62, 16  ;;  %v11326_v43 = vor.u32 %v13771_v1, %v11323_v33  ;;  %v13787_v1 = vld [vmem:[#allocation2 + $0x94] sm:$0xf] }
  0xff   : > { %v716_v50 = vpack.c.b16 %v700_v4, %v700_v4 }
 0x100   : > { %v847_v10 = vrot.slane %v845_v44, 1  ;;  %2101 = vmatpush.bf16.msra.mxu0 %v11326_v43  ;;  %v11299_v44 = vld [vmem:[%s14696_s7 + $0xb0] sm:$0xf0] }
 0x101   : > { %v850_v4 = vshll.u32 %v716_v50, 16  ;;  %v862_v50 = vshll.u32 %v717_v48, 16 }
 0x102   : > { %v1827_v37 = vpop.f32.mrf.mxu2  ;;  %v1732_v45 = vpop.f32.mrf.mxu0 }
 0x103   : > { %v1828_v31 = vadd.f32 %v1827_v37, %v1779_v29  ;;  %v1876_v28 = vpop.f32.mrf.mxu3  ;;  %v1733_v8 = vadd.f32 %v1732_v45, %v14904_v40  ;;  %v1781_v9 = vpop.f32.mrf.mxu1  ;;  %v11451_v29 = vld [vmem:[#allocation2 + $0x118] sm:$0xf0]  ;;  %v11518_v37 = vor.u32 %v13819_v0, %v11515_v55  ;;  %v852_v55 = vrot.slane %v850_v4, 1 }
 0x104   : > { %v11454_v52 = vor.u32 %v13803_v35, %v11451_v29  ;;  %v855_v35 = vshrl.u32 %v15027_v49, 16  ;;  %v859_v29 = vrot.slane %v857_v58, 1  ;;  %v864_v54 = vrot.slane %v862_v50, 1 }
 0x105   : > { %v15033_v21 = vadd.f32 %v1876_v28, %v1828_v31  ;;  %v1782_v34 = vadd.f32 %v1781_v9, %v1733_v8  ;;  %1927 = vmatmul.bf16.gmra.mxu0 %v14996_v18  ;;  %2248 = vmatpush.bf16.msra.mxu3 %v11518_v37  ;;  %v11181_v18 = vld [vmem:[%s14696_s7 + $0xb8] sm:$0x11] }
 0x106   : > { %1976 = vmatmul.bf16.gmra.mxu1 %v14998_v47  ;;  %2199 = vmatpush.bf16.msra.mxu2 %v11454_v52  ;;  %v11387_v52 = vld [vmem:[#allocation2 + $0x98] sm:$0xf0]  ;;  %v13765_v47 = vld [vmem:[%s14696_s7 + $0xac] sm:$0xf]  ;;  %v860_v51 = vor.u32 %v859_v29, %v855_v35  ;;  %v703_v29 = vunpack.c.h.b16 %v11181_v18 }
 0x107   : > { %2025 = vmatmul.bf16.gmra.mxu2 %v15031_v12  ;;  %v11390_v0 = vor.u32 %v13787_v1, %v11387_v52  ;;  %v15056_v48 = vor.u32 %v13765_v47, %v11299_v44 }
 0x108   : > { %2074 = vmatmul.bf16.gmra.mxu3 %v15036_v17  ;;  %v843_v17 = vshrl.u32 %v15025_v62, 16  ;;  %v15065_v35 = vsel %vm393_vm0, %v860_v51, %v864_v54  ;;  %v719_v54 = vpack.c.b16 %v703_v29, %v703_v29 }
 0x109   : > { %2150 = vmatpush.bf16.msra.mxu1 %v11390_v0  ;;  %18710 = vst [vmem:[#allocation46_spill] sm:$0xff] %v15056_v48  ;;  %v881_v52 = vshll.u32 %v15056_v48, 16  ;;  %v13769_v0 = vld [vmem:[#allocation2 + $0x4] sm:$0xf] }
 0x10a   : > { %v1830_v46 = vpop.f32.mrf.mxu2  ;;  %v1734_v45 = vpop.f32.mrf.mxu0  ;;  %v848_v12 = vor.u32 %v847_v10, %v843_v17  ;;  %18712 = vst [vmem:[#allocation48_spill] sm:$0xff] %v15065_v35 }
 0x10b   : > { %v1831_v31 = vadd.f32 %v1830_v46, %v1782_v34  ;;  %v1879_v28 = vpop.f32.mrf.mxu3  ;;  %v1735_v8 = vadd.f32 %v1734_v45, %v14904_v40  ;;  %v1783_v9 = vpop.f32.mrf.mxu1  ;;  %v11297_v46 = vld [vmem:[%s14696_s7 + $0xa8] sm:$0xf]  ;;  %v13766_v45 = vld [vmem:[%s14696_s7 + $0xac] sm:$0xf0] }
 0x10c   : > { %v15054_v58 = vor.u32 %v13766_v45, %v11297_v46  ;;  %v15060_v17 = vsel %vm393_vm0, %v848_v12, %v852_v55  ;;  %v13801_v12 = vld [vmem:[#allocation2 + $0x104] sm:$0xf]  ;;  %v11507_v46 = vld [vmem:[#allocation2 + $0x188] sm:$0xf0] }
 0x10d   : > { %v15047_v34 = vadd.f32 %v1879_v28, %v1831_v31  ;;  %v1784_v33 = vadd.f32 %v1783_v9, %v1735_v8  ;;  %v702_v8 = vunpack.c.l.b16 %v11181_v18  ;;  %18711 = vst [vmem:[#allocation47_spill] sm:$0xff] %v15060_v17  ;;  %v11315_v18 = vld [vmem:[#allocation2 + $0x8] sm:$0xf0]  ;;  %v13817_v55 = vld [vmem:[#allocation2 + $0x184] sm:$0xf] }
 0x10e   : > { %18709 = vst [vmem:[#allocation45_spill] sm:$0xff] %v15054_v58  ;;  %v869_v1 = vshll.u32 %v15054_v58, 16  ;;  %v11318_v44 = vor.u32 %v13769_v0, %v11315_v18  ;;  %v13785_v0 = vld [vmem:[#allocation2 + $0x84] sm:$0xf] }
 0x10f   : > { %v718_v47 = vpack.c.b16 %v702_v8, %v702_v8 }
 0x110   : > { %v871_v29 = vrot.slane %v869_v1, 1  ;;  %2102 = vmatpush.bf16.msra.mxu0 %v11318_v44  ;;  %v11307_v1 = vld [vmem:[%s14696_s7 + $0xc8] sm:$0xf0]  ;;  %v11182_v44 = vld [vmem:[%s14696_s7 + $0xd0] sm:$0x11] }
 0x111   : > { %v874_v8 = vshll.u32 %v718_v47, 16  ;;  %v886_v47 = vshll.u32 %v719_v54, 16 }
 0x112   : > { %v1832_v43 = vpop.f32.mrf.mxu2  ;;  %v1737_v28 = vpop.f32.mrf.mxu0 }
 0x113   : > { %v1833_v37 = vadd.f32 %v1832_v43, %v1784_v33  ;;  %v1881_v31 = vpop.f32.mrf.mxu3  ;;  %v1738_v4 = vadd.f32 %v1737_v28, %v14904_v40  ;;  %v1786_v9 = vpop.f32.mrf.mxu1  ;;  %v11443_v33 = vld [vmem:[#allocation2 + $0x108] sm:$0xf0]  ;;  %v11510_v43 = vor.u32 %v13817_v55, %v11507_v46  ;;  %v876_v46 = vrot.slane %v874_v8, 1 }
 0x114   : > { %v11446_v51 = vor.u32 %v13801_v12, %v11443_v33  ;;  %v879_v12 = vshrl.u32 %v15056_v48, 16  ;;  %v888_v53 = vrot.slane %v886_v47, 1 }
 0x115   : > { %v15062_v10 = vadd.f32 %v1881_v31, %v1833_v37  ;;  %v1787_v50 = vadd.f32 %v1786_v9, %v1738_v4  ;;  %1932 = vmatmul.bf16.gmra.mxu0 %v15025_v62  ;;  %2249 = vmatpush.bf16.msra.mxu3 %v11510_v43 }
 0x116   : > { %1981 = vmatmul.bf16.gmra.mxu1 %v15027_v49  ;;  %2200 = vmatpush.bf16.msra.mxu2 %v11446_v51  ;;  %v11379_v51 = vld [vmem:[#allocation2 + $0x88] sm:$0xf0]  ;;  %v13767_v49 = vld [vmem:[%s14696_s7 + $0xc4] sm:$0xf] }
 0x117   : > { %2030 = vmatmul.bf16.gmra.mxu2 %v15060_v17  ;;  %v11382_v55 = vor.u32 %v13785_v0, %v11379_v51  ;;  %v13768_v17 = vld [vmem:[%s14696_s7 + $0xc4] sm:$0xf0]  ;;  %v15085_v54 = vor.u32 %v13767_v49, %v11307_v1  ;;  %v13879_v0 = vld [vmem:[#allocation2 + $0x374] sm:$0xf]  ;;  %v11755_v51 = vld [vmem:[#allocation2 + $0x378] sm:$0xf0] }
 0x118   : > { %2079 = vmatmul.bf16.gmra.mxu3 %v15065_v35  ;;  %v867_v35 = vshrl.u32 %v15054_v58, 16 }
 0x119   : > { %2151 = vmatpush.bf16.msra.mxu1 %v11382_v55  ;;  %v905_v49 = vshll.u32 %v15085_v54, 16  ;;  %v11627_v55 = vld [vmem:[#allocation2 + $0x278] sm:$0xf0] }
 0x11a   : > { %v1835_v45 = vpop.f32.mrf.mxu2  ;;  %v1739_v28 = vpop.f32.mrf.mxu0 }
 0x11b   : > { %v1836_v37 = vadd.f32 %v1835_v45, %v1787_v50  ;;  %v1884_v31 = vpop.f32.mrf.mxu3  ;;  %v1740_v4 = vadd.f32 %v1739_v28, %v14904_v40  ;;  %v1788_v9 = vpop.f32.mrf.mxu1  ;;  %v883_v50 = vrot.slane %v881_v52, 1  ;;  %v11305_v45 = vld [vmem:[%s14696_s7 + $0xc0] sm:$0xf]  ;;  %v872_v28 = vor.u32 %v871_v29, %v867_v35 }
 0x11c   : > { %v15083_v52 = vor.u32 %v13768_v17, %v11305_v45  ;;  %v11819_v45 = vld [vmem:[#allocation2 + $0x3f8] sm:$0xf0] }
 0x11d   : > { %v15076_v33 = vadd.f32 %v1884_v31, %v1836_v37  ;;  %v1789_v18 = vadd.f32 %v1788_v9, %v1740_v4  ;;  %v884_v62 = vor.u32 %v883_v50, %v879_v12  ;;  %v15089_v35 = vsel %vm393_vm0, %v872_v28, %v876_v46  ;;  %v13895_v46 = vld [vmem:[#allocation2 + $0x3f4] sm:$0xf] }
 0x11e   : > { %18713 = vst [vmem:[#allocation49_spill] sm:$0xff] %v15089_v35  ;;  %v704_v9 = vunpack.c.l.b16 %v11182_v44  ;;  %v705_v50 = vunpack.c.h.b16 %v11182_v44  ;;  %v11822_v44 = vor.u32 %v13895_v46, %v11819_v45  ;;  %v11691_v46 = vld [vmem:[#allocation2 + $0x2f8] sm:$0xf0] }
 0x11f   : > { %v15094_v12 = vsel %vm393_vm0, %v884_v62, %v888_v53  ;;  %v11758_v62 = vor.u32 %v13879_v0, %v11755_v51  ;;  %v903_v0 = vshrl.u32 %v15085_v54, 16  ;;  %v907_v51 = vrot.slane %v905_v49, 1 }
 0x120   : > { %18714 = vst [vmem:[#allocation50_spill] sm:$0xff] %v15094_v12  ;;  %v720_v17 = vpack.c.b16 %v704_v9, %v704_v9  ;;  %v721_v53 = vpack.c.b16 %v705_v50, %v705_v50  ;;  %v891_v9 = vshrl.u32 %v15083_v52, 16  ;;  %2438 = vmatpush.bf16.msrb.mxu3 %v11822_v44 }
 0x121   : > { %2389 = vmatpush.bf16.msrb.mxu2 %v11758_v62 }
 0x122   : > { %v1837_v43 = vpop.f32.mrf.mxu2  ;;  %v1742_v57 = vpop.f32.mrf.mxu0 }
 0x123   : > { %v1838_v37 = vadd.f32 %v1837_v43, %v1789_v18  ;;  %v1886_v31 = vpop.f32.mrf.mxu3  ;;  %v1743_v4 = vadd.f32 %v1742_v57, %v14904_v40  ;;  %v1791_v8 = vpop.f32.mrf.mxu1  ;;  %v893_v57 = vshll.u32 %v15083_v52, 16  ;;  %v13847_v18 = vld [vmem:[#allocation2 + $0x274] sm:$0xf] }
 0x124   : > { %v11630_v1 = vor.u32 %v13847_v18, %v11627_v55  ;;  %v910_v18 = vshll.u32 %v721_v53, 16 }
 0x125   : > { %v15091_v29 = vadd.f32 %v1886_v31, %v1838_v37  ;;  %v1792_v47 = vadd.f32 %v1791_v8, %v1743_v4  ;;  %1937 = vmatmul.bf16.gmra.mxu0 %v15054_v58 }
 0x126   : > { %1986 = vmatmul.bf16.gmra.mxu1 %v15056_v48  ;;  %2291 = vmatpush.bf16.msrb.mxu0 %v11630_v1  ;;  %v912_v48 = vrot.slane %v910_v18, 1 }
 0x127   : > { %2035 = vmatmul.bf16.gmra.mxu2 %v15089_v35  ;;  %v898_v35 = vshll.u32 %v720_v17, 16 }
 0x128   : > { %2084 = vmatmul.bf16.gmra.mxu3 %v15094_v12  ;;  %v895_v12 = vrot.slane %v893_v57, 1 }
 0x129   : > { %v900_v62 = vrot.slane %v898_v35, 1 }
 0x12a   : > { %v1840_v28 = vpop.f32.mrf.mxu2  ;;  %v1744_v31 = vpop.f32.mrf.mxu0  ;;  %v896_v45 = vor.u32 %v895_v12, %v891_v9  ;;  %v11747_v12 = vld [vmem:[#allocation2 + $0x368] sm:$0xf0] }
 0x12b   : > { %v1841_v43 = vadd.f32 %v1840_v28, %v1792_v47  ;;  %v1889_v37 = vpop.f32.mrf.mxu3  ;;  %v1745_v4 = vadd.f32 %v1744_v31, %v14904_v40  ;;  %v1793_v8 = vpop.f32.mrf.mxu1  ;;  %v13863_v47 = vld [vmem:[#allocation2 + $0x2f4] sm:$0xf]  ;;  %v908_v31 = vor.u32 %v907_v51, %v903_v0  ;;  %v11619_v9 = vld [vmem:[#allocation2 + $0x268] sm:$0xf0]  ;;  %v13893_v0 = vld [vmem:[#allocation2 + $0x3e4] sm:$0xf] }
 0x12c   : > { %v11694_v28 = vor.u32 %v13863_v47, %v11691_v46  ;;  %v11811_v51 = vld [vmem:[#allocation2 + $0x3e8] sm:$0xf0] }
 0x12d   : > { %v15104_v50 = vadd.f32 %v1889_v37, %v1841_v43  ;;  %v1794_v55 = vadd.f32 %v1793_v8, %v1745_v4  ;;  %v15109_v37 = vsel %vm393_vm0, %v896_v45, %v900_v62  ;;  %v15114_v53 = vsel %vm393_vm0, %v908_v31, %v912_v48  ;;  %v13845_v4 = vld [vmem:[#allocation2 + $0x264] sm:$0xf] }
 0x12e   : > { %2340 = vmatpush.bf16.msrb.mxu1 %v11694_v28  ;;  %v11814_v48 = vor.u32 %v13893_v0, %v11811_v51  ;;  %v13875_v0 = vld [vmem:[#allocation2 + $0x354] sm:$0xf]  ;;  %v11739_v51 = vld [vmem:[#allocation2 + $0x358] sm:$0xf0] }
 0x130   : > { %2439 = vmatpush.bf16.msrb.mxu3 %v11814_v48  ;;  %v11742_v48 = vor.u32 %v13875_v0, %v11739_v51 }
 0x132   : > { %v1842_v58 = vpop.f32.mrf.mxu2  ;;  %v1747_v1 = vpop.f32.mrf.mxu0 }
 0x133   : > { %v1843_v57 = vadd.f32 %v1842_v58, %v1794_v55  ;;  %v1891_v17 = vpop.f32.mrf.mxu3  ;;  %v1748_v44 = vadd.f32 %v1747_v1, %v14904_v40  ;;  %v1796_v43 = vpop.f32.mrf.mxu1  ;;  %v13877_v58 = vld [vmem:[#allocation2 + $0x364] sm:$0xf]  ;;  %v11622_v55 = vor.u32 %v13845_v4, %v11619_v9  ;;  %v11683_v1 = vld [vmem:[#allocation2 + $0x2e8] sm:$0xf0] }
 0x134   : > { %v11750_v8 = vor.u32 %v13877_v58, %v11747_v12 }
 0x135   : > { %v15111_v49 = vadd.f32 %v1891_v17, %v1843_v57  ;;  %v1797_v35 = vadd.f32 %v1796_v43, %v1748_v44  ;;  %1942 = vmatmul.bf16.gmra.mxu0 %v15083_v52  ;;  %v13861_v17 = vld [vmem:[#allocation2 + $0x2e4] sm:$0xf] }
 0x136   : > { %1991 = vmatmul.bf16.gmra.mxu1 %v15085_v54  ;;  %2390 = vmatpush.bf16.msrb.mxu2 %v11750_v8  ;;  %v11686_v44 = vor.u32 %v13861_v17, %v11683_v1  ;;  %v13859_v1 = vld [vmem:[#allocation2 + $0x2d4] sm:$0xf] }
 0x137   : > { %2040 = vmatmul.bf16.gmra.mxu2 %v15109_v37  ;;  %2292 = vmatpush.bf16.msrb.mxu0 %v11622_v55 }
 0x138   : > { %2089 = vmatmul.bf16.gmra.mxu3 %v15114_v53  ;;  %2341 = vmatpush.bf16.msrb.mxu1 %v11686_v44  ;;  %v11675_v44 = vld [vmem:[#allocation2 + $0x2d8] sm:$0xf0] }
 0x13a   : > { %v1845_v18 = vpop.f32.mrf.mxu2  ;;  %v1749_v45 = vpop.f32.mrf.mxu0  ;;  %2391 = vmatpush.bf16.msrb.mxu2 %v11742_v48  ;;  %v13841_v48 = vld [vmem:[#allocation2 + $0x244] sm:$0xf] }
 0x13b   : > { %v1846_v47 = vadd.f32 %v1845_v18, %v1797_v35  ;;  %v1894_v46 = vpop.f32.mrf.mxu3  ;;  %v1750_v62 = vadd.f32 %v1749_v45, %v14904_v40  ;;  %v1798_v28 = vpop.f32.mrf.mxu1  ;;  %v13843_v18 = vld [vmem:[#allocation2 + $0x254] sm:$0xf]  ;;  %v11803_v45 = vld [vmem:[#allocation2 + $0x3d8] sm:$0xf0] }
 0x13d   : > { %v15121_v31 = vadd.f32 %v1894_v46, %v1846_v47  ;;  %v1799_v57 = vadd.f32 %v1798_v28, %v1750_v62  ;;  %v11611_v47 = vld [vmem:[#allocation2 + $0x258] sm:$0xf0]  ;;  %v13891_v46 = vld [vmem:[#allocation2 + $0x3d4] sm:$0xf] }
 0x13e   : > { %v11806_v28 = vor.u32 %v13891_v46, %v11803_v45  ;;  %v11603_v45 = vld [vmem:[#allocation2 + $0x248] sm:$0xf0] }
 0x140   : > { %2440 = vmatpush.bf16.msrb.mxu3 %v11806_v28 }
 0x142   : > { %v1847_v43 = vpop.f32.mrf.mxu2  ;;  %v1908_v12 = vpop.f32.mrf.mxu0 }
 0x143   : > { %v1848_v58 = vadd.f32 %v1847_v43, %v1799_v57  ;;  %v1896_v35 = vpop.f32.mrf.mxu3  ;;  %v1957_v4 = vpop.f32.mrf.mxu1  ;;  %v1909_v9 = vadd.f32 %v1908_v12, %v14931_v25  ;;  %v11614_v25 = vor.u32 %v13843_v18, %v11611_v47  ;;  %v11678_v43 = vor.u32 %v13859_v1, %v11675_v44 }
 0x145   : > { %v15124_v8 = vadd.f32 %v1896_v35, %v1848_v58  ;;  %2103 = vmatmul.bf16.vlgmr.msra.gmra.mxu0 %v14706_v24  ;;  %v1958_v55 = vadd.f32 %v1957_v4, %v1909_v9  ;;  %2342 = vmatpush.bf16.msrb.mxu1 %v11678_v43 }
 0x146   : > { %2152 = vmatmul.bf16.vlgmr.msra.gmra.mxu1 %v14711_v32  ;;  %2293 = vmatpush.bf16.msrb.mxu0 %v11614_v25  ;;  %v11795_v25 = vld [vmem:[#allocation2 + $0x3c8] sm:$0xf0] }
 0x147   : > { %2201 = vmatmul.bf16.vlgmr.msra.gmra.mxu2 %v14726_v11 }
 0x148   : > { %2250 = vmatmul.bf16.vlgmr.msra.gmra.mxu3 %v14731_v15 }
 0x14a   : > { %v2006_v62 = vpop.f32.mrf.mxu2  ;;  %v1910_v32 = vpop.f32.mrf.mxu0 }
 0x14b   : > { %v2007_v24 = vadd.f32 %v2006_v62, %v1958_v55  ;;  %v2055_v57 = vpop.f32.mrf.mxu3  ;;  %v1959_v11 = vpop.f32.mrf.mxu1  ;;  %v1911_v15 = vadd.f32 %v1910_v32, %v14946_v14  ;;  %v13873_v14 = vld [vmem:[#allocation2 + $0x344] sm:$0xf]  ;;  %v11731_v55 = vld [vmem:[#allocation2 + $0x348] sm:$0xf0] }
 0x14c   : > { %v11734_v46 = vor.u32 %v13873_v14, %v11731_v55  ;;  %v13889_v62 = vld [vmem:[#allocation2 + $0x3c4] sm:$0xf]  ;;  %v11595_v55 = vld [vmem:[#allocation2 + $0x238] sm:$0xf0] }
 0x14d   : > { %v2056_v17 = vadd.f32 %v2055_v57, %v2007_v24  ;;  %v1960_v58 = vadd.f32 %v1959_v11, %v1911_v15  ;;  %v11798_v24 = vor.u32 %v13889_v62, %v11795_v25  ;;  %v13857_v11 = vld [vmem:[#allocation2 + $0x2c4] sm:$0xf] }
 0x14e   : > { %2392 = vmatpush.bf16.msrb.mxu2 %v11734_v46 }
 0x14f   : > { %2487 = vst [vmem:[%s15134_s11] sm:$0xff] %v2056_v17  ;;  %2441 = vmatpush.bf16.msrb.mxu3 %v11798_v24  ;;  %v11667_v17 = vld [vmem:[#allocation2 + $0x2c8] sm:$0xf0] }
 0x150   : > { %v11670_v15 = vor.u32 %v13857_v11, %v11667_v17 }
 0x152   : > { %v2008_v35 = vpop.f32.mrf.mxu2  ;;  %v1913_v9 = vpop.f32.mrf.mxu0  ;;  %2343 = vmatpush.bf16.msrb.mxu1 %v11670_v15  ;;  %v11715_v15 = vld [vmem:[#allocation2 + $0x328] sm:$0xf0] }
 0x153   : > { %v2009_v12 = vadd.f32 %v2008_v35, %v1960_v58  ;;  %v2057_v4 = vpop.f32.mrf.mxu3  ;;  %v1962_v0 = vpop.f32.mrf.mxu1  ;;  %v1914_v18 = vadd.f32 %v1913_v9, %v14960_v27  ;;  %v11606_v27 = vor.u32 %v13841_v48, %v11603_v45  ;;  %v13887_v48 = vld [vmem:[#allocation2 + $0x3b4] sm:$0xf] }
 0x155   : > { %v2058_v51 = vadd.f32 %v2057_v4, %v2009_v12  ;;  %2108 = vmatmul.bf16.gmra.mxu0 %v14728_v13  ;;  %v1963_v47 = vadd.f32 %v1962_v0, %v1914_v18  ;;  %v11723_v0 = vld [vmem:[#allocation2 + $0x338] sm:$0xf0] }
 0x156   : > { %2157 = vmatmul.bf16.gmra.mxu1 %v14733_v16  ;;  %2294 = vmatpush.bf16.msrb.mxu0 %v11606_v27  ;;  %v11659_v27 = vld [vmem:[#allocation2 + $0x2b8] sm:$0xf0] }
 0x157   : > { %2489 = vst [vmem:[%s15134_s11 + $0x10] sm:$0xff] %v2058_v51  ;;  %2206 = vmatmul.bf16.gmra.mxu2 %v14753_v61  ;;  %v13839_v51 = vld [vmem:[#allocation2 + $0x234] sm:$0xf] }
 0x158   : > { %2255 = vmatmul.bf16.gmra.mxu3 %v14756_v63 }
 0x15a   : > { %v2011_v28 = vpop.f32.mrf.mxu2  ;;  %v1915_v32 = vpop.f32.mrf.mxu0 }
 0x15b   : > { %v2012_v13 = vadd.f32 %v2011_v28, %v1963_v47  ;;  %v2060_v57 = vpop.f32.mrf.mxu3  ;;  %v1964_v16 = vpop.f32.mrf.mxu1  ;;  %v1916_v63 = vadd.f32 %v1915_v32, %v14975_v26  ;;  %v13871_v26 = vld [vmem:[#allocation2 + $0x334] sm:$0xf]  ;;  %v11787_v47 = vld [vmem:[#allocation2 + $0x3b8] sm:$0xf0] }
 0x15c   : > { %v11726_v14 = vor.u32 %v13871_v26, %v11723_v0  ;;  %v11790_v45 = vor.u32 %v13887_v48, %v11787_v47  ;;  %v13855_v28 = vld [vmem:[#allocation2 + $0x2b4] sm:$0xf] }
 0x15d   : > { %v2061_v61 = vadd.f32 %v2060_v57, %v2012_v13  ;;  %v1965_v1 = vadd.f32 %v1964_v16, %v1916_v63  ;;  %v11662_v24 = vor.u32 %v13855_v28, %v11659_v27  ;;  %v11579_v28 = vld [vmem:[#allocation2 + $0x218] sm:$0xf0]  ;;  %v13883_v27 = vld [vmem:[#allocation2 + $0x394] sm:$0xf] }
 0x15e   : > { %2393 = vmatpush.bf16.msrb.mxu2 %v11726_v14  ;;  %2442 = vmatpush.bf16.msrb.mxu3 %v11790_v45 }
 0x15f   : > { %2491 = vst [vmem:[%s15134_s11 + $0x20] sm:$0xff] %v2061_v61  ;;  %2344 = vmatpush.bf16.msrb.mxu1 %v11662_v24  ;;  %v11771_v24 = vld [vmem:[#allocation2 + $0x398] sm:$0xf0] }
 0x162   : > { %v2013_v44 = vpop.f32.mrf.mxu2  ;;  %v1918_v35 = vpop.f32.mrf.mxu0 }
 0x163   : > { %v2014_v43 = vadd.f32 %v2013_v44, %v1965_v1  ;;  %v2062_v58 = vpop.f32.mrf.mxu3  ;;  %v1967_v12 = vpop.f32.mrf.mxu1  ;;  %v1919_v9 = vadd.f32 %v1918_v35, %v14989_v30  ;;  %v11598_v30 = vor.u32 %v13839_v51, %v11595_v55  ;;  %v13837_v1 = vld [vmem:[#allocation2 + $0x224] sm:$0xf] }
 0x164   : > { %v13885_v35 = vld [vmem:[#allocation2 + $0x3a4] sm:$0xf] }
 0x165   : > { %v2063_v4 = vadd.f32 %v2062_v58, %v2014_v43  ;;  %2113 = vmatmul.bf16.gmra.mxu0 %v14748_v59  ;;  %v1968_v18 = vadd.f32 %v1967_v12, %v1919_v9  ;;  %v11587_v58 = vld [vmem:[#allocation2 + $0x228] sm:$0xf0]  ;;  %v13853_v51 = vld [vmem:[#allocation2 + $0x2a4] sm:$0xf] }
 0x166   : > { %2162 = vmatmul.bf16.gmra.mxu1 %v14750_v60  ;;  %2295 = vmatpush.bf16.msrb.mxu0 %v11598_v30  ;;  %v11779_v12 = vld [vmem:[#allocation2 + $0x3a8] sm:$0xf0] }
 0x167   : > { %2493 = vst [vmem:[%s15134_s11 + $0x30] sm:$0xff] %v2063_v4  ;;  %2211 = vmatmul.bf16.gmra.mxu2 %v14776_v41  ;;  %v11782_v9 = vor.u32 %v13885_v35, %v11779_v12  ;;  %v13865_v12 = vld [vmem:[#allocation2 + $0x304] sm:$0xf] }
 0x168   : > { %2260 = vmatmul.bf16.gmra.mxu3 %v14779_v42 }
 0x169   : > { %2443 = vmatpush.bf16.msrb.mxu3 %v11782_v9 }
 0x16a   : > { %v2016_v46 = vpop.f32.mrf.mxu2  ;;  %v1920_v25 = vpop.f32.mrf.mxu0 }
 0x16b   : > { %v2017_v59 = vadd.f32 %v2016_v46, %v1968_v18  ;;  %v2065_v62 = vpop.f32.mrf.mxu3  ;;  %v1969_v60 = vpop.f32.mrf.mxu1  ;;  %v1921_v42 = vadd.f32 %v1920_v25, %v15004_v36  ;;  %v13869_v36 = vld [vmem:[#allocation2 + $0x324] sm:$0xf]  ;;  %v11651_v18 = vld [vmem:[#allocation2 + $0x2a8] sm:$0xf0]  ;;  %v11707_v25 = vld [vmem:[#allocation2 + $0x318] sm:$0xf0] }
 0x16c   : > { %v11718_v43 = vor.u32 %v13869_v36, %v11715_v15  ;;  %v11654_v14 = vor.u32 %v13853_v51, %v11651_v18 }
 0x16d   : > { %v2066_v41 = vadd.f32 %v2065_v62, %v2017_v59  ;;  %v1970_v13 = vadd.f32 %v1969_v60, %v1921_v42  ;;  %v13835_v60 = vld [vmem:[#allocation2 + $0x214] sm:$0xf] }
 0x16e   : > { %2394 = vmatpush.bf16.msrb.mxu2 %v11718_v43  ;;  %2345 = vmatpush.bf16.msrb.mxu1 %v11654_v14 }
 0x16f   : > { %2495 = vst [vmem:[%s15134_s11 + $0x40] sm:$0xff] %v2066_v41 }
 0x172   : > { %v2018_v57 = vpop.f32.mrf.mxu2  ;;  %v1923_v61 = vpop.f32.mrf.mxu0 }
 0x173   : > { %v2019_v32 = vadd.f32 %v2018_v57, %v1970_v13  ;;  %v2067_v16 = vpop.f32.mrf.mxu3  ;;  %v1972_v63 = vpop.f32.mrf.mxu1  ;;  %v1924_v17 = vadd.f32 %v1923_v61, %v15018_v7  ;;  %v11590_v7 = vor.u32 %v13837_v1, %v11587_v58  ;;  %v11774_v57 = vor.u32 %v13883_v27, %v11771_v24  ;;  %v13851_v61 = vld [vmem:[#allocation2 + $0x294] sm:$0xf]  ;;  %v12041_v27 = vld [vmem:[#allocation2 + $0x570] sm:$0xf]  ;;  %v13944_v24 = vld [vmem:[#allocation2 + $0x574] sm:$0xf0] }
 0x175   : > { %v2068_v11 = vadd.f32 %v2067_v16, %v2019_v32  ;;  %2118 = vmatmul.bf16.gmra.mxu0 %v14771_v38  ;;  %v1973_v44 = vadd.f32 %v1972_v63, %v1924_v17  ;;  %2444 = vmatpush.bf16.msrb.mxu3 %v11774_v57  ;;  %v11643_v63 = vld [vmem:[#allocation2 + $0x298] sm:$0xf0]  ;;  %v12042_v57 = vor.u32 %v13944_v24, %v12041_v27 }
 0x176   : > { %2167 = vmatmul.bf16.gmra.mxu1 %v14773_v39  ;;  %2296 = vmatpush.bf16.msrb.mxu0 %v11590_v7  ;;  %v13833_v7 = vld [vmem:[#allocation2 + $0x204] sm:$0xf] }
 0x177   : > { %2497 = vst [vmem:[%s15134_s11 + $0x50] sm:$0xff] %v2068_v11  ;;  %2216 = vmatmul.bf16.gmra.mxu2 %v14799_v22  ;;  %v11646_v11 = vor.u32 %v13851_v61, %v11643_v63 }
 0x178   : > { %2265 = vmatmul.bf16.gmra.mxu3 %v14802_v23 }
 0x179   : > { %2346 = vmatpush.bf16.msrb.mxu1 %v11646_v11 }
 0x17a   : > { %v2021_v4 = vpop.f32.mrf.mxu2  ;;  %v1925_v0 = vpop.f32.mrf.mxu0 }
 0x17b   : > { %v2022_v38 = vadd.f32 %v2021_v4, %v1973_v44  ;;  %v2070_v26 = vpop.f32.mrf.mxu3  ;;  %v1974_v39 = vpop.f32.mrf.mxu1  ;;  %v1926_v23 = vadd.f32 %v1925_v0, %v15033_v21  ;;  %v13867_v21 = vld [vmem:[#allocation2 + $0x314] sm:$0xf]  ;;  %v11699_v4 = vld [vmem:[#allocation2 + $0x308] sm:$0xf0]  ;;  %v13881_v0 = vld [vmem:[#allocation2 + $0x384] sm:$0xf] }
 0x17c   : > { %v11710_v42 = vor.u32 %v13867_v21, %v11707_v25 }
 0x17d   : > { %v2071_v22 = vadd.f32 %v2070_v26, %v2022_v38  ;;  %v1975_v55 = vadd.f32 %v1974_v39, %v1926_v23  ;;  %v11702_v38 = vor.u32 %v13865_v12, %v11699_v4  ;;  %v11571_v26 = vld [vmem:[#allocation2 + $0x208] sm:$0xf0] }
 0x17e   : > { %2395 = vmatpush.bf16.msrb.mxu2 %v11710_v42  ;;  %v11763_v39 = vld [vmem:[#allocation2 + $0x388] sm:$0xf0] }
 0x17f   : > { %2499 = vst [vmem:[%s15134_s11 + $0x60] sm:$0xff] %v2071_v22  ;;  %v11766_v23 = vor.u32 %v13881_v0, %v11763_v39  ;;  %v18717_v42 = vld [vmem:[#allocation15_spill] sm:$0xff]  ;;  %v18723_v0 = vld [vmem:[#allocation24_spill] sm:$0xff]  ;;  %v12033_v39 = vld [vmem:[#allocation2 + $0x560] sm:$0xf] }
 0x181   : > { %2445 = vmatpush.bf16.msrb.mxu3 %v11766_v23 }
 0x182   : > { %v2023_v48 = vpop.f32.mrf.mxu2  ;;  %v1928_v30 = vpop.f32.mrf.mxu0  ;;  %2396 = vmatpush.bf16.msrb.mxu2 %v11702_v38  ;;  %v18720_v38 = vld [vmem:[#allocation17_spill] sm:$0xff] }
 0x183   : > { %v2024_v47 = vadd.f32 %v2023_v48, %v1975_v55  ;;  %v2072_v46 = vpop.f32.mrf.mxu3  ;;  %v1977_v45 = vpop.f32.mrf.mxu1  ;;  %v1929_v62 = vadd.f32 %v1928_v30, %v15047_v34  ;;  %v11582_v34 = vor.u32 %v13835_v60, %v11579_v28  ;;  %v13849_v55 = vld [vmem:[#allocation2 + $0x284] sm:$0xf]  ;;  %v11635_v48 = vld [vmem:[#allocation2 + $0x288] sm:$0xf0]  ;;  %v18719_v28 = vld [vmem:[#allocation20_spill] sm:$0xff] }
 0x185   : > { %v2073_v59 = vadd.f32 %v2072_v46, %v2024_v47  ;;  %2123 = vmatmul.bf16.gmra.mxu0 %v14794_v19  ;;  %v1978_v41 = vadd.f32 %v1977_v45, %v1929_v62  ;;  %v11638_v47 = vor.u32 %v13849_v55, %v11635_v48 }
 0x186   : > { %2172 = vmatmul.bf16.gmra.mxu1 %v14796_v20  ;;  %2297 = vmatpush.bf16.msrb.mxu0 %v11582_v34 }
 0x187   : > { %2501 = vst [vmem:[%s15134_s11 + $0x70] sm:$0xff] %v2073_v59  ;;  %2221 = vmatmul.bf16.gmra.mxu2 %v14822_v5  ;;  %2347 = vmatpush.bf16.msrb.mxu1 %v11638_v47 }
 0x188   : > { %2270 = vmatmul.bf16.gmra.mxu3 %v14825_v6  ;;  %4890 = vmatpush.bf16.msra.mxu2 %v12042_v57 }
 0x18a   : > { %v2026_v13 = vpop.f32.mrf.mxu2  ;;  %v1930_v16 = vpop.f32.mrf.mxu0 }
 0x18b   : > { %v2027_v19 = vadd.f32 %v2026_v13, %v1978_v41  ;;  %v2075_v32 = vpop.f32.mrf.mxu3  ;;  %v1979_v20 = vpop.f32.mrf.mxu1  ;;  %v1931_v6 = vadd.f32 %v1930_v16, %v15062_v10  ;;  %v18715_v10 = vld [vmem:[#allocation16_spill] sm:$0xff]  ;;  %v18716_v41 = vld [vmem:[#allocation14_spill] sm:$0xff] }
 0x18c   : > { %v11913_v13 = vld [vmem:[#allocation2 + $0x470] sm:$0xf]  ;;  %v13960_v16 = vld [vmem:[#allocation2 + $0x5f4] sm:$0xf0] }
 0x18d   : > { %v2076_v5 = vadd.f32 %v2075_v32, %v2027_v19  ;;  %v1980_v17 = vadd.f32 %v1979_v20, %v1931_v6  ;;  %v13912_v19 = vld [vmem:[#allocation2 + $0x474] sm:$0xf0]  ;;  %v12105_v32 = vld [vmem:[#allocation2 + $0x5f0] sm:$0xf] }
 0x18f   : > { %2503 = vst [vmem:[%s15134_s11 + $0x80] sm:$0xff] %v2076_v5  ;;  %v12106_v5 = vor.u32 %v13960_v16, %v12105_v32  ;;  %v18727_v32 = vld [vmem:[#allocation27_spill] sm:$0xff]  ;;  %v18728_v16 = vld [vmem:[#allocation28_spill] sm:$0xff] }
 0x191   : > { %4939 = vmatpush.bf16.msra.mxu3 %v12106_v5  ;;  %v11897_v5 = vld [vmem:[#allocation2 + $0x450] sm:$0xf] }
 0x192   : > { %v2028_v36 = vpop.f32.mrf.mxu2  ;;  %v1933_v44 = vpop.f32.mrf.mxu0 }
 0x193   : > { %v2029_v15 = vadd.f32 %v2028_v36, %v1980_v17  ;;  %v2077_v1 = vpop.f32.mrf.mxu3  ;;  %v1982_v43 = vpop.f32.mrf.mxu1  ;;  %v1934_v35 = vadd.f32 %v1933_v44, %v15076_v33  ;;  %v11574_v33 = vor.u32 %v13833_v7, %v11571_v26  ;;  %v18721_v26 = vld [vmem:[#allocation18_spill] sm:$0xff] }
 0x195   : > { %v2078_v58 = vadd.f32 %v2077_v1, %v2029_v15  ;;  %2128 = vmatmul.bf16.gmra.mxu0 %v14817_v2  ;;  %v1983_v9 = vadd.f32 %v1982_v43, %v1934_v35  ;;  %v11977_v15 = vld [vmem:[#allocation2 + $0x4f0] sm:$0xf]  ;;  %v13928_v1 = vld [vmem:[#allocation2 + $0x4f4] sm:$0xf0] }
 0x196   : > { %2177 = vmatmul.bf16.gmra.mxu1 %v14819_v3  ;;  %2298 = vmatpush.bf16.msrb.mxu0 %v11574_v33  ;;  %v11978_v44 = vor.u32 %v13928_v1, %v11977_v15  ;;  %v11905_v33 = vld [vmem:[#allocation2 + $0x460] sm:$0xf] }
 0x197   : > { %2505 = vst [vmem:[%s15134_s11 + $0x90] sm:$0xff] %v2078_v58  ;;  %2226 = vmatmul.bf16.gmra.mxu2 %v14845_v56 }
 0x198   : > { %2275 = vmatmul.bf16.gmra.mxu3 %v18715_v10  ;;  %4841 = vmatpush.bf16.msra.mxu1 %v11978_v44 }
 0x19a   : > { %v2031_v22 = vpop.f32.mrf.mxu2  ;;  %v1935_v18 = vpop.f32.mrf.mxu0 }
 0x19b   : > { %v2032_v2 = vadd.f32 %v2031_v22, %v1983_v9  ;;  %v2080_v51 = vpop.f32.mrf.mxu3  ;;  %v1984_v3 = vpop.f32.mrf.mxu1  ;;  %v1936_v14 = vadd.f32 %v1935_v18, %v15091_v29  ;;  %v18718_v29 = vld [vmem:[#allocation19_spill] sm:$0xff]  ;;  %v12097_v18 = vld [vmem:[#allocation2 + $0x5e0] sm:$0xf] }
 0x19c   : > { %v13942_v22 = vld [vmem:[#allocation2 + $0x564] sm:$0xf0] }
 0x19d   : > { %v2081_v56 = vadd.f32 %v2080_v51, %v2032_v2  ;;  %v1985_v46 = vadd.f32 %v1984_v3, %v1936_v14  ;;  %v12034_v2 = vor.u32 %v13942_v22, %v12033_v39  ;;  %v13910_v51 = vld [vmem:[#allocation2 + $0x464] sm:$0xf0] }
 0x19e   : > { %v13958_v3 = vld [vmem:[#allocation2 + $0x5e4] sm:$0xf0] }
 0x19f   : > { %2507 = vst [vmem:[%s15134_s11 + $0xa0] sm:$0xff] %v2081_v56  ;;  %v12098_v14 = vor.u32 %v13958_v3, %v12097_v18  ;;  %4891 = vmatpush.bf16.msra.mxu2 %v12034_v2  ;;  %v18729_v2 = vld [vmem:[#allocation25_spill] sm:$0xff]  ;;  %v18731_v18 = vld [vmem:[#allocation31_spill] sm:$0xff]  ;;  %v18732_v3 = vld [vmem:[#allocation32_spill] sm:$0xff] }
 0x1a1   : > { %4940 = vmatpush.bf16.msra.mxu3 %v12098_v14  ;;  %v11889_v14 = vld [vmem:[#allocation2 + $0x440] sm:$0xf] }
 0x1a2   : > { %v2033_v30 = vpop.f32.mrf.mxu2  ;;  %v1938_v62 = vpop.f32.mrf.mxu0 }
 0x1a3   : > { %v2034_v45 = vadd.f32 %v2033_v30, %v1985_v46  ;;  %v2082_v59 = vpop.f32.mrf.mxu3  ;;  %v1987_v21 = vpop.f32.mrf.mxu1  ;;  %v1939_v60 = vadd.f32 %v1938_v62, %v15104_v50  ;;  %v11914_v50 = vor.u32 %v13912_v19, %v11913_v13  ;;  %v13926_v62 = vld [vmem:[#allocation2 + $0x4e4] sm:$0xf0] }
 0x1a4   : > { %v18726_v19 = vld [vmem:[#allocation22_spill] sm:$0xff] }
 0x1a5   : > { %v2083_v25 = vadd.f32 %v2082_v59, %v2034_v45  ;;  %2133 = vmatmul.bf16.gmra.mxu0 %v18716_v41  ;;  %v1988_v34 = vadd.f32 %v1987_v21, %v1939_v60  ;;  %v11969_v59 = vld [vmem:[#allocation2 + $0x4e0] sm:$0xf] }
 0x1a6   : > { %2182 = vmatmul.bf16.gmra.mxu1 %v18717_v42  ;;  %4792 = vmatpush.bf16.msra.mxu0 %v11914_v50  ;;  %v11970_v21 = vor.u32 %v13926_v62, %v11969_v59  ;;  %v13940_v50 = vld [vmem:[#allocation2 + $0x554] sm:$0xf0] }
 0x1a7   : > { %2509 = vst [vmem:[%s15134_s11 + $0xb0] sm:$0xff] %v2083_v25  ;;  %2231 = vmatmul.bf16.gmra.mxu2 %v18718_v29  ;;  %v14421_v25 = vld [vmem:[#allocation5] sm:$0x3] }
 0x1a8   : > { %2280 = vmatmul.bf16.gmra.mxu3 %v18719_v28  ;;  %v15193_v60 = vperm.slane %v14421_v25, 1  ;;  %4842 = vmatpush.bf16.msra.mxu1 %v11970_v21 }
 0x1aa   : > { %v2036_v20 = vpop.f32.mrf.mxu2  ;;  %v1940_v63 = vpop.f32.mrf.mxu0  ;;  %18724 = vst [vmem:[#allocation16_spill] sm:$0xff] %v15193_v60 }
 0x1ab   : > { %v2037_v6 = vadd.f32 %v2036_v20, %v1988_v34  ;;  %v2085_v61 = vpop.f32.mrf.mxu3  ;;  %v1989_v11 = vpop.f32.mrf.mxu1  ;;  %v1941_v36 = vadd.f32 %v1940_v63, %v15111_v49  ;;  %v18722_v49 = vld [vmem:[#allocation23_spill] sm:$0xff] }
 0x1ac   : > { %v12025_v20 = vld [vmem:[#allocation2 + $0x550] sm:$0xf] }
 0x1ad   : > { %v2086_v17 = vadd.f32 %v2085_v61, %v2037_v6  ;;  %v1990_v43 = vadd.f32 %v1989_v11, %v1941_v36  ;;  %v12026_v6 = vor.u32 %v13940_v50, %v12025_v20  ;;  %v13908_v61 = vld [vmem:[#allocation2 + $0x454] sm:$0xf0]  ;;  %v12089_v63 = vld [vmem:[#allocation2 + $0x5d0] sm:$0xf] }
 0x1ae   : > { %v13956_v11 = vld [vmem:[#allocation2 + $0x5d4] sm:$0xf0]  ;;  %v11898_v36 = vor.u32 %v13908_v61, %v11897_v5  ;;  %v18735_v61 = vld [vmem:[#allocation35_spill] sm:$0xff] }
 0x1af   : > { %2511 = vst [vmem:[%s15134_s11 + $0xc0] sm:$0xff] %v2086_v17  ;;  %v12090_v15 = vor.u32 %v13956_v11, %v12089_v63  ;;  %4892 = vmatpush.bf16.msra.mxu2 %v12026_v6  ;;  %v18733_v5 = vld [vmem:[#allocation29_spill] sm:$0xff]  ;;  %v18734_v6 = vld [vmem:[#allocation30_spill] sm:$0xff]  ;;  %v18736_v63 = vld [vmem:[#allocation36_spill] sm:$0xff] }
 0x1b0   : > { %v12009_v11 = vld [vmem:[#allocation2 + $0x530] sm:$0xf] }
 0x1b1   : > { %4941 = vmatpush.bf16.msra.mxu3 %v12090_v15 }
 0x1b2   : > { %v2038_v58 = vpop.f32.mrf.mxu2  ;;  %v1943_v12 = vpop.f32.mrf.mxu0 }
 0x1b3   : > { %v2039_v35 = vadd.f32 %v2038_v58, %v1990_v43  ;;  %v2087_v10 = vpop.f32.mrf.mxu3  ;;  %v1992_v4 = vpop.f32.mrf.mxu1  ;;  %v1944_v9 = vadd.f32 %v1943_v12, %v15121_v31  ;;  %v11906_v31 = vor.u32 %v13910_v51, %v11905_v33  ;;  %v11961_v12 = vld [vmem:[#allocation2 + $0x4d0] sm:$0xf]  ;;  %v18730_v51 = vld [vmem:[#allocation26_spill] sm:$0xff] }
 0x1b5   : > { %v2088_v7 = vadd.f32 %v2087_v10, %v2039_v35  ;;  %2138 = vmatmul.bf16.gmra.mxu0 %v18720_v38  ;;  %v1993_v23 = vadd.f32 %v1992_v4, %v1944_v9  ;;  %v13924_v4 = vld [vmem:[#allocation2 + $0x4d4] sm:$0xf0] }
 0x1b6   : > { %2187 = vmatmul.bf16.gmra.mxu1 %v18721_v26  ;;  %4793 = vmatpush.bf16.msra.mxu0 %v11906_v31  ;;  %v11962_v9 = vor.u32 %v13924_v4, %v11961_v12  ;;  %v13938_v31 = vld [vmem:[#allocation2 + $0x544] sm:$0xf0] }
 0x1b7   : > { %2513 = vst [vmem:[%s15134_s11 + $0xd0] sm:$0xff] %v2088_v7  ;;  %2236 = vmatmul.bf16.gmra.mxu2 %v18722_v49 }
 0x1b8   : > { %2285 = vmatmul.bf16.gmra.mxu3 %v18723_v0  ;;  %4843 = vmatpush.bf16.msra.mxu1 %v11962_v9 }
 0x1ba   : > { %v2041_v56 = vpop.f32.mrf.mxu2  ;;  %v1945_v47 = vpop.f32.mrf.mxu0  ;;  %4794 = vmatpush.bf16.msra.mxu0 %v11898_v36  ;;  %v11881_v36 = vld [vmem:[#allocation2 + $0x430] sm:$0xf] }
 0x1bb   : > { %v2042_v55 = vadd.f32 %v2041_v56, %v1993_v23  ;;  %v2090_v48 = vpop.f32.mrf.mxu3  ;;  %v1994_v46 = vpop.f32.mrf.mxu1  ;;  %v1946_v45 = vadd.f32 %v1945_v47, %v15124_v8  ;;  %v18725_v8 = vld [vmem:[#allocation21_spill] sm:$0xff] }
 0x1bc   : > { %v12017_v56 = vld [vmem:[#allocation2 + $0x540] sm:$0xf] }
 0x1bd   : > { %v2091_v30 = vadd.f32 %v2090_v48, %v2042_v55  ;;  %v1995_v41 = vadd.f32 %v1994_v46, %v1946_v45  ;;  %v12018_v55 = vor.u32 %v13938_v31, %v12017_v56  ;;  %v13906_v48 = vld [vmem:[#allocation2 + $0x444] sm:$0xf0]  ;;  %v12081_v47 = vld [vmem:[#allocation2 + $0x5c0] sm:$0xf] }
 0x1be   : > { %v13954_v46 = vld [vmem:[#allocation2 + $0x5c4] sm:$0xf0]  ;;  %v11890_v45 = vor.u32 %v13906_v48, %v11889_v14  ;;  %v18737_v48 = vld [vmem:[#allocation33_spill] sm:$0xff] }
 0x1bf   : > { %2515 = vst [vmem:[%s15134_s11 + $0xe0] sm:$0xff] %v2091_v30  ;;  %v12082_v59 = vor.u32 %v13954_v46, %v12081_v47  ;;  %4893 = vmatpush.bf16.msra.mxu2 %v12018_v55  ;;  %v18738_v47 = vld [vmem:[#allocation34_spill] sm:$0xff]  ;;  %v18739_v46 = vld [vmem:[#allocation39_spill] sm:$0xff] }
 0x1c0   : > { %4795 = vmatpush.bf16.msra.mxu0 %v11890_v45  ;;  %v12001_v45 = vld [vmem:[#allocation2 + $0x520] sm:$0xf] }
 0x1c1   : > { %4942 = vmatpush.bf16.msra.mxu3 %v12082_v59  ;;  %v13934_v59 = vld [vmem:[#allocation2 + $0x524] sm:$0xf0] }
 0x1c2   : > { %v2043_v42 = vpop.f32.mrf.mxu2  ;;  %v2104_v27 = vpop.f32.mrf.mxu0 }
 0x1c3   : > { %v2044_v29 = vadd.f32 %v2043_v42, %v1995_v41  ;;  %v2092_v28 = vpop.f32.mrf.mxu3  ;;  %v2105_v24 = vadd.f32 %v2104_v27, %v15193_v60  ;;  %v2153_v13 = vpop.f32.mrf.mxu1  ;;  %v13922_v27 = vld [vmem:[#allocation2 + $0x4c4] sm:$0xf0] }
 0x1c5   : > { %v2093_v34 = vadd.f32 %v2092_v28, %v2044_v29  ;;  %v2154_v57 = vadd.f32 %v2153_v13, %v2105_v24  ;;  %2299 = vmatmul.bf16.vlgmr.msrb.gmra.mxu0 %v18725_v8  ;;  %v11953_v28 = vld [vmem:[#allocation2 + $0x4c0] sm:$0xf] }
 0x1c6   : > { %2348 = vmatmul.bf16.vlgmr.msrb.gmra.mxu1 %v18726_v19  ;;  %v11954_v13 = vor.u32 %v13922_v27, %v11953_v28 }
 0x1c7   : > { %2517 = vst [vmem:[%s15134_s11 + $0xf0] sm:$0xff] %v2093_v34  ;;  %2397 = vmatmul.bf16.vlgmr.msrb.gmra.mxu2 %v18727_v32 }
 0x1c8   : > { %2446 = vmatmul.bf16.vlgmr.msrb.gmra.mxu3 %v18728_v16  ;;  %4844 = vmatpush.bf16.msra.mxu1 %v11954_v13 }
 0x1ca   : > { %v2202_v17 = vpop.f32.mrf.mxu2  ;;  %v2106_v43 = vpop.f32.mrf.mxu0 }
 0x1cb   : > { %v2203_v1 = vadd.f32 %v2202_v17, %v2154_v57  ;;  %v2251_v44 = vpop.f32.mrf.mxu3  ;;  %v2107_v58 = vadd.f32 %v2106_v43, %v15193_v60  ;;  %v2155_v35 = vpop.f32.mrf.mxu1  ;;  %v13936_v17 = vld [vmem:[#allocation2 + $0x534] sm:$0xf0] }
 0x1cc   : > { %v12010_v15 = vor.u32 %v13936_v17, %v12009_v11  ;;  %v13952_v43 = vld [vmem:[#allocation2 + $0x5b4] sm:$0xf0] }
 0x1cd   : > { %v15202_v10 = vadd.f32 %v2251_v44, %v2203_v1  ;;  %v2156_v7 = vadd.f32 %v2155_v35, %v2107_v58  ;;  %v13904_v1 = vld [vmem:[#allocation2 + $0x434] sm:$0xf0]  ;;  %v12073_v44 = vld [vmem:[#allocation2 + $0x5b0] sm:$0xf] }
 0x1ce   : > { %v11882_v35 = vor.u32 %v13904_v1, %v11881_v36  ;;  %v12074_v12 = vor.u32 %v13952_v43, %v12073_v44  ;;  %4894 = vmatpush.bf16.msra.mxu2 %v12010_v15  ;;  %v18741_v43 = vld [vmem:[#allocation37_spill] sm:$0xff] }
 0x1d0   : > { %4796 = vmatpush.bf16.msra.mxu0 %v11882_v35  ;;  %4943 = vmatpush.bf16.msra.mxu3 %v12074_v12  ;;  %v18743_v35 = vld [vmem:[#allocation43_spill] sm:$0xff]  ;;  %v18744_v12 = vld [vmem:[#allocation44_spill] sm:$0xff] }
 0x1d2   : > { %v2204_v38 = vpop.f32.mrf.mxu2  ;;  %v2109_v0 = vpop.f32.mrf.mxu0 }
 0x1d3   : > { %v2205_v26 = vadd.f32 %v2204_v38, %v2156_v7  ;;  %v2253_v49 = vpop.f32.mrf.mxu3  ;;  %v2110_v39 = vadd.f32 %v2109_v0, %v15193_v60  ;;  %v2158_v22 = vpop.f32.mrf.mxu1  ;;  %v11945_v0 = vld [vmem:[#allocation2 + $0x4b0] sm:$0xf] }
 0x1d5   : > { %v15205_v33 = vadd.f32 %v2253_v49, %v2205_v26  ;;  %v2159_v23 = vadd.f32 %v2158_v22, %v2110_v39  ;;  %2304 = vmatmul.bf16.gmra.mxu0 %v18729_v2  ;;  %v13920_v39 = vld [vmem:[#allocation2 + $0x4b4] sm:$0xf0] }
 0x1d6   : > { %2353 = vmatmul.bf16.gmra.mxu1 %v18730_v51 }
 0x1d7   : > { %2402 = vmatmul.bf16.gmra.mxu2 %v18731_v18 }
 0x1d8   : > { %2451 = vmatmul.bf16.gmra.mxu3 %v18732_v3 }
 0x1da   : > { %v2207_v30 = vpop.f32.mrf.mxu2  ;;  %v2111_v25 = vpop.f32.mrf.mxu0 }
 0x1db   : > { %v2208_v62 = vadd.f32 %v2207_v30, %v2159_v23  ;;  %v2256_v21 = vpop.f32.mrf.mxu3  ;;  %v2112_v41 = vadd.f32 %v2111_v25, %v15193_v60  ;;  %v2160_v42 = vpop.f32.mrf.mxu1  ;;  %v11946_v23 = vor.u32 %v13920_v39, %v11945_v0  ;;  %v18740_v30 = vld [vmem:[#allocation40_spill] sm:$0xff]  ;;  %v13902_v25 = vld [vmem:[#allocation2 + $0x424] sm:$0xf0] }
 0x1dc   : > { %v12057_v0 = vld [vmem:[#allocation2 + $0x590] sm:$0xf]  ;;  %v13948_v39 = vld [vmem:[#allocation2 + $0x594] sm:$0xf0] }
 0x1dd   : > { %v15212_v29 = vadd.f32 %v2256_v21, %v2208_v62  ;;  %v2161_v24 = vadd.f32 %v2160_v42, %v2112_v41  ;;  %4845 = vmatpush.bf16.msra.mxu1 %v11946_v23  ;;  %v11873_v62 = vld [vmem:[#allocation2 + $0x420] sm:$0xf]  ;;  %v12002_v21 = vor.u32 %v13934_v59, %v12001_v45  ;;  %v13950_v42 = vld [vmem:[#allocation2 + $0x5a4] sm:$0xf0] }
 0x1de   : > { %v12065_v41 = vld [vmem:[#allocation2 + $0x5a0] sm:$0xf]  ;;  %v11874_v27 = vor.u32 %v13902_v25, %v11873_v62 }
 0x1df   : > { %4895 = vmatpush.bf16.msra.mxu2 %v12002_v21 }
 0x1e0   : > { %4797 = vmatpush.bf16.msra.mxu0 %v11874_v27  ;;  %v2543_v27 = vld [vmem:[%s14696_s7] sm:$0xee] }
 0x1e2   : > { %v2209_v34 = vpop.f32.mrf.mxu2  ;;  %v2114_v19 = vpop.f32.mrf.mxu0 }
 0x1e3   : > { %v2210_v57 = vadd.f32 %v2209_v34, %v2161_v24  ;;  %v2258_v8 = vpop.f32.mrf.mxu3  ;;  %v2115_v32 = vadd.f32 %v2114_v19, %v15193_v60  ;;  %v2163_v16 = vpop.f32.mrf.mxu1  ;;  %v12066_v24 = vor.u32 %v13950_v42, %v12065_v41 }
 0x1e5   : > { %v15215_v20 = vadd.f32 %v2258_v8, %v2210_v57  ;;  %v2164_v50 = vadd.f32 %v2163_v16, %v2115_v32  ;;  %2309 = vmatmul.bf16.gmra.mxu0 %v18733_v5  ;;  %4944 = vmatpush.bf16.msra.mxu3 %v12066_v24  ;;  %v11937_v16 = vld [vmem:[#allocation2 + $0x4a0] sm:$0xf] }
 0x1e6   : > { %2358 = vmatmul.bf16.gmra.mxu1 %v18734_v6 }
 0x1e7   : > { %2407 = vmatmul.bf16.gmra.mxu2 %v18735_v61 }
 0x1e8   : > { %2456 = vmatmul.bf16.gmra.mxu3 %v18736_v63 }
 0x1ea   : > { %v2212_v58 = vpop.f32.mrf.mxu2  ;;  %v2116_v9 = vpop.f32.mrf.mxu0 }
 0x1eb   : > { %v2213_v4 = vadd.f32 %v2212_v58, %v2164_v50  ;;  %v2261_v7 = vpop.f32.mrf.mxu3  ;;  %v2117_v38 = vadd.f32 %v2116_v9, %v15193_v60  ;;  %v2165_v26 = vpop.f32.mrf.mxu1  ;;  %v13918_v50 = vld [vmem:[#allocation2 + $0x4a4] sm:$0xf0]  ;;  %v11865_v9 = vld [vmem:[#allocation2 + $0x410] sm:$0xf] }
 0x1ec   : > { %v11938_v6 = vor.u32 %v13918_v50, %v11937_v16  ;;  %v18742_v58 = vld [vmem:[#allocation38_spill] sm:$0xff]  ;;  %v18747_v16 = vld [vmem:[#allocation47_spill] sm:$0xff] }
 0x1ed   : > { %v15222_v49 = vadd.f32 %v2261_v7, %v2213_v4  ;;  %v2166_v22 = vadd.f32 %v2165_v26, %v2117_v38  ;;  %v11993_v4 = vld [vmem:[#allocation2 + $0x510] sm:$0xf]  ;;  %v13932_v7 = vld [vmem:[#allocation2 + $0x514] sm:$0xf0] }
 0x1ee   : > { %4846 = vmatpush.bf16.msra.mxu1 %v11938_v6  ;;  %v11994_v38 = vor.u32 %v13932_v7, %v11993_v4  ;;  %v13900_v26 = vld [vmem:[#allocation2 + $0x414] sm:$0xf0]  ;;  %v2521_v50 = vld [vmem:[%s14696_s7 + $0x10] sm:$0x11] }
 0x1ef   : > { %v11866_v23 = vor.u32 %v13900_v26, %v11865_v9  ;;  %v18748_v6 = vld [vmem:[#allocation48_spill] sm:$0xff] }
 0x1f0   : > { %4896 = vmatpush.bf16.msra.mxu2 %v11994_v38 }
 0x1f1   : > { %4798 = vmatpush.bf16.msra.mxu0 %v11866_v23 }
 0x1f2   : > { %v2214_v2 = vpop.f32.mrf.mxu2  ;;  %v2119_v3 = vpop.f32.mrf.mxu0 }
 0x1f3   : > { %v2215_v51 = vadd.f32 %v2214_v2, %v2166_v22  ;;  %v2263_v18 = vpop.f32.mrf.mxu3  ;;  %v2120_v56 = vadd.f32 %v2119_v3, %v15193_v60  ;;  %v2168_v31 = vpop.f32.mrf.mxu1  ;;  %v12058_v2 = vor.u32 %v13948_v39, %v12057_v0 }
 0x1f5   : > { %v15225_v14 = vadd.f32 %v2263_v18, %v2215_v51  ;;  %v2169_v55 = vadd.f32 %v2168_v31, %v2120_v56  ;;  %2314 = vmatmul.bf16.gmra.mxu0 %v18737_v48  ;;  %4945 = vmatpush.bf16.msra.mxu3 %v12058_v2  ;;  %v11929_v48 = vld [vmem:[#allocation2 + $0x490] sm:$0xf] }
 0x1f6   : > { %2363 = vmatmul.bf16.gmra.mxu1 %v18738_v47  ;;  %v13916_v47 = vld [vmem:[#allocation2 + $0x494] sm:$0xf0] }
 0x1f7   : > { %2412 = vmatmul.bf16.gmra.mxu2 %v18739_v46 }
 0x1f8   : > { %2461 = vmatmul.bf16.gmra.mxu3 %v18740_v30  ;;  %v11930_v30 = vor.u32 %v13916_v47, %v11929_v48  ;;  %v11921_v47 = vld [vmem:[#allocation2 + $0x480] sm:$0xf] }
 0x1fa   : > { %v2217_v28 = vpop.f32.mrf.mxu2  ;;  %v2121_v57 = vpop.f32.mrf.mxu0  ;;  %4847 = vmatpush.bf16.msra.mxu1 %v11930_v30 }
 0x1fb   : > { %v2218_v13 = vadd.f32 %v2217_v28, %v2169_v55  ;;  %v2266_v34 = vpop.f32.mrf.mxu3  ;;  %v2122_v8 = vadd.f32 %v2121_v57, %v15193_v60  ;;  %v2170_v19 = vpop.f32.mrf.mxu1  ;;  %v2520_v28 = vld [vmem:[%s14696_s7 + $0x8] sm:$0xff]  ;;  %v2695_v57 = vunpack.c.l.b16 %v2543_v27 }
 0x1fd   : > { %v15232_v32 = vadd.f32 %v2266_v34, %v2218_v13  ;;  %v2171_v5 = vadd.f32 %v2170_v19, %v2122_v8  ;;  %v18745_v13 = vld [vmem:[#allocation41_spill] sm:$0xff]  ;;  %v2609_v34 = vunpack.c.l.b16 %v2520_v28  ;;  %v2610_v8 = vunpack.c.h.b16 %v2520_v28  ;;  %v18746_v19 = vld [vmem:[#allocation42_spill] sm:$0xff] }
 0x202   : > { %v2219_v61 = vpop.f32.mrf.mxu2  ;;  %v2124_v17 = vpop.f32.mrf.mxu0 }
 0x203   : > { %v2220_v63 = vadd.f32 %v2219_v61, %v2171_v5  ;;  %v2268_v11 = vpop.f32.mrf.mxu3  ;;  %v2125_v36 = vadd.f32 %v2124_v17, %v15193_v60  ;;  %v2173_v15 = vpop.f32.mrf.mxu1  ;;  %v2696_v5 = vunpack.c.h.b16 %v2543_v27  ;;  %v11985_v61 = vld [vmem:[#allocation2 + $0x500] sm:$0xf]  ;;  %v2611_v17 = vunpack.c.l.b16 %v2521_v50 }
 0x205   : > { %v15235_v1 = vadd.f32 %v2268_v11, %v2220_v63  ;;  %v2174_v44 = vadd.f32 %v2173_v15, %v2125_v36  ;;  %2319 = vmatmul.bf16.gmra.mxu0 %v18741_v43  ;;  %v13930_v63 = vld [vmem:[#allocation2 + $0x504] sm:$0xf0]  ;;  %v11857_v11 = vld [vmem:[#allocation2 + $0x400] sm:$0xf]  ;;  %v2711_v36 = vpack.c.b16 %v2609_v34, %v2695_v57  ;;  %v2612_v15 = vunpack.c.h.b16 %v2521_v50 }
 0x206   : > { %2368 = vmatmul.bf16.gmra.mxu1 %v18742_v58  ;;  %v13898_v43 = vld [vmem:[#allocation2 + $0x404] sm:$0xf0]  ;;  %v12049_v58 = vld [vmem:[#allocation2 + $0x580] sm:$0xf]  ;;  %v15254_v38 = vpack.c.b16 %v2611_v17, %v2611_v17 }
 0x207   : > { %2417 = vmatmul.bf16.gmra.mxu2 %v18743_v35  ;;  %v13946_v35 = vld [vmem:[#allocation2 + $0x584] sm:$0xf0]  ;;  %v11858_v7 = vor.u32 %v13898_v43, %v11857_v11  ;;  %v15256_v26 = vpack.c.b16 %v2612_v15, %v2612_v15  ;;  %v2730_v23 = vshll.u32 %v2711_v36, 16  ;;  %v15282_v15 = vld [vmem:[%s14696_s7 + $0x20] sm:$0xff] }
 0x208   : > { %2466 = vmatmul.bf16.gmra.mxu3 %v18744_v12  ;;  %v2712_v12 = vpack.c.b16 %v2610_v8, %v2696_v5  ;;  %v12050_v9 = vor.u32 %v13946_v35, %v12049_v58  ;;  %v18749_v58 = vld [vmem:[#allocation45_spill] sm:$0xff]  ;;  %v2751_v35 = vshrl.u32 %v15254_v38, 16 }
 0x209   : > { %4799 = vmatpush.bf16.msra.mxu0 %v11858_v7  ;;  %v18751_v7 = vld [vmem:[#allocation49_spill] sm:$0xff] }
 0x20a   : > { %v2222_v22 = vpop.f32.mrf.mxu2  ;;  %v2126_v3 = vpop.f32.mrf.mxu0  ;;  %4946 = vmatpush.bf16.msra.mxu3 %v12050_v9 }
 0x20b   : > { %v2223_v51 = vadd.f32 %v2222_v22, %v2174_v44  ;;  %v2271_v18 = vpop.f32.mrf.mxu3  ;;  %v2127_v56 = vadd.f32 %v2126_v3, %v15193_v60  ;;  %v2175_v31 = vpop.f32.mrf.mxu1  ;;  %v11986_v44 = vor.u32 %v13930_v63, %v11985_v61  ;;  %v2735_v3 = vshll.u32 %v15254_v38, 16  ;;  %v14008_v38 = vld [vmem:[#allocation2 + $0x774] sm:$0xf0] }
 0x20d   : > { %v15242_v55 = vadd.f32 %v2271_v18, %v2223_v51  ;;  %v2176_v46 = vadd.f32 %v2175_v31, %v2127_v56  ;;  %4897 = vmatpush.bf16.msra.mxu2 %v11986_v44  ;;  %v2519_v18 = vld [vmem:[%s14696_s7] sm:$0xff]  ;;  %v2728_v56 = vshrl.u32 %v2711_v36, 16  ;;  %v2742_v31 = vshll.u32 %v2712_v12, 16  ;;  %v2544_v44 = vld [vmem:[%s14696_s7 + $0x18] sm:$0xee] }
 0x20e   : > { %v2607_v30 = vunpack.c.l.b16 %v2519_v18  ;;  %v15266_v28 = vrot.slane %v2735_v3, 1  ;;  %v2615_v3 = vunpack.c.l.b16 %v15282_v15 }
 0x212   : > { %v2224_v45 = vpop.f32.mrf.mxu2  ;;  %v2129_v21 = vpop.f32.mrf.mxu0 }
 0x213   : > { %v2225_v59 = vadd.f32 %v2224_v45, %v2176_v46  ;;  %v2273_v62 = vpop.f32.mrf.mxu3  ;;  %v2130_v25 = vadd.f32 %v2129_v21, %v15193_v60  ;;  %v2178_v41 = vpop.f32.mrf.mxu1  ;;  %v13914_v46 = vld [vmem:[#allocation2 + $0x484] sm:$0xf0]  ;;  %v2608_v45 = vunpack.c.h.b16 %v2519_v18  ;;  %v12169_v18 = vld [vmem:[#allocation2 + $0x670] sm:$0xf] }
 0x214   : > { %v11922_v21 = vor.u32 %v13914_v46, %v11921_v47 }
 0x215   : > { %v15245_v42 = vadd.f32 %v2273_v62, %v2225_v59  ;;  %v2179_v24 = vadd.f32 %v2178_v41, %v2130_v25  ;;  %2324 = vmatmul.bf16.gmra.mxu0 %v18745_v13  ;;  %v2732_v59 = vrot.slane %v2730_v23, 1  ;;  %v2747_v25 = vshll.u32 %v15256_v26, 16  ;;  %v2524_v23 = vld [vmem:[%s14696_s7 + $0x28] sm:$0x11] }
 0x216   : > { %2373 = vmatmul.bf16.gmra.mxu1 %v18746_v19  ;;  %v15264_v41 = vpack.c.b16 %v2609_v34, %v2607_v30  ;;  %v2744_v13 = vrot.slane %v2742_v31, 1  ;;  %v15268_v57 = vpack.c.b16 %v2610_v8, %v2608_v45  ;;  %v13976_v30 = vld [vmem:[#allocation2 + $0x674] sm:$0xf0]  ;;  %v12361_v45 = vld [vmem:[#allocation2 + $0x7f0] sm:$0xf] }
 0x217   : > { %2422 = vmatmul.bf16.gmra.mxu2 %v18747_v16  ;;  %v2733_v27 = vor.u32 %v2732_v59, %v2728_v56  ;;  %4848 = vmatpush.bf16.msra.mxu1 %v11922_v21  ;;  %v15270_v16 = vrot.slane %v2747_v25, 1  ;;  %v2697_v56 = vunpack.c.l.b16 %v2544_v44  ;;  %v2617_v59 = vunpack.c.l.b16 %v2524_v23 }
 0x218   : > { %2471 = vmatmul.bf16.gmra.mxu3 %v18748_v6  ;;  %v3322_v61 = vshll.u32 %v15264_v41, 16  ;;  %v3330_v8 = vshll.u32 %v15268_v57, 16  ;;  %v3320_v9 = vshrl.u32 %v15264_v41, 16  ;;  %v3328_v31 = vshrl.u32 %v15268_v57, 16  ;;  %v14024_v41 = vld [vmem:[#allocation2 + $0x7f4] sm:$0xf0] }
 0x219   : > { %v15275_v34 = vsel %vm393_vm0, %v2733_v27, %v15266_v28  ;;  %v12170_v25 = vor.u32 %v13976_v30, %v12169_v18  ;;  %v2616_v27 = vunpack.c.h.b16 %v15282_v15  ;;  %v12362_v57 = vor.u32 %v14024_v41, %v12361_v45 }
 0x21a   : > { %v2227_v4 = vpop.f32.mrf.mxu2  ;;  %v2131_v22 = vpop.f32.mrf.mxu0  ;;  %v3332_v47 = vrot.slane %v3330_v8, 1  ;;  %v3336_v21 = vshrl.u32 %v15275_v34, 16  ;;  %v15307_v15 = vpack.c.b16 %v2617_v59, %v2617_v59 }
 0x21b   : > { %v2228_v0 = vadd.f32 %v2227_v4, %v2179_v24  ;;  %v2276_v39 = vpop.f32.mrf.mxu3  ;;  %v2132_v2 = vadd.f32 %v2131_v22, %v15193_v60  ;;  %v2180_v51 = vpop.f32.mrf.mxu1  ;;  %v2740_v24 = vshrl.u32 %v2712_v12, 16  ;;  %v3338_v12 = vshll.u32 %v15275_v34, 16  ;;  %v18750_v4 = vld [vmem:[#allocation46_spill] sm:$0xff]  ;;  %4988 = vmatpush.bf16.msrb.mxu0 %v12170_v25  ;;  %v2522_v34 = vld [vmem:[%s14696_s7 + $0x18] sm:$0xff]  ;;  %5135 = vmatpush.bf16.msrb.mxu3 %v12362_v57 }
 0x21c   : > { %v2753_v22 = vshrl.u32 %v15256_v26, 16  ;;  %v3333_v30 = vor.u32 %v3332_v47, %v3328_v31  ;;  %v2763_v59 = vshll.u32 %v15307_v15, 16 }
 0x21d   : > { %v15261_v48 = vadd.f32 %v2276_v39, %v2228_v0  ;;  %v2181_v62 = vadd.f32 %v2180_v51, %v2132_v2  ;;  %v2745_v63 = vor.u32 %v2744_v13, %v2740_v24  ;;  %v3324_v0 = vrot.slane %v3322_v61, 1  ;;  %v18752_v2 = vld [vmem:[#allocation50_spill] sm:$0xff]  ;;  %v12297_v51 = vld [vmem:[#allocation2 + $0x770] sm:$0xf] }
 0x21e   : > { %v12298_v46 = vor.u32 %v14008_v38, %v12297_v51  ;;  %v12233_v38 = vld [vmem:[#allocation2 + $0x6f0] sm:$0xf] }
 0x21f   : > { %v15293_v39 = vsel %vm393_vm0, %v2745_v63, %v15270_v16  ;;  %v3340_v63 = vrot.slane %v3338_v12, 1  ;;  %v13992_v12 = vld [vmem:[#allocation2 + $0x6f4] sm:$0xf0] }
 0x220   : > { %v3350_v26 = vshll.u32 %v15293_v39, 16  ;;  %5086 = vmatpush.bf16.msrb.mxu2 %v12298_v46 }
 0x221   : > { %v3341_v45 = vor.u32 %v3340_v63, %v3336_v21 }
 0x222   : > { %v2229_v19 = vpop.f32.mrf.mxu2  ;;  %v2134_v6 = vpop.f32.mrf.mxu0  ;;  %v3352_v51 = vrot.slane %v3350_v26, 1 }
 0x223   : > { %v2230_v50 = vadd.f32 %v2229_v19, %v2181_v62  ;;  %v2278_v5 = vpop.f32.mrf.mxu3  ;;  %v2135_v11 = vadd.f32 %v2134_v6, %v15193_v60  ;;  %v2183_v17 = vpop.f32.mrf.mxu1 }
 0x225   : > { %v15278_v36 = vadd.f32 %v2278_v5, %v2230_v50  ;;  %v2184_v43 = vadd.f32 %v2183_v17, %v2135_v11  ;;  %2329 = vmatmul.bf16.gmra.mxu0 %v18749_v58  ;;  %v2713_v50 = vpack.c.b16 %v2615_v3, %v2697_v56  ;;  %v2618_v5 = vunpack.c.h.b16 %v2524_v23 }
 0x226   : > { %2378 = vmatmul.bf16.gmra.mxu1 %v18750_v4  ;;  %v3343_v11 = vshll.u32 %v2751_v35, 16  ;;  %v2698_v17 = vunpack.c.h.b16 %v2544_v44  ;;  %v2613_v58 = vunpack.c.l.b16 %v2522_v34  ;;  %v3325_v44 = vor.u32 %v3324_v0, %v3320_v9 }
 0x227   : > { %2427 = vmatmul.bf16.gmra.mxu2 %v18751_v7  ;;  %v3348_v7 = vshrl.u32 %v15293_v39, 16  ;;  %v15312_v35 = vpack.c.b16 %v2618_v5, %v2618_v5  ;;  %v2758_v18 = vshll.u32 %v2713_v50, 16  ;;  %v12234_v56 = vor.u32 %v13992_v12, %v12233_v38  ;;  %v12161_v38 = vld [vmem:[#allocation2 + $0x660] sm:$0xf] }
 0x228   : > { %2476 = vmatmul.bf16.gmra.mxu3 %v18752_v2  ;;  %v3355_v2 = vshll.u32 %v2753_v22, 16  ;;  %v15310_v23 = vpack.c.b16 %v2616_v27, %v2698_v17  ;;  %v15314_v46 = vpack.c.b16 %v2615_v3, %v2613_v58  ;;  %v3345_v22 = vrot.slane %v3343_v11, 1  ;;  %v15339_v17 = vld [vmem:[%s14696_s7 + $0x30] sm:$0xee] }
 0x229   : > { %5037 = vmatpush.bf16.msrb.mxu1 %v12234_v56  ;;  %v2756_v25 = vshrl.u32 %v2713_v50, 16  ;;  %v2760_v26 = vrot.slane %v2758_v18, 1  ;;  %v3353_v9 = vor.u32 %v3352_v51, %v3348_v7  ;;  %v2775_v3 = vshll.u32 %v15312_v35, 16  ;;  %v14006_v51 = vld [vmem:[#allocation2 + $0x764] sm:$0xf0] }
 0x22a   : > { %v2232_v62 = vpop.f32.mrf.mxu2  ;;  %v2136_v19 = vpop.f32.mrf.mxu0  ;;  %v2770_v41 = vshll.u32 %v15310_v23, 16  ;;  %v3357_v0 = vrot.slane %v3355_v2, 1  ;;  %v15324_v21 = vsel %vm393_vm0, %v3325_v44, %v15266_v28  ;;  %v15329_v50 = vrot.slane %v2763_v59, 1  ;;  %v15336_v28 = vld [vmem:[%s14696_s7 + $0x38] sm:$0xff]  ;;  %v12353_v59 = vld [vmem:[#allocation2 + $0x7e0] sm:$0xf] }
 0x22b   : > { %v2233_v24 = vadd.f32 %v2232_v62, %v2184_v43  ;;  %v2281_v13 = vpop.f32.mrf.mxu3  ;;  %v2137_v6 = vadd.f32 %v2136_v19, %v15193_v60  ;;  %v2185_v61 = vpop.f32.mrf.mxu1  ;;  %v2614_v43 = vunpack.c.h.b16 %v2522_v34  ;;  %v2761_v63 = vor.u32 %v2760_v26, %v2756_v25  ;;  %v14022_v26 = vld [vmem:[#allocation2 + $0x7e4] sm:$0xf0] }
 0x22c   : > { %v2779_v11 = vshrl.u32 %v15307_v15, 16  ;;  %v2772_v34 = vrot.slane %v2770_v41, 1  ;;  %v15345_v58 = vsel %vm393_vm0, %v3333_v30, %v15270_v16  ;;  %v15353_v15 = vrot.slane %v2775_v3, 1  ;;  %v12289_v16 = vld [vmem:[#allocation2 + $0x760] sm:$0xf]  ;;  %v2525_v3 = vld [vmem:[%s14696_s7 + $0x30] sm:$0xff] }
 0x22d   : > { %v15305_v8 = vadd.f32 %v2281_v13, %v2233_v24  ;;  %v2186_v4 = vadd.f32 %v2185_v61, %v2137_v6  ;;  %v15317_v62 = vpack.c.b16 %v2616_v27, %v2614_v43  ;;  %v3402_v27 = vshll.u32 %v15314_v46, 16 }
 0x22e   : > { %v2768_v6 = vshrl.u32 %v15310_v23, 16  ;;  %v15348_v43 = vsel %vm393_vm0, %v3341_v45, %v3345_v22  ;;  %v3400_v7 = vshrl.u32 %v15314_v46, 16  ;;  %v2781_v2 = vshrl.u32 %v15312_v35, 16  ;;  %v13974_v35 = vld [vmem:[#allocation2 + $0x664] sm:$0xf0] }
 0x22f   : > { %v3410_v5 = vshll.u32 %v15317_v62, 16  ;;  %v2621_v12 = vunpack.c.l.b16 %v15336_v28  ;;  %v2699_v44 = vunpack.c.l.b16 %v15339_v17  ;;  %v15366_v46 = vshll.u32 %v2779_v11, 16 }
 0x230   : > { %v2773_v30 = vor.u32 %v2772_v34, %v2768_v6  ;;  %v12290_v45 = vor.u32 %v14006_v51, %v12289_v16  ;;  %v12162_v25 = vor.u32 %v13974_v35, %v12161_v38  ;;  %v2622_v6 = vunpack.c.h.b16 %v15336_v28 }
 0x231   : > { %v3412_v23 = vrot.slane %v3410_v5, 1  ;;  %v2619_v5 = vunpack.c.l.b16 %v2525_v3  ;;  %v2620_v34 = vunpack.c.h.b16 %v2525_v3  ;;  %v2700_v51 = vunpack.c.h.b16 %v15339_v17 }
 0x232   : > { %v2234_v39 = vpop.f32.mrf.mxu2  ;;  %v2139_v19 = vpop.f32.mrf.mxu0  ;;  %5087 = vmatpush.bf16.msrb.mxu2 %v12290_v45  ;;  %4989 = vmatpush.bf16.msrb.mxu0 %v12162_v25 }
 0x233   : > { %v2235_v24 = vadd.f32 %v2234_v39, %v2186_v4  ;;  %v2283_v13 = vpop.f32.mrf.mxu3  ;;  %v2140_v31 = vadd.f32 %v2139_v19, %v15193_v60  ;;  %v2188_v47 = vpop.f32.mrf.mxu1  ;;  %v2527_v4 = vld [vmem:[%s14696_s7 + $0x40] sm:$0x11]  ;;  %v15386_v28 = vpack.c.b16 %v2621_v12, %v2619_v5  ;;  %v15395_v17 = vpack.c.b16 %v2622_v6, %v2620_v34 }
 0x234   : > { %v2623_v18 = vunpack.c.l.b16 %v2527_v4 }
 0x235   : > { %v15327_v57 = vadd.f32 %v2283_v13, %v2235_v24  ;;  %v2189_v61 = vadd.f32 %v2188_v47, %v2140_v31  ;;  %2334 = vmatmul.bf16.gmra.mxu0 %v15083_v52  ;;  %v15351_v52 = vsel %vm393_vm0, %v3353_v9, %v3357_v0  ;;  %v2624_v24 = vunpack.c.h.b16 %v2527_v4 }
 0x236   : > { %2383 = vmatmul.bf16.gmra.mxu1 %v15085_v54  ;;  %v3404_v54 = vrot.slane %v3402_v27, 1  ;;  %v15368_v41 = vpack.c.b16 %v2623_v18, %v2623_v18  ;;  %v12354_v0 = vor.u32 %v14022_v26, %v12353_v59  ;;  %v2715_v31 = vpack.c.b16 %v2621_v12, %v2699_v44 }
 0x237   : > { %2432 = vmatmul.bf16.gmra.mxu2 %v15109_v37  ;;  %v3408_v37 = vshrl.u32 %v15317_v62, 16  ;;  %v15374_v27 = vshll.u32 %v2781_v2, 16  ;;  %v15380_v4 = vsel %vm393_vm0, %v2773_v30, %v15353_v15  ;;  %v15383_v2 = vpack.c.b16 %v2624_v24, %v2624_v24 }
 0x238   : > { %2481 = vmatmul.bf16.gmra.mxu3 %v15114_v53  ;;  %v15364_v53 = vsel %vm393_vm0, %v2761_v63, %v15329_v50  ;;  %v3405_v9 = vor.u32 %v3404_v54, %v3400_v7  ;;  %v12225_v7 = vld [vmem:[#allocation2 + $0x6e0] sm:$0xf]  ;;  %v13990_v54 = vld [vmem:[#allocation2 + $0x6e4] sm:$0xf0]  ;;  %v2791_v16 = vshll.u32 %v15368_v41, 16  ;;  %v2716_v30 = vpack.c.b16 %v2622_v6, %v2700_v51 }
 0x239   : > { %v3413_v63 = vor.u32 %v3412_v23, %v3408_v37  ;;  %v3418_v11 = vshll.u32 %v15364_v53, 16  ;;  %5136 = vmatpush.bf16.msrb.mxu3 %v12354_v0  ;;  %v12226_v38 = vor.u32 %v13990_v54, %v12225_v7  ;;  %v2784_v37 = vshrl.u32 %v2715_v31, 16 }
 0x23a   : > { %v2237_v56 = vpop.f32.mrf.mxu2  ;;  %v2141_v22 = vpop.f32.mrf.mxu0  ;;  %v2786_v23 = vshll.u32 %v2715_v31, 16  ;;  %v15390_v18 = vsel %vm393_vm0, %v3405_v9, %v15329_v50  ;;  %v3416_v44 = vshrl.u32 %v15364_v53, 16  ;;  %v3430_v59 = vshll.u32 %v15380_v4, 16 }
 0x23b   : > { %v2238_v62 = vadd.f32 %v2237_v56, %v2189_v61  ;;  %v2286_v39 = vpop.f32.mrf.mxu3  ;;  %v2142_v13 = vadd.f32 %v2141_v22, %v15193_v60  ;;  %v2190_v19 = vpop.f32.mrf.mxu1  ;;  %v3425_v56 = vrot.slane %v15366_v46, 1  ;;  %v3420_v35 = vrot.slane %v3418_v11, 1  ;;  %5038 = vmatpush.bf16.msrb.mxu1 %v12226_v38  ;;  %v15417_v11 = vld [vmem:[%s14696_s7 + $0x48] sm:$0xee] }
 0x23c   : > { %v2788_v12 = vrot.slane %v2786_v23, 1  ;;  %v15399_v50 = vsel %vm393_vm0, %v3413_v63, %v15353_v15  ;;  %v3428_v53 = vshrl.u32 %v15380_v4, 16  ;;  %v2803_v25 = vshll.u32 %v15383_v2, 16  ;;  %v15414_v63 = vld [vmem:[%s14696_s7 + $0x50] sm:$0xff]  ;;  %v14004_v23 = vld [vmem:[#allocation2 + $0x754] sm:$0xf0] }
 0x23d   : > { %v15372_v47 = vadd.f32 %v2286_v39, %v2238_v62  ;;  %v2191_v61 = vadd.f32 %v2190_v19, %v2142_v13  ;;  %v15404_v13 = vrot.slane %v2791_v16, 1  ;;  %v3482_v19 = vshll.u32 %v15386_v28, 16  ;;  %v2530_v16 = vld [vmem:[%s14696_s7 + $0x58] sm:$0x11] }
 0x23e   : > { %v2789_v9 = vor.u32 %v2788_v12, %v2784_v37  ;;  %v2796_v15 = vshrl.u32 %v2716_v30, 16  ;;  %v2798_v31 = vshll.u32 %v2716_v30, 16  ;;  %v3421_v5 = vor.u32 %v3420_v35, %v3416_v44  ;;  %v12281_v37 = vld [vmem:[#allocation2 + $0x750] sm:$0xf] }
 0x23f   : > { %v3432_v6 = vrot.slane %v3430_v59, 1  ;;  %v15422_v4 = vrot.slane %v2803_v25, 1  ;;  %v2809_v54 = vshrl.u32 %v15383_v2, 16  ;;  %v2629_v44 = vunpack.c.l.b16 %v2530_v16  ;;  %v12153_v35 = vld [vmem:[#allocation2 + $0x650] sm:$0xf] }
 0x240   : > { %v2800_v7 = vrot.slane %v2798_v31, 1  ;;  %v15429_v38 = vsel %vm393_vm0, %v2789_v9, %v15404_v13  ;;  %v13972_v59 = vld [vmem:[#allocation2 + $0x654] sm:$0xf0]  ;;  %v2627_v12 = vunpack.c.l.b16 %v15414_v63  ;;  %v2701_v2 = vunpack.c.l.b16 %v15417_v11 }
 0x242   : > { %v2239_v45 = vpop.f32.mrf.mxu2  ;;  %v2300_v22 = vpop.f32.mrf.mxu0  ;;  %v2801_v30 = vor.u32 %v2800_v7, %v2796_v15  ;;  %v3498_v15 = vshll.u32 %v15429_v38, 16  ;;  %v2717_v3 = vpack.c.b16 %v2627_v12, %v2701_v2  ;;  %v13988_v2 = vld [vmem:[#allocation2 + $0x6d4] sm:$0xf0] }
 0x243   : > { %v2240_v62 = vadd.f32 %v2239_v45, %v2191_v61  ;;  %v2288_v39 = vpop.f32.mrf.mxu3  ;;  %v2301_v26 = vadd.f32 %v2300_v22, %v15202_v10  ;;  %v2349_v24 = vpop.f32.mrf.mxu1  ;;  %v3490_v61 = vshll.u32 %v15395_v17, 16  ;;  %v2807_v10 = vshrl.u32 %v15368_v41, 16 }
 0x244   : > { %v3484_v41 = vrot.slane %v3482_v19, 1  ;;  %v12282_v45 = vor.u32 %v14004_v23, %v12281_v37  ;;  %v3488_v22 = vshrl.u32 %v15395_v17, 16  ;;  %v14020_v19 = vld [vmem:[#allocation2 + $0x7d4] sm:$0xf0]  ;;  %v2806_v7 = vsel %vm393_vm0, %v2801_v30, %v15422_v4 }
 0x245   : > { %v15407_v0 = vadd.f32 %v2288_v39, %v2240_v62  ;;  %4800 = vmatmul.bf16.vlgmr.msra.gmra.mxu0 %v15324_v21  ;;  %v2350_v51 = vadd.f32 %v2349_v24, %v2301_v26  ;;  %v3433_v39 = vor.u32 %v3432_v6, %v3428_v53  ;;  %v3492_v25 = vrot.slane %v3490_v61, 1  ;;  %v12345_v24 = vld [vmem:[#allocation2 + $0x7d0] sm:$0xf]  ;;  %v2528_v61 = vld [vmem:[%s14696_s7 + $0x48] sm:$0xff] }
 0x246   : > { %4849 = vmatmul.bf16.vlgmr.msra.gmra.mxu1 %v15345_v58  ;;  %v12154_v26 = vor.u32 %v13972_v59, %v12153_v35  ;;  %5088 = vmatpush.bf16.msrb.mxu2 %v12282_v45  ;;  %v12346_v37 = vor.u32 %v14020_v19, %v12345_v24  ;;  %v3496_v53 = vshrl.u32 %v15429_v38, 16  ;;  %v15438_v17 = vshll.u32 %v2807_v10, 16 }
 0x247   : > { %4898 = vmatmul.bf16.vlgmr.msra.gmra.mxu2 %v15348_v43  ;;  %v3510_v6 = vshll.u32 %v2806_v7, 16  ;;  %v15441_v35 = vpack.c.b16 %v2629_v44, %v2629_v44  ;;  %v15444_v30 = vshll.u32 %v2809_v54, 16  ;;  %v2626_v45 = vunpack.c.h.b16 %v2528_v61 }
 0x248   : > { %4947 = vmatmul.bf16.vlgmr.msra.gmra.mxu3 %v15351_v52  ;;  %4990 = vmatpush.bf16.msrb.mxu0 %v12154_v26  ;;  %v2628_v24 = vunpack.c.h.b16 %v15414_v63  ;;  %v2630_v19 = vunpack.c.h.b16 %v2530_v16  ;;  %v15451_v10 = vsel %vm393_vm0, %v3421_v5, %v3425_v56  ;;  %v18753_v38 = vrot.slane %v15374_v27, 1 }
 0x249   : > { %5137 = vmatpush.bf16.msrb.mxu3 %v12346_v37  ;;  %v2702_v54 = vunpack.c.h.b16 %v15417_v11  ;;  %v3508_v26 = vshrl.u32 %v2806_v7, 16  ;;  %v2819_v16 = vshll.u32 %v15441_v35, 16  ;;  %v2814_v5 = vshll.u32 %v2717_v3, 16 }
 0x24a   : > { %v2398_v62 = vpop.f32.mrf.mxu2  ;;  %v2302_v34 = vpop.f32.mrf.mxu0  ;;  %v15456_v44 = vsel %vm393_vm0, %v3433_v39, %v18753_v38  ;;  %v15462_v56 = vpack.c.b16 %v2630_v19, %v2630_v19  ;;  %v18754_v39 = vshrl.u32 %v15386_v28, 16  ;;  %v3505_v38 = vrot.slane %v15438_v17, 1 }
 0x24b   : > { %v2399_v9 = vadd.f32 %v2398_v62, %v2350_v51  ;;  %v2447_v31 = vpop.f32.mrf.mxu3  ;;  %v2351_v23 = vpop.f32.mrf.mxu1  ;;  %v2303_v59 = vadd.f32 %v2302_v34, %v15205_v33  ;;  %v2625_v62 = vunpack.c.l.b16 %v2528_v61  ;;  %v3500_v33 = vrot.slane %v3498_v15, 1  ;;  %v12217_v34 = vld [vmem:[#allocation2 + $0x6d0] sm:$0xf] }
 0x24c   : > { %v12218_v63 = vor.u32 %v13988_v2, %v12217_v34  ;;  %v3485_v37 = vor.u32 %v3484_v41, %v18754_v39  ;;  %v3493_v15 = vor.u32 %v3492_v25, %v3488_v22  ;;  %v15466_v61 = vpack.c.b16 %v2628_v24, %v2626_v45  ;;  %v15490_v2 = vld [vmem:[%s14696_s7 + $0x68] sm:$0xff] }
 0x24d   : > { %v2448_v51 = vadd.f32 %v2447_v31, %v2399_v9  ;;  %v3512_v9 = vrot.slane %v3510_v6, 1  ;;  %v2352_v31 = vadd.f32 %v2351_v23, %v2303_v59  ;;  %v15460_v46 = vpack.c.b16 %v2627_v12, %v2625_v62 }
 0x24e   : > { %5039 = vmatpush.bf16.msrb.mxu1 %v12218_v63  ;;  %v2718_v11 = vpack.c.b16 %v2628_v24, %v2702_v54  ;;  %v3517_v12 = vrot.slane %v15444_v30, 1  ;;  %v2812_v23 = vshrl.u32 %v2717_v3, 16  ;;  %v3501_v62 = vor.u32 %v3500_v33, %v3496_v53  ;;  %v15493_v54 = vld [vmem:[%s14696_s7 + $0x70] sm:$0x11]  ;;  %v12273_v63 = vld [vmem:[#allocation2 + $0x740] sm:$0xf] }
 0x24f   : > { %2488 = vst [vmem:[%s15134_s11 + $0x8] sm:$0xff] %v2448_v51  ;;  %v3513_v19 = vor.u32 %v3512_v9, %v3508_v26  ;;  %v15470_v34 = vrot.slane %v2819_v16, 1  ;;  %v2816_v28 = vrot.slane %v2814_v5, 1  ;;  %v3562_v25 = vshll.u32 %v15460_v46, 16  ;;  %v14002_v16 = vld [vmem:[#allocation2 + $0x744] sm:$0xf0] }
 0x250   : > { %v2831_v17 = vshll.u32 %v15462_v56, 16  ;;  %v3570_v3 = vshll.u32 %v15466_v61, 16  ;;  %v2835_v53 = vshrl.u32 %v15441_v35, 16  ;;  %v2824_v30 = vshrl.u32 %v2718_v11, 16  ;;  %v15496_v35 = vld [vmem:[%s14696_s7 + $0x60] sm:$0xee] }
 0x251   : > { %v2826_v45 = vshll.u32 %v2718_v11, 16  ;;  %v15487_v24 = vsel %vm393_vm0, %v3493_v15, %v15422_v4  ;;  %v2817_v33 = vor.u32 %v2816_v28, %v2812_v23  ;;  %v15500_v26 = vsel %vm393_vm0, %v3501_v62, %v3505_v38 }
 0x252   : > { %v2400_v27 = vpop.f32.mrf.mxu2  ;;  %v2305_v51 = vpop.f32.mrf.mxu0  ;;  %18755 = vst [vmem:[#allocation14_spill] sm:$0xff] %v15500_v26  ;;  %v3560_v9 = vshrl.u32 %v15460_v46, 16  ;;  %v2635_v4 = vunpack.c.l.b16 %v15493_v54  ;;  %v3564_v5 = vrot.slane %v3562_v25, 1  ;;  %v12274_v39 = vor.u32 %v14002_v16, %v12273_v63  ;;  %v14018_v46 = vld [vmem:[#allocation2 + $0x7c4] sm:$0xf0] }
 0x253   : > { %v2401_v7 = vadd.f32 %v2400_v27, %v2352_v31  ;;  %v2449_v6 = vpop.f32.mrf.mxu3  ;;  %v2354_v59 = vpop.f32.mrf.mxu1  ;;  %v2306_v22 = vadd.f32 %v2305_v51, %v15212_v29  ;;  %v15483_v29 = vsel %vm393_vm0, %v3485_v37, %v15404_v13  ;;  %v2828_v13 = vrot.slane %v2826_v45, 1  ;;  %v12145_v37 = vld [vmem:[#allocation2 + $0x640] sm:$0xf] }
 0x254   : > { %v15504_v27 = vrot.slane %v2831_v17, 1  ;;  %v15507_v11 = vsel %vm393_vm0, %v3513_v19, %v3517_v12  ;;  %v12337_v51 = vld [vmem:[#allocation2 + $0x7c0] sm:$0xf]  ;;  %v2633_v38 = vunpack.c.l.b16 %v15490_v2  ;;  %v2703_v23 = vunpack.c.l.b16 %v15496_v35  ;;  %5089 = vmatpush.bf16.msrb.mxu2 %v12274_v39 }
 0x255   : > { %v2450_v41 = vadd.f32 %v2449_v6, %v2401_v7  ;;  %4805 = vmatmul.bf16.gmra.mxu0 %v15390_v18  ;;  %v2355_v31 = vadd.f32 %v2354_v59, %v2306_v22  ;;  %18756 = vst [vmem:[#allocation15_spill] sm:$0xff] %v15507_v11  ;;  %v2829_v7 = vor.u32 %v2828_v13, %v2824_v30  ;;  %v13970_v6 = vld [vmem:[#allocation2 + $0x644] sm:$0xf0]  ;;  %v2837_v22 = vshrl.u32 %v15462_v56, 16  ;;  %v2531_v45 = vld [vmem:[%s14696_s7 + $0x60] sm:$0xff] }
 0x256   : > { %4854 = vmatmul.bf16.gmra.mxu1 %v15399_v50  ;;  %v12146_v12 = vor.u32 %v13970_v6, %v12145_v37  ;;  %v3568_v25 = vshrl.u32 %v15466_v61, 16  ;;  %v3572_v17 = vrot.slane %v3570_v3, 1  ;;  %v12338_v30 = vor.u32 %v14018_v46, %v12337_v51 }
 0x257   : > { %2490 = vst [vmem:[%s15134_s11 + $0x18] sm:$0xff] %v2450_v41  ;;  %4903 = vmatmul.bf16.gmra.mxu2 %v15451_v10  ;;  %v15513_v41 = vsel %vm393_vm0, %v2817_v33, %v15470_v34  ;;  %v15518_v13 = vpack.c.b16 %v2635_v4, %v2635_v4  ;;  %v2834_v33 = vsel %vm393_vm0, %v2829_v7, %v15504_v27  ;;  %v2631_v39 = vunpack.c.l.b16 %v2531_v45  ;;  %v12209_v4 = vld [vmem:[#allocation2 + $0x6c0] sm:$0xf] }
 0x258   : > { %4952 = vmatmul.bf16.gmra.mxu3 %v15456_v44  ;;  %4991 = vmatpush.bf16.msrb.mxu0 %v12146_v12  ;;  %v3578_v56 = vshll.u32 %v15513_v41, 16  ;;  %v2719_v37 = vpack.c.b16 %v2633_v38, %v2703_v23  ;;  %v2632_v61 = vunpack.c.h.b16 %v2531_v45  ;;  %v15527_v3 = vshll.u32 %v2837_v22, 16 }
 0x259   : > { %5138 = vmatpush.bf16.msrb.mxu3 %v12338_v30  ;;  %v2634_v6 = vunpack.c.h.b16 %v15490_v2  ;;  %v3590_v51 = vshll.u32 %v2834_v33, 16  ;;  %v15532_v46 = vpack.c.b16 %v2633_v38, %v2631_v39  ;;  %v3565_v23 = vor.u32 %v3564_v5, %v3560_v9 }
 0x25a   : > { %v2403_v15 = vpop.f32.mrf.mxu2  ;;  %v2307_v28 = vpop.f32.mrf.mxu0  ;;  %v3576_v30 = vshrl.u32 %v15513_v41, 16  ;;  %v3580_v39 = vrot.slane %v3578_v56, 1 }
 0x25b   : > { %v2404_v62 = vadd.f32 %v2403_v15, %v2355_v31  ;;  %v2452_v59 = vpop.f32.mrf.mxu3  ;;  %v2356_v19 = vpop.f32.mrf.mxu1  ;;  %v2308_v16 = vadd.f32 %v2307_v28, %v15215_v20  ;;  %v15521_v31 = vshll.u32 %v2835_v53, 16  ;;  %v13986_v15 = vld [vmem:[#allocation2 + $0x6c4] sm:$0xf0]  ;;  %v2636_v20 = vunpack.c.h.b16 %v15493_v54  ;;  %v12329_v28 = vld [vmem:[#allocation2 + $0x7b0] sm:$0xf] }
 0x25c   : > { %v2704_v53 = vunpack.c.h.b16 %v15496_v35  ;;  %v12210_v7 = vor.u32 %v13986_v15, %v12209_v4  ;;  %v15536_v22 = vpack.c.b16 %v2634_v6, %v2632_v61  ;;  %v3642_v2 = vshll.u32 %v15532_v46, 16 }
 0x25d   : > { %v2453_v63 = vadd.f32 %v2452_v59, %v2404_v62  ;;  %v2847_v62 = vshll.u32 %v15518_v13, 16  ;;  %v2357_v59 = vadd.f32 %v2356_v19, %v2308_v16  ;;  %v15540_v54 = vpack.c.b16 %v2636_v20, %v2636_v20  ;;  %v13968_v19 = vld [vmem:[#allocation2 + $0x634] sm:$0xf0] }
 0x25e   : > { %5040 = vmatpush.bf16.msrb.mxu1 %v12210_v7  ;;  %v2842_v35 = vshll.u32 %v2719_v37, 16  ;;  %v2720_v9 = vpack.c.b16 %v2634_v6, %v2704_v53  ;;  %v3588_v61 = vshrl.u32 %v2834_v33, 16  ;;  %v3592_v4 = vrot.slane %v3590_v51, 1 }
 0x25f   : > { %2492 = vst [vmem:[%s15134_s11 + $0x28] sm:$0xff] %v2453_v63  ;;  %v15544_v41 = vrot.slane %v2847_v62, 1  ;;  %v3650_v20 = vshll.u32 %v15536_v22, 16  ;;  %v2840_v7 = vshrl.u32 %v2719_v37, 16  ;;  %v3640_v56 = vshrl.u32 %v15532_v46, 16 }
 0x260   : > { %v3644_v6 = vrot.slane %v3642_v2, 1  ;;  %v2863_v33 = vshrl.u32 %v15518_v13, 16  ;;  %v3573_v53 = vor.u32 %v3572_v17, %v3568_v25  ;;  %v2852_v51 = vshrl.u32 %v2720_v9, 16  ;;  %v15558_v37 = vld [vmem:[%s14696_s7 + $0x88] sm:$0x11] }
 0x261   : > { %v2854_v62 = vshll.u32 %v2720_v9, 16  ;;  %v15566_v13 = vsel %vm393_vm0, %v3565_v23, %v15470_v34  ;;  %v3581_v2 = vor.u32 %v3580_v39, %v3576_v30  ;;  %v12137_v25 = vld [vmem:[#allocation2 + $0x630] sm:$0xf]  ;;  %v2641_v60 = vunpack.c.l.b16 %v15558_v37  ;;  %v14016_v30 = vld [vmem:[#allocation2 + $0x7b4] sm:$0xf0] }
 0x262   : > { %v2405_v12 = vpop.f32.mrf.mxu2  ;;  %v2310_v63 = vpop.f32.mrf.mxu0  ;;  %v3652_v34 = vrot.slane %v3650_v20, 1  ;;  %v12138_v23 = vor.u32 %v13968_v19, %v12137_v25  ;;  %v2534_v19 = vld [vmem:[%s14696_s7 + $0x78] sm:$0xff] }
 0x263   : > { %v2406_v45 = vadd.f32 %v2405_v12, %v2357_v59  ;;  %v2454_v38 = vpop.f32.mrf.mxu3  ;;  %v2311_v5 = vadd.f32 %v2310_v63, %v15222_v49  ;;  %v2359_v16 = vpop.f32.mrf.mxu1  ;;  %v2844_v59 = vrot.slane %v2842_v35, 1  ;;  %v2859_v49 = vshll.u32 %v15540_v54, 16  ;;  %v15555_v12 = vld [vmem:[%s14696_s7 + $0x80] sm:$0xff]  ;;  %v15561_v35 = vld [vmem:[%s14696_s7 + $0x78] sm:$0xee] }
 0x264   : > { %v14000_v63 = vld [vmem:[#allocation2 + $0x734] sm:$0xf0]  ;;  %v2856_v9 = vrot.slane %v2854_v62, 1  ;;  %4992 = vmatpush.bf16.msrb.mxu0 %v12138_v23 }
 0x265   : > { %v2455_v15 = vadd.f32 %v2454_v38, %v2406_v45  ;;  %4810 = vmatmul.bf16.gmra.mxu0 %v15483_v29  ;;  %v2360_v46 = vadd.f32 %v2359_v16, %v2311_v5  ;;  %v3593_v45 = vor.u32 %v3592_v4, %v3588_v61  ;;  %v12265_v38 = vld [vmem:[#allocation2 + $0x730] sm:$0xf]  ;;  %v2845_v17 = vor.u32 %v2844_v59, %v2840_v7 }
 0x266   : > { %4859 = vmatmul.bf16.gmra.mxu1 %v15487_v24  ;;  %v15569_v5 = vrot.slane %v2859_v49, 1  ;;  %v3648_v16 = vshrl.u32 %v15536_v22, 16  ;;  %v12330_v7 = vor.u32 %v14016_v30, %v12329_v28  ;;  %v2639_v59 = vunpack.c.l.b16 %v15555_v12 }
 0x267   : > { %2494 = vst [vmem:[%s15134_s11 + $0x38] sm:$0xff] %v2455_v15  ;;  %4908 = vmatmul.bf16.gmra.mxu2 %v15500_v26  ;;  %v12266_v15 = vor.u32 %v14000_v63, %v12265_v38  ;;  %v15575_v49 = vsel %vm393_vm0, %v3573_v53, %v15504_v27  ;;  %v18758_v22 = vrot.slane %v15521_v31, 1  ;;  %v2850_v38 = vsel %vm393_vm0, %v2845_v17, %v15544_v41 }
 0x268   : > { %4957 = vmatmul.bf16.gmra.mxu3 %v15507_v11  ;;  %v2857_v11 = vor.u32 %v2856_v9, %v2852_v51  ;;  %18757 = vst [vmem:[#allocation19_spill] sm:$0xff] %v15575_v49  ;;  %v2705_v51 = vunpack.c.l.b16 %v15561_v35  ;;  %v15588_v27 = vpack.c.b16 %v2641_v60, %v2641_v60  ;;  %v18760_v31 = vrot.slane %v15527_v3, 1  ;;  %v12201_v9 = vld [vmem:[#allocation2 + $0x6b0] sm:$0xf] }
 0x269   : > { %5090 = vmatpush.bf16.msrb.mxu2 %v12266_v15  ;;  %v15580_v20 = vsel %vm393_vm0, %v3581_v2, %v18758_v22  ;;  %5139 = vmatpush.bf16.msrb.mxu3 %v12330_v7  ;;  %v3645_v2 = vor.u32 %v3644_v6, %v3640_v56  ;;  %v2637_v63 = vunpack.c.l.b16 %v2534_v19  ;;  %v3653_v25 = vor.u32 %v3652_v34, %v3648_v16  ;;  %v13984_v15 = vld [vmem:[#allocation2 + $0x6b4] sm:$0xf0] }
 0x26a   : > { %v2408_v26 = vpop.f32.mrf.mxu2  ;;  %v2312_v4 = vpop.f32.mrf.mxu0  ;;  %18759 = vst [vmem:[#allocation20_spill] sm:$0xff] %v15580_v20  ;;  %v15593_v53 = vsel %vm393_vm0, %v3593_v45, %v18760_v31  ;;  %v2721_v17 = vpack.c.b16 %v2639_v59, %v2705_v51  ;;  %v2640_v60 = vunpack.c.h.b16 %v15555_v12  ;;  %v3658_v23 = vshll.u32 %v2850_v38, 16 }
 0x26b   : > { %v2409_v39 = vadd.f32 %v2408_v26, %v2360_v46  ;;  %v2457_v61 = vpop.f32.mrf.mxu3  ;;  %v2361_v62 = vpop.f32.mrf.mxu1  ;;  %v2865_v26 = vshrl.u32 %v15540_v54, 16  ;;  %v2313_v46 = vadd.f32 %v2312_v4, %v15225_v14  ;;  %18761 = vst [vmem:[#allocation17_spill] sm:$0xff] %v15593_v53  ;;  %v15595_v54 = vshll.u32 %v2863_v33, 16 }
 0x26c   : > { %v2862_v14 = vsel %vm393_vm0, %v2857_v11, %v15569_v5  ;;  %v12202_v3 = vor.u32 %v13984_v15, %v12201_v9  ;;  %v2642_v45 = vunpack.c.h.b16 %v15558_v37  ;;  %v2875_v6 = vshll.u32 %v15588_v27, 16 }
 0x26d   : > { %v2458_v28 = vadd.f32 %v2457_v61, %v2409_v39  ;;  %v15601_v30 = vshll.u32 %v2865_v26, 16  ;;  %v2362_v56 = vadd.f32 %v2361_v62, %v2313_v46  ;;  %v2638_v33 = vunpack.c.h.b16 %v2534_v19 }
 0x26e   : > { %v2706_v16 = vunpack.c.h.b16 %v15561_v35  ;;  %v3670_v39 = vshll.u32 %v2862_v14, 16  ;;  %5041 = vmatpush.bf16.msrb.mxu1 %v12202_v3  ;;  %v15606_v11 = vpack.c.b16 %v2639_v59, %v2637_v63  ;;  %v15608_v61 = vpack.c.b16 %v2642_v45, %v2642_v45 }
 0x26f   : > { %2496 = vst [vmem:[%s15134_s11 + $0x48] sm:$0xff] %v2458_v28  ;;  %v2870_v12 = vshll.u32 %v2721_v17, 16  ;;  %v2868_v62 = vshrl.u32 %v2721_v17, 16  ;;  %v3656_v19 = vshrl.u32 %v2850_v38, 16  ;;  %v3660_v28 = vrot.slane %v3658_v23, 1 }
 0x270   : > { %v2722_v37 = vpack.c.b16 %v2640_v60, %v2706_v16  ;;  %v3668_v35 = vshrl.u32 %v2862_v14, 16  ;;  %v15613_v63 = vrot.slane %v2875_v6, 1  ;;  %v3672_v15 = vrot.slane %v3670_v39, 1  ;;  %v12257_v16 = vld [vmem:[#allocation2 + $0x720] sm:$0xf]  ;;  %v15635_v39 = vld [vmem:[%s14696_s7 + $0x98] sm:$0xff] }
 0x271   : > { %v2872_v9 = vrot.slane %v2870_v12, 1  ;;  %v3722_v3 = vshll.u32 %v15606_v11, 16  ;;  %v15617_v45 = vpack.c.b16 %v2640_v60, %v2638_v33  ;;  %v2887_v38 = vshll.u32 %v15608_v61, 16 }
 0x272   : > { %v2410_v34 = vpop.f32.mrf.mxu2  ;;  %v2315_v22 = vpop.f32.mrf.mxu0  ;;  %v2880_v17 = vshrl.u32 %v2722_v37, 16  ;;  %v2882_v23 = vshll.u32 %v2722_v37, 16  ;;  %v15631_v60 = vsel %vm393_vm0, %v3653_v25, %v15569_v5  ;;  %v3661_v6 = vor.u32 %v3660_v28, %v3656_v19  ;;  %v2549_v19 = vld [vmem:[%s14696_s7 + $0x90] sm:$0xee] }
 0x273   : > { %v2411_v4 = vadd.f32 %v2410_v34, %v2362_v56  ;;  %v2459_v7 = vpop.f32.mrf.mxu3  ;;  %v2364_v51 = vpop.f32.mrf.mxu1  ;;  %v2316_v59 = vadd.f32 %v2315_v22, %v15232_v32  ;;  %v2873_v14 = vor.u32 %v2872_v9, %v2868_v62  ;;  %v2891_v32 = vshrl.u32 %v15588_v27, 16  ;;  %18763 = vst [vmem:[#allocation23_spill] sm:$0xff] %v15631_v60  ;;  %v13998_v34 = vld [vmem:[#allocation2 + $0x724] sm:$0xf0]  ;;  %v12321_v62 = vld [vmem:[#allocation2 + $0x7a0] sm:$0xf] }
 0x274   : > { %v15627_v56 = vsel %vm393_vm0, %v3645_v2, %v15544_v41  ;;  %v3720_v33 = vshrl.u32 %v15606_v11, 16  ;;  %v12258_v41 = vor.u32 %v13998_v34, %v12257_v16  ;;  %v12129_v2 = vld [vmem:[#allocation2 + $0x620] sm:$0xf]  ;;  %v3673_v25 = vor.u32 %v3672_v15, %v3668_v35 }
 0x275   : > { %v2460_v31 = vadd.f32 %v2459_v7, %v2411_v4  ;;  %4815 = vmatmul.bf16.gmra.mxu0 %v15566_v13  ;;  %18762 = vst [vmem:[#allocation18_spill] sm:$0xff] %v15627_v56  ;;  %v2365_v27 = vadd.f32 %v2364_v51, %v2316_v59  ;;  %v15639_v12 = vsel %vm393_vm0, %v2873_v14, %v15613_v63  ;;  %v2884_v4 = vrot.slane %v2882_v23, 1  ;;  %v13966_v7 = vld [vmem:[#allocation2 + $0x624] sm:$0xf0]  ;;  %v2539_v23 = vld [vmem:[%s14696_s7 + $0xa0] sm:$0x11] }
 0x276   : > { %4864 = vmatmul.bf16.gmra.mxu1 %v15575_v49  ;;  %v15641_v22 = vrot.slane %v2887_v38, 1  ;;  %v3730_v11 = vshll.u32 %v15617_v45, 16  ;;  %v12130_v37 = vor.u32 %v13966_v7, %v12129_v2  ;;  %v3724_v59 = vrot.slane %v3722_v3, 1  ;;  %5091 = vmatpush.bf16.msrb.mxu2 %v12258_v41  ;;  %v14014_v14 = vld [vmem:[#allocation2 + $0x7a4] sm:$0xf0] }
 0x277   : > { %2498 = vst [vmem:[%s15134_s11 + $0x58] sm:$0xff] %v2460_v31  ;;  %4913 = vmatmul.bf16.gmra.mxu2 %v15580_v20  ;;  %v2885_v9 = vor.u32 %v2884_v4, %v2880_v17  ;;  %v2645_v16 = vunpack.c.l.b16 %v15635_v39  ;;  %v3728_v35 = vshrl.u32 %v15617_v45, 16  ;;  %v3738_v15 = vshll.u32 %v15639_v12, 16 }
 0x278   : > { %4962 = vmatmul.bf16.gmra.mxu3 %v15593_v53  ;;  %v2893_v38 = vshrl.u32 %v15608_v61, 16  ;;  %4993 = vmatpush.bf16.msrb.mxu0 %v12130_v37  ;;  %v12322_v2 = vor.u32 %v14014_v14, %v12321_v62  ;;  %v3743_v17 = vshll.u32 %v2891_v32, 16  ;;  %v2707_v4 = vunpack.c.l.b16 %v2549_v19  ;;  %v12193_v32 = vld [vmem:[#allocation2 + $0x6a0] sm:$0xf] }
 0x279   : > { %v3732_v41 = vrot.slane %v3730_v11, 1  ;;  %v2647_v26 = vunpack.c.l.b16 %v2539_v23  ;;  %v18764_v45 = vrot.slane %v15595_v54, 1  ;;  %v18766_v37 = vrot.slane %v15601_v30, 1  ;;  %v13982_v11 = vld [vmem:[#allocation2 + $0x6a4] sm:$0xf0] }
 0x27a   : > { %v2413_v5 = vpop.f32.mrf.mxu2  ;;  %v2317_v31 = vpop.f32.mrf.mxu0  ;;  %5140 = vmatpush.bf16.msrb.mxu3 %v12322_v2  ;;  %v2646_v14 = vunpack.c.h.b16 %v15635_v39  ;;  %v3725_v30 = vor.u32 %v3724_v59, %v3720_v33 }
 0x27b   : > { %v2414_v51 = vadd.f32 %v2413_v5, %v2365_v27  ;;  %v2462_v28 = vpop.f32.mrf.mxu3  ;;  %v2366_v34 = vpop.f32.mrf.mxu1  ;;  %v2537_v27 = vld [vmem:[%s14696_s7 + $0x90] sm:$0xff]  ;;  %v2318_v3 = vadd.f32 %v2317_v31, %v15235_v1  ;;  %v2890_v5 = vsel %vm393_vm0, %v2885_v9, %v15641_v22  ;;  %v15658_v61 = vsel %vm393_vm0, %v3661_v6, %v18764_v45 }
 0x27c   : > { %v2643_v46 = vunpack.c.l.b16 %v2537_v27  ;;  %18765 = vst [vmem:[#allocation24_spill] sm:$0xff] %v15658_v61  ;;  %v15663_v62 = vsel %vm393_vm0, %v3673_v25, %v18766_v37  ;;  %v3736_v1 = vshrl.u32 %v15639_v12, 16  ;;  %v15666_v31 = vshll.u32 %v2893_v38, 16 }
 0x27d   : > { %v2463_v7 = vadd.f32 %v2462_v28, %v2414_v51  ;;  %18767 = vst [vmem:[#allocation21_spill] sm:$0xff] %v15663_v62  ;;  %v2723_v51 = vpack.c.b16 %v2645_v16, %v2707_v4  ;;  %v3740_v28 = vrot.slane %v3738_v15, 1  ;;  %v12194_v9 = vor.u32 %v13982_v11, %v12193_v32 }
 0x27e   : > { %v2367_v54 = vadd.f32 %v2366_v34, %v2318_v3  ;;  %v3750_v2 = vshll.u32 %v2890_v5, 16  ;;  %v2648_v6 = vunpack.c.h.b16 %v2539_v23  ;;  %v15669_v25 = vpack.c.b16 %v2645_v16, %v2643_v46 }
 0x27f   : > { %2500 = vst [vmem:[%s15134_s11 + $0x68] sm:$0xff] %v2463_v7  ;;  %v2708_v7 = vunpack.c.h.b16 %v2549_v19  ;;  %5042 = vmatpush.bf16.msrb.mxu1 %v12194_v9  ;;  %v15671_v37 = vpack.c.b16 %v2647_v26, %v2647_v26  ;;  %v2898_v12 = vshll.u32 %v2723_v51, 16  ;;  %v3745_v38 = vrot.slane %v3743_v17, 1 }
 0x280   : > { %v2644_v20 = vunpack.c.h.b16 %v2537_v27  ;;  %v15673_v32 = vpack.c.b16 %v2648_v6, %v2648_v6  ;;  %v3733_v34 = vor.u32 %v3732_v41, %v3728_v35  ;;  %v3741_v23 = vor.u32 %v3740_v28, %v3736_v1  ;;  %v12249_v28 = vld [vmem:[#allocation2 + $0x710] sm:$0xf] }
 0x281   : > { %v3757_v19 = vrot.slane %v15666_v31, 1  ;;  %v2724_v33 = vpack.c.b16 %v2646_v14, %v2708_v7  ;;  %v3748_v26 = vshrl.u32 %v2890_v5, 16  ;;  %v3752_v16 = vrot.slane %v3750_v2, 1  ;;  %v15699_v31 = vld [vmem:[%s14696_s7 + $0xb8] sm:$0x11] }
 0x282   : > { %v2415_v45 = vpop.f32.mrf.mxu2  ;;  %v2320_v15 = vpop.f32.mrf.mxu0  ;;  %v2903_v3 = vshll.u32 %v15671_v37, 16  ;;  %v3802_v27 = vshll.u32 %v15669_v25, 16  ;;  %v2896_v17 = vshrl.u32 %v2723_v51, 16  ;;  %v2900_v11 = vrot.slane %v2898_v12, 1  ;;  %v12121_v6 = vld [vmem:[#allocation2 + $0x610] sm:$0xf] }
 0x283   : > { %v2416_v53 = vadd.f32 %v2415_v45, %v2367_v54  ;;  %v2464_v4 = vpop.f32.mrf.mxu3  ;;  %v2369_v39 = vpop.f32.mrf.mxu1  ;;  %v2321_v46 = vadd.f32 %v2320_v15, %v15242_v55  ;;  %v15683_v35 = vpack.c.b16 %v2646_v14, %v2644_v20  ;;  %v2915_v55 = vshll.u32 %v15673_v32, 16  ;;  %v13996_v20 = vld [vmem:[#allocation2 + $0x714] sm:$0xf0] }
 0x284   : > { %v2910_v41 = vshll.u32 %v2724_v33, 16  ;;  %v15689_v5 = vsel %vm393_vm0, %v3725_v30, %v15613_v63  ;;  %v15693_v1 = vsel %vm393_vm0, %v3733_v34, %v15641_v22  ;;  %v15696_v51 = vsel %vm393_vm0, %v3741_v23, %v3745_v38  ;;  %v13964_v63 = vld [vmem:[#allocation2 + $0x614] sm:$0xf0] }
 0x285   : > { %v2465_v59 = vadd.f32 %v2464_v4, %v2416_v53  ;;  %4820 = vmatmul.bf16.gmra.mxu0 %v15627_v56  ;;  %v2908_v53 = vshrl.u32 %v2724_v33, 16  ;;  %18768 = vst [vmem:[#allocation22_spill] sm:$0xff] %v15689_v5  ;;  %v2370_v9 = vadd.f32 %v2369_v39, %v2321_v46  ;;  %v3753_v14 = vor.u32 %v3752_v16, %v3748_v26  ;;  %v12313_v4 = vld [vmem:[#allocation2 + $0x790] sm:$0xf]  ;;  %v14012_v15 = vld [vmem:[#allocation2 + $0x794] sm:$0xf0] }
 0x286   : > { %4869 = vmatmul.bf16.gmra.mxu1 %v15631_v60  ;;  %18769 = vst [vmem:[#allocation27_spill] sm:$0xff] %v15693_v1  ;;  %v2912_v54 = vrot.slane %v2910_v41, 1  ;;  %v12250_v2 = vor.u32 %v13996_v20, %v12249_v28  ;;  %v15701_v45 = vrot.slane %v2903_v3, 1  ;;  %v3800_v22 = vshrl.u32 %v15669_v25, 16  ;;  %v2550_v46 = vld [vmem:[%s14696_s7 + $0xa8] sm:$0xee] }
 0x287   : > { %2502 = vst [vmem:[%s15134_s11 + $0x78] sm:$0xff] %v2465_v59  ;;  %4918 = vmatmul.bf16.gmra.mxu2 %v15658_v61  ;;  %v2901_v30 = vor.u32 %v2900_v11, %v2896_v17  ;;  %v12122_v12 = vor.u32 %v13964_v63, %v12121_v6  ;;  %v15704_v23 = vrot.slane %v2915_v55, 1  ;;  %v3810_v33 = vshll.u32 %v15683_v35, 16  ;;  %v15708_v59 = vld [vmem:[%s14696_s7 + $0xb0] sm:$0xff]  ;;  %v2540_v41 = vld [vmem:[%s14696_s7 + $0xa8] sm:$0xff] }
 0x288   : > { %4967 = vmatmul.bf16.gmra.mxu3 %v15663_v62  ;;  %18770 = vst [vmem:[#allocation28_spill] sm:$0xff] %v15696_v51  ;;  %5092 = vmatpush.bf16.msrb.mxu2 %v12250_v2  ;;  %v2653_v26 = vunpack.c.l.b16 %v15699_v31  ;;  %v3804_v25 = vrot.slane %v3802_v27, 1  ;;  %v2919_v3 = vshrl.u32 %v15671_v37, 16  ;;  %v2913_v17 = vor.u32 %v2912_v54, %v2908_v53 }
 0x289   : > { %4994 = vmatpush.bf16.msrb.mxu0 %v12122_v12  ;;  %v12314_v11 = vor.u32 %v14012_v15, %v12313_v4  ;;  %v15716_v20 = vsel %vm393_vm0, %v3753_v14, %v3757_v19  ;;  %v15721_v2 = vsel %vm393_vm0, %v2901_v30, %v15701_v45  ;;  %v2649_v27 = vunpack.c.l.b16 %v2540_v41  ;;  %v12185_v19 = vld [vmem:[#allocation2 + $0x690] sm:$0xf] }
 0x28a   : > { %v2418_v7 = vpop.f32.mrf.mxu2  ;;  %v2322_v39 = vpop.f32.mrf.mxu0  ;;  %18771 = vst [vmem:[#allocation25_spill] sm:$0xff] %v15716_v20  ;;  %v2651_v37 = vunpack.c.l.b16 %v15708_v59  ;;  %v2709_v53 = vunpack.c.l.b16 %v2550_v46  ;;  %v3808_v54 = vshrl.u32 %v15683_v35, 16  ;;  %v3812_v6 = vrot.slane %v3810_v33, 1 }
 0x28b   : > { %v2419_v38 = vadd.f32 %v2418_v7, %v2370_v9  ;;  %v2467_v34 = vpop.f32.mrf.mxu3  ;;  %v2371_v16 = vpop.f32.mrf.mxu1  ;;  %v2323_v55 = vadd.f32 %v2322_v39, %v15245_v42  ;;  %v2921_v9 = vshrl.u32 %v15673_v32, 16  ;;  %5141 = vmatpush.bf16.msrb.mxu3 %v12314_v11  ;;  %v15728_v42 = vsel %vm393_vm0, %v2913_v17, %v15704_v23  ;;  %v13980_v7 = vld [vmem:[#allocation2 + $0x694] sm:$0xf0] }
 0x28c   : > { %v15730_v14 = vpack.c.b16 %v2653_v26, %v2653_v26  ;;  %v3805_v32 = vor.u32 %v3804_v25, %v3800_v22  ;;  %v15732_v63 = vshll.u32 %v2919_v3, 16  ;;  %v2652_v30 = vunpack.c.h.b16 %v15708_v59 }
 0x28d   : > { %v2468_v28 = vadd.f32 %v2467_v34, %v2419_v38  ;;  %v2654_v12 = vunpack.c.h.b16 %v15699_v31  ;;  %v2372_v4 = vadd.f32 %v2371_v16, %v2323_v55  ;;  %v3818_v15 = vshll.u32 %v15721_v2, 16 }
 0x28e   : > { %v15737_v35 = vshll.u32 %v2921_v9, 16  ;;  %v12186_v38 = vor.u32 %v13980_v7, %v12185_v19  ;;  %v3830_v39 = vshll.u32 %v15728_v42, 16  ;;  %v15740_v33 = vpack.c.b16 %v2651_v37, %v2649_v27 }
 0x28f   : > { %2504 = vst [vmem:[%s15134_s11 + $0x88] sm:$0xff] %v2468_v28  ;;  %v2725_v26 = vpack.c.b16 %v2651_v37, %v2709_v53  ;;  %v2710_v22 = vunpack.c.h.b16 %v2550_v46  ;;  %v3813_v11 = vor.u32 %v3812_v6, %v3808_v54  ;;  %v2931_v31 = vshll.u32 %v15730_v14, 16 }
 0x290   : > { %5043 = vmatpush.bf16.msrb.mxu1 %v12186_v38  ;;  %v2650_v59 = vunpack.c.h.b16 %v2540_v41  ;;  %v3816_v28 = vshrl.u32 %v15721_v2, 16  ;;  %v3825_v55 = vrot.slane %v15732_v63, 1  ;;  %v15745_v9 = vpack.c.b16 %v2654_v12, %v2654_v12  ;;  %v12241_v38 = vld [vmem:[#allocation2 + $0x700] sm:$0xf] }
 0x291   : > { %v2726_v27 = vpack.c.b16 %v2652_v30, %v2710_v22  ;;  %v3820_v37 = vrot.slane %v3818_v15, 1  ;;  %v3837_v53 = vrot.slane %v15737_v35, 1  ;;  %v3828_v54 = vshrl.u32 %v15728_v42, 16  ;;  %v13994_v22 = vld [vmem:[#allocation2 + $0x704] sm:$0xf0] }
 0x292   : > { %v2420_v34 = vpop.f32.mrf.mxu2  ;;  %v2325_v17 = vpop.f32.mrf.mxu0  ;;  %v3832_v6 = vrot.slane %v3830_v39, 1  ;;  %v3882_v41 = vshll.u32 %v15740_v33, 16  ;;  %v2926_v7 = vshll.u32 %v2725_v26, 16  ;;  %v15755_v2 = vrot.slane %v2931_v31, 1 }
 0x293   : > { %v2421_v25 = vadd.f32 %v2420_v34, %v2372_v4  ;;  %v2469_v3 = vpop.f32.mrf.mxu3  ;;  %v2374_v16 = vpop.f32.mrf.mxu1  ;;  %v2326_v46 = vadd.f32 %v2325_v17, %v15261_v48  ;;  %v3880_v48 = vshrl.u32 %v15740_v33, 16  ;;  %v15758_v63 = vpack.c.b16 %v2652_v30, %v2650_v59  ;;  %v13962_v59 = vld [vmem:[#allocation2 + $0x604] sm:$0xf0] }
 0x294   : > { %v2924_v12 = vshrl.u32 %v2725_v26, 16  ;;  %v2943_v42 = vshll.u32 %v15745_v9, 16  ;;  %v2928_v4 = vrot.slane %v2926_v7, 1  ;;  %v2936_v15 = vshrl.u32 %v2726_v27, 16 }
 0x295   : > { %v2470_v19 = vadd.f32 %v2469_v3, %v2421_v25  ;;  %4825 = vmatmul.bf16.gmra.mxu0 %v15689_v5  ;;  %v2938_v35 = vshll.u32 %v2726_v27, 16  ;;  %v2375_v34 = vadd.f32 %v2374_v16, %v2326_v46  ;;  %v15764_v39 = vsel %vm393_vm0, %v3805_v32, %v15701_v45  ;;  %v12113_v25 = vld [vmem:[#allocation2 + $0x600] sm:$0xf]  ;;  %v15767_v3 = vld [vmem:[%s14696_s7 + $0x28] sm:$0x11] }
 0x296   : > { %4874 = vmatmul.bf16.gmra.mxu1 %v15693_v1  ;;  %18772 = vst [vmem:[#allocation26_spill] sm:$0xff] %v15764_v39  ;;  %v3821_v33 = vor.u32 %v3820_v37, %v3816_v28  ;;  %v3884_v26 = vrot.slane %v3882_v41, 1  ;;  %v12242_v31 = vor.u32 %v13994_v22, %v12241_v38  ;;  %v3833_v46 = vor.u32 %v3832_v6, %v3828_v54  ;;  %v14010_v32 = vld [vmem:[#allocation2 + $0x784] sm:$0xf0]  ;;  %v11847_v38 = vld [vmem:[%s14696_s7 + $0x18] sm:$0xee] }
 0x297   : > { %2506 = vst [vmem:[%s15134_s11 + $0x98] sm:$0xff] %v2470_v19  ;;  %4923 = vmatmul.bf16.gmra.mxu2 %v15696_v51  ;;  %v2940_v17 = vrot.slane %v2938_v35, 1  ;;  %v12305_v19 = vld [vmem:[#allocation2 + $0x780] sm:$0xf]  ;;  %v12114_v45 = vor.u32 %v13962_v59, %v12113_v25  ;;  %v15771_v1 = vsel %vm393_vm0, %v3813_v11, %v15704_v23  ;;  %v15773_v28 = vrot.slane %v2943_v42, 1 }
 0x298   : > { %4972 = vmatmul.bf16.gmra.mxu3 %v15716_v20  ;;  %v2929_v20 = vor.u32 %v2928_v4, %v2924_v12  ;;  %18773 = vst [vmem:[#allocation31_spill] sm:$0xff] %v15771_v1  ;;  %v3890_v37 = vshll.u32 %v15758_v63, 16  ;;  %5093 = vmatpush.bf16.msrb.mxu2 %v12242_v31  ;;  %v15777_v35 = vld [vmem:[%s14696_s7 + $0x20] sm:$0xff]  ;;  %v12306_v6 = vor.u32 %v14010_v32, %v12305_v19  ;;  %v2979_v12 = vunpack.c.l.b16 %v15767_v3  ;;  %v12075_v5 = vld [vmem:[#allocation2 + $0x5b8] sm:$0xf0] }
 0x299   : > { %v2941_v41 = vor.u32 %v2940_v17, %v2936_v15  ;;  %4995 = vmatpush.bf16.msrb.mxu0 %v12114_v45  ;;  %v15783_v23 = vsel %vm393_vm0, %v3821_v33, %v3825_v55  ;;  %v3885_v11 = vor.u32 %v3884_v26, %v3880_v48  ;;  %v3888_v42 = vshrl.u32 %v15758_v63, 16  ;;  %v12177_v22 = vld [vmem:[#allocation2 + $0x680] sm:$0xf]  ;;  %v11823_v63 = vld [vmem:[%s14696_s7 + $0x18] sm:$0xff] }
 0x29a   : > { %v2423_v30 = vpop.f32.mrf.mxu2  ;;  %v2327_v16 = vpop.f32.mrf.mxu0  ;;  %18774 = vst [vmem:[#allocation32_spill] sm:$0xff] %v15783_v23  ;;  %v2947_v4 = vshrl.u32 %v15730_v14, 16  ;;  %v15789_v15 = vsel %vm393_vm0, %v3833_v46, %v3837_v53  ;;  %5142 = vmatpush.bf16.msrb.mxu3 %v12306_v6  ;;  %v2977_v25 = vunpack.c.l.b16 %v15777_v35  ;;  %v3892_v17 = vrot.slane %v3890_v37, 1  ;;  %v13978_v14 = vld [vmem:[#allocation2 + $0x684] sm:$0xf0] }
 0x29b   : > { %v2424_v27 = vadd.f32 %v2423_v30, %v2375_v34  ;;  %v2472_v7 = vpop.f32.mrf.mxu3  ;;  %v2376_v51 = vpop.f32.mrf.mxu1  ;;  %v2328_v54 = vadd.f32 %v2327_v16, %v15278_v36  ;;  %18775 = vst [vmem:[#allocation29_spill] sm:$0xff] %v15789_v15  ;;  %v2934_v36 = vsel %vm393_vm0, %v2929_v20, %v15755_v2  ;;  %v3063_v30 = vunpack.c.l.b16 %v11847_v38 }
 0x29c   : > { %v15796_v55 = vsel %vm393_vm0, %v2941_v41, %v15773_v28  ;;  %v2949_v48 = vshrl.u32 %v15745_v9, 16  ;;  %v2978_v53 = vunpack.c.h.b16 %v15777_v35  ;;  %v12178_v26 = vor.u32 %v13978_v14, %v12177_v22 }
 0x29d   : > { %v2473_v34 = vadd.f32 %v2472_v7, %v2424_v27  ;;  %v2377_v33 = vadd.f32 %v2376_v51, %v2328_v54  ;;  %v15801_v31 = vpack.c.b16 %v2979_v12, %v2979_v12  ;;  %v2980_v20 = vunpack.c.h.b16 %v15767_v3 }
 0x29e   : > { %v15806_v19 = vsel %vm393_vm0, %v3885_v11, %v15755_v2  ;;  %v3898_v27 = vshll.u32 %v2934_v36, 16  ;;  %v15808_v7 = vshll.u32 %v2947_v4, 16  ;;  %v3064_v16 = vunpack.c.h.b16 %v11847_v38  ;;  %5044 = vmatpush.bf16.msrb.mxu1 %v12178_v26  ;;  %v13943_v26 = vld [vmem:[#allocation2 + $0x574] sm:$0xf] }
 0x29f   : > { %2508 = vst [vmem:[%s15134_s11 + $0xa8] sm:$0xff] %v2473_v34  ;;  %v3910_v32 = vshll.u32 %v15796_v55, 16  ;;  %v2975_v51 = vunpack.c.l.b16 %v11823_v63  ;;  %v3079_v37 = vpack.c.b16 %v2977_v25, %v3063_v30  ;;  %v3893_v3 = vor.u32 %v3892_v17, %v3888_v42 }
 0x2a0   : > { %18776 = vst [vmem:[#allocation30_spill] sm:$0xff] %v15806_v19  ;;  %v2976_v35 = vunpack.c.h.b16 %v11823_v63  ;;  %v15811_v34 = vpack.c.b16 %v2980_v20, %v2980_v20  ;;  %v3080_v2 = vpack.c.b16 %v2978_v53, %v3064_v16  ;;  %v15814_v12 = vshll.u32 %v2949_v48, 16 }
 0x2a1   : > { %v3103_v38 = vshll.u32 %v15801_v31, 16  ;;  %v3896_v11 = vshrl.u32 %v2934_v36, 16  ;;  %v3900_v4 = vrot.slane %v3898_v27, 1  ;;  %v3905_v22 = vrot.slane %v15808_v7, 1  ;;  %v12043_v27 = vld [vmem:[#allocation2 + $0x578] sm:$0xf0] }
 0x2a2   : > { %v2425_v59 = vpop.f32.mrf.mxu2  ;;  %v2330_v45 = vpop.f32.mrf.mxu0  ;;  %v3908_v30 = vshrl.u32 %v15796_v55, 16  ;;  %v3912_v42 = vrot.slane %v3910_v32, 1  ;;  %v15823_v17 = vpack.c.b16 %v2977_v25, %v2975_v51  ;;  %v3098_v48 = vshll.u32 %v3079_v37, 16  ;;  %v13911_v7 = vld [vmem:[#allocation2 + $0x474] sm:$0xf] }
 0x2a3   : > { %v2426_v9 = vadd.f32 %v2425_v59, %v2377_v33  ;;  %v2474_v46 = vpop.f32.mrf.mxu3  ;;  %v2379_v41 = vpop.f32.mrf.mxu1  ;;  %v2331_v6 = vadd.f32 %v2330_v45, %v15305_v8  ;;  %v3096_v8 = vshrl.u32 %v3079_v37, 16  ;;  %v15826_v14 = vpack.c.b16 %v2978_v53, %v2976_v35  ;;  %v11915_v32 = vld [vmem:[#allocation2 + $0x478] sm:$0xf0]  ;;  %v13959_v51 = vld [vmem:[#allocation2 + $0x5f4] sm:$0xf] }
 0x2a4   : > { %v3115_v36 = vshll.u32 %v15811_v34, 16  ;;  %v3108_v63 = vshrl.u32 %v3080_v2, 16  ;;  %v3110_v33 = vshll.u32 %v3080_v2, 16  ;;  %v15831_v20 = vsel %vm393_vm0, %v3893_v3, %v15773_v28 }
 0x2a5   : > { %v2475_v54 = vadd.f32 %v2474_v46, %v2426_v9  ;;  %4830 = vmatmul.bf16.gmra.mxu0 %v15764_v39  ;;  %v2380_v55 = vadd.f32 %v2379_v41, %v2331_v6  ;;  %18777 = vst [vmem:[#allocation35_spill] sm:$0xff] %v15831_v20  ;;  %v15833_v59 = vrot.slane %v3103_v38, 1  ;;  %v3100_v25 = vrot.slane %v3098_v48, 1  ;;  %v15841_v48 = vld [vmem:[%s14696_s7 + $0x38] sm:$0xff]  ;;  %v13951_v39 = vld [vmem:[#allocation2 + $0x5b4] sm:$0xf] }
 0x2a6   : > { %4879 = vmatmul.bf16.gmra.mxu1 %v15771_v1  ;;  %v3901_v9 = vor.u32 %v3900_v4, %v3896_v11  ;;  %v3917_v53 = vrot.slane %v15814_v12, 1  ;;  %v3112_v46 = vrot.slane %v3110_v33, 1  ;;  %v12046_v45 = vor.u32 %v13943_v26, %v12043_v27  ;;  %v11848_v33 = vld [vmem:[%s14696_s7 + $0x30] sm:$0xee] }
 0x2a7   : > { %2510 = vst [vmem:[%s15134_s11 + $0xb8] sm:$0xff] %v2475_v54  ;;  %4928 = vmatmul.bf16.gmra.mxu2 %v15783_v23  ;;  %v3913_v28 = vor.u32 %v3912_v42, %v3908_v30  ;;  %v3362_v3 = vshll.u32 %v15823_v17, 16  ;;  %v3101_v2 = vor.u32 %v3100_v25, %v3096_v8  ;;  %v12107_v54 = vld [vmem:[#allocation2 + $0x5f8] sm:$0xf0]  ;;  %v15837_v38 = vrot.slane %v3115_v36, 1 }
 0x2a8   : > { %4977 = vmatmul.bf16.gmra.mxu3 %v15789_v15  ;;  %v3370_v11 = vshll.u32 %v15826_v14, 16  ;;  %v3113_v12 = vor.u32 %v3112_v46, %v3108_v63  ;;  %5282 = vmatpush.bf16.msra.mxu2 %v12046_v45  ;;  %v11918_v4 = vor.u32 %v13911_v7, %v11915_v32  ;;  %v12110_v8 = vor.u32 %v13959_v51, %v12107_v54  ;;  %v11979_v36 = vld [vmem:[#allocation2 + $0x4f8] sm:$0xf0]  ;;  %v11834_v23 = vld [vmem:[%s14696_s7 + $0x70] sm:$0x11] }
 0x2a9   : > { %v3106_v42 = vsel %vm393_vm0, %v3101_v2, %v15833_v59  ;;  %v15848_v25 = vsel %vm393_vm0, %v3901_v9, %v3905_v22  ;;  %v3360_v63 = vshrl.u32 %v15823_v17, 16  ;;  %v3119_v27 = vshrl.u32 %v15801_v31, 16 }
 0x2aa   : > { %v2428_v16 = vpop.f32.mrf.mxu2  ;;  %v2332_v35 = vpop.f32.mrf.mxu0  ;;  %18778 = vst [vmem:[#allocation36_spill] sm:$0xff] %v15848_v25  ;;  %v3121_v7 = vshrl.u32 %v15811_v34, 16  ;;  %5184 = vmatpush.bf16.msra.mxu0 %v11918_v4  ;;  %5331 = vmatpush.bf16.msra.mxu3 %v12110_v8  ;;  %v2983_v45 = vunpack.c.l.b16 %v15841_v48  ;;  %v3065_v32 = vunpack.c.l.b16 %v11848_v33  ;;  %v15857_v51 = vsel %vm393_vm0, %v3913_v28, %v3917_v53  ;;  %v11826_v34 = vld [vmem:[%s14696_s7 + $0x30] sm:$0xff] }
 0x2ab   : > { %v2429_v37 = vadd.f32 %v2428_v16, %v2380_v55  ;;  %v2477_v41 = vpop.f32.mrf.mxu3  ;;  %v2381_v6 = vpop.f32.mrf.mxu1  ;;  %v2333_v30 = vadd.f32 %v2332_v35, %v15327_v57  ;;  %v13927_v55 = vld [vmem:[#allocation2 + $0x4f4] sm:$0xf]  ;;  %v11828_v16 = vld [vmem:[%s14696_s7 + $0x40] sm:$0x11]  ;;  %v3364_v57 = vrot.slane %v3362_v3, 1  ;;  %18779 = vst [vmem:[#allocation33_spill] sm:$0xff] %v15857_v51  ;;  %v15862_v31 = vsel %vm393_vm0, %v3113_v12, %v15837_v38 }
 0x2ac   : > { %v11982_v46 = vor.u32 %v13927_v55, %v11979_v36  ;;  %v3368_v22 = vshrl.u32 %v15826_v14, 16  ;;  %v3378_v9 = vshll.u32 %v3106_v42, 16  ;;  %v2986_v35 = vunpack.c.h.b16 %v11828_v16 }
 0x2ad   : > { %v2478_v26 = vadd.f32 %v2477_v41, %v2429_v37  ;;  %v2382_v17 = vadd.f32 %v2381_v6, %v2333_v30  ;;  %v3372_v37 = vrot.slane %v3370_v11, 1  ;;  %v2985_v41 = vunpack.c.l.b16 %v11828_v16 }
 0x2ae   : > { %5233 = vmatpush.bf16.msra.mxu1 %v11982_v46  ;;  %v15865_v2 = vshll.u32 %v3119_v27, 16  ;;  %v15867_v54 = vshll.u32 %v3121_v7, 16  ;;  %v2984_v53 = vunpack.c.h.b16 %v15841_v48  ;;  %v3066_v28 = vunpack.c.h.b16 %v11848_v33 }
 0x2af   : > { %2512 = vst [vmem:[%s15134_s11 + $0xc8] sm:$0xff] %v2478_v26  ;;  %v3390_v12 = vshll.u32 %v15862_v31, 16  ;;  %v2981_v8 = vunpack.c.l.b16 %v11826_v34  ;;  %v15871_v6 = vpack.c.b16 %v2983_v45, %v3065_v32  ;;  %v3365_v30 = vor.u32 %v3364_v57, %v3360_v63 }
 0x2b0   : > { %v3376_v55 = vshrl.u32 %v3106_v42, 16  ;;  %v3380_v36 = vrot.slane %v3378_v9, 1  ;;  %v2982_v27 = vunpack.c.h.b16 %v11826_v34  ;;  %v15874_v46 = vpack.c.b16 %v2985_v41, %v2985_v41  ;;  %v13941_v41 = vld [vmem:[#allocation2 + $0x564] sm:$0xf] }
 0x2b1   : > { %v15876_v48 = vpack.c.b16 %v2986_v35, %v2986_v35  ;;  %v3373_v33 = vor.u32 %v3372_v37, %v3368_v22  ;;  %v3388_v42 = vshrl.u32 %v15862_v31, 16  ;;  %v15885_v63 = vpack.c.b16 %v2983_v45, %v2981_v8  ;;  %v13909_v8 = vld [vmem:[#allocation2 + $0x464] sm:$0xf] }
 0x2b2   : > { %v2430_v3 = vpop.f32.mrf.mxu2  ;;  %v2335_v26 = vpop.f32.mrf.mxu0  ;;  %v3126_v57 = vshll.u32 %v15871_v6, 16  ;;  %v3381_v22 = vor.u32 %v3380_v36, %v3376_v55  ;;  %v15889_v9 = vpack.c.b16 %v2984_v53, %v2982_v27  ;;  %v3124_v34 = vshrl.u32 %v15871_v6, 16  ;;  %v11907_v6 = vld [vmem:[#allocation2 + $0x468] sm:$0xf0] }
 0x2b3   : > { %v2431_v14 = vadd.f32 %v2430_v3, %v2382_v17  ;;  %v2479_v4 = vpop.f32.mrf.mxu3  ;;  %v2384_v11 = vpop.f32.mrf.mxu1  ;;  %v2336_v7 = vadd.f32 %v2335_v26, %v15372_v47  ;;  %v3385_v17 = vrot.slane %v15865_v2, 1  ;;  %v3082_v3 = vpack.c.b16 %v2984_v53, %v3066_v28 }
 0x2b4   : > { %v3392_v47 = vrot.slane %v3390_v12, 1  ;;  %v3131_v2 = vshll.u32 %v15874_v46, 16  ;;  %v3143_v28 = vshll.u32 %v15876_v48, 16  ;;  %v3128_v26 = vrot.slane %v3126_v57, 1 }
 0x2b5   : > { %v2480_v16 = vadd.f32 %v2479_v4, %v2431_v14  ;;  %4835 = vmatmul.bf16.gmra.mxu0 %v15806_v19  ;;  %v3138_v37 = vshll.u32 %v3082_v3, 16  ;;  %v2385_v35 = vadd.f32 %v2384_v11, %v2336_v7  ;;  %v3136_v31 = vshrl.u32 %v3082_v3, 16  ;;  %v12035_v14 = vld [vmem:[#allocation2 + $0x568] sm:$0xf0] }
 0x2b6   : > { %4884 = vmatmul.bf16.gmra.mxu1 %v15831_v20  ;;  %v15896_v4 = vsel %vm393_vm0, %v3365_v30, %v15833_v59  ;;  %v12038_v53 = vor.u32 %v13941_v41, %v12035_v14  ;;  %v15900_v27 = vsel %vm393_vm0, %v3373_v33, %v15837_v38  ;;  %v3442_v59 = vshll.u32 %v15885_v63, 16  ;;  %v13957_v30 = vld [vmem:[#allocation2 + $0x5e4] sm:$0xf]  ;;  %v12099_v7 = vld [vmem:[#allocation2 + $0x5e8] sm:$0xf0]  ;;  %v15910_v38 = vld [vmem:[%s14696_s7 + $0x50] sm:$0xff] }
 0x2b7   : > { %2514 = vst [vmem:[%s15134_s11 + $0xd8] sm:$0xff] %v2480_v16  ;;  %4933 = vmatmul.bf16.gmra.mxu2 %v15848_v25  ;;  %v3140_v12 = vrot.slane %v3138_v37, 1  ;;  %v3440_v16 = vshrl.u32 %v15885_v63, 16  ;;  %v3393_v57 = vor.u32 %v3392_v47, %v3388_v42  ;;  %v3450_v37 = vshll.u32 %v15889_v9, 16  ;;  %v15907_v14 = vld [vmem:[%s14696_s7 + $0x48] sm:$0xff] }
 0x2b8   : > { %4982 = vmatmul.bf16.gmra.mxu3 %v15857_v51  ;;  %18780 = vst [vmem:[#allocation34_spill] sm:$0xff] %v15896_v4  ;;  %v3147_v41 = vshrl.u32 %v15874_v46, 16  ;;  %5283 = vmatpush.bf16.msra.mxu2 %v12038_v53  ;;  %v11849_v33 = vld [vmem:[%s14696_s7 + $0x48] sm:$0xee]  ;;  %v15915_v32 = vsel %vm393_vm0, %v3381_v22, %v3385_v17  ;;  %v12102_v51 = vor.u32 %v13957_v30, %v12099_v7  ;;  %v13925_v42 = vld [vmem:[#allocation2 + $0x4e4] sm:$0xf]  ;;  %v2987_v17 = vunpack.c.l.b16 %v15907_v14 }
 0x2b9   : > { %18781 = vst [vmem:[#allocation39_spill] sm:$0xff] %v15900_v27  ;;  %v11971_v47 = vld [vmem:[#allocation2 + $0x4e8] sm:$0xf0]  ;;  %v11831_v25 = vld [vmem:[%s14696_s7 + $0x58] sm:$0x11]  ;;  %v15918_v20 = vrot.slane %v3131_v2, 1  ;;  %v3129_v53 = vor.u32 %v3128_v26, %v3124_v34  ;;  %v3067_v2 = vunpack.c.l.b16 %v11849_v33  ;;  %v3068_v26 = vunpack.c.h.b16 %v11849_v33 }
 0x2ba   : > { %v2433_v45 = vpop.f32.mrf.mxu2  ;;  %v2337_v36 = vpop.f32.mrf.mxu0  ;;  %18782 = vst [vmem:[#allocation40_spill] sm:$0xff] %v15915_v32  ;;  %v15920_v46 = vrot.slane %v3143_v28, 1  ;;  %5332 = vmatpush.bf16.msra.mxu3 %v12102_v51  ;;  %v3149_v22 = vshrl.u32 %v15876_v48, 16  ;;  %v3452_v28 = vrot.slane %v3450_v37, 1  ;;  %v15927_v7 = vshll.u32 %v3147_v41, 16 }
 0x2bb   : > { %v2434_v55 = vadd.f32 %v2433_v45, %v2385_v35  ;;  %v2482_v11 = vpop.f32.mrf.mxu3  ;;  %v2386_v3 = vpop.f32.mrf.mxu1  ;;  %v11910_v35 = vor.u32 %v13909_v8, %v11907_v6  ;;  %v2338_v63 = vadd.f32 %v2337_v36, %v15407_v0  ;;  %v3141_v8 = vor.u32 %v3140_v12, %v3136_v31 }
 0x2bc   : > { %v3444_v6 = vrot.slane %v3442_v59, 1  ;;  %v11974_v0 = vor.u32 %v13925_v42, %v11971_v47  ;;  %v2991_v36 = vunpack.c.l.b16 %v11831_v25  ;;  %v2992_v34 = vunpack.c.h.b16 %v11831_v25 }
 0x2bd   : > { %v2483_v45 = vadd.f32 %v2482_v11, %v2434_v55  ;;  %5185 = vmatpush.bf16.msra.mxu0 %v11910_v35  ;;  %v3448_v55 = vshrl.u32 %v15889_v9, 16  ;;  %v2989_v11 = vunpack.c.l.b16 %v15910_v38  ;;  %v2387_v30 = vadd.f32 %v2386_v3, %v2338_v63 }
 0x2be   : > { %5234 = vmatpush.bf16.msra.mxu1 %v11974_v0  ;;  %v15931_v9 = vsel %vm393_vm0, %v3129_v53, %v15918_v20  ;;  %v15935_v51 = vsel %vm393_vm0, %v3141_v8, %v15920_v46  ;;  %v2990_v48 = vunpack.c.h.b16 %v15910_v38  ;;  %v18783_v37 = vrot.slane %v15867_v54, 1 }
 0x2bf   : > { %2516 = vst [vmem:[%s15134_s11 + $0xe8] sm:$0xff] %v2483_v45  ;;  %v15943_v25 = vpack.c.b16 %v2989_v11, %v2987_v17  ;;  %v15945_v35 = vpack.c.b16 %v2991_v36, %v2991_v36  ;;  %v15948_v42 = vor.u32 %v3444_v6, %v3440_v16  ;;  %v15950_v38 = vshll.u32 %v3149_v22, 16  ;;  %v13907_v17 = vld [vmem:[#allocation2 + $0x454] sm:$0xf] }
 0x2c0   : > { %v15941_v41 = vsel %vm393_vm0, %v3393_v57, %v18783_v37  ;;  %v3083_v33 = vpack.c.b16 %v2989_v11, %v3067_v2  ;;  %v3458_v53 = vshll.u32 %v15931_v9, 16  ;;  %v3470_v54 = vshll.u32 %v15935_v51, 16 }
 0x2c1   : > { %18784 = vst [vmem:[#allocation37_spill] sm:$0xff] %v15941_v41  ;;  %v15954_v57 = vpack.c.b16 %v2992_v34, %v2992_v34  ;;  %v3453_v0 = vor.u32 %v3452_v28, %v3448_v55  ;;  %v3084_v36 = vpack.c.b16 %v2990_v48, %v3068_v26  ;;  %v3159_v16 = vshll.u32 %v15945_v35, 16  ;;  %v13939_v34 = vld [vmem:[#allocation2 + $0x554] sm:$0xf] }
 0x2c2   : > { %v2435_v31 = vpop.f32.mrf.mxu2  ;;  %v4801_v3 = vpop.f32.mrf.mxu0  ;;  %v3522_v6 = vshll.u32 %v15943_v25, 16  ;;  %v2988_v22 = vunpack.c.h.b16 %v15907_v14  ;;  %v3152_v2 = vshrl.u32 %v3083_v33, 16  ;;  %v3154_v55 = vshll.u32 %v3083_v33, 16 }
 0x2c3   : > { %v2436_v12 = vadd.f32 %v2435_v31, %v2387_v30  ;;  %v2484_v59 = vpop.f32.mrf.mxu3  ;;  %v4802_v45 = vadd.f32 %v4801_v3, %v14904_v40  ;;  %v4850_v63 = vpop.f32.mrf.mxu1  ;;  %v3171_v11 = vshll.u32 %v15954_v57, 16  ;;  %v3164_v30 = vshrl.u32 %v3084_v36, 16  ;;  %v12027_v3 = vld [vmem:[#allocation2 + $0x558] sm:$0xf0] }
 0x2c4   : > { %v3166_v28 = vshll.u32 %v3084_v36, 16  ;;  %v3456_v31 = vshrl.u32 %v15931_v9, 16  ;;  %v3460_v26 = vrot.slane %v3458_v53, 1  ;;  %v3156_v14 = vrot.slane %v3154_v55, 1  ;;  %v11899_v9 = vld [vmem:[#allocation2 + $0x458] sm:$0xf0] }
 0x2c5   : > { %v2485_v47 = vadd.f32 %v2484_v59, %v2436_v12  ;;  %v4851_v8 = vadd.f32 %v4850_v63, %v4802_v45  ;;  %4996 = vmatmul.bf16.vlgmr.msrb.gmra.mxu0 %v15896_v4  ;;  %v3468_v12 = vshrl.u32 %v15935_v51, 16  ;;  %v3472_v59 = vrot.slane %v3470_v54, 1  ;;  %v13955_v51 = vld [vmem:[#allocation2 + $0x5d4] sm:$0xf] }
 0x2c6   : > { %5045 = vmatmul.bf16.vlgmr.msrb.gmra.mxu1 %v15900_v27  ;;  %v3520_v45 = vshrl.u32 %v15943_v25, 16  ;;  %v3168_v63 = vrot.slane %v3166_v28, 1  ;;  %v3161_v36 = vrot.slane %v3159_v16, 1  ;;  %v3524_v27 = vrot.slane %v3522_v6, 1  ;;  %v12091_v28 = vld [vmem:[#allocation2 + $0x5d8] sm:$0xf0] }
 0x2c7   : > { %2518 = vst [vmem:[%s15134_s11 + $0xf8] sm:$0xff] %v2485_v47  ;;  %5094 = vmatmul.bf16.vlgmr.msrb.gmra.mxu2 %v15915_v32  ;;  %v12030_v47 = vor.u32 %v13939_v34, %v12027_v3  ;;  %v15969_v4 = vpack.c.b16 %v2990_v48, %v2988_v22  ;;  %v15972_v19 = vrot.slane %v3171_v11, 1  ;;  %v3157_v25 = vor.u32 %v3156_v14, %v3152_v2  ;;  %v13923_v6 = vld [vmem:[#allocation2 + $0x4d4] sm:$0xf]  ;;  %v11963_v22 = vld [vmem:[#allocation2 + $0x4d8] sm:$0xf0] }
 0x2c8   : > { %5143 = vmatmul.bf16.vlgmr.msrb.gmra.mxu3 %v15941_v41  ;;  %v3169_v55 = vor.u32 %v3168_v63, %v3164_v30  ;;  %v3461_v16 = vor.u32 %v3460_v26, %v3456_v31  ;;  %v11902_v48 = vor.u32 %v13907_v17, %v11899_v9  ;;  %v11850_v3 = vld [vmem:[%s14696_s7 + $0x60] sm:$0xee]  ;;  %v3473_v15 = vor.u32 %v3472_v59, %v3468_v12 }
 0x2c9   : > { %5284 = vmatpush.bf16.msra.mxu2 %v12030_v47  ;;  %v12094_v11 = vor.u32 %v13955_v51, %v12091_v28  ;;  %v15985_v2 = vsel %vm393_vm0, %v15948_v42, %v15918_v20  ;;  %v3530_v17 = vshll.u32 %v15969_v4, 16  ;;  %v15994_v31 = vsel %vm393_vm0, %v3157_v25, %v3161_v36  ;;  %v16007_v59 = vld [vmem:[%s14696_s7 + $0x60] sm:$0xff] }
 0x2ca   : > { %v4899_v37 = vpop.f32.mrf.mxu2  ;;  %v4803_v32 = vpop.f32.mrf.mxu0  ;;  %18785 = vst [vmem:[#allocation38_spill] sm:$0xff] %v15985_v2  ;;  %5186 = vmatpush.bf16.msra.mxu0 %v11902_v48  ;;  %v11966_v26 = vor.u32 %v13923_v6, %v11963_v22  ;;  %v3069_v20 = vunpack.c.l.b16 %v11850_v3  ;;  %v18787_v42 = vrot.slane %v15927_v7, 1  ;;  %v3175_v12 = vshrl.u32 %v15945_v35, 16 }
 0x2cb   : > { %v4900_v41 = vadd.f32 %v4899_v37, %v4851_v8  ;;  %v4948_v33 = vpop.f32.mrf.mxu3  ;;  %v4804_v53 = vadd.f32 %v4803_v32, %v14904_v40  ;;  %v4852_v54 = vpop.f32.mrf.mxu1  ;;  %v15975_v8 = vld [vmem:[%s14696_s7 + $0x68] sm:$0xff]  ;;  %v3477_v32 = vrot.slane %v15950_v38, 1  ;;  %v15998_v38 = vsel %vm393_vm0, %v3169_v55, %v15972_v19  ;;  %5333 = vmatpush.bf16.msra.mxu3 %v12094_v11 }
 0x2cc   : > { %v2995_v30 = vunpack.c.l.b16 %v15975_v8  ;;  %v2997_v14 = vunpack.c.l.b16 %v11834_v23  ;;  %v3177_v9 = vshrl.u32 %v15954_v57, 16  ;;  %5235 = vmatpush.bf16.msra.mxu1 %v11966_v26  ;;  %v2998_v51 = vunpack.c.h.b16 %v11834_v23 }
 0x2cd   : > { %v15977_v34 = vadd.f32 %v4948_v33, %v4900_v41  ;;  %v4853_v37 = vadd.f32 %v4852_v54, %v4804_v53  ;;  %v15989_v41 = vsel %vm393_vm0, %v3453_v0, %v15920_v46  ;;  %v16003_v46 = vsel %vm393_vm0, %v3461_v16, %v18787_v42 }
 0x2ce   : > { %18786 = vst [vmem:[#allocation43_spill] sm:$0xff] %v15989_v41  ;;  %v3525_v0 = vor.u32 %v3524_v27, %v3520_v45  ;;  %v16010_v47 = vsel %vm393_vm0, %v3473_v15, %v3477_v32  ;;  %v3528_v33 = vshrl.u32 %v15969_v4, 16  ;;  %v3532_v25 = vrot.slane %v3530_v17, 1 }
 0x2cf   : > { %18788 = vst [vmem:[#allocation44_spill] sm:$0xff] %v16003_v46  ;;  %v3538_v27 = vshll.u32 %v15994_v31, 16  ;;  %v3550_v35 = vshll.u32 %v15998_v38, 16  ;;  %v2993_v15 = vunpack.c.l.b16 %v16007_v59  ;;  %v3085_v28 = vpack.c.b16 %v2995_v30, %v3069_v20 }
 0x2d0   : > { %18789 = vst [vmem:[#allocation41_spill] sm:$0xff] %v16010_v47  ;;  %v18555_v4 = vunpack.c.h.b16 %v15975_v8  ;;  %v16022_v23 = vsel %vm393_vm0, %v3525_v0, %v3161_v36  ;;  %v16024_v57 = vshll.u32 %v3175_v12, 16  ;;  %v16026_v48 = vpack.c.b16 %v2997_v14, %v2997_v14  ;;  %v12019_v14 = vld [vmem:[#allocation2 + $0x548] sm:$0xf0] }
 0x2d1   : > { %18790 = vst [vmem:[#allocation42_spill] sm:$0xff] %v16022_v23  ;;  %v16029_v22 = vshll.u32 %v3177_v9, 16  ;;  %v3070_v32 = vunpack.c.h.b16 %v11850_v3  ;;  %v3533_v11 = vor.u32 %v3532_v25, %v3528_v33  ;;  %v3536_v36 = vshrl.u32 %v15994_v31, 16  ;;  %v13937_v3 = vld [vmem:[#allocation2 + $0x544] sm:$0xf] }
 0x2d2   : > { %v4901_v63 = vpop.f32.mrf.mxu2  ;;  %v4806_v54 = vpop.f32.mrf.mxu0  ;;  %v3540_v17 = vrot.slane %v3538_v27, 1  ;;  %v3548_v26 = vshrl.u32 %v15998_v38, 16  ;;  %v3552_v20 = vrot.slane %v3550_v35, 1  ;;  %v16038_v42 = vpack.c.b16 %v2995_v30, %v2993_v15  ;;  %v11891_v25 = vld [vmem:[#allocation2 + $0x448] sm:$0xf0] }
 0x2d3   : > { %v4902_v7 = vadd.f32 %v4901_v63, %v4853_v37  ;;  %v4950_v53 = vpop.f32.mrf.mxu3  ;;  %v4807_v45 = vadd.f32 %v4806_v54, %v14904_v40  ;;  %v4855_v55 = vpop.f32.mrf.mxu1  ;;  %v16031_v37 = vpack.c.b16 %v2998_v51, %v2998_v51  ;;  %v3086_v0 = vpack.c.b16 %v18555_v4, %v3070_v32  ;;  %v13905_v51 = vld [vmem:[#allocation2 + $0x444] sm:$0xf]  ;;  %v12083_v32 = vld [vmem:[#allocation2 + $0x5c8] sm:$0xf0] }
 0x2d4   : > { %v3182_v12 = vshll.u32 %v3085_v28, 16  ;;  %v3545_v63 = vrot.slane %v16024_v57, 1  ;;  %v3187_v33 = vshll.u32 %v16026_v48, 16  ;;  %v3180_v9 = vshrl.u32 %v3085_v28, 16  ;;  %v13953_v28 = vld [vmem:[#allocation2 + $0x5c4] sm:$0xf] }
 0x2d5   : > { %v16019_v16 = vadd.f32 %v4950_v53, %v4902_v7  ;;  %v4856_v6 = vadd.f32 %v4855_v55, %v4807_v45  ;;  %5001 = vmatmul.bf16.gmra.mxu0 %v15985_v2  ;;  %v12022_v31 = vor.u32 %v13937_v3, %v12019_v14  ;;  %v3557_v38 = vrot.slane %v16029_v22, 1  ;;  %v16050_v4 = vld [vmem:[%s14696_s7 + $0x80] sm:$0xff] }
 0x2d6   : > { %5050 = vmatmul.bf16.gmra.mxu1 %v15989_v41  ;;  %v2994_v53 = vunpack.c.h.b16 %v16007_v59  ;;  %v3199_v30 = vshll.u32 %v16031_v37, 16  ;;  %v3184_v54 = vrot.slane %v3182_v12, 1  ;;  %v3541_v55 = vor.u32 %v3540_v17, %v3536_v36  ;;  %v16062_v41 = vld [vmem:[%s14696_s7 + $0x78] sm:$0xff] }
 0x2d7   : > { %5099 = vmatmul.bf16.gmra.mxu2 %v16003_v46  ;;  %v3192_v15 = vshrl.u32 %v3086_v0, 16  ;;  %v3194_v57 = vshll.u32 %v3086_v0, 16  ;;  %v3553_v14 = vor.u32 %v3552_v20, %v3548_v26  ;;  %v3602_v59 = vshll.u32 %v16038_v42, 16 }
 0x2d8   : > { %5148 = vmatmul.bf16.gmra.mxu3 %v16010_v47  ;;  %5285 = vmatpush.bf16.msra.mxu2 %v12022_v31  ;;  %v11894_v12 = vor.u32 %v13905_v51, %v11891_v25  ;;  %v16057_v36 = vrot.slane %v3187_v33, 1  ;;  %v3185_v17 = vor.u32 %v3184_v54, %v3180_v9  ;;  %v13921_v31 = vld [vmem:[#allocation2 + $0x4c4] sm:$0xf]  ;;  %v11955_v47 = vld [vmem:[#allocation2 + $0x4c8] sm:$0xf0]  ;;  %v16059_v46 = vrot.slane %v3199_v30, 1 }
 0x2d9   : > { %v3196_v0 = vrot.slane %v3194_v57, 1  ;;  %v12086_v26 = vor.u32 %v13953_v28, %v12083_v32  ;;  %v11958_v20 = vor.u32 %v13921_v31, %v11955_v47  ;;  %v11837_v51 = vld [vmem:[%s14696_s7 + $0x88] sm:$0x11]  ;;  %v18791_v25 = vunpack.c.h.b16 %v15975_v8 }
 0x2da   : > { %v4904_v7 = vpop.f32.mrf.mxu2  ;;  %v4808_v45 = vpop.f32.mrf.mxu0  ;;  %5187 = vmatpush.bf16.msra.mxu0 %v11894_v12  ;;  %v3203_v33 = vshrl.u32 %v16026_v48, 16  ;;  %v3205_v9 = vshrl.u32 %v16031_v37, 16  ;;  %v16073_v54 = vsel %vm393_vm0, %v3533_v11, %v15972_v19  ;;  %v3600_v30 = vshrl.u32 %v16038_v42, 16 }
 0x2db   : > { %v4905_v27 = vadd.f32 %v4904_v7, %v4856_v6  ;;  %v4953_v35 = vpop.f32.mrf.mxu3  ;;  %v4809_v3 = vadd.f32 %v4808_v45, %v14904_v40  ;;  %v4857_v22 = vpop.f32.mrf.mxu1  ;;  %v16053_v6 = vld [vmem:[%s14696_s7 + $0x78] sm:$0xee]  ;;  %v16067_v2 = vpack.c.b16 %v18791_v25, %v2994_v53  ;;  %18792 = vst [vmem:[#allocation47_spill] sm:$0xff] %v16073_v54  ;;  %5334 = vmatpush.bf16.msra.mxu3 %v12086_v26  ;;  %v3001_v47 = vunpack.c.l.b16 %v16050_v4 }
 0x2dc   : > { %5236 = vmatpush.bf16.msra.mxu1 %v11958_v20  ;;  %v16079_v8 = vsel %vm393_vm0, %v3541_v55, %v3545_v63  ;;  %v16083_v48 = vsel %vm393_vm0, %v3185_v17, %v16057_v36  ;;  %v2999_v37 = vunpack.c.l.b16 %v16062_v41  ;;  %v3003_v53 = vunpack.c.l.b16 %v11837_v51 }
 0x2dd   : > { %v16055_v7 = vadd.f32 %v4953_v35, %v4905_v27  ;;  %v4858_v45 = vadd.f32 %v4857_v22, %v4809_v3  ;;  %v3197_v27 = vor.u32 %v3196_v0, %v3192_v15  ;;  %v3071_v35 = vunpack.c.l.b16 %v16053_v6  ;;  %18793 = vst [vmem:[#allocation48_spill] sm:$0xff] %v16079_v8 }
 0x2de   : > { %v16087_v11 = vsel %vm393_vm0, %v3553_v14, %v3557_v38  ;;  %v3604_v42 = vrot.slane %v3602_v59, 1  ;;  %v3004_v57 = vunpack.c.h.b16 %v11837_v51  ;;  %v3610_v32 = vshll.u32 %v16067_v2, 16 }
 0x2df   : > { %18794 = vst [vmem:[#allocation45_spill] sm:$0xff] %v16087_v11  ;;  %v16091_v15 = vsel %vm393_vm0, %v3197_v27, %v16059_v46  ;;  %v16094_v3 = vshll.u32 %v3203_v33, 16  ;;  %v16096_v22 = vshll.u32 %v3205_v9, 16  ;;  %v3618_v38 = vshll.u32 %v16083_v48, 16 }
 0x2e0   : > { %v3087_v14 = vpack.c.b16 %v3001_v47, %v3071_v35  ;;  %v3002_v59 = vunpack.c.h.b16 %v16050_v4  ;;  %v3630_v31 = vshll.u32 %v16091_v15, 16  ;;  %v16106_v26 = vpack.c.b16 %v3003_v53, %v3003_v53 }
 0x2e1   : > { %v3608_v51 = vshrl.u32 %v16067_v2, 16  ;;  %v16110_v25 = vpack.c.b16 %v3004_v57, %v3004_v57  ;;  %v3072_v33 = vunpack.c.h.b16 %v16053_v6  ;;  %v3612_v4 = vrot.slane %v3610_v32, 1  ;;  %v13935_v32 = vld [vmem:[#allocation2 + $0x534] sm:$0xf] }
 0x2e2   : > { %v4906_v19 = vpop.f32.mrf.mxu2  ;;  %v4811_v55 = vpop.f32.mrf.mxu0  ;;  %v3616_v27 = vshrl.u32 %v16083_v48, 16  ;;  %v3625_v9 = vrot.slane %v16094_v3, 1  ;;  %v3620_v35 = vrot.slane %v3618_v38, 1  ;;  %v3000_v2 = vunpack.c.h.b16 %v16062_v41  ;;  %v12011_v3 = vld [vmem:[#allocation2 + $0x538] sm:$0xf0] }
 0x2e3   : > { %v4907_v28 = vadd.f32 %v4906_v19, %v4858_v45  ;;  %v4955_v63 = vpop.f32.mrf.mxu3  ;;  %v4812_v12 = vadd.f32 %v4811_v55, %v14904_v40  ;;  %v4860_v17 = vpop.f32.mrf.mxu1  ;;  %v16104_v45 = vpack.c.b16 %v3001_v47, %v2999_v37  ;;  %v3088_v37 = vpack.c.b16 %v3002_v59, %v3072_v33 }
 0x2e4   : > { %v3210_v53 = vshll.u32 %v3087_v14, 16  ;;  %v3628_v6 = vshrl.u32 %v16091_v15, 16  ;;  %v3632_v19 = vrot.slane %v3630_v31, 1  ;;  %v3215_v57 = vshll.u32 %v16106_v26, 16 }
 0x2e5   : > { %v16101_v0 = vadd.f32 %v4955_v63, %v4907_v28  ;;  %v4861_v20 = vadd.f32 %v4860_v17, %v4812_v12  ;;  %5006 = vmatmul.bf16.gmra.mxu0 %v16022_v23  ;;  %v3682_v28 = vshll.u32 %v16104_v45, 16  ;;  %v3227_v48 = vshll.u32 %v16110_v25, 16 }
 0x2e6   : > { %5055 = vmatmul.bf16.gmra.mxu1 %v16073_v54  ;;  %v3222_v55 = vshll.u32 %v3088_v37, 16  ;;  %v3605_v47 = vor.u32 %v3604_v42, %v3600_v30  ;;  %v3208_v41 = vshrl.u32 %v3087_v14, 16  ;;  %v3212_v33 = vrot.slane %v3210_v53, 1  ;;  %v13919_v42 = vld [vmem:[#allocation2 + $0x4b4] sm:$0xf] }
 0x2e7   : > { %5104 = vmatmul.bf16.gmra.mxu2 %v16079_v8  ;;  %v11883_v8 = vld [vmem:[#allocation2 + $0x438] sm:$0xf0]  ;;  %v3613_v54 = vor.u32 %v3612_v4, %v3608_v51  ;;  %v3220_v23 = vshrl.u32 %v3088_v37, 16  ;;  %v12014_v30 = vor.u32 %v13935_v32, %v12011_v3  ;;  %v3633_v61 = vor.u32 %v3632_v19, %v3628_v6  ;;  %v11840_v4 = vld [vmem:[%s14696_s7 + $0xa0] sm:$0x11] }
 0x2e8   : > { %5153 = vmatmul.bf16.gmra.mxu3 %v16087_v11  ;;  %v13903_v11 = vld [vmem:[#allocation2 + $0x434] sm:$0xf]  ;;  %v3224_v1 = vrot.slane %v3222_v55, 1  ;;  %v11947_v14 = vld [vmem:[#allocation2 + $0x4b8] sm:$0xf0]  ;;  %v3680_v60 = vshrl.u32 %v16104_v45, 16  ;;  %v3213_v55 = vor.u32 %v3212_v33, %v3208_v41  ;;  %v16140_v6 = vsel %vm393_vm0, %v3605_v47, %v16057_v36 }
 0x2e9   : > { %v16131_v51 = vld [vmem:[%s14696_s7 + $0x98] sm:$0xff]  ;;  %v3684_v37 = vrot.slane %v3682_v28, 1  ;;  %5286 = vmatpush.bf16.msra.mxu2 %v12014_v30  ;;  %v11950_v32 = vor.u32 %v13919_v42, %v11947_v14  ;;  %18795 = vst [vmem:[#allocation46_spill] sm:$0xff] %v16140_v6  ;;  %v3009_v19 = vunpack.c.l.b16 %v11840_v4  ;;  %v3233_v28 = vshrl.u32 %v16110_v25, 16  ;;  %v11838_v33 = vld [vmem:[%s14696_s7 + $0x90] sm:$0xff] }
 0x2ea   : > { %v4909_v63 = vpop.f32.mrf.mxu2  ;;  %v4813_v38 = vpop.f32.mrf.mxu0  ;;  %v3007_v45 = vunpack.c.l.b16 %v16131_v51  ;;  %v3010_v30 = vunpack.c.h.b16 %v11840_v4  ;;  %v13933_v4 = vld [vmem:[#allocation2 + $0x524] sm:$0xf] }
 0x2eb   : > { %v4910_v12 = vadd.f32 %v4909_v63, %v4861_v20  ;;  %v4958_v17 = vpop.f32.mrf.mxu3  ;;  %v4814_v15 = vadd.f32 %v4813_v38, %v14904_v40  ;;  %v4862_v31 = vpop.f32.mrf.mxu1  ;;  %v3621_v20 = vor.u32 %v3620_v35, %v3616_v27  ;;  %v16127_v63 = vpack.c.b16 %v3002_v59, %v3000_v2  ;;  %v11852_v27 = vld [vmem:[%s14696_s7 + $0x90] sm:$0xee]  ;;  %5237 = vmatpush.bf16.msra.mxu1 %v11950_v32 }
 0x2ec   : > { %v3217_v38 = vrot.slane %v3215_v57, 1  ;;  %v16135_v35 = vrot.slane %v3227_v48, 1  ;;  %v3231_v59 = vshrl.u32 %v16106_v26, 16  ;;  %v3225_v2 = vor.u32 %v3224_v1, %v3220_v23 }
 0x2ed   : > { %v16125_v62 = vadd.f32 %v4958_v17, %v4910_v12  ;;  %v4863_v53 = vadd.f32 %v4862_v31, %v4814_v15  ;;  %v11886_v12 = vor.u32 %v13903_v11, %v11883_v8  ;;  %v12078_v17 = vor.u32 %v13951_v39, %v12075_v5 }
 0x2ee   : > { %v16145_v5 = vsel %vm393_vm0, %v3613_v54, %v16059_v46  ;;  %v16148_v39 = vsel %vm393_vm0, %v3621_v20, %v3625_v9  ;;  %v3690_v1 = vshll.u32 %v16127_v63, 16  ;;  %v3073_v23 = vunpack.c.l.b16 %v11852_v27 }
 0x2ef   : > { %5188 = vmatpush.bf16.msra.mxu0 %v11886_v12  ;;  %5335 = vmatpush.bf16.msra.mxu3 %v12078_v17  ;;  %18796 = vst [vmem:[#allocation49_spill] sm:$0xff] %v16145_v5  ;;  %v3685_v26 = vor.u32 %v3684_v37, %v3680_v60  ;;  %v16152_v47 = vsel %vm393_vm0, %v3213_v55, %v3217_v38  ;;  %v18798_v9 = vrot.slane %v16096_v22, 1  ;;  %v16161_v3 = vshll.u32 %v3231_v59, 16  ;;  %v12003_v59 = vld [vmem:[#allocation2 + $0x528] sm:$0xf0] }
 0x2f0   : > { %18797 = vst [vmem:[#allocation50_spill] sm:$0xff] %v16148_v39  ;;  %v16165_v41 = vsel %vm393_vm0, %v3225_v2, %v16135_v35  ;;  %v16170_v15 = vpack.c.b16 %v3009_v19, %v3009_v19  ;;  %v3089_v25 = vpack.c.b16 %v3007_v45, %v3073_v23  ;;  %v3008_v31 = vunpack.c.h.b16 %v16131_v51 }
 0x2f1   : > { %v16159_v48 = vsel %vm393_vm0, %v3633_v61, %v18798_v9  ;;  %v3688_v61 = vshrl.u32 %v16127_v63, 16  ;;  %v3698_v20 = vshll.u32 %v16152_v47, 16  ;;  %v16181_v42 = vsel %vm393_vm0, %v3685_v26, %v3217_v38  ;;  %v13901_v9 = vld [vmem:[#allocation2 + $0x424] sm:$0xf] }
 0x2f2   : > { %v4911_v57 = vpop.f32.mrf.mxu2  ;;  %v4816_v11 = vpop.f32.mrf.mxu0  ;;  %18799 = vst [vmem:[#allocation51_spill] sm:$0xff] %v16159_v48  ;;  %v3692_v14 = vrot.slane %v3690_v1, 1  ;;  %v3074_v37 = vunpack.c.h.b16 %v11852_v27  ;;  %v3710_v63 = vshll.u32 %v16165_v41, 16  ;;  %v3005_v12 = vunpack.c.l.b16 %v11838_v33 }
 0x2f3   : > { %v4912_v36 = vadd.f32 %v4911_v57, %v4863_v53  ;;  %v4960_v8 = vpop.f32.mrf.mxu3  ;;  %v4817_v46 = vadd.f32 %v4816_v11, %v14904_v40  ;;  %v4865_v54 = vpop.f32.mrf.mxu1  ;;  %18800 = vst [vmem:[#allocation52_spill] sm:$0xff] %v16181_v42  ;;  %v16183_v53 = vshll.u32 %v3233_v28, 16  ;;  %v16188_v17 = vpack.c.b16 %v3010_v30, %v3010_v30  ;;  %v11875_v30 = vld [vmem:[#allocation2 + $0x428] sm:$0xf0] }
 0x2f4   : > { %v3243_v2 = vshll.u32 %v16170_v15, 16  ;;  %v3090_v32 = vpack.c.b16 %v3008_v31, %v3074_v37  ;;  %v3238_v38 = vshll.u32 %v3089_v25, 16  ;;  %v12006_v19 = vor.u32 %v13933_v4, %v12003_v59 }
 0x2f5   : > { %v16167_v60 = vadd.f32 %v4960_v8, %v4912_v36  ;;  %v4866_v22 = vadd.f32 %v4865_v54, %v4817_v46  ;;  %5011 = vmatmul.bf16.gmra.mxu0 %v16140_v6  ;;  %v3696_v1 = vshrl.u32 %v16152_v47, 16  ;;  %v3700_v27 = vrot.slane %v3698_v20, 1  ;;  %v13949_v20 = vld [vmem:[#allocation2 + $0x5a4] sm:$0xf]  ;;  %v11853_v6 = vld [vmem:[%s14696_s7 + $0xa8] sm:$0xee] }
 0x2f6   : > { %5060 = vmatmul.bf16.gmra.mxu1 %v16145_v5  ;;  %v3708_v23 = vshrl.u32 %v16165_v41, 16  ;;  %v3236_v36 = vshrl.u32 %v3089_v25, 16  ;;  %v3006_v28 = vunpack.c.h.b16 %v11838_v33  ;;  %v3255_v46 = vshll.u32 %v16188_v17, 16  ;;  %5287 = vmatpush.bf16.msra.mxu2 %v12006_v19  ;;  %v12067_v41 = vld [vmem:[#allocation2 + $0x5a8] sm:$0xf0] }
 0x2f7   : > { %5109 = vmatmul.bf16.gmra.mxu2 %v16148_v39  ;;  %v3240_v54 = vrot.slane %v3238_v38, 1  ;;  %v3693_v59 = vor.u32 %v3692_v14, %v3688_v61  ;;  %v3248_v55 = vshrl.u32 %v3090_v32, 16  ;;  %v3250_v47 = vshll.u32 %v3090_v32, 16  ;;  %v13917_v19 = vld [vmem:[#allocation2 + $0x4a4] sm:$0xf] }
 0x2f8   : > { %5158 = vmatmul.bf16.gmra.mxu3 %v16159_v48  ;;  %v3712_v33 = vrot.slane %v3710_v63, 1  ;;  %v16201_v38 = vrot.slane %v3243_v2, 1  ;;  %v11878_v32 = vor.u32 %v13901_v9, %v11875_v30  ;;  %v3701_v48 = vor.u32 %v3700_v27, %v3696_v1  ;;  %v11843_v63 = vld [vmem:[%s14696_s7 + $0xb8] sm:$0x11] }
 0x2f9   : > { %v3241_v61 = vor.u32 %v3240_v54, %v3236_v36  ;;  %v3252_v14 = vrot.slane %v3250_v47, 1  ;;  %v16203_v39 = vpack.c.b16 %v3008_v31, %v3006_v28  ;;  %v12070_v5 = vor.u32 %v13949_v20, %v12067_v41 }
 0x2fa   : > { %v4914_v57 = vpop.f32.mrf.mxu2  ;;  %v4818_v26 = vpop.f32.mrf.mxu0  ;;  %v16212_v51 = vsel %vm393_vm0, %v3693_v59, %v16135_v35  ;;  %5189 = vmatpush.bf16.msra.mxu0 %v11878_v32  ;;  %v3713_v36 = vor.u32 %v3712_v33, %v3708_v23  ;;  %v3717_v31 = vrot.slane %v16183_v53, 1  ;;  %v3015_v54 = vunpack.c.l.b16 %v11843_v63 }
 0x2fb   : > { %v4915_v8 = vadd.f32 %v4914_v57, %v4866_v22  ;;  %v4963_v11 = vpop.f32.mrf.mxu3  ;;  %v4819_v37 = vadd.f32 %v4818_v26, %v14904_v40  ;;  %v4867_v4 = vpop.f32.mrf.mxu1  ;;  %v16199_v22 = vpack.c.b16 %v3007_v45, %v3005_v12  ;;  %v11939_v57 = vld [vmem:[#allocation2 + $0x4a8] sm:$0xf0]  ;;  %18801 = vst [vmem:[#allocation53_spill] sm:$0xff] %v16212_v51  ;;  %v16214_v45 = vrot.slane %v3255_v46, 1  ;;  %5336 = vmatpush.bf16.msra.mxu3 %v12070_v5 }
 0x2fc   : > { %v3259_v12 = vshrl.u32 %v16170_v15, 16  ;;  %v3253_v2 = vor.u32 %v3252_v14, %v3248_v55  ;;  %v16222_v35 = vsel %vm393_vm0, %v3241_v61, %v16201_v38  ;;  %v3075_v15 = vunpack.c.l.b16 %v11853_v6 }
 0x2fd   : > { %v16195_v25 = vadd.f32 %v4963_v11, %v4915_v8  ;;  %v4868_v26 = vadd.f32 %v4867_v4, %v4819_v37  ;;  %v11942_v8 = vor.u32 %v13917_v19, %v11939_v57  ;;  %v16206_v11 = vld [vmem:[%s14696_s7 + $0xb0] sm:$0xff]  ;;  %v3760_v1 = vshrl.u32 %v16199_v22, 16 }
 0x2fe   : > { %v3762_v27 = vshll.u32 %v16199_v22, 16  ;;  %v3013_v46 = vunpack.c.l.b16 %v16206_v11  ;;  %v18802_v53 = vrot.slane %v16161_v3, 1  ;;  %v3770_v5 = vshll.u32 %v16203_v39, 16  ;;  %v11841_v22 = vld [vmem:[%s14696_s7 + $0xa8] sm:$0xff] }
 0x2ff   : > { %5238 = vmatpush.bf16.msra.mxu1 %v11942_v8  ;;  %v3261_v37 = vshrl.u32 %v16188_v17, 16  ;;  %v16233_v47 = vshll.u32 %v3259_v12, 16  ;;  %v16237_v20 = vsel %vm393_vm0, %v3253_v2, %v16214_v45  ;;  %v3016_v41 = vunpack.c.h.b16 %v11843_v63 }
 0x300   : > { %v16228_v30 = vsel %vm393_vm0, %v3701_v48, %v18802_v53  ;;  %v16242_v3 = vsel %vm393_vm0, %v3713_v36, %v3717_v31  ;;  %v3778_v48 = vshll.u32 %v16222_v35, 16  ;;  %v3014_v17 = vunpack.c.h.b16 %v16206_v11  ;;  %v11995_v53 = vld [vmem:[#allocation2 + $0x518] sm:$0xf0] }
 0x301   : > { %18803 = vst [vmem:[#allocation54_spill] sm:$0xff] %v16228_v30  ;;  %v3764_v57 = vrot.slane %v3762_v27, 1  ;;  %v3091_v61 = vpack.c.b16 %v3013_v46, %v3075_v15  ;;  %v3768_v14 = vshrl.u32 %v16203_v39, 16  ;;  %v3772_v32 = vrot.slane %v3770_v5, 1 }
 0x302   : > { %v4916_v28 = vpop.f32.mrf.mxu2  ;;  %v4821_v9 = vpop.f32.mrf.mxu0  ;;  %18805 = vst [vmem:[#allocation56_spill] sm:$0xff] %v16242_v3  ;;  %v3790_v8 = vshll.u32 %v16237_v20, 16  ;;  %v3076_v63 = vunpack.c.h.b16 %v11853_v6  ;;  %v16256_v12 = vshll.u32 %v3261_v37, 16  ;;  %v3011_v2 = vunpack.c.l.b16 %v11841_v22 }
 0x303   : > { %v4917_v55 = vadd.f32 %v4916_v28, %v4868_v26  ;;  %v4965_v23 = vpop.f32.mrf.mxu3  ;;  %v4822_v4 = vadd.f32 %v4821_v9, %v14904_v40  ;;  %v4870_v59 = vpop.f32.mrf.mxu1  ;;  %v16248_v26 = vpack.c.b16 %v3015_v54, %v3015_v54  ;;  %v16258_v36 = vpack.c.b16 %v3016_v41, %v3016_v41  ;;  %v13931_v9 = vld [vmem:[#allocation2 + $0x514] sm:$0xf] }
 0x304   : > { %v3776_v31 = vshrl.u32 %v16222_v35, 16  ;;  %v3780_v27 = vrot.slane %v3778_v48, 1  ;;  %v3788_v28 = vshrl.u32 %v16237_v20, 16  ;;  %v3092_v54 = vpack.c.b16 %v3014_v17, %v3076_v63  ;;  %v11867_v35 = vld [vmem:[#allocation2 + $0x418] sm:$0xf0] }
 0x305   : > { %v16239_v33 = vadd.f32 %v4965_v23, %v4917_v55  ;;  %v4871_v19 = vadd.f32 %v4870_v59, %v4822_v4  ;;  %5016 = vmatmul.bf16.gmra.mxu0 %v16181_v42  ;;  %v3765_v15 = vor.u32 %v3764_v57, %v3760_v1  ;;  %v3271_v55 = vshll.u32 %v16248_v26, 16  ;;  %v13947_v57 = vld [vmem:[#allocation2 + $0x594] sm:$0xf] }
 0x306   : > { %5065 = vmatmul.bf16.gmra.mxu1 %v16212_v51  ;;  %v3012_v6 = vunpack.c.h.b16 %v11841_v22  ;;  %v3266_v23 = vshll.u32 %v3091_v61, 16  ;;  %v3773_v59 = vor.u32 %v3772_v32, %v3768_v14  ;;  %v3792_v41 = vrot.slane %v3790_v8, 1  ;;  %v13915_v32 = vld [vmem:[#allocation2 + $0x494] sm:$0xf]  ;;  %v11931_v8 = vld [vmem:[#allocation2 + $0x498] sm:$0xf0] }
 0x307   : > { %18804 = vst [vmem:[#allocation55_spill] sm:$0xff] %v16239_v33  ;;  %5114 = vmatmul.bf16.gmra.mxu2 %v16228_v30  ;;  %v3264_v11 = vshrl.u32 %v3091_v61, 16  ;;  %v16264_v63 = vpack.c.b16 %v3013_v46, %v3011_v2  ;;  %v3283_v1 = vshll.u32 %v16258_v36, 16  ;;  %v12059_v30 = vld [vmem:[#allocation2 + $0x598] sm:$0xf0]  ;;  %v3278_v14 = vshll.u32 %v3092_v54, 16 }
 0x308   : > { %5163 = vmatmul.bf16.gmra.mxu3 %v16242_v3  ;;  %v13899_v3 = vld [vmem:[#allocation2 + $0x414] sm:$0xf]  ;;  %v3268_v22 = vrot.slane %v3266_v23, 1  ;;  %v11998_v61 = vor.u32 %v13931_v9, %v11995_v53  ;;  %v16269_v42 = vrot.slane %v3271_v55, 1  ;;  %v16271_v46 = vpack.c.b16 %v3014_v17, %v3012_v6  ;;  %v16274_v2 = vld [vmem:[%s14696_s7 + $0xc8] sm:$0xff] }
 0x309   : > { %v3280_v56 = vrot.slane %v3278_v14, 1  ;;  %v11854_v33 = vld [vmem:[%s14696_s7 + $0xc0] sm:$0xee]  ;;  %v3793_v49 = vor.u32 %v3792_v41, %v3788_v28  ;;  %v16279_v9 = vrot.slane %v3283_v1, 1  ;;  %v11934_v53 = vor.u32 %v13915_v32, %v11931_v8 }
 0x30a   : > { %v4919_v39 = vpop.f32.mrf.mxu2  ;;  %v4823_v4 = vpop.f32.mrf.mxu0  ;;  %v3269_v23 = vor.u32 %v3268_v22, %v3264_v11  ;;  %5288 = vmatpush.bf16.msra.mxu2 %v11998_v61  ;;  %v18581_v11 = vunpack.c.l.b16 %v16274_v2  ;;  %v3077_v28 = vunpack.c.l.b16 %v11854_v33  ;;  %v3289_v22 = vshrl.u32 %v16258_v36, 16 }
 0x30b   : > { %v4920_v5 = vadd.f32 %v4919_v39, %v4871_v19  ;;  %v4968_v37 = vpop.f32.mrf.mxu3  ;;  %v4824_v48 = vadd.f32 %v4823_v4, %v14904_v40  ;;  %v4872_v20 = vpop.f32.mrf.mxu1  ;;  %v3276_v19 = vshrl.u32 %v3092_v54, 16  ;;  %v3781_v4 = vor.u32 %v3780_v27, %v3776_v31  ;;  %5239 = vmatpush.bf16.msra.mxu1 %v11934_v53 }
 0x30c   : > { %v3797_v54 = vrot.slane %v16256_v12, 1  ;;  %v16283_v31 = vsel %vm393_vm0, %v3765_v15, %v16201_v38  ;;  %v18809_v38 = vrot.slane %v16233_v47, 1  ;;  %v3850_v15 = vshll.u32 %v16271_v46, 16 }
 0x30d   : > { %v16267_v51 = vadd.f32 %v4968_v37, %v4920_v5  ;;  %v4873_v39 = vadd.f32 %v4872_v20, %v4824_v48  ;;  %v11870_v5 = vor.u32 %v13899_v3, %v11867_v35  ;;  %v12062_v37 = vor.u32 %v13947_v57, %v12059_v30  ;;  %18807 = vst [vmem:[#allocation58_spill] sm:$0xff] %v16283_v31 }
 0x30e   : > { %v3281_v17 = vor.u32 %v3280_v56, %v3276_v19  ;;  %v16288_v30 = vsel %vm393_vm0, %v3773_v59, %v16214_v45  ;;  %v3842_v3 = vshll.u32 %v16264_v63, 16  ;;  %v16294_v56 = vsel %vm393_vm0, %v3781_v4, %v18809_v38  ;;  %v13929_v38 = vld [vmem:[#allocation2 + $0x504] sm:$0xf] }
 0x30f   : > { %18806 = vst [vmem:[#allocation57_spill] sm:$0xff] %v16267_v51  ;;  %v11846_v51 = vld [vmem:[%s14696_s7 + $0xd0] sm:$0x11]  ;;  %5190 = vmatpush.bf16.msra.mxu0 %v11870_v5  ;;  %5337 = vmatpush.bf16.msra.mxu3 %v12062_v37  ;;  %v3274_v35 = vsel %vm393_vm0, %v3269_v23, %v16269_v42  ;;  %v16301_v48 = vsel %vm393_vm0, %v3793_v49, %v3797_v54  ;;  %v3287_v20 = vshrl.u32 %v16248_v26, 16  ;;  %v18580_v19 = vunpack.c.h.b16 %v16274_v2 }
 0x310   : > { %18808 = vst [vmem:[#allocation59_spill] sm:$0xff] %v16288_v30  ;;  %v3021_v12 = vunpack.c.l.b16 %v11846_v51  ;;  %v16306_v1 = vsel %vm393_vm0, %v3281_v17, %v16279_v9  ;;  %v3093_v57 = vpack.c.b16 %v18581_v11, %v3077_v28  ;;  %v3858_v49 = vshll.u32 %v3274_v35, 16  ;;  %v12051_v11 = vld [vmem:[#allocation2 + $0x588] sm:$0xf0] }
 0x311   : > { %18810 = vst [vmem:[#allocation60_spill] sm:$0xff] %v16294_v56  ;;  %v3022_v26 = vunpack.c.h.b16 %v11846_v51  ;;  %v3840_v32 = vshrl.u32 %v16264_v63, 16  ;;  %v3870_v36 = vshll.u32 %v16306_v1, 16  ;;  %v3078_v8 = vunpack.c.h.b16 %v11854_v33 }
 0x312   : > { %v4921_v27 = vpop.f32.mrf.mxu2  ;;  %v4826_v41 = vpop.f32.mrf.mxu0  ;;  %18811 = vst [vmem:[#allocation61_spill] sm:$0xff] %v16301_v48  ;;  %v16315_v61 = vpack.c.b16 %v3021_v12, %v3021_v12  ;;  %v3848_v4 = vshrl.u32 %v16271_v46, 16  ;;  %v3852_v23 = vrot.slane %v3850_v15, 1  ;;  %v16325_v37 = vshll.u32 %v3287_v20, 16  ;;  %v11844_v12 = vld [vmem:[%s14696_s7 + $0xc0] sm:$0xff] }
 0x313   : > { %v4922_v55 = vadd.f32 %v4921_v27, %v4873_v39  ;;  %v4970_v6 = vpop.f32.mrf.mxu3  ;;  %v4827_v45 = vadd.f32 %v4826_v41, %v14904_v40  ;;  %v4875_v59 = vpop.f32.mrf.mxu1  ;;  %v3844_v39 = vrot.slane %v3842_v3, 1  ;;  %v16323_v5 = vpack.c.b16 %v3022_v26, %v3022_v26  ;;  %v11987_v15 = vld [vmem:[#allocation2 + $0x508] sm:$0xf0] }
 0x314   : > { %v16327_v51 = vshll.u32 %v3289_v22, 16  ;;  %v3094_v54 = vpack.c.b16 %v18580_v19, %v3078_v8  ;;  %v3294_v63 = vshll.u32 %v3093_v57, 16  ;;  %v3856_v17 = vshrl.u32 %v3274_v35, 16  ;;  %v11859_v26 = vld [vmem:[#allocation2 + $0x408] sm:$0xf0] }
 0x315   : > { %v16308_v47 = vadd.f32 %v4970_v6, %v4922_v55  ;;  %v4876_v14 = vadd.f32 %v4875_v59, %v4827_v45  ;;  %5021 = vmatmul.bf16.gmra.mxu0 %v16283_v31  ;;  %v3860_v27 = vrot.slane %v3858_v49, 1  ;;  %v3868_v33 = vshrl.u32 %v16306_v1, 16  ;;  %v13897_v49 = vld [vmem:[#allocation2 + $0x404] sm:$0xf] }
 0x316   : > { %5070 = vmatmul.bf16.gmra.mxu1 %v16288_v30  ;;  %v3299_v3 = vshll.u32 %v16315_v61, 16  ;;  %v3872_v6 = vrot.slane %v3870_v36, 1  ;;  %v3292_v41 = vshrl.u32 %v3093_v57, 16  ;;  %v3845_v20 = vor.u32 %v3844_v39, %v3840_v32  ;;  %v13913_v30 = vld [vmem:[#allocation2 + $0x484] sm:$0xf] }
 0x317   : > { %18812 = vst [vmem:[#allocation62_spill] sm:$0xff] %v16308_v47  ;;  %5119 = vmatmul.bf16.gmra.mxu2 %v16294_v56  ;;  %v3311_v22 = vshll.u32 %v16323_v5, 16  ;;  %v3296_v35 = vrot.slane %v3294_v63, 1  ;;  %v3853_v8 = vor.u32 %v3852_v23, %v3848_v4  ;;  %v3304_v19 = vshrl.u32 %v3094_v54, 16 }
 0x318   : > { %5168 = vmatmul.bf16.gmra.mxu3 %v16301_v48  ;;  %v3017_v57 = vunpack.c.l.b16 %v11844_v12  ;;  %v3018_v48 = vunpack.c.h.b16 %v11844_v12  ;;  %v11990_v56 = vor.u32 %v13929_v38, %v11987_v15  ;;  %v3861_v31 = vor.u32 %v3860_v27, %v3856_v17 }
 0x319   : > { %v3865_v32 = vrot.slane %v16325_v37, 1  ;;  %v11862_v63 = vor.u32 %v13897_v49, %v11859_v26  ;;  %v16339_v47 = vrot.slane %v3299_v3, 1  ;;  %v3297_v4 = vor.u32 %v3296_v35, %v3292_v41  ;;  %v14007_v26 = vld [vmem:[#allocation2 + $0x774] sm:$0xf] }
 0x31a   : > { %v4924_v53 = vpop.f32.mrf.mxu2  ;;  %v4828_v55 = vpop.f32.mrf.mxu0  ;;  %5289 = vmatpush.bf16.msra.mxu2 %v11990_v56  ;;  %v18813_v17 = vunpack.c.l.b16 %v16274_v2  ;;  %v18814_v37 = vunpack.c.h.b16 %v16274_v2  ;;  %v16354_v56 = vsel %vm393_vm0, %v3853_v8, %v16279_v9  ;;  %v3317_v35 = vshrl.u32 %v16323_v5, 16  ;;  %v12299_v8 = vld [vmem:[#allocation2 + $0x778] sm:$0xf0] }
 0x31b   : > { %v4925_v46 = vadd.f32 %v4924_v53, %v4876_v14  ;;  %v4973_v28 = vpop.f32.mrf.mxu3  ;;  %v4829_v45 = vadd.f32 %v4828_v55, %v14904_v40  ;;  %v4877_v59 = vpop.f32.mrf.mxu1  ;;  %v3306_v14 = vshll.u32 %v3094_v54, 16  ;;  %v13945_v53 = vld [vmem:[#allocation2 + $0x584] sm:$0xf]  ;;  %v11923_v55 = vld [vmem:[#allocation2 + $0x488] sm:$0xf0]  ;;  %v3873_v54 = vor.u32 %v3872_v6, %v3868_v33  ;;  %5191 = vmatpush.bf16.msra.mxu0 %v11862_v63 }
 0x31c   : > { %v12054_v23 = vor.u32 %v13945_v53, %v12051_v11  ;;  %v11926_v12 = vor.u32 %v13913_v30, %v11923_v55  ;;  %v3051_v27 = vpack.c.b16 %v18813_v17, %v3017_v57  ;;  %v3052_v15 = vpack.c.b16 %v18814_v37, %v3018_v48  ;;  %v14023_v57 = vld [vmem:[#allocation2 + $0x7f4] sm:$0xf]  ;;  %v12363_v55 = vld [vmem:[#allocation2 + $0x7f8] sm:$0xf0] }
 0x31d   : > { %v16336_v1 = vadd.f32 %v4973_v28, %v4925_v46  ;;  %v4878_v36 = vadd.f32 %v4877_v59, %v4829_v45  ;;  %v3308_v39 = vrot.slane %v3306_v14, 1  ;;  %v16341_v46 = vrot.slane %v3311_v22, 1  ;;  %v13975_v14 = vld [vmem:[#allocation2 + $0x674] sm:$0xf] }
 0x31e   : > { %v3877_v28 = vrot.slane %v16327_v51, 1  ;;  %5338 = vmatpush.bf16.msra.mxu3 %v12054_v23  ;;  %v16350_v11 = vsel %vm393_vm0, %v3845_v20, %v16269_v42  ;;  %5240 = vmatpush.bf16.msra.mxu1 %v11926_v12  ;;  %v16358_v51 = vsel %vm393_vm0, %v3861_v31, %v3865_v32  ;;  %v3302_v2 = vsel %vm393_vm0, %v3297_v4, %v16339_v47 }
 0x31f   : > { %v3309_v45 = vor.u32 %v3308_v39, %v3304_v19  ;;  %v3922_v6 = vshll.u32 %v3051_v27, 16  ;;  %v3930_v41 = vshll.u32 %v3052_v15, 16  ;;  %v3315_v31 = vshrl.u32 %v16315_v61, 16 }
 0x320   : > { %v16367_v42 = vsel %vm393_vm0, %v3873_v54, %v3877_v28  ;;  %v3938_v20 = vshll.u32 %v3302_v2, 16  ;;  %v12302_v53 = vor.u32 %v14007_v26, %v12299_v8  ;;  %v3920_v39 = vshrl.u32 %v3051_v27, 16  ;;  %v13991_v26 = vld [vmem:[#allocation2 + $0x6f4] sm:$0xf] }
 0x321   : > { %v3314_v48 = vsel %vm393_vm0, %v3309_v45, %v16341_v46  ;;  %v12366_v4 = vor.u32 %v14023_v57, %v12363_v55  ;;  %v3924_v28 = vrot.slane %v3922_v6, 1  ;;  %v3928_v45 = vshrl.u32 %v3052_v15, 16  ;;  %v12235_v6 = vld [vmem:[#allocation2 + $0x6f8] sm:$0xf0] }
 0x322   : > { %v4926_v38 = vpop.f32.mrf.mxu2  ;;  %v4831_v22 = vpop.f32.mrf.mxu0  ;;  %v3950_v49 = vshll.u32 %v3314_v48, 16  ;;  %v3932_v5 = vrot.slane %v3930_v41, 1  ;;  %5478 = vmatpush.bf16.msrb.mxu2 %v12302_v53  ;;  %v3936_v17 = vshrl.u32 %v3302_v2, 16  ;;  %v3940_v37 = vrot.slane %v3938_v20, 1 }
 0x323   : > { %v4927_v3 = vadd.f32 %v4926_v38, %v4878_v36  ;;  %v4975_v59 = vpop.f32.mrf.mxu3  ;;  %v4832_v30 = vadd.f32 %v4831_v22, %v14904_v40  ;;  %v4880_v19 = vpop.f32.mrf.mxu1  ;;  %v12171_v36 = vld [vmem:[#allocation2 + $0x678] sm:$0xf0]  ;;  %5527 = vmatpush.bf16.msrb.mxu3 %v12366_v4  ;;  %v3948_v27 = vshrl.u32 %v3314_v48, 16 }
 0x324   : > { %v12174_v63 = vor.u32 %v13975_v14, %v12171_v36  ;;  %v3952_v22 = vrot.slane %v3950_v49, 1  ;;  %v3933_v15 = vor.u32 %v3932_v5, %v3928_v45  ;;  %v3941_v41 = vor.u32 %v3940_v37, %v3936_v17  ;;  %v12355_v45 = vld [vmem:[#allocation2 + $0x7e8] sm:$0xf0] }
 0x325   : > { %v16364_v33 = vadd.f32 %v4975_v59, %v4927_v3  ;;  %v4881_v9 = vadd.f32 %v4880_v19, %v4832_v30  ;;  %5026 = vmatmul.bf16.gmra.mxu0 %v16350_v11  ;;  %v3943_v3 = vshll.u32 %v3315_v31, 16  ;;  %v3955_v30 = vshll.u32 %v3317_v35, 16 }
 0x326   : > { %5075 = vmatmul.bf16.gmra.mxu1 %v16354_v56  ;;  %5380 = vmatpush.bf16.msrb.mxu0 %v12174_v63  ;;  %v12238_v14 = vor.u32 %v13991_v26, %v12235_v6  ;;  %v3953_v53 = vor.u32 %v3952_v22, %v3948_v27  ;;  %v16385_v55 = vsel %vm393_vm0, %v3933_v15, %v16341_v46  ;;  %v12291_v46 = vld [vmem:[#allocation2 + $0x768] sm:$0xf0] }
 0x327   : > { %5124 = vmatmul.bf16.gmra.mxu2 %v16358_v51  ;;  %v3945_v8 = vrot.slane %v3943_v3, 1  ;;  %v3957_v36 = vrot.slane %v3955_v30, 1  ;;  %v12227_v26 = vld [vmem:[#allocation2 + $0x6e8] sm:$0xf0] }
 0x328   : > { %5173 = vmatmul.bf16.gmra.mxu3 %v16367_v42  ;;  %5429 = vmatpush.bf16.msrb.mxu1 %v12238_v14 }
 0x329   : > { %v16393_v63 = vsel %vm393_vm0, %v3953_v53, %v3957_v36 }
 0x32a   : > { %v4929_v32 = vpop.f32.mrf.mxu2  ;;  %v4833_v61 = vpop.f32.mrf.mxu0 }
 0x32b   : > { %v4930_v23 = vadd.f32 %v4929_v32, %v4881_v9  ;;  %v4978_v54 = vpop.f32.mrf.mxu3  ;;  %v4834_v12 = vadd.f32 %v4833_v61, %v14904_v40  ;;  %v4882_v38 = vpop.f32.mrf.mxu1  ;;  %v3925_v9 = vor.u32 %v3924_v28, %v3920_v39  ;;  %v16388_v32 = vsel %vm393_vm0, %v3941_v41, %v3945_v8  ;;  %v12163_v61 = vld [vmem:[#allocation2 + $0x668] sm:$0xf0]  ;;  %v14021_v28 = vld [vmem:[#allocation2 + $0x7e4] sm:$0xf] }
 0x32d   : > { %v16376_v59 = vadd.f32 %v4978_v54, %v4930_v23  ;;  %v4883_v19 = vadd.f32 %v4882_v38, %v4834_v12  ;;  %v16380_v48 = vsel %vm393_vm0, %v3925_v9, %v16339_v47  ;;  %v14005_v47 = vld [vmem:[#allocation2 + $0x764] sm:$0xf]  ;;  %v12358_v38 = vor.u32 %v14021_v28, %v12355_v45  ;;  %v13987_v45 = vld [vmem:[#allocation2 + $0x6d4] sm:$0xf] }
 0x32e   : > { %v13973_v23 = vld [vmem:[#allocation2 + $0x664] sm:$0xf]  ;;  %v12294_v54 = vor.u32 %v14005_v47, %v12291_v46  ;;  %v14019_v47 = vld [vmem:[#allocation2 + $0x7d4] sm:$0xf]  ;;  %v12347_v46 = vld [vmem:[#allocation2 + $0x7d8] sm:$0xf0] }
 0x32f   : > { %v12166_v12 = vor.u32 %v13973_v23, %v12163_v61  ;;  %5528 = vmatpush.bf16.msrb.mxu3 %v12358_v38  ;;  %v13989_v9 = vld [vmem:[#allocation2 + $0x6e4] sm:$0xf] }
 0x330   : > { %5479 = vmatpush.bf16.msrb.mxu2 %v12294_v54  ;;  %v12230_v6 = vor.u32 %v13989_v9, %v12227_v26  ;;  %v12275_v26 = vld [vmem:[#allocation2 + $0x748] sm:$0xf0] }
 0x331   : > { %5381 = vmatpush.bf16.msrb.mxu0 %v12166_v12 }
 0x332   : > { %v4931_v2 = vpop.f32.mrf.mxu2  ;;  %v4836_v57 = vpop.f32.mrf.mxu0  ;;  %5430 = vmatpush.bf16.msrb.mxu1 %v12230_v6  ;;  %v13969_v6 = vld [vmem:[#allocation2 + $0x644] sm:$0xf] }
 0x333   : > { %v4932_v31 = vadd.f32 %v4931_v2, %v4883_v19  ;;  %v4980_v20 = vpop.f32.mrf.mxu3  ;;  %v4837_v35 = vadd.f32 %v4836_v57, %v14904_v40  ;;  %v4885_v49 = vpop.f32.mrf.mxu1  ;;  %v13971_v57 = vld [vmem:[#allocation2 + $0x654] sm:$0xf] }
 0x335   : > { %v16390_v39 = vadd.f32 %v4980_v20, %v4932_v31  ;;  %v4886_v4 = vadd.f32 %v4885_v49, %v4837_v35  ;;  %5031 = vmatmul.bf16.gmra.mxu0 %v16380_v48  ;;  %v14003_v31 = vld [vmem:[#allocation2 + $0x754] sm:$0xf]  ;;  %v12283_v20 = vld [vmem:[#allocation2 + $0x758] sm:$0xf0] }
 0x336   : > { %5080 = vmatmul.bf16.gmra.mxu1 %v16385_v55  ;;  %v12286_v49 = vor.u32 %v14003_v31, %v12283_v20 }
 0x337   : > { %5129 = vmatmul.bf16.gmra.mxu2 %v16388_v32 }
 0x338   : > { %5178 = vmatmul.bf16.gmra.mxu3 %v16393_v63  ;;  %5480 = vmatpush.bf16.msrb.mxu2 %v12286_v49  ;;  %v12211_v49 = vld [vmem:[#allocation2 + $0x6c8] sm:$0xf0] }
 0x33a   : > { %v4934_v5 = vpop.f32.mrf.mxu2  ;;  %v4838_v3 = vpop.f32.mrf.mxu0 }
 0x33b   : > { %v4935_v17 = vadd.f32 %v4934_v5, %v4886_v4  ;;  %v4983_v37 = vpop.f32.mrf.mxu3  ;;  %v4839_v27 = vadd.f32 %v4838_v3, %v14904_v40  ;;  %v4887_v22 = vpop.f32.mrf.mxu1  ;;  %v12155_v4 = vld [vmem:[#allocation2 + $0x658] sm:$0xf0] }
 0x33c   : > { %v12158_v54 = vor.u32 %v13971_v57, %v12155_v4  ;;  %v12219_v5 = vld [vmem:[#allocation2 + $0x6d8] sm:$0xf0] }
 0x33d   : > { %v16400_v30 = vadd.f32 %v4983_v37, %v4935_v17  ;;  %v4888_v19 = vadd.f32 %v4887_v22, %v4839_v27  ;;  %v12222_v12 = vor.u32 %v13987_v45, %v12219_v5  ;;  %v13967_v45 = vld [vmem:[#allocation2 + $0x634] sm:$0xf] }
 0x33e   : > { %5382 = vmatpush.bf16.msrb.mxu0 %v12158_v54 }
 0x33f   : > { %5431 = vmatpush.bf16.msrb.mxu1 %v12222_v12 }
 0x342   : > { %v4936_v15 = vpop.f32.mrf.mxu2  ;;  %v4997_v14 = vpop.f32.mrf.mxu0 }
 0x343   : > { %v4937_v41 = vadd.f32 %v4936_v15, %v4888_v19  ;;  %v4985_v8 = vpop.f32.mrf.mxu3  ;;  %v5046_v53 = vpop.f32.mrf.mxu1  ;;  %v4998_v2 = vadd.f32 %v4997_v14, %v15977_v34  ;;  %v12350_v34 = vor.u32 %v14019_v47, %v12347_v46  ;;  %v14017_v14 = vld [vmem:[#allocation2 + $0x7c4] sm:$0xf] }
 0x345   : > { %v16402_v36 = vadd.f32 %v4985_v8, %v4937_v41  ;;  %5192 = vmatmul.bf16.vlgmr.msra.gmra.mxu0 %v15324_v21  ;;  %v5047_v35 = vadd.f32 %v5046_v53, %v4998_v2  ;;  %5529 = vmatpush.bf16.msrb.mxu3 %v12350_v34  ;;  %v12147_v8 = vld [vmem:[#allocation2 + $0x648] sm:$0xf0] }
 0x346   : > { %5241 = vmatmul.bf16.vlgmr.msra.gmra.mxu1 %v15345_v58  ;;  %v12339_v53 = vld [vmem:[#allocation2 + $0x7c8] sm:$0xf0] }
 0x347   : > { %5290 = vmatmul.bf16.vlgmr.msra.gmra.mxu2 %v15348_v43  ;;  %v12342_v31 = vor.u32 %v14017_v14, %v12339_v53 }
 0x348   : > { %5339 = vmatmul.bf16.vlgmr.msra.gmra.mxu3 %v15351_v52 }
 0x349   : > { %5530 = vmatpush.bf16.msrb.mxu3 %v12342_v31 }
 0x34a   : > { %v5095_v23 = vpop.f32.mrf.mxu2  ;;  %v4999_v28 = vpop.f32.mrf.mxu0 }
 0x34b   : > { %v5096_v61 = vadd.f32 %v5095_v23, %v5047_v35  ;;  %v5144_v21 = vpop.f32.mrf.mxu3  ;;  %v5048_v58 = vpop.f32.mrf.mxu1  ;;  %v5000_v52 = vadd.f32 %v4999_v28, %v16019_v16  ;;  %v14001_v16 = vld [vmem:[#allocation2 + $0x744] sm:$0xf] }
 0x34c   : > { %v12278_v41 = vor.u32 %v14001_v16, %v12275_v26  ;;  %v13985_v35 = vld [vmem:[#allocation2 + $0x6c4] sm:$0xf]  ;;  %v13983_v26 = vld [vmem:[#allocation2 + $0x6b4] sm:$0xf] }
 0x34d   : > { %v5145_v43 = vadd.f32 %v5144_v21, %v5096_v61  ;;  %v5049_v38 = vadd.f32 %v5048_v58, %v5000_v52  ;;  %v12214_v4 = vor.u32 %v13985_v35, %v12211_v49  ;;  %v18816_v58 = vld [vmem:[#allocation15_spill] sm:$0xff]  ;;  %v12267_v52 = vld [vmem:[#allocation2 + $0x738] sm:$0xf0] }
 0x34e   : > { %5481 = vmatpush.bf16.msrb.mxu2 %v12278_v41 }
 0x34f   : > { %12367 = vst [vmem:[%s15134_s11 + $0x100] sm:$0xff] %v5145_v43  ;;  %5432 = vmatpush.bf16.msrb.mxu1 %v12214_v4  ;;  %v13999_v43 = vld [vmem:[#allocation2 + $0x734] sm:$0xf]  ;;  %v12131_v4 = vld [vmem:[#allocation2 + $0x628] sm:$0xf0] }
 0x350   : > { %v12270_v12 = vor.u32 %v13999_v43, %v12267_v52  ;;  %v13981_v43 = vld [vmem:[#allocation2 + $0x6a4] sm:$0xf]  ;;  %v12195_v52 = vld [vmem:[#allocation2 + $0x6a8] sm:$0xf0] }
 0x352   : > { %v5097_v17 = vpop.f32.mrf.mxu2  ;;  %v5002_v27 = vpop.f32.mrf.mxu0  ;;  %5482 = vmatpush.bf16.msrb.mxu2 %v12270_v12 }
 0x353   : > { %v5098_v37 = vadd.f32 %v5097_v17, %v5049_v38  ;;  %v5146_v3 = vpop.f32.mrf.mxu3  ;;  %v5051_v22 = vpop.f32.mrf.mxu1  ;;  %v5003_v9 = vadd.f32 %v5002_v27, %v16055_v7  ;;  %v12150_v7 = vor.u32 %v13969_v6, %v12147_v8  ;;  %v12139_v38 = vld [vmem:[#allocation2 + $0x638] sm:$0xf0]  ;;  %v14015_v17 = vld [vmem:[#allocation2 + $0x7b4] sm:$0xf] }
 0x354   : > { %v12203_v6 = vld [vmem:[#allocation2 + $0x6b8] sm:$0xf0] }
 0x355   : > { %v5147_v19 = vadd.f32 %v5146_v3, %v5098_v37  ;;  %5197 = vmatmul.bf16.gmra.mxu0 %v15390_v18  ;;  %v5052_v15 = vadd.f32 %v5051_v22, %v5003_v9  ;;  %v12331_v37 = vld [vmem:[#allocation2 + $0x7b8] sm:$0xf0] }
 0x356   : > { %5246 = vmatmul.bf16.gmra.mxu1 %v15399_v50  ;;  %5383 = vmatpush.bf16.msrb.mxu0 %v12150_v7  ;;  %v12334_v27 = vor.u32 %v14015_v17, %v12331_v37 }
 0x357   : > { %12369 = vst [vmem:[%s15134_s11 + $0x110] sm:$0xff] %v5147_v19  ;;  %5295 = vmatmul.bf16.gmra.mxu2 %v15451_v10 }
 0x358   : > { %5344 = vmatmul.bf16.gmra.mxu3 %v15456_v44 }
 0x359   : > { %5531 = vmatpush.bf16.msrb.mxu3 %v12334_v27  ;;  %v18821_v27 = vld [vmem:[#allocation57_spill] sm:$0xff] }
 0x35a   : > { %v5100_v2 = vpop.f32.mrf.mxu2  ;;  %v5004_v57 = vpop.f32.mrf.mxu0 }
 0x35b   : > { %v5101_v18 = vadd.f32 %v5100_v2, %v5052_v15  ;;  %v5149_v20 = vpop.f32.mrf.mxu3  ;;  %v5053_v50 = vpop.f32.mrf.mxu1  ;;  %v5005_v44 = vadd.f32 %v5004_v57, %v16101_v0  ;;  %v18815_v0 = vld [vmem:[#allocation14_spill] sm:$0xff]  ;;  %v12206_v15 = vor.u32 %v13983_v26, %v12203_v6  ;;  %v18819_v57 = vld [vmem:[#allocation17_spill] sm:$0xff]  ;;  %v13963_v6 = vld [vmem:[#allocation2 + $0x614] sm:$0xf] }
 0x35c   : > { %v12251_v26 = vld [vmem:[#allocation2 + $0x718] sm:$0xf0] }
 0x35d   : > { %v5150_v10 = vadd.f32 %v5149_v20, %v5101_v18  ;;  %v5054_v47 = vadd.f32 %v5053_v50, %v5005_v44  ;;  %5433 = vmatpush.bf16.msrb.mxu1 %v12206_v15  ;;  %v18817_v20 = vld [vmem:[#allocation19_spill] sm:$0xff]  ;;  %v13997_v50 = vld [vmem:[#allocation2 + $0x724] sm:$0xf] }
 0x35e   : > { %v13965_v44 = vld [vmem:[#allocation2 + $0x624] sm:$0xf] }
 0x35f   : > { %12371 = vst [vmem:[%s15134_s11 + $0x120] sm:$0xff] %v5150_v10  ;;  %v12259_v10 = vld [vmem:[#allocation2 + $0x728] sm:$0xf0] }
 0x360   : > { %v12262_v49 = vor.u32 %v13997_v50, %v12259_v10  ;;  %v18826_v10 = vld [vmem:[#allocation62_spill] sm:$0xff] }
 0x362   : > { %v5102_v46 = vpop.f32.mrf.mxu2  ;;  %v5007_v34 = vpop.f32.mrf.mxu0  ;;  %5483 = vmatpush.bf16.msrb.mxu2 %v12262_v49  ;;  %v12187_v49 = vld [vmem:[#allocation2 + $0x698] sm:$0xf0] }
 0x363   : > { %v5103_v23 = vadd.f32 %v5102_v46, %v5054_v47  ;;  %v5151_v54 = vpop.f32.mrf.mxu3  ;;  %v5056_v61 = vpop.f32.mrf.mxu1  ;;  %v5008_v28 = vadd.f32 %v5007_v34, %v16125_v62  ;;  %v12142_v62 = vor.u32 %v13967_v45, %v12139_v38  ;;  %v14013_v47 = vld [vmem:[#allocation2 + $0x7a4] sm:$0xf]  ;;  %v12323_v46 = vld [vmem:[#allocation2 + $0x7a8] sm:$0xf0]  ;;  %v12198_v45 = vor.u32 %v13981_v43, %v12195_v52 }
 0x364   : > { %v13993_v43 = vld [vmem:[#allocation2 + $0x704] sm:$0xf]  ;;  %v12243_v52 = vld [vmem:[#allocation2 + $0x708] sm:$0xf0] }
 0x365   : > { %v5152_v21 = vadd.f32 %v5151_v54, %v5103_v23  ;;  %5202 = vmatmul.bf16.gmra.mxu0 %v15483_v29  ;;  %v5057_v5 = vadd.f32 %v5056_v61, %v5008_v28  ;;  %v12326_v54 = vor.u32 %v14013_v47, %v12323_v46  ;;  %5434 = vmatpush.bf16.msrb.mxu1 %v12198_v45  ;;  %v13961_v45 = vld [vmem:[#allocation2 + $0x604] sm:$0xf] }
 0x366   : > { %5251 = vmatmul.bf16.gmra.mxu1 %v15487_v24  ;;  %5384 = vmatpush.bf16.msrb.mxu0 %v12142_v62 }
 0x367   : > { %12373 = vst [vmem:[%s15134_s11 + $0x130] sm:$0xff] %v5152_v21  ;;  %5300 = vmatmul.bf16.gmra.mxu2 %v18815_v0  ;;  %5532 = vmatpush.bf16.msrb.mxu3 %v12326_v54  ;;  %v18820_v0 = vld [vmem:[#allocation55_spill] sm:$0xff] }
 0x368   : > { %5349 = vmatmul.bf16.gmra.mxu3 %v18816_v58 }
 0x36a   : > { %v5105_v3 = vpop.f32.mrf.mxu2  ;;  %v5009_v19 = vpop.f32.mrf.mxu0 }
 0x36b   : > { %v5106_v29 = vadd.f32 %v5105_v3, %v5057_v5  ;;  %v5154_v22 = vpop.f32.mrf.mxu3  ;;  %v5058_v24 = vpop.f32.mrf.mxu1  ;;  %v5010_v16 = vadd.f32 %v5009_v19, %v16167_v60  ;;  %v18818_v60 = vld [vmem:[#allocation20_spill] sm:$0xff]  ;;  %v18823_v19 = vld [vmem:[#allocation23_spill] sm:$0xff] }
 0x36d   : > { %v5155_v9 = vadd.f32 %v5154_v22, %v5106_v29  ;;  %v5059_v41 = vadd.f32 %v5058_v24, %v5010_v16  ;;  %v18822_v22 = vld [vmem:[#allocation18_spill] sm:$0xff]  ;;  %v18824_v24 = vld [vmem:[#allocation24_spill] sm:$0xff] }
 0x36e   : > { %v13995_v16 = vld [vmem:[#allocation2 + $0x714] sm:$0xf] }
 0x36f   : > { %12375 = vst [vmem:[%s15134_s11 + $0x140] sm:$0xff] %v5155_v9  ;;  %v18825_v9 = vld [vmem:[#allocation21_spill] sm:$0xff] }
 0x372   : > { %v5107_v8 = vpop.f32.mrf.mxu2  ;;  %v5012_v2 = vpop.f32.mrf.mxu0 }
 0x373   : > { %v5108_v14 = vadd.f32 %v5107_v8, %v5059_v41  ;;  %v5156_v53 = vpop.f32.mrf.mxu3  ;;  %v5061_v7 = vpop.f32.mrf.mxu1  ;;  %v5013_v18 = vadd.f32 %v5012_v2, %v16195_v25  ;;  %v12134_v25 = vor.u32 %v13965_v44, %v12131_v4  ;;  %v12254_v41 = vor.u32 %v13995_v16, %v12251_v26  ;;  %v12123_v8 = vld [vmem:[#allocation2 + $0x618] sm:$0xf0]  ;;  %v13977_v16 = vld [vmem:[#allocation2 + $0x684] sm:$0xf]  ;;  %v12179_v26 = vld [vmem:[#allocation2 + $0x688] sm:$0xf0] }
 0x375   : > { %v5157_v31 = vadd.f32 %v5156_v53, %v5108_v14  ;;  %5207 = vmatmul.bf16.gmra.mxu0 %v15566_v13  ;;  %v5062_v35 = vadd.f32 %v5061_v7, %v5013_v18  ;;  %v14011_v14 = vld [vmem:[#allocation2 + $0x794] sm:$0xf]  ;;  %v12315_v53 = vld [vmem:[#allocation2 + $0x798] sm:$0xf0]  ;;  %v12126_v7 = vor.u32 %v13963_v6, %v12123_v8  ;;  %5484 = vmatpush.bf16.msrb.mxu2 %v12254_v41 }
 0x376   : > { %5256 = vmatmul.bf16.gmra.mxu1 %v18817_v20  ;;  %5385 = vmatpush.bf16.msrb.mxu0 %v12134_v25  ;;  %v12182_v6 = vor.u32 %v13977_v16, %v12179_v26  ;;  %v12819_v16 = vld [vmem:[#allocation2 + $0x9e0] sm:$0xf]  ;;  %v14118_v26 = vld [vmem:[#allocation2 + $0x9e4] sm:$0xf0] }
 0x377   : > { %12377 = vst [vmem:[%s15134_s11 + $0x150] sm:$0xff] %v5157_v31  ;;  %5305 = vmatmul.bf16.gmra.mxu2 %v18818_v60  ;;  %v12318_v31 = vor.u32 %v14011_v14, %v12315_v53 }
 0x378   : > { %5354 = vmatmul.bf16.gmra.mxu3 %v18819_v57 }
 0x379   : > { %5533 = vmatpush.bf16.msrb.mxu3 %v12318_v31 }
 0x37a   : > { %v5110_v23 = vpop.f32.mrf.mxu2  ;;  %v5014_v61 = vpop.f32.mrf.mxu0  ;;  %5386 = vmatpush.bf16.msrb.mxu0 %v12126_v7 }
 0x37b   : > { %v5111_v13 = vadd.f32 %v5110_v23, %v5062_v35  ;;  %v5159_v34 = vpop.f32.mrf.mxu3  ;;  %v5063_v21 = vpop.f32.mrf.mxu1  ;;  %v5015_v58 = vadd.f32 %v5014_v61, %v18820_v0  ;;  %v13979_v35 = vld [vmem:[#allocation2 + $0x694] sm:$0xf] }
 0x37c   : > { %v12190_v4 = vor.u32 %v13979_v35, %v12187_v49  ;;  %v18829_v0 = vld [vmem:[#allocation28_spill] sm:$0xff] }
 0x37d   : > { %v5160_v28 = vadd.f32 %v5159_v34, %v5111_v13  ;;  %v5064_v5 = vadd.f32 %v5063_v21, %v5015_v58  ;;  %v18827_v21 = vld [vmem:[#allocation22_spill] sm:$0xff]  ;;  %v18830_v58 = vld [vmem:[#allocation25_spill] sm:$0xff] }
 0x37e   : > { %5435 = vmatpush.bf16.msrb.mxu1 %v12190_v4  ;;  %v14072_v49 = vld [vmem:[#allocation2 + $0x874] sm:$0xf0]  ;;  %v12827_v4 = vld [vmem:[#allocation2 + $0x9f0] sm:$0xf] }
 0x37f   : > { %12379 = vst [vmem:[%s15134_s11 + $0x160] sm:$0xff] %v5160_v28  ;;  %v18828_v28 = vld [vmem:[#allocation27_spill] sm:$0xff] }
 0x382   : > { %v5112_v12 = vpop.f32.mrf.mxu2  ;;  %v5017_v37 = vpop.f32.mrf.mxu0  ;;  %5436 = vmatpush.bf16.msrb.mxu1 %v12182_v6 }
 0x383   : > { %v5113_v38 = vadd.f32 %v5112_v12, %v5064_v5  ;;  %v5161_v17 = vpop.f32.mrf.mxu3  ;;  %v5066_v3 = vpop.f32.mrf.mxu1  ;;  %v5018_v29 = vadd.f32 %v5017_v37, %v18821_v27  ;;  %v12246_v12 = vor.u32 %v13993_v43, %v12243_v52  ;;  %v12307_v37 = vld [vmem:[#allocation2 + $0x788] sm:$0xf0] }
 0x385   : > { %v5162_v62 = vadd.f32 %v5161_v17, %v5113_v38  ;;  %5212 = vmatmul.bf16.gmra.mxu0 %v18822_v22  ;;  %v5067_v15 = vadd.f32 %v5066_v3, %v5018_v29  ;;  %v12115_v38 = vld [vmem:[#allocation2 + $0x608] sm:$0xf0]  ;;  %v14009_v17 = vld [vmem:[#allocation2 + $0x784] sm:$0xf]  ;;  %5485 = vmatpush.bf16.msrb.mxu2 %v12246_v12 }
 0x386   : > { %5261 = vmatmul.bf16.gmra.mxu1 %v18823_v19 }
 0x387   : > { %12381 = vst [vmem:[%s15134_s11 + $0x170] sm:$0xff] %v5162_v62  ;;  %5310 = vmatmul.bf16.gmra.mxu2 %v18824_v24  ;;  %v12310_v62 = vor.u32 %v14009_v17, %v12307_v37 }
 0x388   : > { %5359 = vmatmul.bf16.gmra.mxu3 %v18825_v9 }
 0x389   : > { %5534 = vmatpush.bf16.msrb.mxu3 %v12310_v62  ;;  %v18838_v62 = vld [vmem:[#allocation33_spill] sm:$0xff] }
 0x38a   : > { %v5115_v2 = vpop.f32.mrf.mxu2  ;;  %v5019_v60 = vpop.f32.mrf.mxu0 }
 0x38b   : > { %v5116_v18 = vadd.f32 %v5115_v2, %v5067_v15  ;;  %v5164_v20 = vpop.f32.mrf.mxu3  ;;  %v5068_v57 = vpop.f32.mrf.mxu1  ;;  %v5020_v44 = vadd.f32 %v5019_v60, %v18826_v10  ;;  %v18834_v60 = vld [vmem:[#allocation29_spill] sm:$0xff]  ;;  %v12635_v10 = vld [vmem:[#allocation2 + $0x870] sm:$0xf] }
 0x38d   : > { %v5165_v50 = vadd.f32 %v5164_v20, %v5116_v18  ;;  %v5069_v47 = vadd.f32 %v5068_v57, %v5020_v44  ;;  %v18831_v18 = vld [vmem:[#allocation26_spill] sm:$0xff]  ;;  %v18832_v20 = vld [vmem:[#allocation31_spill] sm:$0xff] }
 0x38e   : > { %v12763_v57 = vld [vmem:[#allocation2 + $0x970] sm:$0xf] }
 0x38f   : > { %12383 = vst [vmem:[%s15134_s11 + $0x180] sm:$0xff] %v5165_v50  ;;  %v14104_v50 = vld [vmem:[#allocation2 + $0x974] sm:$0xf0] }
 0x390   : > { %v12764_v35 = vor.u32 %v14104_v50, %v12763_v57 }
 0x392   : > { %v5117_v46 = vpop.f32.mrf.mxu2  ;;  %v5022_v54 = vpop.f32.mrf.mxu0  ;;  %7184 = vmatpush.bf16.msra.mxu2 %v12764_v35 }
 0x393   : > { %v5118_v23 = vadd.f32 %v5117_v46, %v5069_v47  ;;  %v5166_v25 = vpop.f32.mrf.mxu3  ;;  %v5071_v13 = vpop.f32.mrf.mxu1  ;;  %v5023_v61 = vadd.f32 %v5022_v54, %v16336_v1  ;;  %v12118_v1 = vor.u32 %v13961_v45, %v12115_v38  ;;  %v14120_v47 = vld [vmem:[#allocation2 + $0x9f4] sm:$0xf0] }
 0x395   : > { %v5167_v34 = vadd.f32 %v5166_v25, %v5118_v23  ;;  %5217 = vmatmul.bf16.gmra.mxu0 %v18827_v21  ;;  %v5072_v5 = vadd.f32 %v5071_v13, %v5023_v61  ;;  %v12828_v23 = vor.u32 %v14120_v47, %v12827_v4 }
 0x396   : > { %5266 = vmatmul.bf16.gmra.mxu1 %v18828_v28  ;;  %5387 = vmatpush.bf16.msrb.mxu0 %v12118_v1  ;;  %v12699_v28 = vld [vmem:[#allocation2 + $0x8f0] sm:$0xf] }
 0x397   : > { %12385 = vst [vmem:[%s15134_s11 + $0x190] sm:$0xff] %v5167_v34  ;;  %5315 = vmatmul.bf16.gmra.mxu2 %v18829_v0  ;;  %7233 = vmatpush.bf16.msra.mxu3 %v12828_v23  ;;  %v14088_v0 = vld [vmem:[#allocation2 + $0x8f4] sm:$0xf0]  ;;  %v18836_v1 = vld [vmem:[#allocation35_spill] sm:$0xff] }
 0x398   : > { %5364 = vmatmul.bf16.gmra.mxu3 %v18830_v58  ;;  %v12700_v58 = vor.u32 %v14088_v0, %v12699_v28  ;;  %v18843_v23 = vld [vmem:[#allocation37_spill] sm:$0xff] }
 0x399   : > { %v14116_v28 = vld [vmem:[#allocation2 + $0x9d4] sm:$0xf0] }
 0x39a   : > { %v5120_v3 = vpop.f32.mrf.mxu2  ;;  %v5024_v22 = vpop.f32.mrf.mxu0  ;;  %7135 = vmatpush.bf16.msra.mxu1 %v12700_v58 }
 0x39b   : > { %v5121_v27 = vadd.f32 %v5120_v3, %v5072_v5  ;;  %v5169_v29 = vpop.f32.mrf.mxu3  ;;  %v5073_v19 = vpop.f32.mrf.mxu1  ;;  %v5025_v9 = vadd.f32 %v5024_v22, %v16364_v33  ;;  %v18833_v33 = vld [vmem:[#allocation32_spill] sm:$0xff]  ;;  %v18835_v3 = vld [vmem:[#allocation30_spill] sm:$0xff] }
 0x39c   : > { %v12627_v22 = vld [vmem:[#allocation2 + $0x860] sm:$0xf] }
 0x39d   : > { %v5170_v24 = vadd.f32 %v5169_v29, %v5121_v27  ;;  %v5074_v15 = vadd.f32 %v5073_v19, %v5025_v9  ;;  %v12755_v27 = vld [vmem:[#allocation2 + $0x960] sm:$0xf]  ;;  %v14102_v29 = vld [vmem:[#allocation2 + $0x964] sm:$0xf0] }
 0x39e   : > { %v14070_v9 = vld [vmem:[#allocation2 + $0x864] sm:$0xf0] }
 0x39f   : > { %12387 = vst [vmem:[%s15134_s11 + $0x1a0] sm:$0xff] %v5170_v24  ;;  %v12756_v24 = vor.u32 %v14102_v29, %v12755_v27 }
 0x3a1   : > { %7185 = vmatpush.bf16.msra.mxu2 %v12756_v24 }
 0x3a2   : > { %v5122_v41 = vpop.f32.mrf.mxu2  ;;  %v5027_v53 = vpop.f32.mrf.mxu0 }
 0x3a3   : > { %v5123_v8 = vadd.f32 %v5122_v41, %v5074_v15  ;;  %v5171_v14 = vpop.f32.mrf.mxu3  ;;  %v5076_v2 = vpop.f32.mrf.mxu1  ;;  %v5028_v31 = vadd.f32 %v5027_v53, %v16376_v59  ;;  %v12636_v59 = vor.u32 %v14072_v49, %v12635_v10  ;;  %v12820_v15 = vor.u32 %v14118_v26, %v12819_v16  ;;  %v18844_v26 = vld [vmem:[#allocation38_spill] sm:$0xff] }
 0x3a5   : > { %v5172_v7 = vadd.f32 %v5171_v14, %v5123_v8  ;;  %5222 = vmatmul.bf16.gmra.mxu0 %v18831_v18  ;;  %v5077_v44 = vadd.f32 %v5076_v2, %v5028_v31  ;;  %7234 = vmatpush.bf16.msra.mxu3 %v12820_v15  ;;  %v12691_v31 = vld [vmem:[#allocation2 + $0x8e0] sm:$0xf]  ;;  %v14086_v18 = vld [vmem:[#allocation2 + $0x8e4] sm:$0xf0] }
 0x3a6   : > { %5271 = vmatmul.bf16.gmra.mxu1 %v18832_v20  ;;  %7086 = vmatpush.bf16.msra.mxu0 %v12636_v59  ;;  %v12692_v20 = vor.u32 %v14086_v18, %v12691_v31  ;;  %v18842_v59 = vld [vmem:[#allocation40_spill] sm:$0xff]  ;;  %v18847_v15 = vld [vmem:[#allocation41_spill] sm:$0xff]  ;;  %v14114_v31 = vld [vmem:[#allocation2 + $0x9c4] sm:$0xf0] }
 0x3a7   : > { %12389 = vst [vmem:[%s15134_s11 + $0x1b0] sm:$0xff] %v5172_v7  ;;  %5320 = vmatmul.bf16.gmra.mxu2 %v18833_v33 }
 0x3a8   : > { %5369 = vmatmul.bf16.gmra.mxu3 %v18834_v60  ;;  %7136 = vmatpush.bf16.msra.mxu1 %v12692_v20 }
 0x3aa   : > { %v5125_v46 = vpop.f32.mrf.mxu2  ;;  %v5029_v13 = vpop.f32.mrf.mxu0 }
 0x3ab   : > { %v5126_v25 = vadd.f32 %v5125_v46, %v5077_v44  ;;  %v5174_v54 = vpop.f32.mrf.mxu3  ;;  %v5078_v34 = vpop.f32.mrf.mxu1  ;;  %v5030_v21 = vadd.f32 %v5029_v13, %v16390_v39  ;;  %v18837_v39 = vld [vmem:[#allocation36_spill] sm:$0xff]  ;;  %v18840_v46 = vld [vmem:[#allocation34_spill] sm:$0xff] }
 0x3ac   : > { %v18839_v44 = vld [vmem:[#allocation16_spill] sm:$0xff] }
 0x3ad   : > { %v5175_v61 = vadd.f32 %v5174_v54, %v5126_v25  ;;  %v5079_v43 = vadd.f32 %v5078_v34, %v5030_v21  ;;  %v12747_v25 = vld [vmem:[#allocation2 + $0x950] sm:$0xf]  ;;  %v14100_v54 = vld [vmem:[#allocation2 + $0x954] sm:$0xf0] }
 0x3ae   : > { %v12619_v13 = vld [vmem:[#allocation2 + $0x850] sm:$0xf]  ;;  %v12748_v34 = vor.u32 %v14100_v54, %v12747_v25 }
 0x3af   : > { %12391 = vst [vmem:[%s15134_s11 + $0x1c0] sm:$0xff] %v5175_v61  ;;  %v14068_v61 = vld [vmem:[#allocation2 + $0x854] sm:$0xf0]  ;;  %v12811_v21 = vld [vmem:[#allocation2 + $0x9d0] sm:$0xf] }
 0x3b0   : > { %v12620_v58 = vor.u32 %v14068_v61, %v12619_v13  ;;  %7186 = vmatpush.bf16.msra.mxu2 %v12748_v34 }
 0x3b2   : > { %v5127_v52 = vpop.f32.mrf.mxu2  ;;  %v5032_v12 = vpop.f32.mrf.mxu0 }
 0x3b3   : > { %v5128_v45 = vadd.f32 %v5127_v52, %v5079_v43  ;;  %v5176_v5 = vpop.f32.mrf.mxu3  ;;  %v5081_v38 = vpop.f32.mrf.mxu1  ;;  %v5033_v37 = vadd.f32 %v5032_v12, %v16400_v30  ;;  %v12628_v30 = vor.u32 %v14070_v9, %v12627_v22  ;;  %v12812_v43 = vor.u32 %v14116_v28, %v12811_v21  ;;  %v18848_v28 = vld [vmem:[#allocation42_spill] sm:$0xff] }
 0x3b5   : > { %v5177_v17 = vadd.f32 %v5176_v5, %v5128_v45  ;;  %5227 = vmatmul.bf16.gmra.mxu0 %v18835_v3  ;;  %v5082_v19 = vadd.f32 %v5081_v38, %v5033_v37  ;;  %7235 = vmatpush.bf16.msra.mxu3 %v12812_v43  ;;  %v12683_v37 = vld [vmem:[#allocation2 + $0x8d0] sm:$0xf]  ;;  %v14084_v3 = vld [vmem:[#allocation2 + $0x8d4] sm:$0xf0] }
 0x3b6   : > { %5276 = vmatmul.bf16.gmra.mxu1 %v18836_v1  ;;  %7087 = vmatpush.bf16.msra.mxu0 %v12628_v30  ;;  %v18846_v30 = vld [vmem:[#allocation44_spill] sm:$0xff]  ;;  %v18851_v43 = vld [vmem:[#allocation45_spill] sm:$0xff] }
 0x3b7   : > { %12393 = vst [vmem:[%s15134_s11 + $0x1d0] sm:$0xff] %v5177_v17  ;;  %5325 = vmatmul.bf16.gmra.mxu2 %v18837_v39  ;;  %v12684_v39 = vor.u32 %v14084_v3, %v12683_v37  ;;  %v12795_v37 = vld [vmem:[#allocation2 + $0x9b0] sm:$0xf]  ;;  %v14112_v3 = vld [vmem:[#allocation2 + $0x9b4] sm:$0xf0] }
 0x3b8   : > { %5374 = vmatmul.bf16.gmra.mxu3 %v18838_v62 }
 0x3b9   : > { %7137 = vmatpush.bf16.msra.mxu1 %v12684_v39 }
 0x3ba   : > { %v5130_v6 = vpop.f32.mrf.mxu2  ;;  %v5034_v14 = vpop.f32.mrf.mxu0  ;;  %7088 = vmatpush.bf16.msra.mxu0 %v12620_v58  ;;  %v18850_v58 = vld [vmem:[#allocation48_spill] sm:$0xff] }
 0x3bb   : > { %v5131_v41 = vadd.f32 %v5130_v6, %v5082_v19  ;;  %v5179_v8 = vpop.f32.mrf.mxu3  ;;  %v5083_v53 = vpop.f32.mrf.mxu1  ;;  %v5035_v7 = vadd.f32 %v5034_v14, %v16402_v36  ;;  %v18841_v36 = vld [vmem:[#allocation39_spill] sm:$0xff]  ;;  %v12611_v14 = vld [vmem:[#allocation2 + $0x840] sm:$0xf] }
 0x3bc   : > { %v18845_v6 = vld [vmem:[#allocation43_spill] sm:$0xff] }
 0x3bd   : > { %v5180_v2 = vadd.f32 %v5179_v8, %v5131_v41  ;;  %v5084_v33 = vadd.f32 %v5083_v53, %v5035_v7  ;;  %v12739_v41 = vld [vmem:[#allocation2 + $0x940] sm:$0xf]  ;;  %v14098_v8 = vld [vmem:[#allocation2 + $0x944] sm:$0xf0] }
 0x3be   : > { %v12740_v53 = vor.u32 %v14098_v8, %v12739_v41  ;;  %v12803_v7 = vld [vmem:[#allocation2 + $0x9c0] sm:$0xf] }
 0x3bf   : > { %12395 = vst [vmem:[%s15134_s11 + $0x1e0] sm:$0xff] %v5180_v2  ;;  %v14066_v2 = vld [vmem:[#allocation2 + $0x844] sm:$0xf0] }
 0x3c0   : > { %v12612_v20 = vor.u32 %v14066_v2, %v12611_v14  ;;  %7187 = vmatpush.bf16.msra.mxu2 %v12740_v53 }
 0x3c2   : > { %v5132_v60 = vpop.f32.mrf.mxu2  ;;  %v5193_v10 = vpop.f32.mrf.mxu0  ;;  %7089 = vmatpush.bf16.msra.mxu0 %v12612_v20  ;;  %v18852_v20 = vld [vmem:[#allocation46_spill] sm:$0xff] }
 0x3c3   : > { %v5133_v57 = vadd.f32 %v5132_v60, %v5084_v33  ;;  %v5181_v50 = vpop.f32.mrf.mxu3  ;;  %v5194_v35 = vadd.f32 %v5193_v10, %v18839_v44  ;;  %v5242_v49 = vpop.f32.mrf.mxu1  ;;  %v12804_v33 = vor.u32 %v14114_v31, %v12803_v7 }
 0x3c5   : > { %v5182_v4 = vadd.f32 %v5181_v50, %v5133_v57  ;;  %v5243_v47 = vadd.f32 %v5242_v49, %v5194_v35  ;;  %5388 = vmatmul.bf16.vlgmr.msrb.gmra.mxu0 %v18840_v46  ;;  %7236 = vmatpush.bf16.msra.mxu3 %v12804_v33  ;;  %v18853_v33 = vld [vmem:[#allocation49_spill] sm:$0xff] }
 0x3c6   : > { %5437 = vmatmul.bf16.vlgmr.msrb.gmra.mxu1 %v18841_v36 }
 0x3c7   : > { %12397 = vst [vmem:[%s15134_s11 + $0x1f0] sm:$0xff] %v5182_v4  ;;  %5486 = vmatmul.bf16.vlgmr.msrb.gmra.mxu2 %v18842_v59  ;;  %v12675_v4 = vld [vmem:[#allocation2 + $0x8c0] sm:$0xf] }
 0x3c8   : > { %5535 = vmatmul.bf16.vlgmr.msrb.gmra.mxu3 %v18843_v23 }
 0x3ca   : > { %v5291_v0 = vpop.f32.mrf.mxu2  ;;  %v5195_v5 = vpop.f32.mrf.mxu0 }
 0x3cb   : > { %v5292_v52 = vadd.f32 %v5291_v0, %v5243_v47  ;;  %v5340_v45 = vpop.f32.mrf.mxu3  ;;  %v5196_v12 = vadd.f32 %v5195_v5, %v18839_v44  ;;  %v5244_v38 = vpop.f32.mrf.mxu1  ;;  %v14082_v47 = vld [vmem:[#allocation2 + $0x8c4] sm:$0xf0]  ;;  %v12603_v5 = vld [vmem:[#allocation2 + $0x830] sm:$0xf] }
 0x3cc   : > { %v12676_v36 = vor.u32 %v14082_v47, %v12675_v4  ;;  %v18849_v0 = vld [vmem:[#allocation47_spill] sm:$0xff] }
 0x3cd   : > { %v16474_v17 = vadd.f32 %v5340_v45, %v5292_v52  ;;  %v5245_v1 = vadd.f32 %v5244_v38, %v5196_v12  ;;  %v12731_v52 = vld [vmem:[#allocation2 + $0x930] sm:$0xf]  ;;  %v14096_v45 = vld [vmem:[#allocation2 + $0x934] sm:$0xf0]  ;;  %v14062_v47 = vld [vmem:[#allocation2 + $0x824] sm:$0xf0] }
 0x3ce   : > { %7138 = vmatpush.bf16.msra.mxu1 %v12676_v36  ;;  %v12732_v12 = vor.u32 %v14096_v45, %v12731_v52  ;;  %v14064_v38 = vld [vmem:[#allocation2 + $0x834] sm:$0xf0]  ;;  %v14110_v36 = vld [vmem:[#allocation2 + $0x9a4] sm:$0xf0] }
 0x3cf   : > { %v12604_v39 = vor.u32 %v14064_v38, %v12603_v5 }
 0x3d0   : > { %7188 = vmatpush.bf16.msra.mxu2 %v12732_v12 }
 0x3d1   : > { %7090 = vmatpush.bf16.msra.mxu0 %v12604_v39 }
 0x3d2   : > { %v5293_v62 = vpop.f32.mrf.mxu2  ;;  %v5198_v22 = vpop.f32.mrf.mxu0 }
 0x3d3   : > { %v5294_v27 = vadd.f32 %v5293_v62, %v5245_v1  ;;  %v5342_v29 = vpop.f32.mrf.mxu3  ;;  %v5199_v19 = vadd.f32 %v5198_v22, %v18839_v44  ;;  %v5247_v24 = vpop.f32.mrf.mxu1  ;;  %v12796_v62 = vor.u32 %v14112_v3, %v12795_v37 }
 0x3d5   : > { %v16477_v9 = vadd.f32 %v5342_v29, %v5294_v27  ;;  %v5248_v16 = vadd.f32 %v5247_v24, %v5199_v19  ;;  %5393 = vmatmul.bf16.gmra.mxu0 %v18844_v26  ;;  %7237 = vmatpush.bf16.msra.mxu3 %v12796_v62  ;;  %v12667_v26 = vld [vmem:[#allocation2 + $0x8b0] sm:$0xf] }
 0x3d6   : > { %5442 = vmatmul.bf16.gmra.mxu1 %v18845_v6  ;;  %v14080_v6 = vld [vmem:[#allocation2 + $0x8b4] sm:$0xf0] }
 0x3d7   : > { %5491 = vmatmul.bf16.gmra.mxu2 %v18846_v30 }
 0x3d8   : > { %5540 = vmatmul.bf16.gmra.mxu3 %v18847_v15  ;;  %v12668_v15 = vor.u32 %v14080_v6, %v12667_v26  ;;  %v14092_v26 = vld [vmem:[#allocation2 + $0x914] sm:$0xf0]  ;;  %v12587_v6 = vld [vmem:[#allocation2 + $0x810] sm:$0xf] }
 0x3da   : > { %v5296_v18 = vpop.f32.mrf.mxu2  ;;  %v5200_v50 = vpop.f32.mrf.mxu0  ;;  %7139 = vmatpush.bf16.msra.mxu1 %v12668_v15  ;;  %v14060_v15 = vld [vmem:[#allocation2 + $0x814] sm:$0xf0] }
 0x3db   : > { %v5297_v60 = vadd.f32 %v5296_v18, %v5248_v16  ;;  %v5345_v57 = vpop.f32.mrf.mxu3  ;;  %v5201_v10 = vadd.f32 %v5200_v50, %v18839_v44  ;;  %v5249_v35 = vpop.f32.mrf.mxu1  ;;  %v12723_v50 = vld [vmem:[#allocation2 + $0x920] sm:$0xf] }
 0x3dd   : > { %v16484_v49 = vadd.f32 %v5345_v57, %v5297_v60  ;;  %v5250_v46 = vadd.f32 %v5249_v35, %v5201_v10  ;;  %v18854_v60 = vld [vmem:[#allocation50_spill] sm:$0xff]  ;;  %v18855_v57 = vld [vmem:[#allocation51_spill] sm:$0xff] }
 0x3de   : > { %v14094_v10 = vld [vmem:[#allocation2 + $0x924] sm:$0xf0]  ;;  %v12595_v35 = vld [vmem:[#allocation2 + $0x820] sm:$0xf] }
 0x3df   : > { %v12724_v4 = vor.u32 %v14094_v10, %v12723_v50  ;;  %v12651_v50 = vld [vmem:[#allocation2 + $0x890] sm:$0xf]  ;;  %v14076_v10 = vld [vmem:[#allocation2 + $0x894] sm:$0xf0] }
 0x3e1   : > { %7189 = vmatpush.bf16.msra.mxu2 %v12724_v4  ;;  %v12652_v4 = vor.u32 %v14076_v10, %v12651_v50  ;;  %v14168_v50 = vld [vmem:[#allocation2 + $0xb74] sm:$0xf0]  ;;  %v12891_v10 = vld [vmem:[#allocation2 + $0xa70] sm:$0xf] }
 0x3e2   : > { %v5298_v59 = vpop.f32.mrf.mxu2  ;;  %v5203_v54 = vpop.f32.mrf.mxu0 }
 0x3e3   : > { %v5299_v23 = vadd.f32 %v5298_v59, %v5250_v46  ;;  %v5347_v25 = vpop.f32.mrf.mxu3  ;;  %v5204_v13 = vadd.f32 %v5203_v54, %v18839_v44  ;;  %v5252_v34 = vpop.f32.mrf.mxu1  ;;  %v12787_v46 = vld [vmem:[#allocation2 + $0x9a0] sm:$0xf] }
 0x3e5   : > { %v16487_v61 = vadd.f32 %v5347_v25, %v5299_v23  ;;  %v5253_v21 = vadd.f32 %v5252_v34, %v5204_v13  ;;  %5398 = vmatmul.bf16.gmra.mxu0 %v18848_v28  ;;  %v12596_v23 = vor.u32 %v14062_v47, %v12595_v35  ;;  %v12788_v25 = vor.u32 %v14110_v36, %v12787_v46 }
 0x3e6   : > { %5447 = vmatmul.bf16.gmra.mxu1 %v18849_v0 }
 0x3e7   : > { %5496 = vmatmul.bf16.gmra.mxu2 %v18850_v58  ;;  %7091 = vmatpush.bf16.msra.mxu0 %v12596_v23  ;;  %v12659_v58 = vld [vmem:[#allocation2 + $0x8a0] sm:$0xf] }
 0x3e8   : > { %5545 = vmatmul.bf16.gmra.mxu3 %v18851_v43  ;;  %v14078_v43 = vld [vmem:[#allocation2 + $0x8a4] sm:$0xf0] }
 0x3e9   : > { %7238 = vmatpush.bf16.msra.mxu3 %v12788_v25  ;;  %v12660_v45 = vor.u32 %v14078_v43, %v12659_v58  ;;  %v18863_v58 = vld [vmem:[#allocation61_spill] sm:$0xff] }
 0x3ea   : > { %v5301_v1 = vpop.f32.mrf.mxu2  ;;  %v5205_v22 = vpop.f32.mrf.mxu0  ;;  %v12707_v43 = vld [vmem:[#allocation2 + $0x900] sm:$0xf] }
 0x3eb   : > { %v5302_v27 = vadd.f32 %v5301_v1, %v5253_v21  ;;  %v5350_v29 = vpop.f32.mrf.mxu3  ;;  %v5206_v19 = vadd.f32 %v5205_v22, %v18839_v44  ;;  %v5254_v24 = vpop.f32.mrf.mxu1  ;;  %7140 = vmatpush.bf16.msra.mxu1 %v12660_v45  ;;  %v18858_v22 = vld [vmem:[#allocation54_spill] sm:$0xff] }
 0x3ec   : > { %v12579_v45 = vld [vmem:[#allocation2 + $0x800] sm:$0xf] }
 0x3ed   : > { %v16494_v16 = vadd.f32 %v5350_v29, %v5302_v27  ;;  %v5255_v30 = vadd.f32 %v5254_v24, %v5206_v19  ;;  %v18856_v27 = vld [vmem:[#allocation52_spill] sm:$0xff]  ;;  %v18857_v29 = vld [vmem:[#allocation53_spill] sm:$0xff] }
 0x3ee   : > { %v18859_v19 = vld [vmem:[#allocation56_spill] sm:$0xff] }
 0x3ef   : > { %v12715_v24 = vld [vmem:[#allocation2 + $0x910] sm:$0xf]  ;;  %7141 = vmatpush.bf16.msra.mxu1 %v12652_v4  ;;  %v14136_v4 = vld [vmem:[#allocation2 + $0xa74] sm:$0xf0] }
 0x3f2   : > { %v5303_v41 = vpop.f32.mrf.mxu2  ;;  %v5208_v53 = vpop.f32.mrf.mxu0 }
 0x3f3   : > { %v5304_v8 = vadd.f32 %v5303_v41, %v5255_v30  ;;  %v5352_v14 = vpop.f32.mrf.mxu3  ;;  %v5209_v2 = vadd.f32 %v5208_v53, %v18839_v44  ;;  %v5257_v7 = vpop.f32.mrf.mxu1  ;;  %v12716_v30 = vor.u32 %v14092_v26, %v12715_v24  ;;  %v12779_v41 = vld [vmem:[#allocation2 + $0x990] sm:$0xf]  ;;  %v12588_v53 = vor.u32 %v14060_v15, %v12587_v6  ;;  %v12643_v6 = vld [vmem:[#allocation2 + $0x880] sm:$0xf] }
 0x3f5   : > { %v16497_v31 = vadd.f32 %v5352_v14, %v5304_v8  ;;  %v5258_v18 = vadd.f32 %v5257_v7, %v5209_v2  ;;  %5403 = vmatmul.bf16.gmra.mxu0 %v18852_v20  ;;  %v14108_v8 = vld [vmem:[#allocation2 + $0x994] sm:$0xf0]  ;;  %7190 = vmatpush.bf16.msra.mxu2 %v12716_v30  ;;  %v14074_v30 = vld [vmem:[#allocation2 + $0x884] sm:$0xf0] }
 0x3f6   : > { %5452 = vmatmul.bf16.gmra.mxu1 %v18853_v33  ;;  %v12780_v2 = vor.u32 %v14108_v8, %v12779_v41  ;;  %7092 = vmatpush.bf16.msra.mxu0 %v12588_v53  ;;  %v12644_v41 = vor.u32 %v14074_v30, %v12643_v6 }
 0x3f7   : > { %5501 = vmatmul.bf16.gmra.mxu2 %v18854_v60 }
 0x3f8   : > { %5550 = vmatmul.bf16.gmra.mxu3 %v18855_v57  ;;  %7142 = vmatpush.bf16.msra.mxu1 %v12644_v41 }
 0x3f9   : > { %7239 = vmatpush.bf16.msra.mxu3 %v12780_v2 }
 0x3fa   : > { %v5306_v59 = vpop.f32.mrf.mxu2  ;;  %v5210_v34 = vpop.f32.mrf.mxu0 }
 0x3fb   : > { %v5307_v54 = vadd.f32 %v5306_v59, %v5258_v18  ;;  %v5355_v13 = vpop.f32.mrf.mxu3  ;;  %v5211_v21 = vadd.f32 %v5210_v34, %v18839_v44  ;;  %v5259_v28 = vpop.f32.mrf.mxu1  ;;  %v18860_v34 = vld [vmem:[#allocation58_spill] sm:$0xff] }
 0x3fd   : > { %v16504_v0 = vadd.f32 %v5355_v13, %v5307_v54  ;;  %v5260_v52 = vadd.f32 %v5259_v28, %v5211_v21  ;;  %v18861_v21 = vld [vmem:[#allocation59_spill] sm:$0xff]  ;;  %v18862_v28 = vld [vmem:[#allocation60_spill] sm:$0xff] }
 0x402   : > { %v5308_v5 = vpop.f32.mrf.mxu2  ;;  %v5213_v37 = vpop.f32.mrf.mxu0 }
 0x403   : > { %v5309_v12 = vadd.f32 %v5308_v5, %v5260_v52  ;;  %v5357_v38 = vpop.f32.mrf.mxu3  ;;  %v5214_v3 = vadd.f32 %v5213_v37, %v18839_v44  ;;  %v5262_v1 = vpop.f32.mrf.mxu1  ;;  %v14090_v52 = vld [vmem:[#allocation2 + $0x904] sm:$0xf0] }
 0x404   : > { %v12708_v5 = vor.u32 %v14090_v52, %v12707_v43  ;;  %v14106_v37 = vld [vmem:[#allocation2 + $0x984] sm:$0xf0]  ;;  %v14026_v43 = vld [vmem:[%s14696_s7 + $0x1c] sm:$0xf0] }
 0x405   : > { %v16507_v39 = vadd.f32 %v5357_v38, %v5309_v12  ;;  %v5263_v62 = vadd.f32 %v5262_v1, %v5214_v3  ;;  %5408 = vmatmul.bf16.gmra.mxu0 %v18856_v27  ;;  %v14058_v12 = vld [vmem:[#allocation2 + $0x804] sm:$0xf0]  ;;  %v12771_v38 = vld [vmem:[#allocation2 + $0x980] sm:$0xf] }
 0x406   : > { %5457 = vmatmul.bf16.gmra.mxu1 %v18857_v29  ;;  %v12580_v1 = vor.u32 %v14058_v12, %v12579_v45  ;;  %7191 = vmatpush.bf16.msra.mxu2 %v12708_v5  ;;  %v14025_v45 = vld [vmem:[%s14696_s7 + $0x1c] sm:$0xf]  ;;  %v12453_v5 = vld [vmem:[%s14696_s7 + $0x20] sm:$0xf0]  ;;  %v12415_v12 = vld [vmem:[%s14696_s7 + $0x28] sm:$0x11] }
 0x407   : > { %5506 = vmatmul.bf16.gmra.mxu2 %v18858_v22 }
 0x408   : > { %5555 = vmatmul.bf16.gmra.mxu3 %v18859_v19  ;;  %7093 = vmatpush.bf16.msra.mxu0 %v12580_v1 }
 0x40a   : > { %v5311_v14 = vpop.f32.mrf.mxu2  ;;  %v5215_v20 = vpop.f32.mrf.mxu0 }
 0x40b   : > { %v5312_v7 = vadd.f32 %v5311_v14, %v5263_v62  ;;  %v5360_v18 = vpop.f32.mrf.mxu3  ;;  %v5216_v33 = vadd.f32 %v5215_v20, %v18839_v44  ;;  %v5264_v60 = vpop.f32.mrf.mxu1  ;;  %v12772_v62 = vor.u32 %v14106_v37, %v12771_v38 }
 0x40d   : > { %v16514_v57 = vadd.f32 %v5360_v18, %v5312_v7  ;;  %v5265_v35 = vadd.f32 %v5264_v60, %v5216_v33  ;;  %7240 = vmatpush.bf16.msra.mxu3 %v12772_v62  ;;  %v13019_v60 = vld [vmem:[#allocation2 + $0xb70] sm:$0xf] }
 0x412   : > { %v5313_v47 = vpop.f32.mrf.mxu2  ;;  %v5218_v59 = vpop.f32.mrf.mxu0 }
 0x413   : > { %v5314_v46 = vadd.f32 %v5313_v47, %v5265_v35  ;;  %v5362_v36 = vpop.f32.mrf.mxu3  ;;  %v5219_v23 = vadd.f32 %v5218_v59, %v18839_v44  ;;  %v5267_v25 = vpop.f32.mrf.mxu1  ;;  %v13020_v35 = vor.u32 %v14168_v50, %v13019_v60  ;;  %v13083_v47 = vld [vmem:[#allocation2 + $0xbf0] sm:$0xf]  ;;  %v12892_v59 = vor.u32 %v14136_v4, %v12891_v10  ;;  %v13075_v60 = vld [vmem:[#allocation2 + $0xbe0] sm:$0xf]  ;;  %v14182_v10 = vld [vmem:[#allocation2 + $0xbe4] sm:$0xf0] }
 0x414   : > { %v13076_v4 = vor.u32 %v14182_v10, %v13075_v60  ;;  %v13003_v60 = vld [vmem:[#allocation2 + $0xb50] sm:$0xf] }
 0x415   : > { %v16517_v54 = vadd.f32 %v5362_v36, %v5314_v46  ;;  %v5268_v13 = vadd.f32 %v5267_v25, %v5219_v23  ;;  %5413 = vmatmul.bf16.gmra.mxu0 %v18860_v34  ;;  %v14184_v46 = vld [vmem:[#allocation2 + $0xbf4] sm:$0xf0]  ;;  %7380 = vmatpush.bf16.msrb.mxu2 %v13020_v35 }
 0x416   : > { %5462 = vmatmul.bf16.gmra.mxu1 %v18861_v21  ;;  %v13084_v23 = vor.u32 %v14184_v46, %v13083_v47  ;;  %7282 = vmatpush.bf16.msrb.mxu0 %v12892_v59  ;;  %v12955_v21 = vld [vmem:[#allocation2 + $0xaf0] sm:$0xf] }
 0x417   : > { %5511 = vmatmul.bf16.gmra.mxu2 %v18862_v28  ;;  %v14152_v28 = vld [vmem:[#allocation2 + $0xaf4] sm:$0xf0] }
 0x418   : > { %5560 = vmatmul.bf16.gmra.mxu3 %v18863_v58  ;;  %v12451_v58 = vld [vmem:[%s14696_s7 + $0x18] sm:$0xf]  ;;  %v12956_v52 = vor.u32 %v14152_v28, %v12955_v21 }
 0x419   : > { %7429 = vmatpush.bf16.msrb.mxu3 %v13084_v23  ;;  %v16541_v62 = vor.u32 %v14026_v43, %v12451_v58  ;;  %v12459_v43 = vld [vmem:[%s14696_s7 + $0x30] sm:$0xf] }
 0x41a   : > { %v5316_v3 = vpop.f32.mrf.mxu2  ;;  %v5220_v22 = vpop.f32.mrf.mxu0  ;;  %7331 = vmatpush.bf16.msrb.mxu1 %v12956_v52  ;;  %v12416_v52 = vld [vmem:[%s14696_s7 + $0x40] sm:$0x11] }
 0x41b   : > { %v5317_v27 = vadd.f32 %v5316_v3, %v5268_v13  ;;  %v5365_v29 = vpop.f32.mrf.mxu3  ;;  %v5221_v19 = vadd.f32 %v5220_v22, %v18839_v44  ;;  %v5269_v24 = vpop.f32.mrf.mxu1  ;;  %v16544_v22 = vor.u32 %v14025_v45, %v12453_v5  ;;  %v5784_v41 = vshll.u32 %v16541_v62, 16 }
 0x41d   : > { %v16524_v26 = vadd.f32 %v5365_v29, %v5317_v27  ;;  %v5270_v15 = vadd.f32 %v5269_v24, %v5221_v19  ;;  %v5749_v19 = vunpack.c.l.b16 %v12415_v12  ;;  %v5750_v24 = vunpack.c.h.b16 %v12415_v12  ;;  %7430 = vmatpush.bf16.msrb.mxu3 %v13076_v4  ;;  %v14028_v12 = vld [vmem:[%s14696_s7 + $0x34] sm:$0xf0] }
 0x422   : > { %v5318_v8 = vpop.f32.mrf.mxu2  ;;  %v5223_v2 = vpop.f32.mrf.mxu0 }
 0x423   : > { %v5319_v14 = vadd.f32 %v5318_v8, %v5270_v15  ;;  %v5367_v53 = vpop.f32.mrf.mxu3  ;;  %v5224_v7 = vadd.f32 %v5223_v2, %v18839_v44  ;;  %v5272_v18 = vpop.f32.mrf.mxu1  ;;  %v5765_v15 = vpack.c.b16 %v5749_v19, %v5749_v19  ;;  %v5766_v8 = vpack.c.b16 %v5750_v24, %v5750_v24  ;;  %v14166_v2 = vld [vmem:[#allocation2 + $0xb64] sm:$0xf0] }
 0x424   : > { %v5751_v19 = vunpack.c.l.b16 %v12416_v52 }
 0x425   : > { %v16527_v20 = vadd.f32 %v5367_v53, %v5319_v14  ;;  %v5273_v33 = vadd.f32 %v5272_v18, %v5224_v7  ;;  %5418 = vmatmul.bf16.gmra.mxu0 %v16350_v11  ;;  %v5796_v14 = vshll.u32 %v16544_v22, 16  ;;  %v13011_v53 = vld [vmem:[#allocation2 + $0xb60] sm:$0xf]  ;;  %v5789_v59 = vshll.u32 %v5765_v15, 16 }
 0x426   : > { %5467 = vmatmul.bf16.gmra.mxu1 %v16354_v56  ;;  %v13012_v7 = vor.u32 %v14166_v2, %v13011_v53  ;;  %v12883_v18 = vld [vmem:[#allocation2 + $0xa60] sm:$0xf]  ;;  %v5801_v23 = vshll.u32 %v5766_v8, 16  ;;  %v16567_v15 = vor.u32 %v14028_v12, %v12459_v43  ;;  %v5752_v2 = vunpack.c.h.b16 %v12416_v52 }
 0x427   : > { %5516 = vmatmul.bf16.gmra.mxu2 %v16358_v51  ;;  %v5791_v28 = vrot.slane %v5789_v59, 1 }
 0x428   : > { %5565 = vmatmul.bf16.gmra.mxu3 %v16367_v42  ;;  %7381 = vmatpush.bf16.msrb.mxu2 %v13012_v7  ;;  %v5803_v58 = vrot.slane %v5801_v23, 1  ;;  %v5767_v7 = vpack.c.b16 %v5751_v19, %v5751_v19 }
 0x42a   : > { %v5321_v36 = vpop.f32.mrf.mxu2  ;;  %v5225_v51 = vpop.f32.mrf.mxu0  ;;  %v5813_v23 = vshll.u32 %v5767_v7, 16 }
 0x42b   : > { %v5322_v11 = vadd.f32 %v5321_v36, %v5273_v33  ;;  %v5370_v56 = vpop.f32.mrf.mxu3  ;;  %v5226_v42 = vadd.f32 %v5225_v51, %v18839_v44  ;;  %v5274_v25 = vpop.f32.mrf.mxu1  ;;  %v14134_v33 = vld [vmem:[#allocation2 + $0xa64] sm:$0xf0]  ;;  %v5786_v36 = vrot.slane %v5784_v41, 1  ;;  %v5798_v51 = vrot.slane %v5796_v14, 1 }
 0x42c   : > { %v5815_v52 = vrot.slane %v5813_v23, 1 }
 0x42d   : > { %v16534_v13 = vadd.f32 %v5370_v56, %v5322_v11  ;;  %v5275_v34 = vadd.f32 %v5274_v25, %v5226_v42  ;;  %v5794_v56 = vshrl.u32 %v16544_v22, 16  ;;  %v12947_v25 = vld [vmem:[#allocation2 + $0xae0] sm:$0xf] }
 0x42f   : > { %v5799_v5 = vor.u32 %v5798_v51, %v5794_v56 }
 0x431   : > { %v16575_v53 = vsel %vm393_vm0, %v5799_v5, %v5803_v58  ;;  %v14148_v5 = vld [vmem:[#allocation2 + $0xad4] sm:$0xf0] }
 0x432   : > { %v5323_v38 = vpop.f32.mrf.mxu2  ;;  %v5228_v1 = vpop.f32.mrf.mxu0 }
 0x433   : > { %v5324_v37 = vadd.f32 %v5323_v38, %v5275_v34  ;;  %v5372_v3 = vpop.f32.mrf.mxu3  ;;  %v5229_v27 = vadd.f32 %v5228_v1, %v18839_v44  ;;  %v5277_v29 = vpop.f32.mrf.mxu1  ;;  %v14150_v34 = vld [vmem:[#allocation2 + $0xae4] sm:$0xf0]  ;;  %v14027_v38 = vld [vmem:[%s14696_s7 + $0x34] sm:$0xf] }
 0x434   : > { %v12948_v45 = vor.u32 %v14150_v34, %v12947_v25 }
 0x435   : > { %v16546_v6 = vadd.f32 %v5372_v3, %v5324_v37  ;;  %v5278_v30 = vadd.f32 %v5277_v29, %v5229_v27  ;;  %5423 = vmatmul.bf16.gmra.mxu0 %v16380_v48  ;;  %v12884_v48 = vor.u32 %v14134_v33, %v12883_v18  ;;  %v12461_v37 = vld [vmem:[%s14696_s7 + $0x38] sm:$0xf0]  ;;  %v5808_v18 = vshll.u32 %v16567_v15, 16 }
 0x436   : > { %5472 = vmatmul.bf16.gmra.mxu1 %v16385_v55  ;;  %v16569_v41 = vor.u32 %v14027_v38, %v12461_v37  ;;  %v12467_v38 = vld [vmem:[%s14696_s7 + $0x48] sm:$0xf]  ;;  %v14030_v37 = vld [vmem:[%s14696_s7 + $0x4c] sm:$0xf0] }
 0x437   : > { %5521 = vmatmul.bf16.gmra.mxu2 %v16388_v32  ;;  %7283 = vmatpush.bf16.msrb.mxu0 %v12884_v48  ;;  %v5768_v48 = vpack.c.b16 %v5752_v2, %v5752_v2  ;;  %v5810_v25 = vrot.slane %v5808_v18, 1 }
 0x438   : > { %5570 = vmatmul.bf16.gmra.mxu3 %v16393_v63  ;;  %v5782_v63 = vshrl.u32 %v16541_v62, 16  ;;  %7332 = vmatpush.bf16.msrb.mxu1 %v12948_v45  ;;  %v5820_v33 = vshll.u32 %v16569_v41, 16  ;;  %v5818_v34 = vshrl.u32 %v16569_v41, 16  ;;  %v12939_v45 = vld [vmem:[#allocation2 + $0xad0] sm:$0xf] }
 0x439   : > { %v5825_v43 = vshll.u32 %v5768_v48, 16 }
 0x43a   : > { %v5326_v50 = vpop.f32.mrf.mxu2  ;;  %v5230_v32 = vpop.f32.mrf.mxu0  ;;  %v5787_v21 = vor.u32 %v5786_v36, %v5782_v63  ;;  %v5822_v58 = vrot.slane %v5820_v33, 1  ;;  %v16592_v33 = vor.u32 %v14030_v37, %v12467_v38 }
 0x43b   : > { %v5327_v55 = vadd.f32 %v5326_v50, %v5278_v30  ;;  %v5375_v35 = vpop.f32.mrf.mxu3  ;;  %v5231_v47 = vadd.f32 %v5230_v32, %v18839_v44  ;;  %v5279_v46 = vpop.f32.mrf.mxu1  ;;  %v14164_v50 = vld [vmem:[#allocation2 + $0xb54] sm:$0xf0]  ;;  %v13067_v32 = vld [vmem:[#allocation2 + $0xbd0] sm:$0xf]  ;;  %v5827_v19 = vrot.slane %v5825_v43, 1 }
 0x43c   : > { %v16565_v30 = vsel %vm393_vm0, %v5787_v21, %v5791_v28  ;;  %v13004_v10 = vor.u32 %v14164_v50, %v13003_v60 }
 0x43d   : > { %v16556_v11 = vadd.f32 %v5375_v35, %v5327_v55  ;;  %v5280_v42 = vadd.f32 %v5279_v46, %v5231_v47  ;;  %v12875_v55 = vld [vmem:[#allocation2 + $0xa50] sm:$0xf]  ;;  %v14132_v35 = vld [vmem:[#allocation2 + $0xa54] sm:$0xf0] }
 0x43e   : > { %v12876_v4 = vor.u32 %v14132_v35, %v12875_v55  ;;  %v14180_v47 = vld [vmem:[#allocation2 + $0xbd4] sm:$0xf0]  ;;  %7382 = vmatpush.bf16.msrb.mxu2 %v13004_v10 }
 0x43f   : > { %v13068_v56 = vor.u32 %v14180_v47, %v13067_v32 }
 0x440   : > { %7284 = vmatpush.bf16.msrb.mxu0 %v12876_v4  ;;  %v5832_v4 = vshll.u32 %v16592_v33, 16 }
 0x441   : > { %7431 = vmatpush.bf16.msrb.mxu3 %v13068_v56  ;;  %v12867_v56 = vld [vmem:[#allocation2 + $0xa40] sm:$0xf] }
 0x442   : > { %v5328_v3 = vpop.f32.mrf.mxu2  ;;  %v5389_v29 = vpop.f32.mrf.mxu0 }
 0x443   : > { %v5329_v1 = vadd.f32 %v5328_v3, %v5280_v42  ;;  %v5377_v27 = vpop.f32.mrf.mxu3  ;;  %v5438_v24 = vpop.f32.mrf.mxu1  ;;  %v5390_v14 = vadd.f32 %v5389_v29, %v16474_v17  ;;  %v5806_v42 = vshrl.u32 %v16567_v15, 16  ;;  %v12417_v3 = vld [vmem:[%s14696_s7 + $0x58] sm:$0x11]  ;;  %v5823_v29 = vor.u32 %v5822_v58, %v5818_v34 }
 0x444   : > { %v5753_v60 = vunpack.c.l.b16 %v12417_v3  ;;  %v5754_v10 = vunpack.c.h.b16 %v12417_v3  ;;  %v5830_v34 = vshrl.u32 %v16592_v33, 16 }
 0x445   : > { %v16571_v8 = vadd.f32 %v5377_v27, %v5329_v1  ;;  %7094 = vmatmul.bf16.vlgmr.msra.gmra.mxu0 %v16541_v62  ;;  %v5439_v17 = vadd.f32 %v5438_v24, %v5390_v14  ;;  %v5811_v12 = vor.u32 %v5810_v25, %v5806_v42  ;;  %v12940_v1 = vor.u32 %v14148_v5, %v12939_v45  ;;  %v14029_v24 = vld [vmem:[%s14696_s7 + $0x4c] sm:$0xf]  ;;  %v12469_v14 = vld [vmem:[%s14696_s7 + $0x50] sm:$0xf0]  ;;  %v13059_v42 = vld [vmem:[#allocation2 + $0xbc0] sm:$0xf] }
 0x446   : > { %7143 = vmatmul.bf16.vlgmr.msra.gmra.mxu1 %v16544_v22  ;;  %v16597_v48 = vor.u32 %v14029_v24, %v12469_v14  ;;  %v16601_v32 = vsel %vm393_vm0, %v5823_v29, %v5827_v19  ;;  %v5770_v47 = vpack.c.b16 %v5754_v10, %v5754_v10  ;;  %v5834_v45 = vrot.slane %v5832_v4, 1  ;;  %v12931_v14 = vld [vmem:[#allocation2 + $0xac0] sm:$0xf] }
 0x447   : > { %7192 = vmatmul.bf16.vlgmr.msra.gmra.mxu2 %v16565_v30  ;;  %7333 = vmatpush.bf16.msrb.mxu1 %v12940_v1 }
 0x448   : > { %7241 = vmatmul.bf16.vlgmr.msra.gmra.mxu3 %v16575_v53  ;;  %v5849_v37 = vshll.u32 %v5770_v47, 16  ;;  %v5835_v19 = vor.u32 %v5834_v45, %v5830_v34 }
 0x44a   : > { %v5487_v63 = vpop.f32.mrf.mxu2  ;;  %v5391_v59 = vpop.f32.mrf.mxu0 }
 0x44b   : > { %v5488_v46 = vadd.f32 %v5487_v63, %v5439_v17  ;;  %v5536_v36 = vpop.f32.mrf.mxu3  ;;  %v5440_v51 = vpop.f32.mrf.mxu1  ;;  %v5392_v28 = vadd.f32 %v5391_v59, %v16477_v9  ;;  %v16595_v17 = vsel %vm393_vm0, %v5811_v12, %v5815_v52  ;;  %v5769_v63 = vpack.c.b16 %v5753_v60, %v5753_v60 }
 0x44d   : > { %v5537_v21 = vadd.f32 %v5536_v36, %v5488_v46  ;;  %v5441_v27 = vadd.f32 %v5440_v51, %v5392_v28  ;;  %v5844_v46 = vshll.u32 %v16597_v48, 16  ;;  %v12995_v36 = vld [vmem:[#allocation2 + $0xb40] sm:$0xf]  ;;  %v14130_v51 = vld [vmem:[#allocation2 + $0xa44] sm:$0xf0]  ;;  %v5837_v5 = vshll.u32 %v5769_v63, 16 }
 0x44e   : > { %v14178_v28 = vld [vmem:[#allocation2 + $0xbc4] sm:$0xf0] }
 0x44f   : > { %12368 = vst [vmem:[%s15134_s11 + $0x108] sm:$0xff] %v5537_v21  ;;  %v12868_v21 = vor.u32 %v14130_v51, %v12867_v56  ;;  %v13060_v12 = vor.u32 %v14178_v28, %v13059_v42  ;;  %v5846_v29 = vrot.slane %v5844_v46, 1  ;;  %v5839_v24 = vrot.slane %v5837_v5, 1 }
 0x451   : > { %7285 = vmatpush.bf16.msrb.mxu0 %v12868_v21  ;;  %7432 = vmatpush.bf16.msrb.mxu3 %v13060_v12  ;;  %v12859_v12 = vld [vmem:[#allocation2 + $0xa30] sm:$0xf] }
 0x452   : > { %v5489_v9 = vpop.f32.mrf.mxu2  ;;  %v5394_v18 = vpop.f32.mrf.mxu0 }
 0x453   : > { %v5490_v2 = vadd.f32 %v5489_v9, %v5441_v27  ;;  %v5538_v7 = vpop.f32.mrf.mxu3  ;;  %v5443_v50 = vpop.f32.mrf.mxu1  ;;  %v5395_v35 = vadd.f32 %v5394_v18, %v16484_v49  ;;  %v14162_v49 = vld [vmem:[#allocation2 + $0xb44] sm:$0xf0]  ;;  %v5842_v27 = vshrl.u32 %v16597_v48, 16 }
 0x454   : > { %v12996_v23 = vor.u32 %v14162_v49, %v12995_v36  ;;  %v14146_v9 = vld [vmem:[#allocation2 + $0xac4] sm:$0xf0]  ;;  %v16620_v36 = vsel %vm393_vm0, %v5835_v19, %v5839_v24 }
 0x455   : > { %v5539_v55 = vadd.f32 %v5538_v7, %v5490_v2  ;;  %7099 = vmatmul.bf16.gmra.mxu0 %v16567_v15  ;;  %v5444_v59 = vadd.f32 %v5443_v50, %v5395_v35  ;;  %v5851_v2 = vrot.slane %v5849_v37, 1  ;;  %v12475_v7 = vld [vmem:[%s14696_s7 + $0x60] sm:$0xf]  ;;  %v14032_v18 = vld [vmem:[%s14696_s7 + $0x64] sm:$0xf0]  ;;  %v12932_v60 = vor.u32 %v14146_v9, %v12931_v14 }
 0x456   : > { %7148 = vmatmul.bf16.gmra.mxu1 %v16569_v41  ;;  %7383 = vmatpush.bf16.msrb.mxu2 %v12996_v23  ;;  %v5847_v10 = vor.u32 %v5846_v29, %v5842_v27  ;;  %v12477_v35 = vld [vmem:[%s14696_s7 + $0x68] sm:$0xf0]  ;;  %v13051_v37 = vld [vmem:[#allocation2 + $0xbb0] sm:$0xf]  ;;  %v14176_v27 = vld [vmem:[#allocation2 + $0xbb4] sm:$0xf0] }
 0x457   : > { %12370 = vst [vmem:[%s15134_s11 + $0x118] sm:$0xff] %v5539_v55  ;;  %7197 = vmatmul.bf16.gmra.mxu2 %v16595_v17  ;;  %v14031_v55 = vld [vmem:[%s14696_s7 + $0x64] sm:$0xf]  ;;  %7334 = vmatpush.bf16.msrb.mxu1 %v12932_v60  ;;  %v13052_v14 = vor.u32 %v14176_v27, %v13051_v37 }
 0x458   : > { %7246 = vmatmul.bf16.gmra.mxu3 %v16601_v32  ;;  %v16624_v23 = vor.u32 %v14031_v55, %v12477_v35  ;;  %v16628_v34 = vsel %vm393_vm0, %v5847_v10, %v5851_v2 }
 0x459   : > { %7433 = vmatpush.bf16.msrb.mxu3 %v13052_v14 }
 0x45a   : > { %v5492_v25 = vpop.f32.mrf.mxu2  ;;  %v5396_v52 = vpop.f32.mrf.mxu0  ;;  %v5866_v55 = vshrl.u32 %v16624_v23, 16 }
 0x45b   : > { %v5493_v58 = vadd.f32 %v5492_v25, %v5444_v59  ;;  %v5541_v43 = vpop.f32.mrf.mxu3  ;;  %v5445_v38 = vpop.f32.mrf.mxu1  ;;  %v5397_v1 = vadd.f32 %v5396_v52, %v16487_v61  ;;  %v12418_v61 = vld [vmem:[%s14696_s7 + $0x70] sm:$0x11]  ;;  %v16622_v59 = vor.u32 %v14032_v18, %v12475_v7 }
 0x45c   : > { %v5755_v56 = vunpack.c.l.b16 %v12418_v61  ;;  %v5756_v51 = vunpack.c.h.b16 %v12418_v61  ;;  %v12987_v52 = vld [vmem:[#allocation2 + $0xb30] sm:$0xf] }
 0x45d   : > { %v5542_v3 = vadd.f32 %v5541_v43, %v5493_v58  ;;  %v5446_v50 = vadd.f32 %v5445_v38, %v5397_v1  ;;  %v5856_v28 = vshll.u32 %v16622_v59, 16  ;;  %v5868_v43 = vshll.u32 %v16624_v23, 16  ;;  %v14128_v38 = vld [vmem:[#allocation2 + $0xa34] sm:$0xf0]  ;;  %v12923_v61 = vld [vmem:[#allocation2 + $0xab0] sm:$0xf] }
 0x45e   : > { %v5771_v21 = vpack.c.b16 %v5755_v56, %v5755_v56  ;;  %v5772_v58 = vpack.c.b16 %v5756_v51, %v5756_v51  ;;  %v12860_v1 = vor.u32 %v14128_v38, %v12859_v12  ;;  %v5854_v2 = vshrl.u32 %v16622_v59, 16  ;;  %v12419_v56 = vld [vmem:[%s14696_s7 + $0x88] sm:$0x11] }
 0x45f   : > { %12372 = vst [vmem:[%s15134_s11 + $0x128] sm:$0xff] %v5542_v3  ;;  %v5858_v7 = vrot.slane %v5856_v28, 1  ;;  %v5870_v35 = vrot.slane %v5868_v43, 1  ;;  %v14033_v28 = vld [vmem:[%s14696_s7 + $0x7c] sm:$0xf] }
 0x460   : > { %v5861_v18 = vshll.u32 %v5771_v21, 16  ;;  %v5873_v60 = vshll.u32 %v5772_v58, 16  ;;  %7286 = vmatpush.bf16.msrb.mxu0 %v12860_v1  ;;  %v14034_v21 = vld [vmem:[%s14696_s7 + $0x7c] sm:$0xf0] }
 0x462   : > { %v5494_v63 = vpop.f32.mrf.mxu2  ;;  %v5399_v46 = vpop.f32.mrf.mxu0 }
 0x463   : > { %v5495_v4 = vadd.f32 %v5494_v63, %v5446_v50  ;;  %v5543_v47 = vpop.f32.mrf.mxu3  ;;  %v5448_v49 = vpop.f32.mrf.mxu1  ;;  %v5400_v25 = vadd.f32 %v5399_v46, %v16494_v16  ;;  %v14160_v16 = vld [vmem:[#allocation2 + $0xb34] sm:$0xf0]  ;;  %v5875_v46 = vrot.slane %v5873_v60, 1  ;;  %v12851_v60 = vld [vmem:[#allocation2 + $0xa20] sm:$0xf] }
 0x464   : > { %v12988_v5 = vor.u32 %v14160_v16, %v12987_v52  ;;  %v14144_v63 = vld [vmem:[#allocation2 + $0xab4] sm:$0xf0] }
 0x465   : > { %v5544_v42 = vadd.f32 %v5543_v47, %v5495_v4  ;;  %7104 = vmatmul.bf16.gmra.mxu0 %v16592_v33  ;;  %v5449_v45 = vadd.f32 %v5448_v49, %v5400_v25  ;;  %v5859_v4 = vor.u32 %v5858_v7, %v5854_v2  ;;  %v5863_v47 = vrot.slane %v5861_v18, 1  ;;  %v12483_v49 = vld [vmem:[%s14696_s7 + $0x78] sm:$0xf] }
 0x466   : > { %7153 = vmatmul.bf16.gmra.mxu1 %v16597_v48  ;;  %7384 = vmatpush.bf16.msrb.mxu2 %v12988_v5  ;;  %v12924_v51 = vor.u32 %v14144_v63, %v12923_v61  ;;  %v5871_v25 = vor.u32 %v5870_v35, %v5866_v55  ;;  %v16649_v38 = vor.u32 %v14034_v21, %v12483_v49  ;;  %v14174_v61 = vld [vmem:[#allocation2 + $0xba4] sm:$0xf0] }
 0x467   : > { %12374 = vst [vmem:[%s15134_s11 + $0x138] sm:$0xff] %v5544_v42  ;;  %7202 = vmatmul.bf16.gmra.mxu2 %v16620_v36  ;;  %v16647_v12 = vsel %vm393_vm0, %v5859_v4, %v5863_v47 }
 0x468   : > { %7251 = vmatmul.bf16.gmra.mxu3 %v16628_v34  ;;  %7335 = vmatpush.bf16.msrb.mxu1 %v12924_v51  ;;  %v16655_v27 = vsel %vm393_vm0, %v5871_v25, %v5875_v46  ;;  %v5878_v51 = vshrl.u32 %v16649_v38, 16 }
 0x46a   : > { %v5497_v3 = vpop.f32.mrf.mxu2  ;;  %v5401_v24 = vpop.f32.mrf.mxu0 }
 0x46b   : > { %v5498_v29 = vadd.f32 %v5497_v3, %v5449_v45  ;;  %v5546_v19 = vpop.f32.mrf.mxu3  ;;  %v5450_v9 = vpop.f32.mrf.mxu1  ;;  %v5402_v10 = vadd.f32 %v5401_v24, %v16497_v31  ;;  %v12485_v31 = vld [vmem:[%s14696_s7 + $0x80] sm:$0xf0]  ;;  %v5757_v45 = vunpack.c.l.b16 %v12419_v56  ;;  %v5880_v24 = vshll.u32 %v16649_v38, 16 }
 0x46c   : > { %v16651_v37 = vor.u32 %v14033_v28, %v12485_v31 }
 0x46d   : > { %v5547_v50 = vadd.f32 %v5546_v19, %v5498_v29  ;;  %v5451_v42 = vadd.f32 %v5450_v9, %v5402_v10  ;;  %v5758_v29 = vunpack.c.h.b16 %v12419_v56  ;;  %v5773_v19 = vpack.c.b16 %v5757_v45, %v5757_v45  ;;  %v12979_v9 = vld [vmem:[#allocation2 + $0xb20] sm:$0xf] }
 0x46e   : > { %v5892_v14 = vshll.u32 %v16651_v37, 16  ;;  %v13043_v10 = vld [vmem:[#allocation2 + $0xba0] sm:$0xf]  ;;  %v5890_v25 = vshrl.u32 %v16651_v37, 16 }
 0x46f   : > { %12376 = vst [vmem:[%s15134_s11 + $0x148] sm:$0xff] %v5547_v50  ;;  %v5774_v7 = vpack.c.b16 %v5758_v29, %v5758_v29  ;;  %v14126_v50 = vld [vmem:[#allocation2 + $0xa24] sm:$0xf0]  ;;  %v5885_v46 = vshll.u32 %v5773_v19, 16  ;;  %v13044_v49 = vor.u32 %v14174_v61, %v13043_v10 }
 0x470   : > { %v12852_v35 = vor.u32 %v14126_v50, %v12851_v60  ;;  %v5894_v31 = vrot.slane %v5892_v14, 1 }
 0x471   : > { %7434 = vmatpush.bf16.msrb.mxu3 %v13044_v49 }
 0x472   : > { %v5499_v58 = vpop.f32.mrf.mxu2  ;;  %v5404_v16 = vpop.f32.mrf.mxu0  ;;  %7287 = vmatpush.bf16.msrb.mxu0 %v12852_v35 }
 0x473   : > { %v5500_v52 = vadd.f32 %v5499_v58, %v5451_v42  ;;  %v5548_v43 = vpop.f32.mrf.mxu3  ;;  %v5453_v5 = vpop.f32.mrf.mxu1  ;;  %v5405_v1 = vadd.f32 %v5404_v16, %v16504_v0  ;;  %v14158_v0 = vld [vmem:[#allocation2 + $0xb24] sm:$0xf0]  ;;  %v5882_v42 = vrot.slane %v5880_v24, 1  ;;  %v5897_v58 = vshll.u32 %v5774_v7, 16 }
 0x474   : > { %v12980_v18 = vor.u32 %v14158_v0, %v12979_v9  ;;  %v14142_v16 = vld [vmem:[#allocation2 + $0xaa4] sm:$0xf0]  ;;  %v5895_v24 = vor.u32 %v5894_v31, %v5890_v25  ;;  %v14035_v0 = vld [vmem:[%s14696_s7 + $0x94] sm:$0xf]  ;;  %v14124_v31 = vld [vmem:[#allocation2 + $0xa14] sm:$0xf0] }
 0x475   : > { %v5549_v3 = vadd.f32 %v5548_v43, %v5500_v52  ;;  %7109 = vmatmul.bf16.gmra.mxu0 %v16622_v59  ;;  %v5454_v2 = vadd.f32 %v5453_v5, %v5405_v1  ;;  %v5887_v52 = vrot.slane %v5885_v46, 1  ;;  %v12915_v43 = vld [vmem:[#allocation2 + $0xaa0] sm:$0xf]  ;;  %v5883_v45 = vor.u32 %v5882_v42, %v5878_v51  ;;  %v12491_v5 = vld [vmem:[%s14696_s7 + $0x90] sm:$0xf] }
 0x476   : > { %7158 = vmatmul.bf16.gmra.mxu1 %v16624_v23  ;;  %7385 = vmatpush.bf16.msrb.mxu2 %v12980_v18  ;;  %v12420_v1 = vld [vmem:[%s14696_s7 + $0xa0] sm:$0x11]  ;;  %v12916_v29 = vor.u32 %v14142_v16, %v12915_v43  ;;  %v5899_v9 = vrot.slane %v5897_v58, 1  ;;  %v12971_v42 = vld [vmem:[#allocation2 + $0xb10] sm:$0xf] }
 0x477   : > { %12378 = vst [vmem:[%s15134_s11 + $0x158] sm:$0xff] %v5549_v3  ;;  %7207 = vmatmul.bf16.gmra.mxu2 %v16647_v12  ;;  %v14036_v3 = vld [vmem:[%s14696_s7 + $0x94] sm:$0xf0]  ;;  %v5759_v50 = vunpack.c.l.b16 %v12420_v1  ;;  %v5760_v61 = vunpack.c.h.b16 %v12420_v1  ;;  %v13035_v58 = vld [vmem:[#allocation2 + $0xb90] sm:$0xf] }
 0x478   : > { %7256 = vmatmul.bf16.gmra.mxu3 %v16655_v27  ;;  %7336 = vmatpush.bf16.msrb.mxu1 %v12916_v29  ;;  %v16673_v60 = vor.u32 %v14036_v3, %v12491_v5 }
 0x479   : > { %v5775_v46 = vpack.c.b16 %v5759_v50, %v5759_v50 }
 0x47a   : > { %v5502_v55 = vpop.f32.mrf.mxu2  ;;  %v5406_v47 = vpop.f32.mrf.mxu0  ;;  %v5904_v49 = vshll.u32 %v16673_v60, 16  ;;  %v5902_v43 = vshrl.u32 %v16673_v60, 16 }
 0x47b   : > { %v5503_v63 = vadd.f32 %v5502_v55, %v5454_v2  ;;  %v5551_v4 = vpop.f32.mrf.mxu3  ;;  %v5455_v56 = vpop.f32.mrf.mxu1  ;;  %v5407_v28 = vadd.f32 %v5406_v47, %v16507_v39  ;;  %v12493_v2 = vld [vmem:[%s14696_s7 + $0x98] sm:$0xf0]  ;;  %v16676_v55 = vsel %vm393_vm0, %v5883_v45, %v5887_v52  ;;  %v16682_v47 = vsel %vm393_vm0, %v5895_v24, %v5899_v9  ;;  %v14172_v45 = vld [vmem:[#allocation2 + $0xb94] sm:$0xf0] }
 0x47c   : > { %v16678_v35 = vor.u32 %v14035_v0, %v12493_v2  ;;  %v5906_v29 = vrot.slane %v5904_v49, 1  ;;  %v13036_v24 = vor.u32 %v14172_v45, %v13035_v58 }
 0x47d   : > { %v5552_v21 = vadd.f32 %v5551_v4, %v5503_v63  ;;  %v5456_v19 = vadd.f32 %v5455_v56, %v5407_v28  ;;  %v5776_v56 = vpack.c.b16 %v5760_v61, %v5760_v61  ;;  %v12843_v28 = vld [vmem:[#allocation2 + $0xa10] sm:$0xf]  ;;  %v14140_v61 = vld [vmem:[#allocation2 + $0xa94] sm:$0xf0] }
 0x47e   : > { %v5916_v51 = vshll.u32 %v16678_v35, 16  ;;  %v12844_v16 = vor.u32 %v14124_v31, %v12843_v28  ;;  %7435 = vmatpush.bf16.msrb.mxu3 %v13036_v24 }
 0x47f   : > { %12380 = vst [vmem:[%s15134_s11 + $0x168] sm:$0xff] %v5552_v21  ;;  %v5921_v0 = vshll.u32 %v5776_v56, 16 }
 0x480   : > { %7288 = vmatpush.bf16.msrb.mxu0 %v12844_v16 }
 0x482   : > { %v5504_v39 = vpop.f32.mrf.mxu2  ;;  %v5409_v18 = vpop.f32.mrf.mxu0 }
 0x483   : > { %v5505_v14 = vadd.f32 %v5504_v39, %v5456_v19  ;;  %v5553_v7 = vpop.f32.mrf.mxu3  ;;  %v5458_v10 = vpop.f32.mrf.mxu1  ;;  %v5410_v4 = vadd.f32 %v5409_v18, %v16514_v57  ;;  %v14156_v57 = vld [vmem:[#allocation2 + $0xb14] sm:$0xf0]  ;;  %v5909_v19 = vshll.u32 %v5775_v46, 16  ;;  %v5907_v18 = vor.u32 %v5906_v29, %v5902_v43  ;;  %v14038_v46 = vld [vmem:[%s14696_s7 + $0xac] sm:$0xf0] }
 0x484   : > { %v12972_v21 = vor.u32 %v14156_v57, %v12971_v42  ;;  %v14037_v57 = vld [vmem:[%s14696_s7 + $0xac] sm:$0xf] }
 0x485   : > { %v5554_v63 = vadd.f32 %v5553_v7, %v5505_v14  ;;  %7114 = vmatmul.bf16.gmra.mxu0 %v16649_v38  ;;  %v5459_v25 = vadd.f32 %v5458_v10, %v5410_v4  ;;  %v5914_v14 = vshrl.u32 %v16678_v35, 16  ;;  %v5918_v7 = vrot.slane %v5916_v51, 1  ;;  %v12907_v10 = vld [vmem:[#allocation2 + $0xa90] sm:$0xf]  ;;  %v12499_v4 = vld [vmem:[%s14696_s7 + $0xa8] sm:$0xf] }
 0x486   : > { %7163 = vmatmul.bf16.gmra.mxu1 %v16651_v37  ;;  %7386 = vmatpush.bf16.msrb.mxu2 %v12972_v21  ;;  %v5911_v50 = vrot.slane %v5909_v19, 1  ;;  %v12908_v49 = vor.u32 %v14140_v61, %v12907_v10  ;;  %v16703_v43 = vor.u32 %v14038_v46, %v12499_v4 }
 0x487   : > { %12382 = vst [vmem:[%s15134_s11 + $0x178] sm:$0xff] %v5554_v63  ;;  %7212 = vmatmul.bf16.gmra.mxu2 %v16676_v55  ;;  %v5923_v63 = vrot.slane %v5921_v0, 1  ;;  %v5919_v42 = vor.u32 %v5918_v7, %v5914_v14  ;;  %v12835_v7 = vld [vmem:[#allocation2 + $0xa00] sm:$0xf] }
 0x488   : > { %7261 = vmatmul.bf16.gmra.mxu3 %v16682_v47  ;;  %7337 = vmatpush.bf16.msrb.mxu1 %v12908_v49  ;;  %v16701_v58 = vsel %vm393_vm0, %v5907_v18, %v5911_v50  ;;  %18864 = vst [vmem:[#allocation14_spill] sm:$0xff] %v16703_v43  ;;  %v5928_v24 = vshll.u32 %v16703_v43, 16  ;;  %v14122_v18 = vld [vmem:[#allocation2 + $0xa04] sm:$0xf0]  ;;  %v13027_v50 = vld [vmem:[#allocation2 + $0xb80] sm:$0xf] }
 0x489   : > { %v16709_v29 = vsel %vm393_vm0, %v5919_v42, %v5923_v63  ;;  %v12836_v61 = vor.u32 %v14122_v18, %v12835_v7  ;;  %v14170_v63 = vld [vmem:[#allocation2 + $0xb84] sm:$0xf0]  ;;  %v14039_v7 = vld [vmem:[%s14696_s7 + $0xc4] sm:$0xf] }
 0x48a   : > { %v5507_v52 = vpop.f32.mrf.mxu2  ;;  %v5411_v1 = vpop.f32.mrf.mxu0  ;;  %18866 = vst [vmem:[#allocation19_spill] sm:$0xff] %v16709_v29 }
 0x48b   : > { %v5508_v5 = vadd.f32 %v5507_v52, %v5459_v25  ;;  %v5556_v3 = vpop.f32.mrf.mxu3  ;;  %v5460_v9 = vpop.f32.mrf.mxu1  ;;  %v5412_v39 = vadd.f32 %v5411_v1, %v16517_v54  ;;  %v12501_v25 = vld [vmem:[%s14696_s7 + $0xb0] sm:$0xf0]  ;;  %v12421_v54 = vld [vmem:[%s14696_s7 + $0xb8] sm:$0x11]  ;;  %7289 = vmatpush.bf16.msrb.mxu0 %v12836_v61 }
 0x48c   : > { %v16705_v16 = vor.u32 %v14037_v57, %v12501_v25  ;;  %v5761_v45 = vunpack.c.l.b16 %v12421_v54  ;;  %v5926_v57 = vshrl.u32 %v16703_v43, 16  ;;  %v5930_v25 = vrot.slane %v5928_v24, 1 }
 0x48d   : > { %v5557_v2 = vadd.f32 %v5556_v3, %v5508_v5  ;;  %v5461_v56 = vadd.f32 %v5460_v9, %v5412_v39  ;;  %v5762_v5 = vunpack.c.h.b16 %v12421_v54 }
 0x48e   : > { %18865 = vst [vmem:[#allocation15_spill] sm:$0xff] %v16705_v16  ;;  %v5777_v19 = vpack.c.b16 %v5761_v45, %v5761_v45  ;;  %v5940_v0 = vshll.u32 %v16705_v16, 16  ;;  %v12899_v45 = vld [vmem:[#allocation2 + $0xa80] sm:$0xf] }
 0x48f   : > { %12384 = vst [vmem:[%s15134_s11 + $0x188] sm:$0xff] %v5557_v2  ;;  %v5778_v9 = vpack.c.b16 %v5762_v5, %v5762_v5  ;;  %v12963_v2 = vld [vmem:[#allocation2 + $0xb00] sm:$0xf]  ;;  %v14138_v5 = vld [vmem:[#allocation2 + $0xa84] sm:$0xf0] }
 0x490   : > { %v5933_v54 = vshll.u32 %v5777_v19, 16  ;;  %v12422_v19 = vld [vmem:[%s14696_s7 + $0xd0] sm:$0x11] }
 0x491   : > { %v5763_v61 = vunpack.c.l.b16 %v12422_v19 }
 0x492   : > { %v5509_v21 = vpop.f32.mrf.mxu2  ;;  %v5414_v31 = vpop.f32.mrf.mxu0 }
 0x493   : > { %v5510_v28 = vadd.f32 %v5509_v21, %v5461_v56  ;;  %v5558_v51 = vpop.f32.mrf.mxu3  ;;  %v5463_v52 = vpop.f32.mrf.mxu1  ;;  %v5415_v1 = vadd.f32 %v5414_v31, %v16524_v26  ;;  %v14154_v26 = vld [vmem:[#allocation2 + $0xb04] sm:$0xf0]  ;;  %v13028_v56 = vor.u32 %v14170_v63, %v13027_v50  ;;  %v5945_v21 = vshll.u32 %v5778_v9, 16 }
 0x494   : > { %v12964_v14 = vor.u32 %v14154_v26, %v12963_v2  ;;  %v5938_v31 = vshrl.u32 %v16705_v16, 16  ;;  %v12507_v2 = vld [vmem:[%s14696_s7 + $0xc0] sm:$0xf]  ;;  %v12900_v9 = vor.u32 %v14138_v5, %v12899_v45  ;;  %v14071_v5 = vld [vmem:[#allocation2 + $0x874] sm:$0xf] }
 0x495   : > { %v5559_v3 = vadd.f32 %v5558_v51, %v5510_v28  ;;  %7119 = vmatmul.bf16.gmra.mxu0 %v16673_v60  ;;  %v5464_v39 = vadd.f32 %v5463_v52, %v5415_v1  ;;  %v5942_v52 = vrot.slane %v5940_v0, 1  ;;  %7436 = vmatpush.bf16.msrb.mxu3 %v13028_v56  ;;  %v5935_v1 = vrot.slane %v5933_v54, 1 }
 0x496   : > { %7168 = vmatmul.bf16.gmra.mxu1 %v16678_v35  ;;  %7387 = vmatpush.bf16.msrb.mxu2 %v12964_v14  ;;  %v5947_v24 = vrot.slane %v5945_v21, 1  ;;  %v14040_v14 = vld [vmem:[%s14696_s7 + $0xc4] sm:$0xf0]  ;;  %v5779_v54 = vpack.c.b16 %v5763_v61, %v5763_v61 }
 0x497   : > { %12386 = vst [vmem:[%s15134_s11 + $0x198] sm:$0xff] %v5559_v3  ;;  %7217 = vmatmul.bf16.gmra.mxu2 %v16701_v58  ;;  %v5931_v3 = vor.u32 %v5930_v25, %v5926_v57  ;;  %7338 = vmatpush.bf16.msrb.mxu1 %v12900_v9  ;;  %v5764_v25 = vunpack.c.h.b16 %v12422_v19  ;;  %v12829_v19 = vld [vmem:[#allocation2 + $0x9f8] sm:$0xf0] }
 0x498   : > { %7266 = vmatmul.bf16.gmra.mxu3 %v16709_v29 }
 0x49a   : > { %v5512_v10 = vpop.f32.mrf.mxu2  ;;  %v5416_v49 = vpop.f32.mrf.mxu0 }
 0x49b   : > { %v5513_v4 = vadd.f32 %v5512_v10, %v5464_v39  ;;  %v5561_v46 = vpop.f32.mrf.mxu3  ;;  %v5465_v42 = vpop.f32.mrf.mxu1  ;;  %v5417_v51 = vadd.f32 %v5416_v49, %v16527_v20  ;;  %v5943_v39 = vor.u32 %v5942_v52, %v5938_v31  ;;  %v12509_v20 = vld [vmem:[%s14696_s7 + $0xc8] sm:$0xf0]  ;;  %v5780_v52 = vpack.c.b16 %v5764_v25, %v5764_v25  ;;  %v12701_v25 = vld [vmem:[#allocation2 + $0x8f8] sm:$0xf0] }
 0x49c   : > { %v16732_v49 = vor.u32 %v14039_v7, %v12509_v20 }
 0x49d   : > { %v5562_v28 = vadd.f32 %v5561_v46, %v5513_v4  ;;  %v5466_v26 = vadd.f32 %v5465_v42, %v5417_v51  ;;  %v16728_v4 = vsel %vm393_vm0, %v5931_v3, %v5935_v1  ;;  %v16730_v46 = vor.u32 %v14040_v14, %v12507_v2  ;;  %v14103_v51 = vld [vmem:[#allocation2 + $0x974] sm:$0xf]  ;;  %v12637_v3 = vld [vmem:[#allocation2 + $0x878] sm:$0xf0] }
 0x49e   : > { %18867 = vst [vmem:[#allocation20_spill] sm:$0xff] %v16728_v4  ;;  %v16736_v57 = vsel %vm393_vm0, %v5943_v39, %v5947_v24  ;;  %v14119_v1 = vld [vmem:[#allocation2 + $0x9f4] sm:$0xf]  ;;  %v12640_v2 = vor.u32 %v14071_v5, %v12637_v3  ;;  %v5957_v14 = vshll.u32 %v5779_v54, 16  ;;  %v12517_v5 = vld [vmem:[%s14696_s7 + $0x38] sm:$0xf0] }
 0x49f   : > { %12388 = vst [vmem:[%s15134_s11 + $0x1a8] sm:$0xff] %v5562_v28  ;;  %v5952_v21 = vshll.u32 %v16730_v46, 16  ;;  %v5964_v28 = vshll.u32 %v16732_v49, 16  ;;  %v12832_v7 = vor.u32 %v14119_v1, %v12829_v19  ;;  %v12441_v3 = vld [vmem:[%s14696_s7 + $0x40] sm:$0x11] }
 0x4a0   : > { %18868 = vst [vmem:[#allocation17_spill] sm:$0xff] %v16730_v46  ;;  %7478 = vmatpush.bf16.msra.mxu0 %v12640_v2 }
 0x4a1   : > { %18869 = vst [vmem:[#allocation55_spill] sm:$0xff] %v16732_v49  ;;  %7625 = vmatpush.bf16.msra.mxu3 %v12832_v7 }
 0x4a2   : > { %v5514_v18 = vpop.f32.mrf.mxu2  ;;  %v5419_v10 = vpop.f32.mrf.mxu0  ;;  %18870 = vst [vmem:[#allocation57_spill] sm:$0xff] %v16736_v57 }
 0x4a3   : > { %v5515_v50 = vadd.f32 %v5514_v18, %v5466_v26  ;;  %v5563_v0 = vpop.f32.mrf.mxu3  ;;  %v5468_v63 = vpop.f32.mrf.mxu1  ;;  %v5420_v42 = vadd.f32 %v5419_v10, %v16534_v13  ;;  %v12765_v13 = vld [vmem:[#allocation2 + $0x978] sm:$0xf0]  ;;  %v5950_v18 = vshrl.u32 %v16730_v46, 16 }
 0x4a4   : > { %v12768_v45 = vor.u32 %v14103_v51, %v12765_v13  ;;  %v5959_v51 = vrot.slane %v5957_v14, 1  ;;  %v12515_v13 = vld [vmem:[%s14696_s7 + $0x30] sm:$0xf] }
 0x4a5   : > { %v5564_v56 = vadd.f32 %v5563_v0, %v5515_v50  ;;  %7124 = vmatmul.bf16.gmra.mxu0 %v16703_v43  ;;  %v5469_v31 = vadd.f32 %v5468_v63, %v5420_v42  ;;  %v5954_v50 = vrot.slane %v5952_v21, 1  ;;  %v5962_v0 = vshrl.u32 %v16732_v49, 16  ;;  %v14087_v42 = vld [vmem:[#allocation2 + $0x8f4] sm:$0xf] }
 0x4a6   : > { %7173 = vmatmul.bf16.gmra.mxu1 %v16705_v16  ;;  %7576 = vmatpush.bf16.msra.mxu2 %v12768_v45  ;;  %v5966_v63 = vrot.slane %v5964_v28, 1  ;;  %v12704_v54 = vor.u32 %v14087_v42, %v12701_v25  ;;  %v14041_v45 = vld [vmem:[%s14696_s7 + $0x34] sm:$0xf]  ;;  %v14069_v42 = vld [vmem:[#allocation2 + $0x864] sm:$0xf] }
 0x4a7   : > { %12390 = vst [vmem:[%s15134_s11 + $0x1b8] sm:$0xff] %v5564_v56  ;;  %7222 = vmatmul.bf16.gmra.mxu2 %v16728_v4  ;;  %v5969_v56 = vshll.u32 %v5780_v52, 16  ;;  %v5955_v21 = vor.u32 %v5954_v50, %v5950_v18 }
 0x4a8   : > { %7271 = vmatmul.bf16.gmra.mxu3 %v16736_v57  ;;  %7527 = vmatpush.bf16.msra.mxu1 %v12704_v54 }
 0x4a9   : > { %v5971_v2 = vrot.slane %v5969_v56, 1  ;;  %v16759_v7 = vsel %vm393_vm0, %v5955_v21, %v5959_v51  ;;  %v14101_v56 = vld [vmem:[#allocation2 + $0x964] sm:$0xf]  ;;  %v12821_v21 = vld [vmem:[#allocation2 + $0x9e8] sm:$0xf0] }
 0x4aa   : > { %v5517_v24 = vpop.f32.mrf.mxu2  ;;  %v5421_v39 = vpop.f32.mrf.mxu0  ;;  %18873 = vst [vmem:[#allocation24_spill] sm:$0xff] %v16759_v7 }
 0x4ab   : > { %v5518_v9 = vadd.f32 %v5517_v24, %v5469_v31  ;;  %v5566_v26 = vpop.f32.mrf.mxu3  ;;  %v5470_v20 = vpop.f32.mrf.mxu1  ;;  %v5422_v61 = vadd.f32 %v5421_v39, %v16546_v6  ;;  %v14042_v31 = vld [vmem:[%s14696_s7 + $0x34] sm:$0xf0]  ;;  %v5967_v24 = vor.u32 %v5966_v63, %v5962_v0  ;;  %v6077_v39 = vunpack.c.l.b16 %v12441_v3 }
 0x4ac   : > { %v6078_v0 = vunpack.c.h.b16 %v12441_v3 }
 0x4ad   : > { %v5567_v10 = vadd.f32 %v5566_v26, %v5518_v9  ;;  %v5471_v1 = vadd.f32 %v5470_v20, %v5422_v61  ;;  %v16754_v9 = vor.u32 %v14042_v31, %v12515_v13  ;;  %v16756_v26 = vor.u32 %v14041_v45, %v12517_v5  ;;  %v12629_v13 = vld [vmem:[#allocation2 + $0x868] sm:$0xf0]  ;;  %v14117_v31 = vld [vmem:[#allocation2 + $0x9e4] sm:$0xf] }
 0x4ae   : > { %v16763_v20 = vsel %vm393_vm0, %v5967_v24, %v5971_v2  ;;  %v6094_v54 = vpack.c.b16 %v6078_v0, %v6078_v0  ;;  %v12632_v5 = vor.u32 %v14069_v42, %v12629_v13  ;;  %v12824_v3 = vor.u32 %v14117_v31, %v12821_v21  ;;  %v14043_v13 = vld [vmem:[%s14696_s7 + $0x4c] sm:$0xf]  ;;  %v12525_v31 = vld [vmem:[%s14696_s7 + $0x50] sm:$0xf0]  ;;  %v12442_v21 = vld [vmem:[%s14696_s7 + $0x58] sm:$0x11] }
 0x4af   : > { %12392 = vst [vmem:[%s15134_s11 + $0x1c8] sm:$0xff] %v5567_v10  ;;  %v6093_v10 = vpack.c.b16 %v6077_v39, %v6077_v39  ;;  %v6112_v61 = vshll.u32 %v16754_v9, 16  ;;  %v6124_v63 = vshll.u32 %v16756_v26, 16  ;;  %v6122_v39 = vshrl.u32 %v16756_v26, 16 }
 0x4b0   : > { %18871 = vst [vmem:[#allocation18_spill] sm:$0xff] %v16754_v9  ;;  %7479 = vmatpush.bf16.msra.mxu0 %v12632_v5  ;;  %7626 = vmatpush.bf16.msra.mxu3 %v12824_v3  ;;  %v6129_v0 = vshll.u32 %v6094_v54, 16 }
 0x4b1   : > { %18872 = vst [vmem:[#allocation23_spill] sm:$0xff] %v16756_v26 }
 0x4b2   : > { %v5519_v6 = vpop.f32.mrf.mxu2  ;;  %v5424_v19 = vpop.f32.mrf.mxu0  ;;  %18874 = vst [vmem:[#allocation21_spill] sm:$0xff] %v16763_v20  ;;  %v6131_v3 = vrot.slane %v6129_v0, 1 }
 0x4b3   : > { %v5520_v28 = vadd.f32 %v5519_v6, %v5471_v1  ;;  %v5568_v52 = vpop.f32.mrf.mxu3  ;;  %v5473_v14 = vpop.f32.mrf.mxu1  ;;  %v5425_v50 = vadd.f32 %v5424_v19, %v16556_v11  ;;  %v12757_v11 = vld [vmem:[#allocation2 + $0x968] sm:$0xf0]  ;;  %v6117_v6 = vshll.u32 %v6093_v10, 16  ;;  %v6114_v19 = vrot.slane %v6112_v61, 1  ;;  %v14085_v10 = vld [vmem:[#allocation2 + $0x8e4] sm:$0xf] }
 0x4b4   : > { %v12760_v51 = vor.u32 %v14101_v56, %v12757_v11  ;;  %v12693_v56 = vld [vmem:[#allocation2 + $0x8e8] sm:$0xf0] }
 0x4b5   : > { %v5569_v18 = vadd.f32 %v5568_v52, %v5520_v28  ;;  %7129 = vmatmul.bf16.gmra.mxu0 %v16730_v46  ;;  %v5474_v25 = vadd.f32 %v5473_v14, %v5425_v50  ;;  %v6110_v52 = vshrl.u32 %v16754_v9, 16  ;;  %v6126_v50 = vrot.slane %v6124_v63, 1 }
 0x4b6   : > { %7178 = vmatmul.bf16.gmra.mxu1 %v16732_v49  ;;  %7577 = vmatpush.bf16.msra.mxu2 %v12760_v51  ;;  %v12696_v11 = vor.u32 %v14085_v10, %v12693_v56  ;;  %v6119_v42 = vrot.slane %v6117_v6, 1  ;;  %v14044_v51 = vld [vmem:[%s14696_s7 + $0x4c] sm:$0xf0]  ;;  %v6079_v6 = vunpack.c.l.b16 %v12442_v21 }
 0x4b7   : > { %12394 = vst [vmem:[%s15134_s11 + $0x1d8] sm:$0xff] %v5569_v18  ;;  %7227 = vmatmul.bf16.gmra.mxu2 %v16759_v7  ;;  %v6115_v61 = vor.u32 %v6114_v19, %v6110_v52  ;;  %v6127_v5 = vor.u32 %v6126_v50, %v6122_v39  ;;  %v6080_v39 = vunpack.c.h.b16 %v12442_v21  ;;  %v12813_v21 = vld [vmem:[#allocation2 + $0x9d8] sm:$0xf0] }
 0x4b8   : > { %7276 = vmatmul.bf16.gmra.mxu3 %v16763_v20  ;;  %7528 = vmatpush.bf16.msra.mxu1 %v12696_v11  ;;  %v6095_v50 = vpack.c.b16 %v6079_v6, %v6079_v6  ;;  %v14099_v11 = vld [vmem:[#allocation2 + $0x954] sm:$0xf] }
 0x4b9   : > { %v16787_v19 = vsel %vm393_vm0, %v6115_v61, %v6119_v42  ;;  %v12749_v42 = vld [vmem:[#allocation2 + $0x958] sm:$0xf0] }
 0x4ba   : > { %v5522_v45 = vpop.f32.mrf.mxu2  ;;  %v5426_v2 = vpop.f32.mrf.mxu0  ;;  %18877 = vst [vmem:[#allocation27_spill] sm:$0xff] %v16787_v19  ;;  %v12752_v61 = vor.u32 %v14099_v11, %v12749_v42  ;;  %v14083_v42 = vld [vmem:[#allocation2 + $0x8d4] sm:$0xf] }
 0x4bb   : > { %v5523_v1 = vadd.f32 %v5522_v45, %v5474_v25  ;;  %v5571_v24 = vpop.f32.mrf.mxu3  ;;  %v5475_v28 = vpop.f32.mrf.mxu1  ;;  %v5427_v18 = vadd.f32 %v5426_v2, %v16571_v8  ;;  %v12523_v25 = vld [vmem:[%s14696_s7 + $0x48] sm:$0xf]  ;;  %v16783_v2 = vor.u32 %v14043_v13, %v12525_v31  ;;  %v12621_v13 = vld [vmem:[#allocation2 + $0x858] sm:$0xf0]  ;;  %v14115_v31 = vld [vmem:[#allocation2 + $0x9d4] sm:$0xf] }
 0x4bc   : > { %7578 = vmatpush.bf16.msra.mxu2 %v12752_v61 }
 0x4bd   : > { %v5572_v14 = vadd.f32 %v5571_v24, %v5523_v1  ;;  %v5476_v45 = vadd.f32 %v5475_v28, %v5427_v18  ;;  %v16781_v24 = vor.u32 %v14044_v51, %v12523_v25  ;;  %18876 = vst [vmem:[#allocation22_spill] sm:$0xff] %v16783_v2  ;;  %v16790_v28 = vsel %vm393_vm0, %v6127_v5, %v6131_v3  ;;  %v14067_v25 = vld [vmem:[#allocation2 + $0x854] sm:$0xf] }
 0x4be   : > { %18878 = vst [vmem:[#allocation28_spill] sm:$0xff] %v16790_v28  ;;  %v6148_v56 = vshll.u32 %v16783_v2, 16  ;;  %v6096_v51 = vpack.c.b16 %v6080_v39, %v6080_v39  ;;  %v12624_v5 = vor.u32 %v14067_v25, %v12621_v13  ;;  %v12816_v3 = vor.u32 %v14115_v31, %v12813_v21  ;;  %v12685_v25 = vld [vmem:[#allocation2 + $0x8d8] sm:$0xf0]  ;;  %v12531_v21 = vld [vmem:[%s14696_s7 + $0x60] sm:$0xf] }
 0x4bf   : > { %12396 = vst [vmem:[%s15134_s11 + $0x1e8] sm:$0xff] %v5572_v14  ;;  %v6136_v0 = vshll.u32 %v16781_v24, 16  ;;  %v6146_v39 = vshrl.u32 %v16783_v2, 16  ;;  %v12688_v13 = vor.u32 %v14083_v42, %v12685_v25 }
 0x4c0   : > { %18875 = vst [vmem:[#allocation62_spill] sm:$0xff] %v16781_v24  ;;  %7480 = vmatpush.bf16.msra.mxu0 %v12624_v5  ;;  %7627 = vmatpush.bf16.msra.mxu3 %v12816_v3  ;;  %v6150_v11 = vrot.slane %v6148_v56, 1 }
 0x4c1   : > { %7529 = vmatpush.bf16.msra.mxu1 %v12688_v13  ;;  %v12741_v13 = vld [vmem:[#allocation2 + $0x948] sm:$0xf0] }
 0x4c2   : > { %v5524_v1 = vpop.f32.mrf.mxu2  ;;  %v7095_v54 = vpop.f32.mrf.mxu0 }
 0x4c3   : > { %v5525_v8 = vadd.f32 %v5524_v1, %v5476_v45  ;;  %v5573_v63 = vpop.f32.mrf.mxu3  ;;  %v7096_v14 = vadd.f32 %v7095_v54, %v14904_v40  ;;  %v7144_v52 = vpop.f32.mrf.mxu1  ;;  %v6141_v54 = vshll.u32 %v6095_v50, 16  ;;  %v6153_v50 = vshll.u32 %v6096_v51, 16 }
 0x4c5   : > { %v5574_v10 = vadd.f32 %v5573_v63, %v5525_v8  ;;  %v7145_v18 = vadd.f32 %v7144_v52, %v7096_v14  ;;  %7290 = vmatmul.bf16.vlgmr.msrb.gmra.mxu0 %v16754_v9  ;;  %v6134_v52 = vshrl.u32 %v16781_v24, 16  ;;  %v6143_v31 = vrot.slane %v6141_v54, 1 }
 0x4c6   : > { %7339 = vmatmul.bf16.vlgmr.msrb.gmra.mxu1 %v16756_v26  ;;  %v6151_v26 = vor.u32 %v6150_v11, %v6146_v39  ;;  %v6155_v9 = vrot.slane %v6153_v50, 1 }
 0x4c7   : > { %12398 = vst [vmem:[%s15134_s11 + $0x1f8] sm:$0xff] %v5574_v10  ;;  %7388 = vmatmul.bf16.vlgmr.msrb.gmra.mxu2 %v16787_v19  ;;  %v6138_v10 = vrot.slane %v6136_v0, 1  ;;  %v12533_v0 = vld [vmem:[%s14696_s7 + $0x68] sm:$0xf0]  ;;  %v12443_v19 = vld [vmem:[%s14696_s7 + $0x70] sm:$0x11] }
 0x4c8   : > { %7437 = vmatmul.bf16.vlgmr.msrb.gmra.mxu3 %v16790_v28  ;;  %v14045_v28 = vld [vmem:[%s14696_s7 + $0x64] sm:$0xf]  ;;  %v16820_v39 = vsel %vm393_vm0, %v6151_v26, %v6155_v9  ;;  %v6082_v11 = vunpack.c.h.b16 %v12443_v19 }
 0x4c9   : > { %v16811_v51 = vor.u32 %v14045_v28, %v12533_v0  ;;  %18882 = vst [vmem:[#allocation32_spill] sm:$0xff] %v16820_v39 }
 0x4ca   : > { %v7193_v45 = vpop.f32.mrf.mxu2  ;;  %v7097_v63 = vpop.f32.mrf.mxu0  ;;  %v6098_v9 = vpack.c.b16 %v6082_v11, %v6082_v11 }
 0x4cb   : > { %v7194_v1 = vadd.f32 %v7193_v45, %v7145_v18  ;;  %v7242_v8 = vpop.f32.mrf.mxu3  ;;  %v7098_v6 = vadd.f32 %v7097_v63, %v14904_v40  ;;  %v7146_v14 = vpop.f32.mrf.mxu1  ;;  %v14046_v45 = vld [vmem:[%s14696_s7 + $0x64] sm:$0xf0]  ;;  %v6139_v63 = vor.u32 %v6138_v10, %v6134_v52  ;;  %18880 = vst [vmem:[#allocation26_spill] sm:$0xff] %v16811_v51  ;;  %v6172_v25 = vshll.u32 %v16811_v51, 16 }
 0x4cc   : > { %v16809_v56 = vor.u32 %v14046_v45, %v12531_v21  ;;  %v14113_v21 = vld [vmem:[#allocation2 + $0x9c4] sm:$0xf]  ;;  %v12805_v45 = vld [vmem:[#allocation2 + $0x9c8] sm:$0xf0] }
 0x4cd   : > { %v16802_v18 = vadd.f32 %v7242_v8, %v7194_v1  ;;  %v7147_v61 = vadd.f32 %v7146_v14, %v7098_v6  ;;  %v6081_v6 = vunpack.c.l.b16 %v12443_v19  ;;  %v16815_v52 = vsel %vm393_vm0, %v6139_v63, %v6143_v31  ;;  %v14065_v31 = vld [vmem:[#allocation2 + $0x844] sm:$0xf]  ;;  %v12613_v19 = vld [vmem:[#allocation2 + $0x848] sm:$0xf0] }
 0x4ce   : > { %18879 = vst [vmem:[#allocation25_spill] sm:$0xff] %v16809_v56  ;;  %v6160_v42 = vshll.u32 %v16809_v56, 16  ;;  %v12616_v0 = vor.u32 %v14065_v31, %v12613_v19  ;;  %v14081_v31 = vld [vmem:[#allocation2 + $0x8c4] sm:$0xf] }
 0x4cf   : > { %18881 = vst [vmem:[#allocation31_spill] sm:$0xff] %v16815_v52  ;;  %v6097_v28 = vpack.c.b16 %v6081_v6, %v6081_v6 }
 0x4d0   : > { %v6162_v11 = vrot.slane %v6160_v42, 1  ;;  %7481 = vmatpush.bf16.msra.mxu0 %v12616_v0  ;;  %v12541_v42 = vld [vmem:[%s14696_s7 + $0x80] sm:$0xf0] }
 0x4d1   : > { %v6165_v6 = vshll.u32 %v6097_v28, 16  ;;  %v6177_v28 = vshll.u32 %v6098_v9, 16 }
 0x4d2   : > { %v7195_v5 = vpop.f32.mrf.mxu2  ;;  %v7100_v8 = vpop.f32.mrf.mxu0 }
 0x4d3   : > { %v7196_v3 = vadd.f32 %v7195_v5, %v7147_v61  ;;  %v7244_v1 = vpop.f32.mrf.mxu3  ;;  %v7101_v54 = vadd.f32 %v7100_v8, %v14904_v40  ;;  %v7149_v14 = vpop.f32.mrf.mxu1  ;;  %v14097_v61 = vld [vmem:[#allocation2 + $0x944] sm:$0xf]  ;;  %v12808_v5 = vor.u32 %v14113_v21, %v12805_v45  ;;  %v6167_v45 = vrot.slane %v6165_v6, 1 }
 0x4d4   : > { %v12744_v26 = vor.u32 %v14097_v61, %v12741_v13  ;;  %v6170_v61 = vshrl.u32 %v16811_v51, 16  ;;  %v6174_v13 = vrot.slane %v6172_v25, 1  ;;  %v6179_v20 = vrot.slane %v6177_v28, 1 }
 0x4d5   : > { %v16817_v10 = vadd.f32 %v7244_v1, %v7196_v3  ;;  %v7150_v50 = vadd.f32 %v7149_v14, %v7101_v54  ;;  %7295 = vmatmul.bf16.gmra.mxu0 %v16781_v24  ;;  %7628 = vmatpush.bf16.msra.mxu3 %v12808_v5  ;;  %v12444_v24 = vld [vmem:[%s14696_s7 + $0x88] sm:$0x11] }
 0x4d6   : > { %7344 = vmatmul.bf16.gmra.mxu1 %v16783_v2  ;;  %7579 = vmatpush.bf16.msra.mxu2 %v12744_v26  ;;  %v12677_v26 = vld [vmem:[#allocation2 + $0x8c8] sm:$0xf0]  ;;  %v14047_v2 = vld [vmem:[%s14696_s7 + $0x7c] sm:$0xf]  ;;  %v6175_v44 = vor.u32 %v6174_v13, %v6170_v61  ;;  %v6084_v13 = vunpack.c.h.b16 %v12444_v24 }
 0x4d7   : > { %7393 = vmatmul.bf16.gmra.mxu2 %v16815_v52  ;;  %v12680_v21 = vor.u32 %v14081_v31, %v12677_v26  ;;  %v16840_v9 = vor.u32 %v14047_v2, %v12541_v42 }
 0x4d8   : > { %7442 = vmatmul.bf16.gmra.mxu3 %v16820_v39  ;;  %v6158_v39 = vshrl.u32 %v16809_v56, 16  ;;  %v16849_v61 = vsel %vm393_vm0, %v6175_v44, %v6179_v20  ;;  %v6100_v44 = vpack.c.b16 %v6084_v13, %v6084_v13 }
 0x4d9   : > { %7530 = vmatpush.bf16.msra.mxu1 %v12680_v21  ;;  %18884 = vst [vmem:[#allocation30_spill] sm:$0xff] %v16840_v9  ;;  %v6196_v26 = vshll.u32 %v16840_v9, 16  ;;  %v14063_v21 = vld [vmem:[#allocation2 + $0x834] sm:$0xf] }
 0x4da   : > { %v7198_v63 = vpop.f32.mrf.mxu2  ;;  %v7102_v8 = vpop.f32.mrf.mxu0  ;;  %v6163_v52 = vor.u32 %v6162_v11, %v6158_v39  ;;  %18886 = vst [vmem:[#allocation36_spill] sm:$0xff] %v16849_v61 }
 0x4db   : > { %v7199_v3 = vadd.f32 %v7198_v63, %v7150_v50  ;;  %v7247_v1 = vpop.f32.mrf.mxu3  ;;  %v7103_v54 = vadd.f32 %v7102_v8, %v14904_v40  ;;  %v7151_v14 = vpop.f32.mrf.mxu1  ;;  %v12539_v63 = vld [vmem:[%s14696_s7 + $0x78] sm:$0xf]  ;;  %v14048_v8 = vld [vmem:[%s14696_s7 + $0x7c] sm:$0xf0] }
 0x4dc   : > { %v16838_v25 = vor.u32 %v14048_v8, %v12539_v63  ;;  %v16844_v39 = vsel %vm393_vm0, %v6163_v52, %v6167_v45  ;;  %v14095_v52 = vld [vmem:[#allocation2 + $0x934] sm:$0xf]  ;;  %v12797_v63 = vld [vmem:[#allocation2 + $0x9b8] sm:$0xf0] }
 0x4dd   : > { %v16831_v50 = vadd.f32 %v7247_v1, %v7199_v3  ;;  %v7152_v19 = vadd.f32 %v7151_v14, %v7103_v54  ;;  %v6083_v54 = vunpack.c.l.b16 %v12444_v24  ;;  %18885 = vst [vmem:[#allocation35_spill] sm:$0xff] %v16844_v39  ;;  %v12605_v24 = vld [vmem:[#allocation2 + $0x838] sm:$0xf0]  ;;  %v14111_v45 = vld [vmem:[#allocation2 + $0x9b4] sm:$0xf] }
 0x4de   : > { %18883 = vst [vmem:[#allocation29_spill] sm:$0xff] %v16838_v25  ;;  %v6184_v31 = vshll.u32 %v16838_v25, 16  ;;  %v12608_v42 = vor.u32 %v14063_v21, %v12605_v24  ;;  %v14079_v21 = vld [vmem:[#allocation2 + $0x8b4] sm:$0xf] }
 0x4df   : > { %v6099_v2 = vpack.c.b16 %v6083_v54, %v6083_v54 }
 0x4e0   : > { %v6186_v13 = vrot.slane %v6184_v31, 1  ;;  %7482 = vmatpush.bf16.msra.mxu0 %v12608_v42  ;;  %v12549_v31 = vld [vmem:[%s14696_s7 + $0x98] sm:$0xf0] }
 0x4e1   : > { %v6189_v54 = vshll.u32 %v6099_v2, 16  ;;  %v6201_v2 = vshll.u32 %v6100_v44, 16 }
 0x4e2   : > { %v7200_v0 = vpop.f32.mrf.mxu2  ;;  %v7105_v1 = vpop.f32.mrf.mxu0 }
 0x4e3   : > { %v7201_v5 = vadd.f32 %v7200_v0, %v7152_v19  ;;  %v7249_v3 = vpop.f32.mrf.mxu3  ;;  %v7106_v6 = vadd.f32 %v7105_v1, %v14904_v40  ;;  %v7154_v14 = vpop.f32.mrf.mxu1  ;;  %v12733_v19 = vld [vmem:[#allocation2 + $0x938] sm:$0xf0]  ;;  %v12800_v0 = vor.u32 %v14111_v45, %v12797_v63  ;;  %v6191_v63 = vrot.slane %v6189_v54, 1 }
 0x4e4   : > { %v12736_v20 = vor.u32 %v14095_v52, %v12733_v19  ;;  %v6194_v52 = vshrl.u32 %v16840_v9, 16  ;;  %v6198_v19 = vrot.slane %v6196_v26, 1  ;;  %v6203_v49 = vrot.slane %v6201_v2, 1 }
 0x4e5   : > { %v16846_v11 = vadd.f32 %v7249_v3, %v7201_v5  ;;  %v7155_v28 = vadd.f32 %v7154_v14, %v7106_v6  ;;  %7300 = vmatmul.bf16.gmra.mxu0 %v16809_v56  ;;  %7629 = vmatpush.bf16.msra.mxu3 %v12800_v0  ;;  %v12445_v56 = vld [vmem:[%s14696_s7 + $0xa0] sm:$0x11] }
 0x4e6   : > { %7349 = vmatmul.bf16.gmra.mxu1 %v16811_v51  ;;  %7580 = vmatpush.bf16.msra.mxu2 %v12736_v20  ;;  %v12669_v20 = vld [vmem:[#allocation2 + $0x8b8] sm:$0xf0]  ;;  %v14049_v51 = vld [vmem:[%s14696_s7 + $0x94] sm:$0xf]  ;;  %v6199_v7 = vor.u32 %v6198_v19, %v6194_v52  ;;  %v6086_v19 = vunpack.c.h.b16 %v12445_v56 }
 0x4e7   : > { %7398 = vmatmul.bf16.gmra.mxu2 %v16844_v39  ;;  %v12672_v45 = vor.u32 %v14079_v21, %v12669_v20  ;;  %v16869_v44 = vor.u32 %v14049_v51, %v12549_v31 }
 0x4e8   : > { %7447 = vmatmul.bf16.gmra.mxu3 %v16849_v61  ;;  %v6182_v61 = vshrl.u32 %v16838_v25, 16  ;;  %v16878_v52 = vsel %vm393_vm0, %v6199_v7, %v6203_v49  ;;  %v6102_v49 = vpack.c.b16 %v6086_v19, %v6086_v19 }
 0x4e9   : > { %7531 = vmatpush.bf16.msra.mxu1 %v12672_v45  ;;  %18888 = vst [vmem:[#allocation34_spill] sm:$0xff] %v16869_v44  ;;  %v6220_v20 = vshll.u32 %v16869_v44, 16  ;;  %v14061_v45 = vld [vmem:[#allocation2 + $0x824] sm:$0xf] }
 0x4ea   : > { %v7203_v8 = vpop.f32.mrf.mxu2  ;;  %v7107_v1 = vpop.f32.mrf.mxu0  ;;  %v6187_v39 = vor.u32 %v6186_v13, %v6182_v61  ;;  %18890 = vst [vmem:[#allocation40_spill] sm:$0xff] %v16878_v52 }
 0x4eb   : > { %v7204_v5 = vadd.f32 %v7203_v8, %v7155_v28  ;;  %v7252_v3 = vpop.f32.mrf.mxu3  ;;  %v7108_v6 = vadd.f32 %v7107_v1, %v14904_v40  ;;  %v7156_v14 = vpop.f32.mrf.mxu1  ;;  %v12547_v8 = vld [vmem:[%s14696_s7 + $0x90] sm:$0xf]  ;;  %v14050_v1 = vld [vmem:[%s14696_s7 + $0x94] sm:$0xf0] }
 0x4ec   : > { %v16867_v26 = vor.u32 %v14050_v1, %v12547_v8  ;;  %v16873_v61 = vsel %vm393_vm0, %v6187_v39, %v6191_v63  ;;  %v14093_v39 = vld [vmem:[#allocation2 + $0x924] sm:$0xf]  ;;  %v12789_v8 = vld [vmem:[#allocation2 + $0x9a8] sm:$0xf0] }
 0x4ed   : > { %v16860_v28 = vadd.f32 %v7252_v3, %v7204_v5  ;;  %v7157_v24 = vadd.f32 %v7156_v14, %v7108_v6  ;;  %v6085_v6 = vunpack.c.l.b16 %v12445_v56  ;;  %18889 = vst [vmem:[#allocation39_spill] sm:$0xff] %v16873_v61  ;;  %v12597_v56 = vld [vmem:[#allocation2 + $0x828] sm:$0xf0]  ;;  %v14109_v63 = vld [vmem:[#allocation2 + $0x9a4] sm:$0xf] }
 0x4ee   : > { %18887 = vst [vmem:[#allocation33_spill] sm:$0xff] %v16867_v26  ;;  %v6208_v21 = vshll.u32 %v16867_v26, 16  ;;  %v12600_v31 = vor.u32 %v14061_v45, %v12597_v56  ;;  %v14077_v45 = vld [vmem:[#allocation2 + $0x8a4] sm:$0xf] }
 0x4ef   : > { %v6101_v51 = vpack.c.b16 %v6085_v6, %v6085_v6 }
 0x4f0   : > { %v6210_v19 = vrot.slane %v6208_v21, 1  ;;  %7483 = vmatpush.bf16.msra.mxu0 %v12600_v31  ;;  %v12557_v21 = vld [vmem:[%s14696_s7 + $0xb0] sm:$0xf0] }
 0x4f1   : > { %v6213_v6 = vshll.u32 %v6101_v51, 16  ;;  %v6225_v51 = vshll.u32 %v6102_v49, 16 }
 0x4f2   : > { %v7205_v42 = vpop.f32.mrf.mxu2  ;;  %v7110_v3 = vpop.f32.mrf.mxu0 }
 0x4f3   : > { %v7206_v0 = vadd.f32 %v7205_v42, %v7157_v24  ;;  %v7254_v5 = vpop.f32.mrf.mxu3  ;;  %v7111_v54 = vadd.f32 %v7110_v3, %v14904_v40  ;;  %v7159_v14 = vpop.f32.mrf.mxu1  ;;  %v12725_v24 = vld [vmem:[#allocation2 + $0x928] sm:$0xf0]  ;;  %v12792_v42 = vor.u32 %v14109_v63, %v12789_v8  ;;  %v6215_v8 = vrot.slane %v6213_v6, 1 }
 0x4f4   : > { %v12728_v7 = vor.u32 %v14093_v39, %v12725_v24  ;;  %v6218_v39 = vshrl.u32 %v16869_v44, 16  ;;  %v6222_v24 = vrot.slane %v6220_v20, 1  ;;  %v6227_v57 = vrot.slane %v6225_v51, 1 }
 0x4f5   : > { %v16875_v13 = vadd.f32 %v7254_v5, %v7206_v0  ;;  %v7160_v2 = vadd.f32 %v7159_v14, %v7111_v54  ;;  %7305 = vmatmul.bf16.gmra.mxu0 %v16838_v25  ;;  %7630 = vmatpush.bf16.msra.mxu3 %v12792_v42  ;;  %v12446_v25 = vld [vmem:[%s14696_s7 + $0xb8] sm:$0x11] }
 0x4f6   : > { %7354 = vmatmul.bf16.gmra.mxu1 %v16840_v9  ;;  %7581 = vmatpush.bf16.msra.mxu2 %v12728_v7  ;;  %v12661_v7 = vld [vmem:[#allocation2 + $0x8a8] sm:$0xf0]  ;;  %v6223_v46 = vor.u32 %v6222_v24, %v6218_v39  ;;  %v6088_v24 = vunpack.c.h.b16 %v12446_v25 }
 0x4f7   : > { %7403 = vmatmul.bf16.gmra.mxu2 %v16873_v61  ;;  %v12664_v63 = vor.u32 %v14077_v45, %v12661_v7  ;;  %v14051_v9 = vld [vmem:[%s14696_s7 + $0xac] sm:$0xf] }
 0x4f8   : > { %7452 = vmatmul.bf16.gmra.mxu3 %v16878_v52  ;;  %v6206_v52 = vshrl.u32 %v16867_v26, 16  ;;  %v16898_v49 = vor.u32 %v14051_v9, %v12557_v21  ;;  %v16907_v39 = vsel %vm393_vm0, %v6223_v46, %v6227_v57  ;;  %v6104_v46 = vpack.c.b16 %v6088_v24, %v6088_v24 }
 0x4f9   : > { %7532 = vmatpush.bf16.msra.mxu1 %v12664_v63  ;;  %18894 = vst [vmem:[#allocation44_spill] sm:$0xff] %v16907_v39  ;;  %v14059_v63 = vld [vmem:[#allocation2 + $0x814] sm:$0xf] }
 0x4fa   : > { %v7208_v1 = vpop.f32.mrf.mxu2  ;;  %v7112_v3 = vpop.f32.mrf.mxu0  ;;  %v6211_v61 = vor.u32 %v6210_v19, %v6206_v52  ;;  %18892 = vst [vmem:[#allocation38_spill] sm:$0xff] %v16898_v49  ;;  %v6244_v7 = vshll.u32 %v16898_v49, 16 }
 0x4fb   : > { %v7209_v0 = vadd.f32 %v7208_v1, %v7160_v2  ;;  %v7257_v5 = vpop.f32.mrf.mxu3  ;;  %v7113_v54 = vadd.f32 %v7112_v3, %v14904_v40  ;;  %v7161_v14 = vpop.f32.mrf.mxu1  ;;  %v12555_v1 = vld [vmem:[%s14696_s7 + $0xa8] sm:$0xf]  ;;  %v14052_v3 = vld [vmem:[%s14696_s7 + $0xac] sm:$0xf0] }
 0x4fc   : > { %v16896_v20 = vor.u32 %v14052_v3, %v12555_v1  ;;  %v16902_v52 = vsel %vm393_vm0, %v6211_v61, %v6215_v8  ;;  %v14091_v61 = vld [vmem:[#allocation2 + $0x914] sm:$0xf]  ;;  %v12781_v1 = vld [vmem:[#allocation2 + $0x998] sm:$0xf0] }
 0x4fd   : > { %v16889_v2 = vadd.f32 %v7257_v5, %v7209_v0  ;;  %v7162_v56 = vadd.f32 %v7161_v14, %v7113_v54  ;;  %v6087_v54 = vunpack.c.l.b16 %v12446_v25  ;;  %18893 = vst [vmem:[#allocation43_spill] sm:$0xff] %v16902_v52  ;;  %v12589_v25 = vld [vmem:[#allocation2 + $0x818] sm:$0xf0]  ;;  %v14107_v8 = vld [vmem:[#allocation2 + $0x994] sm:$0xf] }
 0x4fe   : > { %18891 = vst [vmem:[#allocation37_spill] sm:$0xff] %v16896_v20  ;;  %v6232_v45 = vshll.u32 %v16896_v20, 16  ;;  %v12592_v21 = vor.u32 %v14059_v63, %v12589_v25  ;;  %v14075_v63 = vld [vmem:[#allocation2 + $0x894] sm:$0xf] }
 0x4ff   : > { %v6103_v9 = vpack.c.b16 %v6087_v54, %v6087_v54 }
 0x500   : > { %v6234_v24 = vrot.slane %v6232_v45, 1  ;;  %7484 = vmatpush.bf16.msra.mxu0 %v12592_v21  ;;  %v12565_v45 = vld [vmem:[%s14696_s7 + $0xc8] sm:$0xf0] }
 0x501   : > { %v6237_v54 = vshll.u32 %v6103_v9, 16  ;;  %v6249_v9 = vshll.u32 %v6104_v46, 16 }
 0x502   : > { %v7210_v31 = vpop.f32.mrf.mxu2  ;;  %v7115_v5 = vpop.f32.mrf.mxu0 }
 0x503   : > { %v7211_v42 = vadd.f32 %v7210_v31, %v7162_v56  ;;  %v7259_v0 = vpop.f32.mrf.mxu3  ;;  %v7116_v6 = vadd.f32 %v7115_v5, %v14904_v40  ;;  %v7164_v14 = vpop.f32.mrf.mxu1  ;;  %v12717_v56 = vld [vmem:[#allocation2 + $0x918] sm:$0xf0]  ;;  %v12784_v31 = vor.u32 %v14107_v8, %v12781_v1  ;;  %v6239_v1 = vrot.slane %v6237_v54, 1 }
 0x504   : > { %v12720_v57 = vor.u32 %v14091_v61, %v12717_v56  ;;  %v6242_v61 = vshrl.u32 %v16898_v49, 16  ;;  %v6246_v56 = vrot.slane %v6244_v7, 1  ;;  %v6251_v16 = vrot.slane %v6249_v9, 1 }
 0x505   : > { %v16904_v19 = vadd.f32 %v7259_v0, %v7211_v42  ;;  %v7165_v51 = vadd.f32 %v7164_v14, %v7116_v6  ;;  %7310 = vmatmul.bf16.gmra.mxu0 %v16867_v26  ;;  %7631 = vmatpush.bf16.msra.mxu3 %v12784_v31  ;;  %v12447_v26 = vld [vmem:[%s14696_s7 + $0xd0] sm:$0x11] }
 0x506   : > { %7359 = vmatmul.bf16.gmra.mxu1 %v16869_v44  ;;  %7582 = vmatpush.bf16.msra.mxu2 %v12720_v57  ;;  %v12653_v57 = vld [vmem:[#allocation2 + $0x898] sm:$0xf0]  ;;  %v14053_v44 = vld [vmem:[%s14696_s7 + $0xc4] sm:$0xf]  ;;  %v6247_v4 = vor.u32 %v6246_v56, %v6242_v61  ;;  %v6090_v56 = vunpack.c.h.b16 %v12447_v26 }
 0x507   : > { %7408 = vmatmul.bf16.gmra.mxu2 %v16902_v52  ;;  %v12656_v8 = vor.u32 %v14075_v63, %v12653_v57  ;;  %v16927_v46 = vor.u32 %v14053_v44, %v12565_v45 }
 0x508   : > { %7457 = vmatmul.bf16.gmra.mxu3 %v16907_v39  ;;  %v6230_v39 = vshrl.u32 %v16896_v20, 16  ;;  %v16936_v61 = vsel %vm393_vm0, %v6247_v4, %v6251_v16  ;;  %v6106_v16 = vpack.c.b16 %v6090_v56, %v6090_v56 }
 0x509   : > { %7533 = vmatpush.bf16.msra.mxu1 %v12656_v8  ;;  %18896 = vst [vmem:[#allocation42_spill] sm:$0xff] %v16927_v46  ;;  %v6268_v57 = vshll.u32 %v16927_v46, 16  ;;  %v14057_v8 = vld [vmem:[#allocation2 + $0x804] sm:$0xf] }
 0x50a   : > { %v7213_v3 = vpop.f32.mrf.mxu2  ;;  %v7117_v5 = vpop.f32.mrf.mxu0  ;;  %v6235_v52 = vor.u32 %v6234_v24, %v6230_v39  ;;  %18898 = vst [vmem:[#allocation48_spill] sm:$0xff] %v16936_v61 }
 0x50b   : > { %v7214_v42 = vadd.f32 %v7213_v3, %v7165_v51  ;;  %v7262_v0 = vpop.f32.mrf.mxu3  ;;  %v7118_v6 = vadd.f32 %v7117_v5, %v14904_v40  ;;  %v7166_v14 = vpop.f32.mrf.mxu1  ;;  %v12563_v3 = vld [vmem:[%s14696_s7 + $0xc0] sm:$0xf]  ;;  %v14054_v5 = vld [vmem:[%s14696_s7 + $0xc4] sm:$0xf0] }
 0x50c   : > { %v16925_v7 = vor.u32 %v14054_v5, %v12563_v3  ;;  %v16931_v39 = vsel %vm393_vm0, %v6235_v52, %v6239_v1  ;;  %v14089_v52 = vld [vmem:[#allocation2 + $0x904] sm:$0xf]  ;;  %v12773_v3 = vld [vmem:[#allocation2 + $0x988] sm:$0xf0] }
 0x50d   : > { %v16918_v51 = vadd.f32 %v7262_v0, %v7214_v42  ;;  %v7167_v25 = vadd.f32 %v7166_v14, %v7118_v6  ;;  %v6089_v6 = vunpack.c.l.b16 %v12447_v26  ;;  %18897 = vst [vmem:[#allocation47_spill] sm:$0xff] %v16931_v39  ;;  %v12581_v26 = vld [vmem:[#allocation2 + $0x808] sm:$0xf0]  ;;  %v14105_v1 = vld [vmem:[#allocation2 + $0x984] sm:$0xf] }
 0x50e   : > { %18895 = vst [vmem:[#allocation41_spill] sm:$0xff] %v16925_v7  ;;  %v6256_v63 = vshll.u32 %v16925_v7, 16  ;;  %v12584_v45 = vor.u32 %v14057_v8, %v12581_v26  ;;  %v14073_v8 = vld [vmem:[#allocation2 + $0x884] sm:$0xf] }
 0x50f   : > { %v6105_v44 = vpack.c.b16 %v6089_v6, %v6089_v6 }
 0x510   : > { %v6258_v56 = vrot.slane %v6256_v63, 1  ;;  %7485 = vmatpush.bf16.msra.mxu0 %v12584_v45  ;;  %v12573_v63 = vld [vmem:[%s14696_s7 + $0xe0] sm:$0xf0]  ;;  %v12448_v45 = vld [vmem:[%s14696_s7 + $0xe8] sm:$0x11] }
 0x511   : > { %v6261_v6 = vshll.u32 %v6105_v44, 16  ;;  %v6273_v44 = vshll.u32 %v6106_v16, 16 }
 0x512   : > { %v7215_v21 = vpop.f32.mrf.mxu2  ;;  %v7120_v0 = vpop.f32.mrf.mxu0 }
 0x513   : > { %v7216_v31 = vadd.f32 %v7215_v21, %v7167_v25  ;;  %v7264_v42 = vpop.f32.mrf.mxu3  ;;  %v7121_v54 = vadd.f32 %v7120_v0, %v14904_v40  ;;  %v7169_v14 = vpop.f32.mrf.mxu1  ;;  %v12709_v25 = vld [vmem:[#allocation2 + $0x908] sm:$0xf0]  ;;  %v12776_v21 = vor.u32 %v14105_v1, %v12773_v3  ;;  %v6263_v3 = vrot.slane %v6261_v6, 1 }
 0x514   : > { %v12712_v4 = vor.u32 %v14089_v52, %v12709_v25  ;;  %v6266_v52 = vshrl.u32 %v16927_v46, 16  ;;  %v6275_v43 = vrot.slane %v6273_v44, 1 }
 0x515   : > { %v16933_v24 = vadd.f32 %v7264_v42, %v7216_v31  ;;  %v7170_v9 = vadd.f32 %v7169_v14, %v7121_v54  ;;  %7315 = vmatmul.bf16.gmra.mxu0 %v16896_v20  ;;  %7632 = vmatpush.bf16.msra.mxu3 %v12776_v21 }
 0x516   : > { %7364 = vmatmul.bf16.gmra.mxu1 %v16898_v49  ;;  %7583 = vmatpush.bf16.msra.mxu2 %v12712_v4  ;;  %v12645_v4 = vld [vmem:[#allocation2 + $0x888] sm:$0xf0]  ;;  %v14055_v49 = vld [vmem:[%s14696_s7 + $0xdc] sm:$0xf] }
 0x517   : > { %7413 = vmatmul.bf16.gmra.mxu2 %v16931_v39  ;;  %v12648_v1 = vor.u32 %v14073_v8, %v12645_v4  ;;  %v14056_v39 = vld [vmem:[%s14696_s7 + $0xdc] sm:$0xf0]  ;;  %v16956_v16 = vor.u32 %v14055_v49, %v12573_v63  ;;  %v14167_v8 = vld [vmem:[#allocation2 + $0xb74] sm:$0xf]  ;;  %v13021_v4 = vld [vmem:[#allocation2 + $0xb78] sm:$0xf0] }
 0x518   : > { %7462 = vmatmul.bf16.gmra.mxu3 %v16936_v61  ;;  %v6254_v61 = vshrl.u32 %v16925_v7, 16 }
 0x519   : > { %7534 = vmatpush.bf16.msra.mxu1 %v12648_v1  ;;  %v6292_v49 = vshll.u32 %v16956_v16, 16  ;;  %v12893_v1 = vld [vmem:[#allocation2 + $0xa78] sm:$0xf0] }
 0x51a   : > { %v7218_v5 = vpop.f32.mrf.mxu2  ;;  %v7122_v0 = vpop.f32.mrf.mxu0 }
 0x51b   : > { %v7219_v31 = vadd.f32 %v7218_v5, %v7170_v9  ;;  %v7267_v42 = vpop.f32.mrf.mxu3  ;;  %v7123_v54 = vadd.f32 %v7122_v0, %v14904_v40  ;;  %v7171_v14 = vpop.f32.mrf.mxu1  ;;  %v6270_v9 = vrot.slane %v6268_v57, 1  ;;  %v12571_v5 = vld [vmem:[%s14696_s7 + $0xd8] sm:$0xf]  ;;  %v6259_v0 = vor.u32 %v6258_v56, %v6254_v61 }
 0x51c   : > { %v16954_v57 = vor.u32 %v14056_v39, %v12571_v5  ;;  %v13085_v5 = vld [vmem:[#allocation2 + $0xbf8] sm:$0xf0] }
 0x51d   : > { %v16947_v25 = vadd.f32 %v7267_v42, %v7219_v31  ;;  %v7172_v26 = vadd.f32 %v7171_v14, %v7123_v54  ;;  %v6271_v20 = vor.u32 %v6270_v9, %v6266_v52  ;;  %v16960_v61 = vsel %vm393_vm0, %v6259_v0, %v6263_v3  ;;  %v14183_v3 = vld [vmem:[#allocation2 + $0xbf4] sm:$0xf] }
 0x51e   : > { %18899 = vst [vmem:[#allocation45_spill] sm:$0xff] %v16960_v61  ;;  %v6091_v14 = vunpack.c.l.b16 %v12448_v45  ;;  %v6092_v9 = vunpack.c.h.b16 %v12448_v45  ;;  %v13088_v45 = vor.u32 %v14183_v3, %v13085_v5  ;;  %v12957_v3 = vld [vmem:[#allocation2 + $0xaf8] sm:$0xf0] }
 0x51f   : > { %v16965_v52 = vsel %vm393_vm0, %v6271_v20, %v6275_v43  ;;  %v13024_v20 = vor.u32 %v14167_v8, %v13021_v4  ;;  %v6290_v8 = vshrl.u32 %v16956_v16, 16  ;;  %v6294_v4 = vrot.slane %v6292_v49, 1 }
 0x520   : > { %18900 = vst [vmem:[#allocation46_spill] sm:$0xff] %v16965_v52  ;;  %v6107_v39 = vpack.c.b16 %v6091_v14, %v6091_v14  ;;  %v6108_v43 = vpack.c.b16 %v6092_v9, %v6092_v9  ;;  %v6278_v14 = vshrl.u32 %v16954_v57, 16  ;;  %7821 = vmatpush.bf16.msrb.mxu3 %v13088_v45 }
 0x521   : > { %7772 = vmatpush.bf16.msrb.mxu2 %v13024_v20 }
 0x522   : > { %v7220_v21 = vpop.f32.mrf.mxu2  ;;  %v7125_v29 = vpop.f32.mrf.mxu0 }
 0x523   : > { %v7221_v31 = vadd.f32 %v7220_v21, %v7172_v26  ;;  %v7269_v42 = vpop.f32.mrf.mxu3  ;;  %v7126_v54 = vadd.f32 %v7125_v29, %v14904_v40  ;;  %v7174_v6 = vpop.f32.mrf.mxu1  ;;  %v6280_v29 = vshll.u32 %v16954_v57, 16  ;;  %v14135_v26 = vld [vmem:[#allocation2 + $0xa74] sm:$0xf] }
 0x524   : > { %v12896_v63 = vor.u32 %v14135_v26, %v12893_v1  ;;  %v6297_v26 = vshll.u32 %v6108_v43, 16 }
 0x525   : > { %v16962_v56 = vadd.f32 %v7269_v42, %v7221_v31  ;;  %v7175_v44 = vadd.f32 %v7174_v6, %v7126_v54  ;;  %7320 = vmatmul.bf16.gmra.mxu0 %v16925_v7 }
 0x526   : > { %7369 = vmatmul.bf16.gmra.mxu1 %v16927_v46  ;;  %7674 = vmatpush.bf16.msrb.mxu0 %v12896_v63  ;;  %v6299_v46 = vrot.slane %v6297_v26, 1 }
 0x527   : > { %7418 = vmatmul.bf16.gmra.mxu2 %v16960_v61  ;;  %v6285_v61 = vshll.u32 %v6107_v39, 16 }
 0x528   : > { %7467 = vmatmul.bf16.gmra.mxu3 %v16965_v52  ;;  %v6282_v52 = vrot.slane %v6280_v29, 1 }
 0x529   : > { %v6287_v20 = vrot.slane %v6285_v61, 1 }
 0x52a   : > { %v7223_v0 = vpop.f32.mrf.mxu2  ;;  %v7127_v42 = vpop.f32.mrf.mxu0  ;;  %v6283_v5 = vor.u32 %v6282_v52, %v6278_v14  ;;  %v13013_v52 = vld [vmem:[#allocation2 + $0xb68] sm:$0xf0] }
 0x52b   : > { %v7224_v21 = vadd.f32 %v7223_v0, %v7175_v44  ;;  %v7272_v31 = vpop.f32.mrf.mxu3  ;;  %v7128_v54 = vadd.f32 %v7127_v42, %v14904_v40  ;;  %v7176_v6 = vpop.f32.mrf.mxu1  ;;  %v14151_v44 = vld [vmem:[#allocation2 + $0xaf4] sm:$0xf]  ;;  %v6295_v42 = vor.u32 %v6294_v4, %v6290_v8  ;;  %v12885_v14 = vld [vmem:[#allocation2 + $0xa68] sm:$0xf0]  ;;  %v14181_v8 = vld [vmem:[#allocation2 + $0xbe4] sm:$0xf] }
 0x52c   : > { %v12960_v0 = vor.u32 %v14151_v44, %v12957_v3  ;;  %v13077_v4 = vld [vmem:[#allocation2 + $0xbe8] sm:$0xf0] }
 0x52d   : > { %v16975_v9 = vadd.f32 %v7272_v31, %v7224_v21  ;;  %v7177_v1 = vadd.f32 %v7176_v6, %v7128_v54  ;;  %v16980_v31 = vsel %vm393_vm0, %v6283_v5, %v6287_v20  ;;  %v16985_v43 = vsel %vm393_vm0, %v6295_v42, %v6299_v46  ;;  %v14133_v54 = vld [vmem:[#allocation2 + $0xa64] sm:$0xf] }
 0x52e   : > { %7723 = vmatpush.bf16.msrb.mxu1 %v12960_v0  ;;  %v13080_v46 = vor.u32 %v14181_v8, %v13077_v4  ;;  %v14163_v8 = vld [vmem:[#allocation2 + $0xb54] sm:$0xf]  ;;  %v13005_v4 = vld [vmem:[#allocation2 + $0xb58] sm:$0xf0] }
 0x530   : > { %7822 = vmatpush.bf16.msrb.mxu3 %v13080_v46  ;;  %v13008_v46 = vor.u32 %v14163_v8, %v13005_v4 }
 0x532   : > { %v7225_v7 = vpop.f32.mrf.mxu2  ;;  %v7130_v63 = vpop.f32.mrf.mxu0 }
 0x533   : > { %v7226_v29 = vadd.f32 %v7225_v7, %v7177_v1  ;;  %v7274_v39 = vpop.f32.mrf.mxu3  ;;  %v7131_v45 = vadd.f32 %v7130_v63, %v14904_v40  ;;  %v7179_v21 = vpop.f32.mrf.mxu1  ;;  %v14165_v7 = vld [vmem:[#allocation2 + $0xb64] sm:$0xf]  ;;  %v12888_v1 = vor.u32 %v14133_v54, %v12885_v14  ;;  %v12949_v63 = vld [vmem:[#allocation2 + $0xae8] sm:$0xf0] }
 0x534   : > { %v13016_v6 = vor.u32 %v14165_v7, %v13013_v52 }
 0x535   : > { %v16982_v49 = vadd.f32 %v7274_v39, %v7226_v29  ;;  %v7180_v61 = vadd.f32 %v7179_v21, %v7131_v45  ;;  %7325 = vmatmul.bf16.gmra.mxu0 %v16954_v57  ;;  %v14149_v39 = vld [vmem:[#allocation2 + $0xae4] sm:$0xf] }
 0x536   : > { %7374 = vmatmul.bf16.gmra.mxu1 %v16956_v16  ;;  %7773 = vmatpush.bf16.msrb.mxu2 %v13016_v6  ;;  %v12952_v45 = vor.u32 %v14149_v39, %v12949_v63  ;;  %v14147_v63 = vld [vmem:[#allocation2 + $0xad4] sm:$0xf] }
 0x537   : > { %7423 = vmatmul.bf16.gmra.mxu2 %v16980_v31  ;;  %7675 = vmatpush.bf16.msrb.mxu0 %v12888_v1 }
 0x538   : > { %7472 = vmatmul.bf16.gmra.mxu3 %v16985_v43  ;;  %7724 = vmatpush.bf16.msrb.mxu1 %v12952_v45  ;;  %v12941_v45 = vld [vmem:[#allocation2 + $0xad8] sm:$0xf0] }
 0x53a   : > { %v7228_v26 = vpop.f32.mrf.mxu2  ;;  %v7132_v5 = vpop.f32.mrf.mxu0  ;;  %7774 = vmatpush.bf16.msrb.mxu2 %v13008_v46  ;;  %v14129_v46 = vld [vmem:[#allocation2 + $0xa44] sm:$0xf] }
 0x53b   : > { %v7229_v44 = vadd.f32 %v7228_v26, %v7180_v61  ;;  %v7277_v3 = vpop.f32.mrf.mxu3  ;;  %v7133_v20 = vadd.f32 %v7132_v5, %v14904_v40  ;;  %v7181_v0 = vpop.f32.mrf.mxu1  ;;  %v14131_v26 = vld [vmem:[#allocation2 + $0xa54] sm:$0xf]  ;;  %v13069_v5 = vld [vmem:[#allocation2 + $0xbd8] sm:$0xf0] }
 0x53d   : > { %v16992_v42 = vadd.f32 %v7277_v3, %v7229_v44  ;;  %v7182_v29 = vadd.f32 %v7181_v0, %v7133_v20  ;;  %v12877_v44 = vld [vmem:[#allocation2 + $0xa58] sm:$0xf0]  ;;  %v14179_v3 = vld [vmem:[#allocation2 + $0xbd4] sm:$0xf] }
 0x53e   : > { %v12880_v0 = vor.u32 %v14131_v26, %v12877_v44 }
 0x540   : > { %7676 = vmatpush.bf16.msrb.mxu0 %v12880_v0  ;;  %v13061_v0 = vld [vmem:[#allocation2 + $0xbc8] sm:$0xf0] }
 0x542   : > { %v7230_v21 = vpop.f32.mrf.mxu2  ;;  %v7291_v54 = vpop.f32.mrf.mxu0 }
 0x543   : > { %v7231_v7 = vadd.f32 %v7230_v21, %v7182_v29  ;;  %v7279_v52 = vpop.f32.mrf.mxu3  ;;  %v7340_v61 = vpop.f32.mrf.mxu1  ;;  %v7292_v6 = vadd.f32 %v7291_v54, %v16802_v18  ;;  %v13072_v18 = vor.u32 %v14179_v3, %v13069_v5  ;;  %v12944_v21 = vor.u32 %v14147_v63, %v12941_v45  ;;  %v12869_v5 = vld [vmem:[#allocation2 + $0xa48] sm:$0xf0] }
 0x545   : > { %v16994_v14 = vadd.f32 %v7279_v52, %v7231_v7  ;;  %7486 = vmatmul.bf16.vlgmr.msra.gmra.mxu0 %v16541_v62  ;;  %v7341_v1 = vadd.f32 %v7340_v61, %v7292_v6  ;;  %7823 = vmatpush.bf16.msrb.mxu3 %v13072_v18 }
 0x546   : > { %7535 = vmatmul.bf16.vlgmr.msra.gmra.mxu1 %v16544_v22 }
 0x547   : > { %7584 = vmatmul.bf16.vlgmr.msra.gmra.mxu2 %v16565_v30  ;;  %7725 = vmatpush.bf16.msrb.mxu1 %v12944_v21 }
 0x548   : > { %7633 = vmatmul.bf16.vlgmr.msra.gmra.mxu3 %v16575_v53 }
 0x54a   : > { %v7389_v20 = vpop.f32.mrf.mxu2  ;;  %v7293_v39 = vpop.f32.mrf.mxu0 }
 0x54b   : > { %v7390_v29 = vadd.f32 %v7389_v20, %v7341_v1  ;;  %v7438_v62 = vpop.f32.mrf.mxu3  ;;  %v7342_v22 = vpop.f32.mrf.mxu1  ;;  %v7294_v53 = vadd.f32 %v7293_v39, %v16817_v10  ;;  %v14161_v10 = vld [vmem:[#allocation2 + $0xb44] sm:$0xf]  ;;  %v12997_v1 = vld [vmem:[#allocation2 + $0xb48] sm:$0xf0] }
 0x54c   : > { %v13000_v3 = vor.u32 %v14161_v10, %v12997_v1  ;;  %v14177_v20 = vld [vmem:[#allocation2 + $0xbc4] sm:$0xf]  ;;  %v12861_v1 = vld [vmem:[#allocation2 + $0xa38] sm:$0xf0] }
 0x54d   : > { %v7439_v30 = vadd.f32 %v7438_v62, %v7390_v29  ;;  %v7343_v7 = vadd.f32 %v7342_v22, %v7294_v53  ;;  %v13064_v29 = vor.u32 %v14177_v20, %v13061_v0  ;;  %v14145_v22 = vld [vmem:[#allocation2 + $0xac4] sm:$0xf] }
 0x54e   : > { %7775 = vmatpush.bf16.msrb.mxu2 %v13000_v3 }
 0x54f   : > { %13089 = vst [vmem:[%s15134_s11 + $0x200] sm:$0xff] %v7439_v30  ;;  %7824 = vmatpush.bf16.msrb.mxu3 %v13064_v29  ;;  %v12933_v30 = vld [vmem:[#allocation2 + $0xac8] sm:$0xf0] }
 0x550   : > { %v12936_v53 = vor.u32 %v14145_v22, %v12933_v30 }
 0x552   : > { %v7391_v52 = vpop.f32.mrf.mxu2  ;;  %v7296_v6 = vpop.f32.mrf.mxu0  ;;  %7726 = vmatpush.bf16.msrb.mxu1 %v12936_v53  ;;  %v12981_v53 = vld [vmem:[#allocation2 + $0xb28] sm:$0xf0] }
 0x553   : > { %v7392_v54 = vadd.f32 %v7391_v52, %v7343_v7  ;;  %v7440_v61 = vpop.f32.mrf.mxu3  ;;  %v7345_v8 = vpop.f32.mrf.mxu1  ;;  %v7297_v26 = vadd.f32 %v7296_v6, %v16831_v50  ;;  %v12872_v50 = vor.u32 %v14129_v46, %v12869_v5  ;;  %v14175_v46 = vld [vmem:[#allocation2 + $0xbb4] sm:$0xf] }
 0x555   : > { %v7441_v4 = vadd.f32 %v7440_v61, %v7392_v54  ;;  %7491 = vmatmul.bf16.gmra.mxu0 %v16567_v15  ;;  %v7346_v44 = vadd.f32 %v7345_v8, %v7297_v26  ;;  %v12989_v8 = vld [vmem:[#allocation2 + $0xb38] sm:$0xf0] }
 0x556   : > { %7540 = vmatmul.bf16.gmra.mxu1 %v16569_v41  ;;  %7677 = vmatpush.bf16.msrb.mxu0 %v12872_v50  ;;  %v12925_v50 = vld [vmem:[#allocation2 + $0xab8] sm:$0xf0] }
 0x557   : > { %13091 = vst [vmem:[%s15134_s11 + $0x210] sm:$0xff] %v7441_v4  ;;  %7589 = vmatmul.bf16.gmra.mxu2 %v16595_v17  ;;  %v14127_v4 = vld [vmem:[#allocation2 + $0xa34] sm:$0xf] }
 0x558   : > { %7638 = vmatmul.bf16.gmra.mxu3 %v16601_v32 }
 0x55a   : > { %v7394_v18 = vpop.f32.mrf.mxu2  ;;  %v7298_v39 = vpop.f32.mrf.mxu0 }
 0x55b   : > { %v7395_v15 = vadd.f32 %v7394_v18, %v7346_v44  ;;  %v7443_v62 = vpop.f32.mrf.mxu3  ;;  %v7347_v41 = vpop.f32.mrf.mxu1  ;;  %v7299_v32 = vadd.f32 %v7298_v39, %v16846_v11  ;;  %v14159_v11 = vld [vmem:[#allocation2 + $0xb34] sm:$0xf]  ;;  %v13053_v44 = vld [vmem:[#allocation2 + $0xbb8] sm:$0xf0] }
 0x55c   : > { %v12992_v10 = vor.u32 %v14159_v11, %v12989_v8  ;;  %v13056_v5 = vor.u32 %v14175_v46, %v13053_v44  ;;  %v14143_v18 = vld [vmem:[#allocation2 + $0xab4] sm:$0xf] }
 0x55d   : > { %v7444_v17 = vadd.f32 %v7443_v62, %v7395_v15  ;;  %v7348_v63 = vadd.f32 %v7347_v41, %v7299_v32  ;;  %v12928_v29 = vor.u32 %v14143_v18, %v12925_v50  ;;  %v12845_v18 = vld [vmem:[#allocation2 + $0xa18] sm:$0xf0]  ;;  %v14171_v50 = vld [vmem:[#allocation2 + $0xb94] sm:$0xf] }
 0x55e   : > { %7776 = vmatpush.bf16.msrb.mxu2 %v12992_v10  ;;  %7825 = vmatpush.bf16.msrb.mxu3 %v13056_v5 }
 0x55f   : > { %13093 = vst [vmem:[%s15134_s11 + $0x220] sm:$0xff] %v7444_v17  ;;  %7727 = vmatpush.bf16.msrb.mxu1 %v12928_v29  ;;  %v13037_v29 = vld [vmem:[#allocation2 + $0xb98] sm:$0xf0] }
 0x562   : > { %v7396_v45 = vpop.f32.mrf.mxu2  ;;  %v7301_v52 = vpop.f32.mrf.mxu0 }
 0x563   : > { %v7397_v21 = vadd.f32 %v7396_v45, %v7348_v63  ;;  %v7445_v7 = vpop.f32.mrf.mxu3  ;;  %v7350_v54 = vpop.f32.mrf.mxu1  ;;  %v7302_v6 = vadd.f32 %v7301_v52, %v16860_v28  ;;  %v12864_v28 = vor.u32 %v14127_v4, %v12861_v1  ;;  %v14125_v63 = vld [vmem:[#allocation2 + $0xa24] sm:$0xf] }
 0x564   : > { %v14173_v52 = vld [vmem:[#allocation2 + $0xba4] sm:$0xf] }
 0x565   : > { %v7446_v61 = vadd.f32 %v7445_v7, %v7397_v21  ;;  %7496 = vmatmul.bf16.gmra.mxu0 %v16592_v33  ;;  %v7351_v26 = vadd.f32 %v7350_v54, %v7302_v6  ;;  %v12853_v7 = vld [vmem:[#allocation2 + $0xa28] sm:$0xf0]  ;;  %v14141_v4 = vld [vmem:[#allocation2 + $0xaa4] sm:$0xf] }
 0x566   : > { %7545 = vmatmul.bf16.gmra.mxu1 %v16597_v48  ;;  %7678 = vmatpush.bf16.msrb.mxu0 %v12864_v28  ;;  %v13045_v54 = vld [vmem:[#allocation2 + $0xba8] sm:$0xf0] }
 0x567   : > { %13095 = vst [vmem:[%s15134_s11 + $0x230] sm:$0xff] %v7446_v61  ;;  %7594 = vmatmul.bf16.gmra.mxu2 %v16620_v36  ;;  %v13048_v6 = vor.u32 %v14173_v52, %v13045_v54  ;;  %v14153_v54 = vld [vmem:[#allocation2 + $0xb04] sm:$0xf] }
 0x568   : > { %7643 = vmatmul.bf16.gmra.mxu3 %v16628_v34 }
 0x569   : > { %7826 = vmatpush.bf16.msrb.mxu3 %v13048_v6 }
 0x56a   : > { %v7399_v3 = vpop.f32.mrf.mxu2  ;;  %v7303_v0 = vpop.f32.mrf.mxu0 }
 0x56b   : > { %v7400_v33 = vadd.f32 %v7399_v3, %v7351_v26  ;;  %v7448_v20 = vpop.f32.mrf.mxu3  ;;  %v7352_v48 = vpop.f32.mrf.mxu1  ;;  %v7304_v34 = vadd.f32 %v7303_v0, %v16875_v13  ;;  %v14157_v13 = vld [vmem:[#allocation2 + $0xb24] sm:$0xf]  ;;  %v12917_v26 = vld [vmem:[#allocation2 + $0xaa8] sm:$0xf0]  ;;  %v12973_v0 = vld [vmem:[#allocation2 + $0xb18] sm:$0xf0] }
 0x56c   : > { %v12984_v21 = vor.u32 %v14157_v13, %v12981_v53  ;;  %v12920_v10 = vor.u32 %v14141_v4, %v12917_v26 }
 0x56d   : > { %v7449_v36 = vadd.f32 %v7448_v20, %v7400_v33  ;;  %v7353_v15 = vadd.f32 %v7352_v48, %v7304_v34  ;;  %v14123_v48 = vld [vmem:[#allocation2 + $0xa14] sm:$0xf] }
 0x56e   : > { %7777 = vmatpush.bf16.msrb.mxu2 %v12984_v21  ;;  %7728 = vmatpush.bf16.msrb.mxu1 %v12920_v10 }
 0x56f   : > { %13097 = vst [vmem:[%s15134_s11 + $0x240] sm:$0xff] %v7449_v36 }
 0x572   : > { %v7401_v62 = vpop.f32.mrf.mxu2  ;;  %v7306_v17 = vpop.f32.mrf.mxu0 }
 0x573   : > { %v7402_v39 = vadd.f32 %v7401_v62, %v7353_v15  ;;  %v7450_v41 = vpop.f32.mrf.mxu3  ;;  %v7355_v32 = vpop.f32.mrf.mxu1  ;;  %v7307_v30 = vadd.f32 %v7306_v17, %v16889_v2  ;;  %v12856_v2 = vor.u32 %v14125_v63, %v12853_v7  ;;  %v13040_v62 = vor.u32 %v14171_v50, %v13037_v29  ;;  %v14139_v17 = vld [vmem:[#allocation2 + $0xa94] sm:$0xf]  ;;  %v13371_v50 = vld [vmem:[#allocation2 + $0xd70] sm:$0xf]  ;;  %v14232_v29 = vld [vmem:[#allocation2 + $0xd74] sm:$0xf0] }
 0x575   : > { %v7451_v22 = vadd.f32 %v7450_v41, %v7402_v39  ;;  %7501 = vmatmul.bf16.gmra.mxu0 %v16622_v59  ;;  %v7356_v45 = vadd.f32 %v7355_v32, %v7307_v30  ;;  %7827 = vmatpush.bf16.msrb.mxu3 %v13040_v62  ;;  %v12909_v32 = vld [vmem:[#allocation2 + $0xa98] sm:$0xf0]  ;;  %v13372_v62 = vor.u32 %v14232_v29, %v13371_v50 }
 0x576   : > { %7550 = vmatmul.bf16.gmra.mxu1 %v16624_v23  ;;  %7679 = vmatpush.bf16.msrb.mxu0 %v12856_v2  ;;  %v14121_v2 = vld [vmem:[#allocation2 + $0xa04] sm:$0xf] }
 0x577   : > { %13099 = vst [vmem:[%s15134_s11 + $0x250] sm:$0xff] %v7451_v22  ;;  %7599 = vmatmul.bf16.gmra.mxu2 %v16647_v12  ;;  %v12912_v22 = vor.u32 %v14139_v17, %v12909_v32 }
 0x578   : > { %7648 = vmatmul.bf16.gmra.mxu3 %v16655_v27 }
 0x579   : > { %7729 = vmatpush.bf16.msrb.mxu1 %v12912_v22 }
 0x57a   : > { %v7404_v61 = vpop.f32.mrf.mxu2  ;;  %v7308_v8 = vpop.f32.mrf.mxu0 }
 0x57b   : > { %v7405_v59 = vadd.f32 %v7404_v61, %v7356_v45  ;;  %v7453_v11 = vpop.f32.mrf.mxu3  ;;  %v7357_v23 = vpop.f32.mrf.mxu1  ;;  %v7309_v27 = vadd.f32 %v7308_v8, %v16904_v19  ;;  %v14155_v19 = vld [vmem:[#allocation2 + $0xb14] sm:$0xf]  ;;  %v12965_v61 = vld [vmem:[#allocation2 + $0xb08] sm:$0xf0]  ;;  %v14169_v8 = vld [vmem:[#allocation2 + $0xb84] sm:$0xf] }
 0x57c   : > { %v12976_v34 = vor.u32 %v14155_v19, %v12973_v0 }
 0x57d   : > { %v7454_v12 = vadd.f32 %v7453_v11, %v7405_v59  ;;  %v7358_v1 = vadd.f32 %v7357_v23, %v7309_v27  ;;  %v12968_v59 = vor.u32 %v14153_v54, %v12965_v61  ;;  %v12837_v11 = vld [vmem:[#allocation2 + $0xa08] sm:$0xf0] }
 0x57e   : > { %7778 = vmatpush.bf16.msrb.mxu2 %v12976_v34  ;;  %v13029_v23 = vld [vmem:[#allocation2 + $0xb88] sm:$0xf0] }
 0x57f   : > { %13101 = vst [vmem:[%s15134_s11 + $0x260] sm:$0xff] %v7454_v12  ;;  %v13032_v27 = vor.u32 %v14169_v8, %v13029_v23  ;;  %v18903_v34 = vld [vmem:[#allocation15_spill] sm:$0xff]  ;;  %v18909_v8 = vld [vmem:[#allocation21_spill] sm:$0xff] }
 0x580   : > { %v13363_v23 = vld [vmem:[#allocation2 + $0xd60] sm:$0xf] }
 0x581   : > { %7828 = vmatpush.bf16.msrb.mxu3 %v13032_v27 }
 0x582   : > { %v7406_v46 = vpop.f32.mrf.mxu2  ;;  %v7311_v28 = vpop.f32.mrf.mxu0  ;;  %7779 = vmatpush.bf16.msrb.mxu2 %v12968_v59  ;;  %v18906_v59 = vld [vmem:[#allocation17_spill] sm:$0xff] }
 0x583   : > { %v7407_v44 = vadd.f32 %v7406_v46, %v7358_v1  ;;  %v7455_v3 = vpop.f32.mrf.mxu3  ;;  %v7360_v5 = vpop.f32.mrf.mxu1  ;;  %v7312_v20 = vadd.f32 %v7311_v28, %v16918_v51  ;;  %v12848_v51 = vor.u32 %v14123_v48, %v12845_v18  ;;  %v14137_v1 = vld [vmem:[#allocation2 + $0xa84] sm:$0xf]  ;;  %v12901_v46 = vld [vmem:[#allocation2 + $0xa88] sm:$0xf0]  ;;  %v18905_v18 = vld [vmem:[#allocation57_spill] sm:$0xff] }
 0x585   : > { %v7456_v33 = vadd.f32 %v7455_v3, %v7407_v44  ;;  %7506 = vmatmul.bf16.gmra.mxu0 %v16649_v38  ;;  %v7361_v36 = vadd.f32 %v7360_v5, %v7312_v20  ;;  %v12904_v44 = vor.u32 %v14137_v1, %v12901_v46 }
 0x586   : > { %7555 = vmatmul.bf16.gmra.mxu1 %v16651_v37  ;;  %7680 = vmatpush.bf16.msrb.mxu0 %v12848_v51 }
 0x587   : > { %13103 = vst [vmem:[%s15134_s11 + $0x270] sm:$0xff] %v7456_v33  ;;  %7604 = vmatmul.bf16.gmra.mxu2 %v16676_v55  ;;  %7730 = vmatpush.bf16.msrb.mxu1 %v12904_v44 }
 0x588   : > { %7653 = vmatmul.bf16.gmra.mxu3 %v16682_v47  ;;  %10274 = vmatpush.bf16.msra.mxu2 %v13372_v62  ;;  %v18911_v62 = vld [vmem:[#allocation18_spill] sm:$0xff] }
 0x58a   : > { %v7409_v15 = vpop.f32.mrf.mxu2  ;;  %v7313_v41 = vpop.f32.mrf.mxu0 }
 0x58b   : > { %v7410_v38 = vadd.f32 %v7409_v15, %v7361_v36  ;;  %v7458_v39 = vpop.f32.mrf.mxu3  ;;  %v7362_v37 = vpop.f32.mrf.mxu1  ;;  %v7314_v47 = vadd.f32 %v7313_v41, %v16933_v24  ;;  %v18901_v24 = vld [vmem:[#allocation19_spill] sm:$0xff]  ;;  %v18902_v36 = vld [vmem:[#allocation14_spill] sm:$0xff]  ;;  %v14248_v41 = vld [vmem:[#allocation2 + $0xdf4] sm:$0xf0] }
 0x58c   : > { %v13243_v15 = vld [vmem:[#allocation2 + $0xc70] sm:$0xf] }
 0x58d   : > { %v7459_v55 = vadd.f32 %v7458_v39, %v7410_v38  ;;  %v7363_v30 = vadd.f32 %v7362_v37, %v7314_v47  ;;  %v14200_v38 = vld [vmem:[#allocation2 + $0xc74] sm:$0xf0]  ;;  %v13435_v39 = vld [vmem:[#allocation2 + $0xdf0] sm:$0xf] }
 0x58f   : > { %13105 = vst [vmem:[%s15134_s11 + $0x280] sm:$0xff] %v7459_v55  ;;  %v13436_v55 = vor.u32 %v14248_v41, %v13435_v39  ;;  %v18914_v39 = vld [vmem:[#allocation28_spill] sm:$0xff] }
 0x590   : > { %v13355_v41 = vld [vmem:[#allocation2 + $0xd50] sm:$0xf] }
 0x591   : > { %10323 = vmatpush.bf16.msra.mxu3 %v13436_v55 }
 0x592   : > { %v7411_v13 = vpop.f32.mrf.mxu2  ;;  %v7316_v45 = vpop.f32.mrf.mxu0 }
 0x593   : > { %v7412_v53 = vadd.f32 %v7411_v13, %v7363_v30  ;;  %v7460_v63 = vpop.f32.mrf.mxu3  ;;  %v7365_v21 = vpop.f32.mrf.mxu1  ;;  %v7317_v52 = vadd.f32 %v7316_v45, %v16947_v25  ;;  %v12840_v25 = vor.u32 %v14121_v2, %v12837_v11  ;;  %v18907_v11 = vld [vmem:[#allocation55_spill] sm:$0xff] }
 0x595   : > { %v7461_v7 = vadd.f32 %v7460_v63, %v7412_v53  ;;  %7511 = vmatmul.bf16.gmra.mxu0 %v16673_v60  ;;  %v7366_v6 = vadd.f32 %v7365_v21, %v7317_v52  ;;  %v13307_v53 = vld [vmem:[#allocation2 + $0xcf0] sm:$0xf]  ;;  %v14216_v63 = vld [vmem:[#allocation2 + $0xcf4] sm:$0xf0] }
 0x596   : > { %7560 = vmatmul.bf16.gmra.mxu1 %v16678_v35  ;;  %7681 = vmatpush.bf16.msrb.mxu0 %v12840_v25  ;;  %v13308_v45 = vor.u32 %v14216_v63, %v13307_v53  ;;  %v13235_v25 = vld [vmem:[#allocation2 + $0xc60] sm:$0xf] }
 0x597   : > { %13107 = vst [vmem:[%s15134_s11 + $0x290] sm:$0xff] %v7461_v7  ;;  %7609 = vmatmul.bf16.gmra.mxu2 %v16701_v58 }
 0x598   : > { %7658 = vmatmul.bf16.gmra.mxu3 %v18901_v24  ;;  %10225 = vmatpush.bf16.msra.mxu1 %v13308_v45 }
 0x59a   : > { %v7414_v12 = vpop.f32.mrf.mxu2  ;;  %v7318_v26 = vpop.f32.mrf.mxu0 }
 0x59b   : > { %v7415_v60 = vadd.f32 %v7414_v12, %v7366_v6  ;;  %v7463_v4 = vpop.f32.mrf.mxu3  ;;  %v7367_v35 = vpop.f32.mrf.mxu1  ;;  %v7319_v10 = vadd.f32 %v7318_v26, %v16962_v56  ;;  %v18904_v56 = vld [vmem:[#allocation20_spill] sm:$0xff]  ;;  %v14230_v12 = vld [vmem:[#allocation2 + $0xd64] sm:$0xf0]  ;;  %v13427_v26 = vld [vmem:[#allocation2 + $0xde0] sm:$0xf] }
 0x59d   : > { %v7464_v58 = vadd.f32 %v7463_v4, %v7415_v60  ;;  %v7368_v3 = vadd.f32 %v7367_v35, %v7319_v10  ;;  %v13364_v60 = vor.u32 %v14230_v12, %v13363_v23  ;;  %v14198_v4 = vld [vmem:[#allocation2 + $0xc64] sm:$0xf0] }
 0x59e   : > { %v14246_v35 = vld [vmem:[#allocation2 + $0xde4] sm:$0xf0] }
 0x59f   : > { %13109 = vst [vmem:[%s15134_s11 + $0x2a0] sm:$0xff] %v7464_v58  ;;  %v13428_v10 = vor.u32 %v14246_v35, %v13427_v26  ;;  %10275 = vmatpush.bf16.msra.mxu2 %v13364_v60  ;;  %v18916_v60 = vld [vmem:[#allocation22_spill] sm:$0xff]  ;;  %v18918_v26 = vld [vmem:[#allocation32_spill] sm:$0xff] }
 0x5a0   : > { %v13347_v35 = vld [vmem:[#allocation2 + $0xd40] sm:$0xf] }
 0x5a1   : > { %10324 = vmatpush.bf16.msra.mxu3 %v13428_v10 }
 0x5a2   : > { %v7416_v28 = vpop.f32.mrf.mxu2  ;;  %v7321_v20 = vpop.f32.mrf.mxu0 }
 0x5a3   : > { %v7417_v5 = vadd.f32 %v7416_v28, %v7368_v3  ;;  %v7465_v33 = vpop.f32.mrf.mxu3  ;;  %v7370_v19 = vpop.f32.mrf.mxu1  ;;  %v7322_v48 = vadd.f32 %v7321_v20, %v16975_v9  ;;  %v13244_v9 = vor.u32 %v14200_v38, %v13243_v15  ;;  %v14214_v20 = vld [vmem:[#allocation2 + $0xce4] sm:$0xf0] }
 0x5a4   : > { %v18913_v38 = vld [vmem:[#allocation27_spill] sm:$0xff] }
 0x5a5   : > { %v7466_v0 = vadd.f32 %v7465_v33, %v7417_v5  ;;  %7516 = vmatmul.bf16.gmra.mxu0 %v18902_v36  ;;  %v7371_v51 = vadd.f32 %v7370_v19, %v7322_v48  ;;  %v13299_v33 = vld [vmem:[#allocation2 + $0xce0] sm:$0xf] }
 0x5a6   : > { %7565 = vmatmul.bf16.gmra.mxu1 %v18903_v34  ;;  %10176 = vmatpush.bf16.msra.mxu0 %v13244_v9  ;;  %v13300_v19 = vor.u32 %v14214_v20, %v13299_v33  ;;  %v13227_v9 = vld [vmem:[#allocation2 + $0xc50] sm:$0xf] }
 0x5a7   : > { %13111 = vst [vmem:[%s15134_s11 + $0x2b0] sm:$0xff] %v7466_v0  ;;  %7614 = vmatmul.bf16.gmra.mxu2 %v18904_v56 }
 0x5a8   : > { %7663 = vmatmul.bf16.gmra.mxu3 %v18905_v18  ;;  %10226 = vmatpush.bf16.msra.mxu1 %v13300_v19  ;;  %v18910_v18 = vld [vmem:[#allocation16_spill] sm:$0xff] }
 0x5aa   : > { %v7419_v37 = vpop.f32.mrf.mxu2  ;;  %v7323_v32 = vpop.f32.mrf.mxu0 }
 0x5ab   : > { %v7420_v47 = vadd.f32 %v7419_v37, %v7371_v51  ;;  %v7468_v17 = vpop.f32.mrf.mxu3  ;;  %v7372_v22 = vpop.f32.mrf.mxu1  ;;  %v7324_v13 = vadd.f32 %v7323_v32, %v16982_v49  ;;  %v18908_v49 = vld [vmem:[#allocation24_spill] sm:$0xff] }
 0x5ac   : > { %v14228_v37 = vld [vmem:[#allocation2 + $0xd54] sm:$0xf0] }
 0x5ad   : > { %v7469_v30 = vadd.f32 %v7468_v17, %v7420_v47  ;;  %v7373_v21 = vadd.f32 %v7372_v22, %v7324_v13  ;;  %v13356_v55 = vor.u32 %v14228_v37, %v13355_v41  ;;  %v14196_v47 = vld [vmem:[#allocation2 + $0xc54] sm:$0xf0]  ;;  %v13419_v17 = vld [vmem:[#allocation2 + $0xdd0] sm:$0xf] }
 0x5ae   : > { %v14244_v32 = vld [vmem:[#allocation2 + $0xdd4] sm:$0xf0] }
 0x5af   : > { %13113 = vst [vmem:[%s15134_s11 + $0x2c0] sm:$0xff] %v7469_v30  ;;  %v13228_v30 = vor.u32 %v14196_v47, %v13227_v9  ;;  %v13420_v13 = vor.u32 %v14244_v32, %v13419_v17  ;;  %10276 = vmatpush.bf16.msra.mxu2 %v13356_v55  ;;  %v18919_v9 = vld [vmem:[#allocation25_spill] sm:$0xff]  ;;  %v18920_v55 = vld [vmem:[#allocation26_spill] sm:$0xff]  ;;  %v18921_v47 = vld [vmem:[#allocation35_spill] sm:$0xff] }
 0x5b0   : > { %v18922_v17 = vld [vmem:[#allocation36_spill] sm:$0xff] }
 0x5b1   : > { %10325 = vmatpush.bf16.msra.mxu3 %v13420_v13  ;;  %v13339_v32 = vld [vmem:[#allocation2 + $0xd30] sm:$0xf] }
 0x5b2   : > { %v7421_v7 = vpop.f32.mrf.mxu2  ;;  %v7326_v54 = vpop.f32.mrf.mxu0 }
 0x5b3   : > { %v7422_v52 = vadd.f32 %v7421_v7, %v7373_v21  ;;  %v7470_v24 = vpop.f32.mrf.mxu3  ;;  %v7375_v61 = vpop.f32.mrf.mxu1  ;;  %v7327_v6 = vadd.f32 %v7326_v54, %v16992_v42  ;;  %v13236_v42 = vor.u32 %v14198_v4, %v13235_v25  ;;  %v14212_v54 = vld [vmem:[#allocation2 + $0xcd4] sm:$0xf0]  ;;  %v18917_v4 = vld [vmem:[#allocation31_spill] sm:$0xff] }
 0x5b5   : > { %v7471_v2 = vadd.f32 %v7470_v24, %v7422_v52  ;;  %7521 = vmatmul.bf16.gmra.mxu0 %v18906_v59  ;;  %v7376_v27 = vadd.f32 %v7375_v61, %v7327_v6  ;;  %v13291_v24 = vld [vmem:[#allocation2 + $0xcd0] sm:$0xf] }
 0x5b6   : > { %7570 = vmatmul.bf16.gmra.mxu1 %v18907_v11  ;;  %10177 = vmatpush.bf16.msra.mxu0 %v13236_v42  ;;  %v13219_v42 = vld [vmem:[#allocation2 + $0xc40] sm:$0xf] }
 0x5b7   : > { %13115 = vst [vmem:[%s15134_s11 + $0x2d0] sm:$0xff] %v7471_v2  ;;  %7619 = vmatmul.bf16.gmra.mxu2 %v18908_v49  ;;  %v13292_v2 = vor.u32 %v14212_v54, %v13291_v24 }
 0x5b8   : > { %7668 = vmatmul.bf16.gmra.mxu3 %v18909_v8 }
 0x5b9   : > { %10227 = vmatpush.bf16.msra.mxu1 %v13292_v2 }
 0x5ba   : > { %v7424_v58 = vpop.f32.mrf.mxu2  ;;  %v7328_v44 = vpop.f32.mrf.mxu0  ;;  %10178 = vmatpush.bf16.msra.mxu0 %v13228_v30  ;;  %v13211_v30 = vld [vmem:[#allocation2 + $0xc30] sm:$0xf] }
 0x5bb   : > { %v7425_v1 = vadd.f32 %v7424_v58, %v7376_v27  ;;  %v7473_v46 = vpop.f32.mrf.mxu3  ;;  %v7377_v3 = vpop.f32.mrf.mxu1  ;;  %v7329_v5 = vadd.f32 %v7328_v44, %v16994_v14  ;;  %v18912_v14 = vld [vmem:[#allocation23_spill] sm:$0xff]  ;;  %v18915_v27 = vld [vmem:[#allocation62_spill] sm:$0xff] }
 0x5bc   : > { %v14226_v58 = vld [vmem:[#allocation2 + $0xd44] sm:$0xf0] }
 0x5bd   : > { %v7474_v28 = vadd.f32 %v7473_v46, %v7425_v1  ;;  %v7378_v0 = vadd.f32 %v7377_v3, %v7329_v5  ;;  %v13348_v10 = vor.u32 %v14226_v58, %v13347_v35  ;;  %v14194_v1 = vld [vmem:[#allocation2 + $0xc44] sm:$0xf0]  ;;  %v13411_v46 = vld [vmem:[#allocation2 + $0xdc0] sm:$0xf] }
 0x5be   : > { %v14242_v44 = vld [vmem:[#allocation2 + $0xdc4] sm:$0xf0] }
 0x5bf   : > { %13117 = vst [vmem:[%s15134_s11 + $0x2e0] sm:$0xff] %v7474_v28  ;;  %v13220_v28 = vor.u32 %v14194_v1, %v13219_v42  ;;  %v13412_v5 = vor.u32 %v14242_v44, %v13411_v46  ;;  %10277 = vmatpush.bf16.msra.mxu2 %v13348_v10  ;;  %v18923_v1 = vld [vmem:[#allocation29_spill] sm:$0xff]  ;;  %v18924_v46 = vld [vmem:[#allocation30_spill] sm:$0xff]  ;;  %v18925_v44 = vld [vmem:[#allocation39_spill] sm:$0xff] }
 0x5c1   : > { %10179 = vmatpush.bf16.msra.mxu0 %v13220_v28  ;;  %10326 = vmatpush.bf16.msra.mxu3 %v13412_v5  ;;  %v13331_v28 = vld [vmem:[#allocation2 + $0xd20] sm:$0xf]  ;;  %v14222_v5 = vld [vmem:[#allocation2 + $0xd24] sm:$0xf0] }
 0x5c2   : > { %v7426_v48 = vpop.f32.mrf.mxu2  ;;  %v7487_v56 = vpop.f32.mrf.mxu0 }
 0x5c3   : > { %v7427_v36 = vadd.f32 %v7426_v48, %v7378_v0  ;;  %v7475_v34 = vpop.f32.mrf.mxu3  ;;  %v7488_v50 = vadd.f32 %v7487_v56, %v18910_v18  ;;  %v7536_v29 = vpop.f32.mrf.mxu1  ;;  %v14210_v56 = vld [vmem:[#allocation2 + $0xcc4] sm:$0xf0] }
 0x5c5   : > { %v7476_v15 = vadd.f32 %v7475_v34, %v7427_v36  ;;  %v7537_v51 = vadd.f32 %v7536_v29, %v7488_v50  ;;  %7682 = vmatmul.bf16.vlgmr.msrb.gmra.mxu0 %v18911_v62  ;;  %v13283_v34 = vld [vmem:[#allocation2 + $0xcc0] sm:$0xf] }
 0x5c6   : > { %7731 = vmatmul.bf16.vlgmr.msrb.gmra.mxu1 %v18912_v14  ;;  %v13284_v29 = vor.u32 %v14210_v56, %v13283_v34 }
 0x5c7   : > { %13119 = vst [vmem:[%s15134_s11 + $0x2f0] sm:$0xff] %v7476_v15  ;;  %7780 = vmatmul.bf16.vlgmr.msrb.gmra.mxu2 %v18913_v38 }
 0x5c8   : > { %7829 = vmatmul.bf16.vlgmr.msrb.gmra.mxu3 %v18914_v39  ;;  %10228 = vmatpush.bf16.msra.mxu1 %v13284_v29 }
 0x5ca   : > { %v7585_v22 = vpop.f32.mrf.mxu2  ;;  %v7489_v45 = vpop.f32.mrf.mxu0 }
 0x5cb   : > { %v7586_v53 = vadd.f32 %v7585_v22, %v7537_v51  ;;  %v7634_v63 = vpop.f32.mrf.mxu3  ;;  %v7490_v21 = vadd.f32 %v7489_v45, %v18910_v18  ;;  %v7538_v7 = vpop.f32.mrf.mxu1  ;;  %v14224_v22 = vld [vmem:[#allocation2 + $0xd34] sm:$0xf0] }
 0x5cc   : > { %v13340_v13 = vor.u32 %v14224_v22, %v13339_v32  ;;  %v14240_v45 = vld [vmem:[#allocation2 + $0xdb4] sm:$0xf0] }
 0x5cd   : > { %v17066_v52 = vadd.f32 %v7634_v63, %v7586_v53  ;;  %v7539_v61 = vadd.f32 %v7538_v7, %v7490_v21  ;;  %v14192_v53 = vld [vmem:[#allocation2 + $0xc34] sm:$0xf0]  ;;  %v13403_v63 = vld [vmem:[#allocation2 + $0xdb0] sm:$0xf] }
 0x5ce   : > { %v13212_v7 = vor.u32 %v14192_v53, %v13211_v30  ;;  %v13404_v24 = vor.u32 %v14240_v45, %v13403_v63  ;;  %10278 = vmatpush.bf16.msra.mxu2 %v13340_v13  ;;  %v18927_v45 = vld [vmem:[#allocation33_spill] sm:$0xff] }
 0x5d0   : > { %10180 = vmatpush.bf16.msra.mxu0 %v13212_v7  ;;  %10327 = vmatpush.bf16.msra.mxu3 %v13404_v24  ;;  %v18929_v7 = vld [vmem:[#allocation43_spill] sm:$0xff]  ;;  %v18930_v24 = vld [vmem:[#allocation44_spill] sm:$0xff] }
 0x5d2   : > { %v7587_v6 = vpop.f32.mrf.mxu2  ;;  %v7492_v49 = vpop.f32.mrf.mxu0 }
 0x5d3   : > { %v7588_v59 = vadd.f32 %v7587_v6, %v7539_v61  ;;  %v7636_v11 = vpop.f32.mrf.mxu3  ;;  %v7493_v8 = vadd.f32 %v7492_v49, %v18910_v18  ;;  %v7541_v23 = vpop.f32.mrf.mxu1  ;;  %v13275_v49 = vld [vmem:[#allocation2 + $0xcb0] sm:$0xf] }
 0x5d5   : > { %v17069_v12 = vadd.f32 %v7636_v11, %v7588_v59  ;;  %v7542_v25 = vadd.f32 %v7541_v23, %v7493_v8  ;;  %7687 = vmatmul.bf16.gmra.mxu0 %v18915_v27  ;;  %v14208_v8 = vld [vmem:[#allocation2 + $0xcb4] sm:$0xf0] }
 0x5d6   : > { %7736 = vmatmul.bf16.gmra.mxu1 %v18916_v60 }
 0x5d7   : > { %7785 = vmatmul.bf16.gmra.mxu2 %v18917_v4 }
 0x5d8   : > { %7834 = vmatmul.bf16.gmra.mxu3 %v18918_v26 }
 0x5da   : > { %v7590_v3 = vpop.f32.mrf.mxu2  ;;  %v7494_v19 = vpop.f32.mrf.mxu0 }
 0x5db   : > { %v7591_v33 = vadd.f32 %v7590_v3, %v7542_v25  ;;  %v7639_v20 = vpop.f32.mrf.mxu3  ;;  %v7495_v0 = vadd.f32 %v7494_v19, %v18910_v18  ;;  %v7543_v48 = vpop.f32.mrf.mxu1  ;;  %v13276_v25 = vor.u32 %v14208_v8, %v13275_v49  ;;  %v18926_v3 = vld [vmem:[#allocation40_spill] sm:$0xff]  ;;  %v14190_v19 = vld [vmem:[#allocation2 + $0xc24] sm:$0xf0] }
 0x5dc   : > { %v13387_v49 = vld [vmem:[#allocation2 + $0xd90] sm:$0xf]  ;;  %v14236_v8 = vld [vmem:[#allocation2 + $0xd94] sm:$0xf0] }
 0x5dd   : > { %v17076_v36 = vadd.f32 %v7639_v20, %v7591_v33  ;;  %v7544_v50 = vadd.f32 %v7543_v48, %v7495_v0  ;;  %10229 = vmatpush.bf16.msra.mxu1 %v13276_v25  ;;  %v13203_v33 = vld [vmem:[#allocation2 + $0xc20] sm:$0xf]  ;;  %v13332_v20 = vor.u32 %v14222_v5, %v13331_v28  ;;  %v14238_v48 = vld [vmem:[#allocation2 + $0xda4] sm:$0xf0] }
 0x5de   : > { %v13395_v0 = vld [vmem:[#allocation2 + $0xda0] sm:$0xf]  ;;  %v13204_v56 = vor.u32 %v14190_v19, %v13203_v33 }
 0x5df   : > { %10279 = vmatpush.bf16.msra.mxu2 %v13332_v20 }
 0x5e0   : > { %10181 = vmatpush.bf16.msra.mxu0 %v13204_v56  ;;  %v13145_v56 = vld [vmem:[%s14696_s7 + $0x18] sm:$0xee] }
 0x5e2   : > { %v7592_v15 = vpop.f32.mrf.mxu2  ;;  %v7497_v14 = vpop.f32.mrf.mxu0 }
 0x5e3   : > { %v7593_v51 = vadd.f32 %v7592_v15, %v7544_v50  ;;  %v7641_v62 = vpop.f32.mrf.mxu3  ;;  %v7498_v38 = vadd.f32 %v7497_v14, %v18910_v18  ;;  %v7546_v39 = vpop.f32.mrf.mxu1  ;;  %v13396_v50 = vor.u32 %v14238_v48, %v13395_v0 }
 0x5e5   : > { %v17079_v41 = vadd.f32 %v7641_v62, %v7593_v51  ;;  %v7547_v37 = vadd.f32 %v7546_v39, %v7498_v38  ;;  %7692 = vmatmul.bf16.gmra.mxu0 %v18919_v9  ;;  %10328 = vmatpush.bf16.msra.mxu3 %v13396_v50  ;;  %v13267_v39 = vld [vmem:[#allocation2 + $0xca0] sm:$0xf] }
 0x5e6   : > { %7741 = vmatmul.bf16.gmra.mxu1 %v18920_v55 }
 0x5e7   : > { %7790 = vmatmul.bf16.gmra.mxu2 %v18921_v47 }
 0x5e8   : > { %7839 = vmatmul.bf16.gmra.mxu3 %v18922_v17 }
 0x5ea   : > { %v7595_v21 = vpop.f32.mrf.mxu2  ;;  %v7499_v2 = vpop.f32.mrf.mxu0 }
 0x5eb   : > { %v7596_v54 = vadd.f32 %v7595_v21, %v7547_v37  ;;  %v7644_v61 = vpop.f32.mrf.mxu3  ;;  %v7500_v6 = vadd.f32 %v7499_v2, %v18910_v18  ;;  %v7548_v59 = vpop.f32.mrf.mxu1  ;;  %v14206_v37 = vld [vmem:[#allocation2 + $0xca4] sm:$0xf0]  ;;  %v13195_v2 = vld [vmem:[#allocation2 + $0xc10] sm:$0xf] }
 0x5ec   : > { %v13268_v55 = vor.u32 %v14206_v37, %v13267_v39  ;;  %v18928_v21 = vld [vmem:[#allocation34_spill] sm:$0xff]  ;;  %v18933_v39 = vld [vmem:[#allocation47_spill] sm:$0xff] }
 0x5ed   : > { %v17086_v11 = vadd.f32 %v7644_v61, %v7596_v54  ;;  %v7549_v23 = vadd.f32 %v7548_v59, %v7500_v6  ;;  %v13323_v54 = vld [vmem:[#allocation2 + $0xd10] sm:$0xf]  ;;  %v14220_v61 = vld [vmem:[#allocation2 + $0xd14] sm:$0xf0]  ;;  %v13123_v37 = vld [vmem:[%s14696_s7 + $0x28] sm:$0x11] }
 0x5ee   : > { %10230 = vmatpush.bf16.msra.mxu1 %v13268_v55  ;;  %v13324_v6 = vor.u32 %v14220_v61, %v13323_v54  ;;  %v14188_v59 = vld [vmem:[#allocation2 + $0xc14] sm:$0xf0] }
 0x5ef   : > { %v13196_v25 = vor.u32 %v14188_v59, %v13195_v2  ;;  %v18934_v55 = vld [vmem:[#allocation48_spill] sm:$0xff] }
 0x5f0   : > { %10280 = vmatpush.bf16.msra.mxu2 %v13324_v6 }
 0x5f1   : > { %10182 = vmatpush.bf16.msra.mxu0 %v13196_v25 }
 0x5f2   : > { %v7597_v27 = vpop.f32.mrf.mxu2  ;;  %v7502_v26 = vpop.f32.mrf.mxu0 }
 0x5f3   : > { %v7598_v60 = vadd.f32 %v7597_v27, %v7549_v23  ;;  %v7646_v4 = vpop.f32.mrf.mxu3  ;;  %v7503_v35 = vadd.f32 %v7502_v26, %v18910_v18  ;;  %v7551_v58 = vpop.f32.mrf.mxu1  ;;  %v13388_v27 = vor.u32 %v14236_v8, %v13387_v49 }
 0x5f5   : > { %v17089_v42 = vadd.f32 %v7646_v4, %v7598_v60  ;;  %v7552_v10 = vadd.f32 %v7551_v58, %v7503_v35  ;;  %7697 = vmatmul.bf16.gmra.mxu0 %v18923_v1  ;;  %10329 = vmatpush.bf16.msra.mxu3 %v13388_v27  ;;  %v13259_v1 = vld [vmem:[#allocation2 + $0xc90] sm:$0xf] }
 0x5f6   : > { %7746 = vmatmul.bf16.gmra.mxu1 %v18924_v46  ;;  %v14204_v46 = vld [vmem:[#allocation2 + $0xc94] sm:$0xf0] }
 0x5f7   : > { %7795 = vmatmul.bf16.gmra.mxu2 %v18925_v44 }
 0x5f8   : > { %7844 = vmatmul.bf16.gmra.mxu3 %v18926_v3  ;;  %v13260_v3 = vor.u32 %v14204_v46, %v13259_v1  ;;  %v13251_v46 = vld [vmem:[#allocation2 + $0xc80] sm:$0xf] }
 0x5fa   : > { %v7600_v34 = vpop.f32.mrf.mxu2  ;;  %v7504_v51 = vpop.f32.mrf.mxu0  ;;  %10231 = vmatpush.bf16.msra.mxu1 %v13260_v3 }
 0x5fb   : > { %v7601_v29 = vadd.f32 %v7600_v34, %v7552_v10  ;;  %v7649_v15 = vpop.f32.mrf.mxu3  ;;  %v7505_v62 = vadd.f32 %v7504_v51, %v18910_v18  ;;  %v7553_v14 = vpop.f32.mrf.mxu1  ;;  %v13122_v34 = vld [vmem:[%s14696_s7 + $0x20] sm:$0xff]  ;;  %v8079_v51 = vunpack.c.l.b16 %v13145_v56 }
 0x5fd   : > { %v17096_v38 = vadd.f32 %v7649_v15, %v7601_v29  ;;  %v7554_v9 = vadd.f32 %v7553_v14, %v7505_v62  ;;  %v18931_v29 = vld [vmem:[#allocation37_spill] sm:$0xff]  ;;  %v7993_v15 = vunpack.c.l.b16 %v13122_v34  ;;  %v7994_v62 = vunpack.c.h.b16 %v13122_v34  ;;  %v18932_v14 = vld [vmem:[#allocation38_spill] sm:$0xff] }
 0x602   : > { %v7602_v47 = vpop.f32.mrf.mxu2  ;;  %v7507_v22 = vpop.f32.mrf.mxu0 }
 0x603   : > { %v7603_v17 = vadd.f32 %v7602_v47, %v7554_v9  ;;  %v7651_v32 = vpop.f32.mrf.mxu3  ;;  %v7508_v30 = vadd.f32 %v7507_v22, %v18910_v18  ;;  %v7556_v13 = vpop.f32.mrf.mxu1  ;;  %v8080_v9 = vunpack.c.h.b16 %v13145_v56  ;;  %v13315_v47 = vld [vmem:[#allocation2 + $0xd00] sm:$0xf]  ;;  %v7995_v22 = vunpack.c.l.b16 %v13123_v37 }
 0x605   : > { %v17099_v53 = vadd.f32 %v7651_v32, %v7603_v17  ;;  %v7557_v63 = vadd.f32 %v7556_v13, %v7508_v30  ;;  %7702 = vmatmul.bf16.gmra.mxu0 %v18927_v45  ;;  %v14218_v17 = vld [vmem:[#allocation2 + $0xd04] sm:$0xf0]  ;;  %v13187_v32 = vld [vmem:[#allocation2 + $0xc00] sm:$0xf]  ;;  %v8095_v30 = vpack.c.b16 %v7993_v15, %v8079_v51  ;;  %v7996_v13 = vunpack.c.h.b16 %v13123_v37 }
 0x606   : > { %7751 = vmatmul.bf16.gmra.mxu1 %v18928_v21  ;;  %v14186_v45 = vld [vmem:[#allocation2 + $0xc04] sm:$0xf0]  ;;  %v13379_v21 = vld [vmem:[#allocation2 + $0xd80] sm:$0xf]  ;;  %v17118_v6 = vpack.c.b16 %v7995_v22, %v7995_v22 }
 0x607   : > { %7800 = vmatmul.bf16.gmra.mxu2 %v18929_v7  ;;  %v14234_v7 = vld [vmem:[#allocation2 + $0xd84] sm:$0xf0]  ;;  %v13188_v61 = vor.u32 %v14186_v45, %v13187_v32  ;;  %v17120_v59 = vpack.c.b16 %v7996_v13, %v7996_v13  ;;  %v8114_v25 = vshll.u32 %v8095_v30, 16  ;;  %v17146_v13 = vld [vmem:[%s14696_s7 + $0x38] sm:$0xff] }
 0x608   : > { %7849 = vmatmul.bf16.gmra.mxu3 %v18930_v24  ;;  %v8096_v24 = vpack.c.b16 %v7994_v62, %v8080_v9  ;;  %v13380_v2 = vor.u32 %v14234_v7, %v13379_v21  ;;  %v18935_v21 = vld [vmem:[#allocation41_spill] sm:$0xff]  ;;  %v8135_v7 = vshrl.u32 %v17118_v6, 16 }
 0x609   : > { %10183 = vmatpush.bf16.msra.mxu0 %v13188_v61  ;;  %v18937_v61 = vld [vmem:[#allocation45_spill] sm:$0xff] }
 0x60a   : > { %v7605_v23 = vpop.f32.mrf.mxu2  ;;  %v7509_v26 = vpop.f32.mrf.mxu0  ;;  %10330 = vmatpush.bf16.msra.mxu3 %v13380_v2 }
 0x60b   : > { %v7606_v60 = vadd.f32 %v7605_v23, %v7557_v63  ;;  %v7654_v4 = vpop.f32.mrf.mxu3  ;;  %v7510_v35 = vadd.f32 %v7509_v26, %v18910_v18  ;;  %v7558_v58 = vpop.f32.mrf.mxu1  ;;  %v13316_v63 = vor.u32 %v14218_v17, %v13315_v47  ;;  %v8119_v26 = vshll.u32 %v17118_v6, 16  ;;  %v14296_v6 = vld [vmem:[#allocation2 + $0xf74] sm:$0xf0] }
 0x60d   : > { %v17106_v10 = vadd.f32 %v7654_v4, %v7606_v60  ;;  %v7559_v44 = vadd.f32 %v7558_v58, %v7510_v35  ;;  %10281 = vmatpush.bf16.msra.mxu2 %v13316_v63  ;;  %v13121_v4 = vld [vmem:[%s14696_s7 + $0x18] sm:$0xff]  ;;  %v8112_v35 = vshrl.u32 %v8095_v30, 16  ;;  %v8126_v58 = vshll.u32 %v8096_v24, 16  ;;  %v13146_v63 = vld [vmem:[%s14696_s7 + $0x30] sm:$0xee] }
 0x60e   : > { %v7991_v3 = vunpack.c.l.b16 %v13121_v4  ;;  %v17130_v34 = vrot.slane %v8119_v26, 1  ;;  %v7999_v26 = vunpack.c.l.b16 %v17146_v13 }
 0x612   : > { %v7607_v28 = vpop.f32.mrf.mxu2  ;;  %v7512_v20 = vpop.f32.mrf.mxu0 }
 0x613   : > { %v7608_v5 = vadd.f32 %v7607_v28, %v7559_v44  ;;  %v7656_v33 = vpop.f32.mrf.mxu3  ;;  %v7513_v19 = vadd.f32 %v7512_v20, %v18910_v18  ;;  %v7561_v0 = vpop.f32.mrf.mxu1  ;;  %v14202_v44 = vld [vmem:[#allocation2 + $0xc84] sm:$0xf0]  ;;  %v7992_v28 = vunpack.c.h.b16 %v13121_v4  ;;  %v13499_v4 = vld [vmem:[#allocation2 + $0xe70] sm:$0xf] }
 0x614   : > { %v13252_v20 = vor.u32 %v14202_v44, %v13251_v46 }
 0x615   : > { %v17109_v48 = vadd.f32 %v7656_v33, %v7608_v5  ;;  %v7562_v50 = vadd.f32 %v7561_v0, %v7513_v19  ;;  %7707 = vmatmul.bf16.gmra.mxu0 %v18931_v29  ;;  %v8116_v5 = vrot.slane %v8114_v25, 1  ;;  %v8131_v19 = vshll.u32 %v17120_v59, 16  ;;  %v13126_v25 = vld [vmem:[%s14696_s7 + $0x40] sm:$0x11] }
 0x616   : > { %7756 = vmatmul.bf16.gmra.mxu1 %v18932_v14  ;;  %v17128_v0 = vpack.c.b16 %v7993_v15, %v7991_v3  ;;  %v8128_v29 = vrot.slane %v8126_v58, 1  ;;  %v17132_v51 = vpack.c.b16 %v7994_v62, %v7992_v28  ;;  %v14264_v3 = vld [vmem:[#allocation2 + $0xe74] sm:$0xf0]  ;;  %v13691_v28 = vld [vmem:[#allocation2 + $0xff0] sm:$0xf] }
 0x617   : > { %7805 = vmatmul.bf16.gmra.mxu2 %v18933_v39  ;;  %v8117_v56 = vor.u32 %v8116_v5, %v8112_v35  ;;  %10232 = vmatpush.bf16.msra.mxu1 %v13252_v20  ;;  %v17134_v39 = vrot.slane %v8131_v19, 1  ;;  %v8081_v35 = vunpack.c.l.b16 %v13146_v63  ;;  %v8001_v5 = vunpack.c.l.b16 %v13126_v25 }
 0x618   : > { %7854 = vmatmul.bf16.gmra.mxu3 %v18934_v55  ;;  %v8706_v47 = vshll.u32 %v17128_v0, 16  ;;  %v8714_v62 = vshll.u32 %v17132_v51, 16  ;;  %v8704_v2 = vshrl.u32 %v17128_v0, 16  ;;  %v8712_v58 = vshrl.u32 %v17132_v51, 16  ;;  %v14312_v0 = vld [vmem:[#allocation2 + $0xff4] sm:$0xf0] }
 0x619   : > { %v17139_v15 = vsel %vm393_vm0, %v8117_v56, %v17130_v34  ;;  %v13500_v19 = vor.u32 %v14264_v3, %v13499_v4  ;;  %v8000_v56 = vunpack.c.h.b16 %v17146_v13  ;;  %v13692_v51 = vor.u32 %v14312_v0, %v13691_v28 }
 0x61a   : > { %v7610_v54 = vpop.f32.mrf.mxu2  ;;  %v7514_v23 = vpop.f32.mrf.mxu0  ;;  %v8716_v46 = vrot.slane %v8714_v62, 1  ;;  %v8720_v20 = vshrl.u32 %v17139_v15, 16  ;;  %v17171_v13 = vpack.c.b16 %v8001_v5, %v8001_v5 }
 0x61b   : > { %v7611_v49 = vadd.f32 %v7610_v54, %v7562_v50  ;;  %v7659_v8 = vpop.f32.mrf.mxu3  ;;  %v7515_v27 = vadd.f32 %v7514_v23, %v18910_v18  ;;  %v7563_v60 = vpop.f32.mrf.mxu1  ;;  %v8124_v50 = vshrl.u32 %v8096_v24, 16  ;;  %v8722_v24 = vshll.u32 %v17139_v15, 16  ;;  %v18936_v54 = vld [vmem:[#allocation42_spill] sm:$0xff]  ;;  %10372 = vmatpush.bf16.msrb.mxu0 %v13500_v19  ;;  %v13124_v15 = vld [vmem:[%s14696_s7 + $0x30] sm:$0xff]  ;;  %10519 = vmatpush.bf16.msrb.mxu3 %v13692_v51 }
 0x61c   : > { %v8137_v23 = vshrl.u32 %v17120_v59, 16  ;;  %v8717_v3 = vor.u32 %v8716_v46, %v8712_v58  ;;  %v8147_v5 = vshll.u32 %v17171_v13, 16 }
 0x61d   : > { %v17125_v1 = vadd.f32 %v7659_v8, %v7611_v49  ;;  %v7564_v33 = vadd.f32 %v7563_v60, %v7515_v27  ;;  %v8129_v17 = vor.u32 %v8128_v29, %v8124_v50  ;;  %v8708_v49 = vrot.slane %v8706_v47, 1  ;;  %v18938_v27 = vld [vmem:[#allocation46_spill] sm:$0xff]  ;;  %v13627_v60 = vld [vmem:[#allocation2 + $0xf70] sm:$0xf] }
 0x61e   : > { %v13628_v44 = vor.u32 %v14296_v6, %v13627_v60  ;;  %v13563_v6 = vld [vmem:[#allocation2 + $0xef0] sm:$0xf] }
 0x61f   : > { %v17157_v8 = vsel %vm393_vm0, %v8129_v17, %v17134_v39  ;;  %v8724_v17 = vrot.slane %v8722_v24, 1  ;;  %v14280_v24 = vld [vmem:[#allocation2 + $0xef4] sm:$0xf0] }
 0x620   : > { %v8734_v59 = vshll.u32 %v17157_v8, 16  ;;  %10470 = vmatpush.bf16.msrb.mxu2 %v13628_v44 }
 0x621   : > { %v8725_v28 = vor.u32 %v8724_v17, %v8720_v20 }
 0x622   : > { %v7612_v14 = vpop.f32.mrf.mxu2  ;;  %v7517_v55 = vpop.f32.mrf.mxu0  ;;  %v8736_v60 = vrot.slane %v8734_v59, 1 }
 0x623   : > { %v7613_v37 = vadd.f32 %v7612_v14, %v7564_v33  ;;  %v7661_v9 = vpop.f32.mrf.mxu3  ;;  %v7518_v32 = vadd.f32 %v7517_v55, %v18910_v18  ;;  %v7566_v22 = vpop.f32.mrf.mxu1 }
 0x625   : > { %v17142_v30 = vadd.f32 %v7661_v9, %v7613_v37  ;;  %v7567_v45 = vadd.f32 %v7566_v22, %v7518_v32  ;;  %7712 = vmatmul.bf16.gmra.mxu0 %v18935_v21  ;;  %v8097_v37 = vpack.c.b16 %v7999_v26, %v8081_v35  ;;  %v8002_v9 = vunpack.c.h.b16 %v13126_v25 }
 0x626   : > { %7761 = vmatmul.bf16.gmra.mxu1 %v18936_v54  ;;  %v8727_v32 = vshll.u32 %v8135_v7, 16  ;;  %v8082_v22 = vunpack.c.h.b16 %v13146_v63  ;;  %v7997_v21 = vunpack.c.l.b16 %v13124_v15  ;;  %v8709_v63 = vor.u32 %v8708_v49, %v8704_v2 }
 0x627   : > { %7810 = vmatmul.bf16.gmra.mxu2 %v18937_v61  ;;  %v8732_v61 = vshrl.u32 %v17157_v8, 16  ;;  %v17176_v7 = vpack.c.b16 %v8002_v9, %v8002_v9  ;;  %v8142_v4 = vshll.u32 %v8097_v37, 16  ;;  %v13564_v35 = vor.u32 %v14280_v24, %v13563_v6  ;;  %v13491_v6 = vld [vmem:[#allocation2 + $0xe60] sm:$0xf] }
 0x628   : > { %7859 = vmatmul.bf16.gmra.mxu3 %v18938_v27  ;;  %v8739_v27 = vshll.u32 %v8137_v23, 16  ;;  %v17174_v25 = vpack.c.b16 %v8000_v56, %v8082_v22  ;;  %v17178_v44 = vpack.c.b16 %v7999_v26, %v7997_v21  ;;  %v8729_v23 = vrot.slane %v8727_v32, 1  ;;  %v17203_v22 = vld [vmem:[%s14696_s7 + $0x48] sm:$0xee] }
 0x629   : > { %10421 = vmatpush.bf16.msrb.mxu1 %v13564_v35  ;;  %v8140_v19 = vshrl.u32 %v8097_v37, 16  ;;  %v8144_v59 = vrot.slane %v8142_v4, 1  ;;  %v8737_v2 = vor.u32 %v8736_v60, %v8732_v61  ;;  %v8159_v26 = vshll.u32 %v17176_v7, 16  ;;  %v14294_v60 = vld [vmem:[#allocation2 + $0xf64] sm:$0xf0] }
 0x62a   : > { %v7615_v33 = vpop.f32.mrf.mxu2  ;;  %v7519_v14 = vpop.f32.mrf.mxu0  ;;  %v8154_v0 = vshll.u32 %v17174_v25, 16  ;;  %v8741_v49 = vrot.slane %v8739_v27, 1  ;;  %v17188_v20 = vsel %vm393_vm0, %v8709_v63, %v17130_v34  ;;  %v17193_v37 = vrot.slane %v8147_v5, 1  ;;  %v17200_v34 = vld [vmem:[%s14696_s7 + $0x50] sm:$0xff]  ;;  %v13683_v5 = vld [vmem:[#allocation2 + $0xfe0] sm:$0xf] }
 0x62b   : > { %v7616_v50 = vadd.f32 %v7615_v33, %v7567_v45  ;;  %v7664_v29 = vpop.f32.mrf.mxu3  ;;  %v7520_v55 = vadd.f32 %v7519_v14, %v18910_v18  ;;  %v7568_v47 = vpop.f32.mrf.mxu1  ;;  %v7998_v45 = vunpack.c.h.b16 %v13124_v15  ;;  %v8145_v17 = vor.u32 %v8144_v59, %v8140_v19  ;;  %v14310_v59 = vld [vmem:[#allocation2 + $0xfe4] sm:$0xf0] }
 0x62c   : > { %v8163_v32 = vshrl.u32 %v17171_v13, 16  ;;  %v8156_v15 = vrot.slane %v8154_v0, 1  ;;  %v17209_v21 = vsel %vm393_vm0, %v8717_v3, %v17134_v39  ;;  %v17217_v13 = vrot.slane %v8159_v26, 1  ;;  %v13619_v39 = vld [vmem:[#allocation2 + $0xf60] sm:$0xf]  ;;  %v13127_v26 = vld [vmem:[%s14696_s7 + $0x48] sm:$0xff] }
 0x62d   : > { %v17169_v62 = vadd.f32 %v7664_v29, %v7616_v50  ;;  %v7569_v54 = vadd.f32 %v7568_v47, %v7520_v55  ;;  %v17181_v33 = vpack.c.b16 %v8000_v56, %v7998_v45  ;;  %v8786_v56 = vshll.u32 %v17178_v44, 16 }
 0x62e   : > { %v8152_v55 = vshrl.u32 %v17174_v25, 16  ;;  %v17212_v45 = vsel %vm393_vm0, %v8725_v28, %v8729_v23  ;;  %v8784_v61 = vshrl.u32 %v17178_v44, 16  ;;  %v8165_v27 = vshrl.u32 %v17176_v7, 16  ;;  %v14262_v7 = vld [vmem:[#allocation2 + $0xe64] sm:$0xf0] }
 0x62f   : > { %v8794_v9 = vshll.u32 %v17181_v33, 16  ;;  %v8005_v24 = vunpack.c.l.b16 %v17200_v34  ;;  %v8083_v63 = vunpack.c.l.b16 %v17203_v22  ;;  %v17230_v44 = vshll.u32 %v8163_v32, 16 }
 0x630   : > { %v8157_v3 = vor.u32 %v8156_v15, %v8152_v55  ;;  %v13620_v28 = vor.u32 %v14294_v60, %v13619_v39  ;;  %v13492_v19 = vor.u32 %v14262_v7, %v13491_v6  ;;  %v8006_v55 = vunpack.c.h.b16 %v17200_v34 }
 0x631   : > { %v8796_v25 = vrot.slane %v8794_v9, 1  ;;  %v8003_v9 = vunpack.c.l.b16 %v13127_v26  ;;  %v8004_v15 = vunpack.c.h.b16 %v13127_v26  ;;  %v8084_v60 = vunpack.c.h.b16 %v17203_v22 }
 0x632   : > { %v7617_v8 = vpop.f32.mrf.mxu2  ;;  %v7522_v14 = vpop.f32.mrf.mxu0  ;;  %10471 = vmatpush.bf16.msrb.mxu2 %v13620_v28  ;;  %10373 = vmatpush.bf16.msrb.mxu0 %v13492_v19 }
 0x633   : > { %v7618_v50 = vadd.f32 %v7617_v8, %v7569_v54  ;;  %v7666_v29 = vpop.f32.mrf.mxu3  ;;  %v7523_v58 = vadd.f32 %v7522_v14, %v18910_v18  ;;  %v7571_v46 = vpop.f32.mrf.mxu1  ;;  %v13129_v54 = vld [vmem:[%s14696_s7 + $0x58] sm:$0x11]  ;;  %v17250_v34 = vpack.c.b16 %v8005_v24, %v8003_v9  ;;  %v17259_v22 = vpack.c.b16 %v8006_v55, %v8004_v15 }
 0x634   : > { %v8007_v4 = vunpack.c.l.b16 %v13129_v54 }
 0x635   : > { %v17191_v51 = vadd.f32 %v7666_v29, %v7618_v50  ;;  %v7572_v47 = vadd.f32 %v7571_v46, %v7523_v58  ;;  %7717 = vmatmul.bf16.gmra.mxu0 %v16954_v57  ;;  %v17215_v57 = vsel %vm393_vm0, %v8737_v2, %v8741_v49  ;;  %v8008_v50 = vunpack.c.h.b16 %v13129_v54 }
 0x636   : > { %7766 = vmatmul.bf16.gmra.mxu1 %v16956_v16  ;;  %v8788_v16 = vrot.slane %v8786_v56, 1  ;;  %v17232_v0 = vpack.c.b16 %v8007_v4, %v8007_v4  ;;  %v13684_v49 = vor.u32 %v14310_v59, %v13683_v5  ;;  %v8099_v58 = vpack.c.b16 %v8005_v24, %v8083_v63 }
 0x637   : > { %7815 = vmatmul.bf16.gmra.mxu2 %v16980_v31  ;;  %v8792_v31 = vshrl.u32 %v17181_v33, 16  ;;  %v17238_v56 = vshll.u32 %v8165_v27, 16  ;;  %v17244_v54 = vsel %vm393_vm0, %v8157_v3, %v17217_v13  ;;  %v17247_v27 = vpack.c.b16 %v8008_v50, %v8008_v50 }
 0x638   : > { %7864 = vmatmul.bf16.gmra.mxu3 %v16985_v43  ;;  %v17228_v43 = vsel %vm393_vm0, %v8145_v17, %v17193_v37  ;;  %v8789_v2 = vor.u32 %v8788_v16, %v8784_v61  ;;  %v13555_v61 = vld [vmem:[#allocation2 + $0xee0] sm:$0xf]  ;;  %v14278_v16 = vld [vmem:[#allocation2 + $0xee4] sm:$0xf0]  ;;  %v8175_v39 = vshll.u32 %v17232_v0, 16  ;;  %v8100_v3 = vpack.c.b16 %v8006_v55, %v8084_v60 }
 0x639   : > { %v8797_v17 = vor.u32 %v8796_v25, %v8792_v31  ;;  %v8802_v32 = vshll.u32 %v17228_v43, 16  ;;  %10520 = vmatpush.bf16.msrb.mxu3 %v13684_v49  ;;  %v13556_v6 = vor.u32 %v14278_v16, %v13555_v61  ;;  %v8168_v31 = vshrl.u32 %v8099_v58, 16 }
 0x63a   : > { %v7620_v35 = vpop.f32.mrf.mxu2  ;;  %v7524_v23 = vpop.f32.mrf.mxu0  ;;  %v8170_v25 = vshll.u32 %v8099_v58, 16  ;;  %v17254_v4 = vsel %vm393_vm0, %v8789_v2, %v17193_v37  ;;  %v8800_v63 = vshrl.u32 %v17228_v43, 16  ;;  %v8814_v5 = vshll.u32 %v17244_v54, 16 }
 0x63b   : > { %v7621_v33 = vadd.f32 %v7620_v35, %v7572_v47  ;;  %v7669_v8 = vpop.f32.mrf.mxu3  ;;  %v7525_v29 = vadd.f32 %v7524_v23, %v18910_v18  ;;  %v7573_v14 = vpop.f32.mrf.mxu1  ;;  %v8809_v35 = vrot.slane %v17230_v44, 1  ;;  %v8804_v7 = vrot.slane %v8802_v32, 1  ;;  %10422 = vmatpush.bf16.msrb.mxu1 %v13556_v6  ;;  %v17281_v32 = vld [vmem:[%s14696_s7 + $0x60] sm:$0xee] }
 0x63c   : > { %v8172_v24 = vrot.slane %v8170_v25, 1  ;;  %v17263_v37 = vsel %vm393_vm0, %v8797_v17, %v17217_v13  ;;  %v8812_v43 = vshrl.u32 %v17244_v54, 16  ;;  %v8187_v19 = vshll.u32 %v17247_v27, 16  ;;  %v17278_v17 = vld [vmem:[%s14696_s7 + $0x68] sm:$0xff]  ;;  %v14292_v25 = vld [vmem:[#allocation2 + $0xf54] sm:$0xf0] }
 0x63d   : > { %v17236_v46 = vadd.f32 %v7669_v8, %v7621_v33  ;;  %v7574_v47 = vadd.f32 %v7573_v14, %v7525_v29  ;;  %v17268_v29 = vrot.slane %v8175_v39, 1  ;;  %v8866_v14 = vshll.u32 %v17250_v34, 16  ;;  %v13132_v39 = vld [vmem:[%s14696_s7 + $0x70] sm:$0x11] }
 0x63e   : > { %v8173_v2 = vor.u32 %v8172_v24, %v8168_v31  ;;  %v8180_v13 = vshrl.u32 %v8100_v3, 16  ;;  %v8182_v58 = vshll.u32 %v8100_v3, 16  ;;  %v8805_v9 = vor.u32 %v8804_v7, %v8800_v63  ;;  %v13611_v31 = vld [vmem:[#allocation2 + $0xf50] sm:$0xf] }
 0x63f   : > { %v8816_v55 = vrot.slane %v8814_v5, 1  ;;  %v17286_v54 = vrot.slane %v8187_v19, 1  ;;  %v8193_v16 = vshrl.u32 %v17247_v27, 16  ;;  %v8013_v63 = vunpack.c.l.b16 %v13132_v39  ;;  %v13483_v7 = vld [vmem:[#allocation2 + $0xe50] sm:$0xf] }
 0x640   : > { %v8184_v61 = vrot.slane %v8182_v58, 1  ;;  %v17293_v6 = vsel %vm393_vm0, %v8173_v2, %v17268_v29  ;;  %v14260_v5 = vld [vmem:[#allocation2 + $0xe54] sm:$0xf0]  ;;  %v8011_v24 = vunpack.c.l.b16 %v17278_v17  ;;  %v8085_v27 = vunpack.c.l.b16 %v17281_v32 }
 0x642   : > { %v7622_v28 = vpop.f32.mrf.mxu2  ;;  %v7683_v23 = vpop.f32.mrf.mxu0  ;;  %v8185_v3 = vor.u32 %v8184_v61, %v8180_v13  ;;  %v8882_v13 = vshll.u32 %v17293_v6, 16  ;;  %v8101_v26 = vpack.c.b16 %v8011_v24, %v8085_v27  ;;  %v14276_v27 = vld [vmem:[#allocation2 + $0xed4] sm:$0xf0] }
 0x643   : > { %v7623_v33 = vadd.f32 %v7622_v28, %v7574_v47  ;;  %v7671_v8 = vpop.f32.mrf.mxu3  ;;  %v7684_v59 = vadd.f32 %v7683_v23, %v17066_v52  ;;  %v7732_v50 = vpop.f32.mrf.mxu1  ;;  %v8874_v47 = vshll.u32 %v17259_v22, 16  ;;  %v8191_v52 = vshrl.u32 %v17232_v0, 16 }
 0x644   : > { %v8868_v0 = vrot.slane %v8866_v14, 1  ;;  %v13612_v28 = vor.u32 %v14292_v25, %v13611_v31  ;;  %v8872_v23 = vshrl.u32 %v17259_v22, 16  ;;  %v14308_v14 = vld [vmem:[#allocation2 + $0xfd4] sm:$0xf0]  ;;  %v8190_v61 = vsel %vm393_vm0, %v8185_v3, %v17286_v54 }
 0x645   : > { %v17271_v49 = vadd.f32 %v7671_v8, %v7623_v33  ;;  %10184 = vmatmul.bf16.vlgmr.msra.gmra.mxu0 %v17188_v20  ;;  %v7733_v60 = vadd.f32 %v7732_v50, %v7684_v59  ;;  %v8817_v8 = vor.u32 %v8816_v55, %v8812_v43  ;;  %v8876_v19 = vrot.slane %v8874_v47, 1  ;;  %v13675_v50 = vld [vmem:[#allocation2 + $0xfd0] sm:$0xf]  ;;  %v13130_v47 = vld [vmem:[%s14696_s7 + $0x60] sm:$0xff] }
 0x646   : > { %10233 = vmatmul.bf16.vlgmr.msra.gmra.mxu1 %v17209_v21  ;;  %v13484_v59 = vor.u32 %v14260_v5, %v13483_v7  ;;  %10472 = vmatpush.bf16.msrb.mxu2 %v13612_v28  ;;  %v13676_v31 = vor.u32 %v14308_v14, %v13675_v50  ;;  %v8880_v43 = vshrl.u32 %v17293_v6, 16  ;;  %v17302_v22 = vshll.u32 %v8191_v52, 16 }
 0x647   : > { %10282 = vmatmul.bf16.vlgmr.msra.gmra.mxu2 %v17212_v45  ;;  %v8894_v55 = vshll.u32 %v8190_v61, 16  ;;  %v17305_v7 = vpack.c.b16 %v8013_v63, %v8013_v63  ;;  %v17308_v3 = vshll.u32 %v8193_v16, 16  ;;  %v8010_v28 = vunpack.c.h.b16 %v13130_v47 }
 0x648   : > { %10331 = vmatmul.bf16.vlgmr.msra.gmra.mxu3 %v17215_v57  ;;  %10374 = vmatpush.bf16.msrb.mxu0 %v13484_v59  ;;  %v8012_v50 = vunpack.c.h.b16 %v17278_v17  ;;  %v8014_v14 = vunpack.c.h.b16 %v13132_v39  ;;  %v17315_v52 = vsel %vm393_vm0, %v8805_v9, %v8809_v35  ;;  %v18939_v6 = vrot.slane %v17238_v56, 1 }
 0x649   : > { %10521 = vmatpush.bf16.msrb.mxu3 %v13676_v31  ;;  %v8086_v16 = vunpack.c.h.b16 %v17281_v32  ;;  %v8892_v59 = vshrl.u32 %v8190_v61, 16  ;;  %v8203_v39 = vshll.u32 %v17305_v7, 16  ;;  %v8198_v9 = vshll.u32 %v8101_v26, 16 }
 0x64a   : > { %v7781_v33 = vpop.f32.mrf.mxu2  ;;  %v7685_v15 = vpop.f32.mrf.mxu0  ;;  %v17320_v63 = vsel %vm393_vm0, %v8817_v8, %v18939_v6  ;;  %v17326_v35 = vpack.c.b16 %v8014_v14, %v8014_v14  ;;  %v18940_v8 = vshrl.u32 %v17250_v34, 16  ;;  %v8889_v6 = vrot.slane %v17302_v22, 1 }
 0x64b   : > { %v7782_v2 = vadd.f32 %v7781_v33, %v7733_v60  ;;  %v7830_v58 = vpop.f32.mrf.mxu3  ;;  %v7734_v25 = vpop.f32.mrf.mxu1  ;;  %v7686_v5 = vadd.f32 %v7685_v15, %v17069_v12  ;;  %v8009_v33 = vunpack.c.l.b16 %v13130_v47  ;;  %v8884_v12 = vrot.slane %v8882_v13, 1  ;;  %v13547_v15 = vld [vmem:[#allocation2 + $0xed0] sm:$0xf] }
 0x64c   : > { %v13548_v17 = vor.u32 %v14276_v27, %v13547_v15  ;;  %v8869_v31 = vor.u32 %v8868_v0, %v18940_v8  ;;  %v8877_v13 = vor.u32 %v8876_v19, %v8872_v23  ;;  %v17330_v47 = vpack.c.b16 %v8012_v50, %v8010_v28  ;;  %v17354_v27 = vld [vmem:[%s14696_s7 + $0x80] sm:$0xff] }
 0x64d   : > { %v7831_v60 = vadd.f32 %v7830_v58, %v7782_v2  ;;  %v8896_v2 = vrot.slane %v8894_v55, 1  ;;  %v7735_v58 = vadd.f32 %v7734_v25, %v7686_v5  ;;  %v17324_v44 = vpack.c.b16 %v8011_v24, %v8009_v33 }
 0x64e   : > { %10423 = vmatpush.bf16.msrb.mxu1 %v13548_v17  ;;  %v8102_v32 = vpack.c.b16 %v8012_v50, %v8086_v16  ;;  %v8901_v24 = vrot.slane %v17308_v3, 1  ;;  %v8196_v25 = vshrl.u32 %v8101_v26, 16  ;;  %v8885_v33 = vor.u32 %v8884_v12, %v8880_v43  ;;  %v17357_v16 = vld [vmem:[%s14696_s7 + $0x88] sm:$0x11]  ;;  %v13603_v17 = vld [vmem:[#allocation2 + $0xf40] sm:$0xf] }
 0x64f   : > { %13090 = vst [vmem:[%s15134_s11 + $0x208] sm:$0xff] %v7831_v60  ;;  %v8897_v14 = vor.u32 %v8896_v2, %v8892_v59  ;;  %v17334_v15 = vrot.slane %v8203_v39, 1  ;;  %v8200_v34 = vrot.slane %v8198_v9, 1  ;;  %v8946_v19 = vshll.u32 %v17324_v44, 16  ;;  %v14290_v39 = vld [vmem:[#allocation2 + $0xf44] sm:$0xf0] }
 0x650   : > { %v8215_v22 = vshll.u32 %v17326_v35, 16  ;;  %v8954_v26 = vshll.u32 %v17330_v47, 16  ;;  %v8219_v43 = vshrl.u32 %v17305_v7, 16  ;;  %v8208_v3 = vshrl.u32 %v8102_v32, 16  ;;  %v17360_v7 = vld [vmem:[%s14696_s7 + $0x78] sm:$0xee] }
 0x651   : > { %v8210_v28 = vshll.u32 %v8102_v32, 16  ;;  %v17351_v50 = vsel %vm393_vm0, %v8877_v13, %v17286_v54  ;;  %v8201_v12 = vor.u32 %v8200_v34, %v8196_v25  ;;  %v17364_v59 = vsel %vm393_vm0, %v8885_v33, %v8889_v6 }
 0x652   : > { %v7783_v56 = vpop.f32.mrf.mxu2  ;;  %v7688_v60 = vpop.f32.mrf.mxu0  ;;  %18941 = vst [vmem:[#allocation49_spill] sm:$0xff] %v17364_v59  ;;  %v8944_v2 = vshrl.u32 %v17324_v44, 16  ;;  %v8019_v54 = vunpack.c.l.b16 %v17357_v16  ;;  %v8948_v9 = vrot.slane %v8946_v19, 1  ;;  %v13604_v8 = vor.u32 %v14290_v39, %v13603_v17  ;;  %v14306_v44 = vld [vmem:[#allocation2 + $0xfc4] sm:$0xf0] }
 0x653   : > { %v7784_v61 = vadd.f32 %v7783_v56, %v7735_v58  ;;  %v7832_v55 = vpop.f32.mrf.mxu3  ;;  %v7737_v5 = vpop.f32.mrf.mxu1  ;;  %v7689_v23 = vadd.f32 %v7688_v60, %v17076_v36  ;;  %v17347_v36 = vsel %vm393_vm0, %v8869_v31, %v17268_v29  ;;  %v8212_v29 = vrot.slane %v8210_v28, 1  ;;  %v13475_v31 = vld [vmem:[#allocation2 + $0xe40] sm:$0xf]  ;;  %v13133_v28 = vld [vmem:[%s14696_s7 + $0x78] sm:$0xff] }
 0x654   : > { %v17368_v56 = vrot.slane %v8215_v22, 1  ;;  %v17371_v32 = vsel %vm393_vm0, %v8897_v14, %v8901_v24  ;;  %v13667_v60 = vld [vmem:[#allocation2 + $0xfc0] sm:$0xf]  ;;  %v8017_v6 = vunpack.c.l.b16 %v17354_v27  ;;  %v8087_v25 = vunpack.c.l.b16 %v17360_v7  ;;  %10473 = vmatpush.bf16.msrb.mxu2 %v13604_v8 }
 0x655   : > { %v7833_v0 = vadd.f32 %v7832_v55, %v7784_v61  ;;  %10189 = vmatmul.bf16.gmra.mxu0 %v17254_v4  ;;  %v7738_v58 = vadd.f32 %v7737_v5, %v7689_v23  ;;  %18942 = vst [vmem:[#allocation50_spill] sm:$0xff] %v17371_v32  ;;  %v8213_v61 = vor.u32 %v8212_v29, %v8208_v3  ;;  %v14258_v55 = vld [vmem:[#allocation2 + $0xe44] sm:$0xf0]  ;;  %v8221_v23 = vshrl.u32 %v17326_v35, 16 }
 0x656   : > { %10238 = vmatmul.bf16.gmra.mxu1 %v17263_v37  ;;  %v13476_v24 = vor.u32 %v14258_v55, %v13475_v31  ;;  %v8952_v19 = vshrl.u32 %v17330_v47, 16  ;;  %v8956_v22 = vrot.slane %v8954_v26, 1  ;;  %v13668_v3 = vor.u32 %v14306_v44, %v13667_v60 }
 0x657   : > { %13092 = vst [vmem:[%s15134_s11 + $0x218] sm:$0xff] %v7833_v0  ;;  %10287 = vmatmul.bf16.gmra.mxu2 %v17315_v52  ;;  %v17377_v0 = vsel %vm393_vm0, %v8201_v12, %v17334_v15  ;;  %v17382_v29 = vpack.c.b16 %v8019_v54, %v8019_v54  ;;  %v8218_v12 = vsel %vm393_vm0, %v8213_v61, %v17368_v56  ;;  %v8015_v8 = vunpack.c.l.b16 %v13133_v28  ;;  %v13539_v54 = vld [vmem:[#allocation2 + $0xec0] sm:$0xf] }
 0x658   : > { %10336 = vmatmul.bf16.gmra.mxu3 %v17320_v63  ;;  %10375 = vmatpush.bf16.msrb.mxu0 %v13476_v24  ;;  %v8962_v35 = vshll.u32 %v17377_v0, 16  ;;  %v8103_v31 = vpack.c.b16 %v8017_v6, %v8087_v25  ;;  %v8016_v47 = vunpack.c.h.b16 %v13133_v28  ;;  %v17391_v26 = vshll.u32 %v8221_v23, 16 }
 0x659   : > { %10522 = vmatpush.bf16.msrb.mxu3 %v13668_v3  ;;  %v8018_v55 = vunpack.c.h.b16 %v17354_v27  ;;  %v8974_v60 = vshll.u32 %v8218_v12, 16  ;;  %v17396_v44 = vpack.c.b16 %v8017_v6, %v8015_v8  ;;  %v8949_v25 = vor.u32 %v8948_v9, %v8944_v2 }
 0x65a   : > { %v7786_v13 = vpop.f32.mrf.mxu2  ;;  %v7690_v34 = vpop.f32.mrf.mxu0  ;;  %v8960_v3 = vshrl.u32 %v17377_v0, 16  ;;  %v8964_v8 = vrot.slane %v8962_v35, 1 }
 0x65b   : > { %v7787_v33 = vadd.f32 %v7786_v13, %v7738_v58  ;;  %v7835_v5 = vpop.f32.mrf.mxu3  ;;  %v7739_v14 = vpop.f32.mrf.mxu1  ;;  %v7691_v39 = vadd.f32 %v7690_v34, %v17079_v41  ;;  %v17385_v58 = vshll.u32 %v8219_v43, 16  ;;  %v14274_v13 = vld [vmem:[#allocation2 + $0xec4] sm:$0xf0]  ;;  %v8020_v41 = vunpack.c.h.b16 %v17357_v16  ;;  %v13659_v34 = vld [vmem:[#allocation2 + $0xfb0] sm:$0xf] }
 0x65c   : > { %v8088_v43 = vunpack.c.h.b16 %v17360_v7  ;;  %v13540_v61 = vor.u32 %v14274_v13, %v13539_v54  ;;  %v17400_v23 = vpack.c.b16 %v8018_v55, %v8016_v47  ;;  %v9026_v27 = vshll.u32 %v17396_v44, 16 }
 0x65d   : > { %v7836_v17 = vadd.f32 %v7835_v5, %v7787_v33  ;;  %v8231_v33 = vshll.u32 %v17382_v29, 16  ;;  %v7740_v5 = vadd.f32 %v7739_v14, %v7691_v39  ;;  %v17404_v16 = vpack.c.b16 %v8020_v41, %v8020_v41  ;;  %v14256_v14 = vld [vmem:[#allocation2 + $0xe34] sm:$0xf0] }
 0x65e   : > { %10424 = vmatpush.bf16.msrb.mxu1 %v13540_v61  ;;  %v8226_v7 = vshll.u32 %v8103_v31, 16  ;;  %v8104_v2 = vpack.c.b16 %v8018_v55, %v8088_v43  ;;  %v8972_v47 = vshrl.u32 %v8218_v12, 16  ;;  %v8976_v54 = vrot.slane %v8974_v60, 1 }
 0x65f   : > { %13094 = vst [vmem:[%s15134_s11 + $0x228] sm:$0xff] %v7836_v17  ;;  %v17408_v0 = vrot.slane %v8231_v33, 1  ;;  %v9034_v41 = vshll.u32 %v17400_v23, 16  ;;  %v8224_v61 = vshrl.u32 %v8103_v31, 16  ;;  %v9024_v35 = vshrl.u32 %v17396_v44, 16 }
 0x660   : > { %v9028_v55 = vrot.slane %v9026_v27, 1  ;;  %v8247_v12 = vshrl.u32 %v17382_v29, 16  ;;  %v8957_v43 = vor.u32 %v8956_v22, %v8952_v19  ;;  %v8236_v60 = vshrl.u32 %v8104_v2, 16  ;;  %v17422_v31 = vld [vmem:[%s14696_s7 + $0xa0] sm:$0x11] }
 0x661   : > { %v8238_v33 = vshll.u32 %v8104_v2, 16  ;;  %v17430_v29 = vsel %vm393_vm0, %v8949_v25, %v17334_v15  ;;  %v8965_v27 = vor.u32 %v8964_v8, %v8960_v3  ;;  %v13467_v19 = vld [vmem:[#allocation2 + $0xe30] sm:$0xf]  ;;  %v8025_v18 = vunpack.c.l.b16 %v17422_v31  ;;  %v14304_v3 = vld [vmem:[#allocation2 + $0xfb4] sm:$0xf0] }
 0x662   : > { %v7788_v24 = vpop.f32.mrf.mxu2  ;;  %v7693_v17 = vpop.f32.mrf.mxu0  ;;  %v9036_v15 = vrot.slane %v9034_v41, 1  ;;  %v13468_v25 = vor.u32 %v14256_v14, %v13467_v19  ;;  %v13136_v14 = vld [vmem:[%s14696_s7 + $0x90] sm:$0xff] }
 0x663   : > { %v7789_v28 = vadd.f32 %v7788_v24, %v7740_v5  ;;  %v7837_v6 = vpop.f32.mrf.mxu3  ;;  %v7694_v9 = vadd.f32 %v7693_v17, %v17086_v11  ;;  %v7742_v39 = vpop.f32.mrf.mxu1  ;;  %v8228_v5 = vrot.slane %v8226_v7, 1  ;;  %v8243_v11 = vshll.u32 %v17404_v16, 16  ;;  %v17419_v24 = vld [vmem:[%s14696_s7 + $0x98] sm:$0xff]  ;;  %v17425_v7 = vld [vmem:[%s14696_s7 + $0x90] sm:$0xee] }
 0x664   : > { %v14288_v17 = vld [vmem:[#allocation2 + $0xf34] sm:$0xf0]  ;;  %v8240_v2 = vrot.slane %v8238_v33, 1  ;;  %10376 = vmatpush.bf16.msrb.mxu0 %v13468_v25 }
 0x665   : > { %v7838_v13 = vadd.f32 %v7837_v6, %v7789_v28  ;;  %10194 = vmatmul.bf16.gmra.mxu0 %v17347_v36  ;;  %v7743_v44 = vadd.f32 %v7742_v39, %v7694_v9  ;;  %v8977_v28 = vor.u32 %v8976_v54, %v8972_v47  ;;  %v13595_v6 = vld [vmem:[#allocation2 + $0xf30] sm:$0xf]  ;;  %v8229_v22 = vor.u32 %v8228_v5, %v8224_v61 }
 0x666   : > { %10243 = vmatmul.bf16.gmra.mxu1 %v17351_v50  ;;  %v17433_v9 = vrot.slane %v8243_v11, 1  ;;  %v9032_v39 = vshrl.u32 %v17400_v23, 16  ;;  %v13660_v61 = vor.u32 %v14304_v3, %v13659_v34  ;;  %v8023_v5 = vunpack.c.l.b16 %v17419_v24 }
 0x667   : > { %13096 = vst [vmem:[%s15134_s11 + $0x238] sm:$0xff] %v7838_v13  ;;  %10292 = vmatmul.bf16.gmra.mxu2 %v17364_v59  ;;  %v13596_v13 = vor.u32 %v14288_v17, %v13595_v6  ;;  %v17439_v11 = vsel %vm393_vm0, %v8957_v43, %v17368_v56  ;;  %v18944_v23 = vrot.slane %v17385_v58, 1  ;;  %v8234_v6 = vsel %vm393_vm0, %v8229_v22, %v17408_v0 }
 0x668   : > { %10341 = vmatmul.bf16.gmra.mxu3 %v17371_v32  ;;  %v8241_v32 = vor.u32 %v8240_v2, %v8236_v60  ;;  %18943 = vst [vmem:[#allocation51_spill] sm:$0xff] %v17439_v11  ;;  %v8089_v60 = vunpack.c.l.b16 %v17425_v7  ;;  %v17452_v56 = vpack.c.b16 %v8025_v18, %v8025_v18  ;;  %v18946_v58 = vrot.slane %v17391_v26, 1  ;;  %v13531_v2 = vld [vmem:[#allocation2 + $0xeb0] sm:$0xf] }
 0x669   : > { %10474 = vmatpush.bf16.msrb.mxu2 %v13596_v13  ;;  %v17444_v41 = vsel %vm393_vm0, %v8965_v27, %v18944_v23  ;;  %10523 = vmatpush.bf16.msrb.mxu3 %v13660_v61  ;;  %v9029_v27 = vor.u32 %v9028_v55, %v9024_v35  ;;  %v8021_v17 = vunpack.c.l.b16 %v13136_v14  ;;  %v9037_v19 = vor.u32 %v9036_v15, %v9032_v39  ;;  %v14272_v13 = vld [vmem:[#allocation2 + $0xeb4] sm:$0xf0] }
 0x66a   : > { %v7791_v59 = vpop.f32.mrf.mxu2  ;;  %v7695_v54 = vpop.f32.mrf.mxu0  ;;  %18945 = vst [vmem:[#allocation52_spill] sm:$0xff] %v17444_v41  ;;  %v17457_v43 = vsel %vm393_vm0, %v8977_v28, %v18946_v58  ;;  %v8105_v22 = vpack.c.b16 %v8023_v5, %v8089_v60  ;;  %v8024_v18 = vunpack.c.h.b16 %v17419_v24  ;;  %v9042_v25 = vshll.u32 %v8234_v6, 16 }
 0x66b   : > { %v7792_v8 = vadd.f32 %v7791_v59, %v7743_v44  ;;  %v7840_v47 = vpop.f32.mrf.mxu3  ;;  %v7744_v33 = vpop.f32.mrf.mxu1  ;;  %v8249_v59 = vshrl.u32 %v17404_v16, 16  ;;  %v7696_v44 = vadd.f32 %v7695_v54, %v17089_v42  ;;  %18947 = vst [vmem:[#allocation53_spill] sm:$0xff] %v17457_v43  ;;  %v17459_v16 = vshll.u32 %v8247_v12, 16 }
 0x66c   : > { %v8246_v42 = vsel %vm393_vm0, %v8241_v32, %v17433_v9  ;;  %v13532_v26 = vor.u32 %v14272_v13, %v13531_v2  ;;  %v8026_v28 = vunpack.c.h.b16 %v17422_v31  ;;  %v8259_v55 = vshll.u32 %v17452_v56, 16 }
 0x66d   : > { %v7841_v34 = vadd.f32 %v7840_v47, %v7792_v8  ;;  %v17465_v3 = vshll.u32 %v8249_v59, 16  ;;  %v7745_v35 = vadd.f32 %v7744_v33, %v7696_v44  ;;  %v8022_v12 = vunpack.c.h.b16 %v13136_v14 }
 0x66e   : > { %v8090_v39 = vunpack.c.h.b16 %v17425_v7  ;;  %v9054_v8 = vshll.u32 %v8246_v42, 16  ;;  %10425 = vmatpush.bf16.msrb.mxu1 %v13532_v26  ;;  %v17470_v32 = vpack.c.b16 %v8023_v5, %v8021_v17  ;;  %v17472_v47 = vpack.c.b16 %v8026_v28, %v8026_v28 }
 0x66f   : > { %13098 = vst [vmem:[%s15134_s11 + $0x248] sm:$0xff] %v7841_v34  ;;  %v8254_v24 = vshll.u32 %v8105_v22, 16  ;;  %v8252_v33 = vshrl.u32 %v8105_v22, 16  ;;  %v9040_v14 = vshrl.u32 %v8234_v6, 16  ;;  %v9044_v34 = vrot.slane %v9042_v25, 1 }
 0x670   : > { %v8106_v31 = vpack.c.b16 %v8024_v18, %v8090_v39  ;;  %v9052_v7 = vshrl.u32 %v8246_v42, 16  ;;  %v17477_v17 = vrot.slane %v8259_v55, 1  ;;  %v9056_v13 = vrot.slane %v9054_v8, 1  ;;  %v13587_v39 = vld [vmem:[#allocation2 + $0xf20] sm:$0xf]  ;;  %v17499_v8 = vld [vmem:[%s14696_s7 + $0xb0] sm:$0xff] }
 0x671   : > { %v8256_v2 = vrot.slane %v8254_v24, 1  ;;  %v9106_v26 = vshll.u32 %v17470_v32, 16  ;;  %v17481_v28 = vpack.c.b16 %v8024_v18, %v8022_v12  ;;  %v8271_v6 = vshll.u32 %v17472_v47, 16 }
 0x672   : > { %v7793_v15 = vpop.f32.mrf.mxu2  ;;  %v7698_v23 = vpop.f32.mrf.mxu0  ;;  %v8264_v22 = vshrl.u32 %v8106_v31, 16  ;;  %v8266_v25 = vshll.u32 %v8106_v31, 16  ;;  %v17495_v18 = vsel %vm393_vm0, %v9037_v19, %v17433_v9  ;;  %v9045_v55 = vor.u32 %v9044_v34, %v9040_v14  ;;  %v13151_v14 = vld [vmem:[%s14696_s7 + $0xa8] sm:$0xee] }
 0x673   : > { %v7794_v54 = vadd.f32 %v7793_v15, %v7745_v35  ;;  %v7842_v61 = vpop.f32.mrf.mxu3  ;;  %v7747_v60 = vpop.f32.mrf.mxu1  ;;  %v7699_v5 = vadd.f32 %v7698_v23, %v17096_v38  ;;  %v8257_v42 = vor.u32 %v8256_v2, %v8252_v33  ;;  %v8275_v38 = vshrl.u32 %v17452_v56, 16  ;;  %18949 = vst [vmem:[#allocation56_spill] sm:$0xff] %v17495_v18  ;;  %v14286_v15 = vld [vmem:[#allocation2 + $0xf24] sm:$0xf0]  ;;  %v13651_v33 = vld [vmem:[#allocation2 + $0xfa0] sm:$0xf] }
 0x674   : > { %v17491_v35 = vsel %vm393_vm0, %v9029_v27, %v17408_v0  ;;  %v9104_v12 = vshrl.u32 %v17470_v32, 16  ;;  %v13588_v0 = vor.u32 %v14286_v15, %v13587_v39  ;;  %v13459_v27 = vld [vmem:[#allocation2 + $0xe20] sm:$0xf]  ;;  %v9057_v19 = vor.u32 %v9056_v13, %v9052_v7 }
 0x675   : > { %v7843_v58 = vadd.f32 %v7842_v61, %v7794_v54  ;;  %10199 = vmatmul.bf16.gmra.mxu0 %v17430_v29  ;;  %18948 = vst [vmem:[#allocation54_spill] sm:$0xff] %v17491_v35  ;;  %v7748_v56 = vadd.f32 %v7747_v60, %v7699_v5  ;;  %v17503_v24 = vsel %vm393_vm0, %v8257_v42, %v17477_v17  ;;  %v8268_v54 = vrot.slane %v8266_v25, 1  ;;  %v14254_v61 = vld [vmem:[#allocation2 + $0xe24] sm:$0xf0]  ;;  %v13141_v25 = vld [vmem:[%s14696_s7 + $0xb8] sm:$0x11] }
 0x676   : > { %10248 = vmatmul.bf16.gmra.mxu1 %v17439_v11  ;;  %v17505_v23 = vrot.slane %v8271_v6, 1  ;;  %v9114_v32 = vshll.u32 %v17481_v28, 16  ;;  %v13460_v31 = vor.u32 %v14254_v61, %v13459_v27  ;;  %v9108_v5 = vrot.slane %v9106_v26, 1  ;;  %10475 = vmatpush.bf16.msrb.mxu2 %v13588_v0  ;;  %v14302_v42 = vld [vmem:[#allocation2 + $0xfa4] sm:$0xf0] }
 0x677   : > { %13100 = vst [vmem:[%s15134_s11 + $0x258] sm:$0xff] %v7843_v58  ;;  %10297 = vmatmul.bf16.gmra.mxu2 %v17444_v41  ;;  %v8269_v2 = vor.u32 %v8268_v54, %v8264_v22  ;;  %v8029_v39 = vunpack.c.l.b16 %v17499_v8  ;;  %v9112_v7 = vshrl.u32 %v17481_v28, 16  ;;  %v9122_v13 = vshll.u32 %v17503_v24, 16 }
 0x678   : > { %10346 = vmatmul.bf16.gmra.mxu3 %v17457_v43  ;;  %v8277_v6 = vshrl.u32 %v17472_v47, 16  ;;  %10377 = vmatpush.bf16.msrb.mxu0 %v13460_v31  ;;  %v13652_v27 = vor.u32 %v14302_v42, %v13651_v33  ;;  %v9127_v22 = vshll.u32 %v8275_v38, 16  ;;  %v8091_v54 = vunpack.c.l.b16 %v13151_v14  ;;  %v13523_v38 = vld [vmem:[#allocation2 + $0xea0] sm:$0xf] }
 0x679   : > { %v9116_v0 = vrot.slane %v9114_v32, 1  ;;  %v8031_v59 = vunpack.c.l.b16 %v13141_v25  ;;  %v18950_v28 = vrot.slane %v17459_v16, 1  ;;  %v18952_v31 = vrot.slane %v17465_v3, 1  ;;  %v14270_v32 = vld [vmem:[#allocation2 + $0xea4] sm:$0xf0] }
 0x67a   : > { %v7796_v9 = vpop.f32.mrf.mxu2  ;;  %v7700_v58 = vpop.f32.mrf.mxu0  ;;  %10524 = vmatpush.bf16.msrb.mxu3 %v13652_v27  ;;  %v8030_v42 = vunpack.c.h.b16 %v17499_v8  ;;  %v9109_v3 = vor.u32 %v9108_v5, %v9104_v12 }
 0x67b   : > { %v7797_v60 = vadd.f32 %v7796_v9, %v7748_v56  ;;  %v7845_v34 = vpop.f32.mrf.mxu3  ;;  %v7749_v15 = vpop.f32.mrf.mxu1  ;;  %v13139_v56 = vld [vmem:[%s14696_s7 + $0xa8] sm:$0xff]  ;;  %v7701_v26 = vadd.f32 %v7700_v58, %v17099_v53  ;;  %v8274_v9 = vsel %vm393_vm0, %v8269_v2, %v17505_v23  ;;  %v17522_v47 = vsel %vm393_vm0, %v9045_v55, %v18950_v28 }
 0x67c   : > { %v8027_v44 = vunpack.c.l.b16 %v13139_v56  ;;  %18951 = vst [vmem:[#allocation58_spill] sm:$0xff] %v17522_v47  ;;  %v17527_v33 = vsel %vm393_vm0, %v9057_v19, %v18952_v31  ;;  %v9120_v53 = vshrl.u32 %v17503_v24, 16  ;;  %v17530_v58 = vshll.u32 %v8277_v6, 16 }
 0x67d   : > { %v7846_v61 = vadd.f32 %v7845_v34, %v7797_v60  ;;  %18953 = vst [vmem:[#allocation59_spill] sm:$0xff] %v17527_v33  ;;  %v8107_v60 = vpack.c.b16 %v8029_v39, %v8091_v54  ;;  %v9124_v34 = vrot.slane %v9122_v13, 1  ;;  %v13524_v2 = vor.u32 %v14270_v32, %v13523_v38 }
 0x67e   : > { %v7750_v16 = vadd.f32 %v7749_v15, %v7701_v26  ;;  %v9134_v27 = vshll.u32 %v8274_v9, 16  ;;  %v8032_v55 = vunpack.c.h.b16 %v13141_v25  ;;  %v17533_v19 = vpack.c.b16 %v8029_v39, %v8027_v44 }
 0x67f   : > { %13102 = vst [vmem:[%s15134_s11 + $0x268] sm:$0xff] %v7846_v61  ;;  %v8092_v61 = vunpack.c.h.b16 %v13151_v14  ;;  %10426 = vmatpush.bf16.msrb.mxu1 %v13524_v2  ;;  %v17535_v31 = vpack.c.b16 %v8031_v59, %v8031_v59  ;;  %v8282_v24 = vshll.u32 %v8107_v60, 16  ;;  %v9129_v6 = vrot.slane %v9127_v22, 1 }
 0x680   : > { %v8028_v41 = vunpack.c.h.b16 %v13139_v56  ;;  %v17537_v38 = vpack.c.b16 %v8032_v55, %v8032_v55  ;;  %v9117_v15 = vor.u32 %v9116_v0, %v9112_v7  ;;  %v9125_v25 = vor.u32 %v9124_v34, %v9120_v53  ;;  %v13579_v34 = vld [vmem:[#allocation2 + $0xf10] sm:$0xf] }
 0x681   : > { %v9141_v14 = vrot.slane %v17530_v58, 1  ;;  %v8108_v12 = vpack.c.b16 %v8030_v42, %v8092_v61  ;;  %v9132_v59 = vshrl.u32 %v8274_v9, 16  ;;  %v9136_v39 = vrot.slane %v9134_v27, 1  ;;  %v17563_v58 = vld [vmem:[%s14696_s7 + $0xd0] sm:$0x11] }
 0x682   : > { %v7798_v28 = vpop.f32.mrf.mxu2  ;;  %v7703_v13 = vpop.f32.mrf.mxu0  ;;  %v8287_v26 = vshll.u32 %v17535_v31, 16  ;;  %v9186_v56 = vshll.u32 %v17533_v19, 16  ;;  %v8280_v22 = vshrl.u32 %v8107_v60, 16  ;;  %v8284_v32 = vrot.slane %v8282_v24, 1  ;;  %v13451_v55 = vld [vmem:[#allocation2 + $0xe10] sm:$0xf] }
 0x683   : > { %v7799_v43 = vadd.f32 %v7798_v28, %v7750_v16  ;;  %v7847_v54 = vpop.f32.mrf.mxu3  ;;  %v7752_v8 = vpop.f32.mrf.mxu1  ;;  %v7704_v44 = vadd.f32 %v7703_v13, %v17106_v10  ;;  %v17547_v7 = vpack.c.b16 %v8030_v42, %v8028_v41  ;;  %v8299_v10 = vshll.u32 %v17537_v38, 16  ;;  %v14284_v41 = vld [vmem:[#allocation2 + $0xf14] sm:$0xf0] }
 0x684   : > { %v8294_v0 = vshll.u32 %v8108_v12, 16  ;;  %v17553_v9 = vsel %vm393_vm0, %v9109_v3, %v17477_v17  ;;  %v17557_v53 = vsel %vm393_vm0, %v9117_v15, %v17505_v23  ;;  %v17560_v60 = vsel %vm393_vm0, %v9125_v25, %v9129_v6  ;;  %v14252_v17 = vld [vmem:[#allocation2 + $0xe14] sm:$0xf0] }
 0x685   : > { %v7848_v5 = vadd.f32 %v7847_v54, %v7799_v43  ;;  %10204 = vmatmul.bf16.gmra.mxu0 %v17491_v35  ;;  %v8292_v43 = vshrl.u32 %v8108_v12, 16  ;;  %18954 = vst [vmem:[#allocation60_spill] sm:$0xff] %v17553_v9  ;;  %v7753_v2 = vadd.f32 %v7752_v8, %v7704_v44  ;;  %v9137_v42 = vor.u32 %v9136_v39, %v9132_v59  ;;  %v13643_v54 = vld [vmem:[#allocation2 + $0xf90] sm:$0xf]  ;;  %v14300_v13 = vld [vmem:[#allocation2 + $0xf94] sm:$0xf0] }
 0x686   : > { %10253 = vmatmul.bf16.gmra.mxu1 %v17495_v18  ;;  %18955 = vst [vmem:[#allocation61_spill] sm:$0xff] %v17557_v53  ;;  %v8296_v16 = vrot.slane %v8294_v0, 1  ;;  %v13580_v27 = vor.u32 %v14284_v41, %v13579_v34  ;;  %v17565_v28 = vrot.slane %v8287_v26, 1  ;;  %v9184_v23 = vshrl.u32 %v17533_v19, 16  ;;  %v13152_v44 = vld [vmem:[%s14696_s7 + $0xc0] sm:$0xee] }
 0x687   : > { %13104 = vst [vmem:[%s15134_s11 + $0x278] sm:$0xff] %v7848_v5  ;;  %10302 = vmatmul.bf16.gmra.mxu2 %v17522_v47  ;;  %v8285_v3 = vor.u32 %v8284_v32, %v8280_v22  ;;  %v13452_v24 = vor.u32 %v14252_v17, %v13451_v55  ;;  %v17568_v25 = vrot.slane %v8299_v10, 1  ;;  %v9194_v12 = vshll.u32 %v17547_v7, 16  ;;  %v17572_v5 = vld [vmem:[%s14696_s7 + $0xc8] sm:$0xff]  ;;  %v13142_v0 = vld [vmem:[%s14696_s7 + $0xc0] sm:$0xff] }
 0x688   : > { %10351 = vmatmul.bf16.gmra.mxu3 %v17527_v33  ;;  %18956 = vst [vmem:[#allocation19_spill] sm:$0xff] %v17560_v60  ;;  %10476 = vmatpush.bf16.msrb.mxu2 %v13580_v27  ;;  %v8037_v59 = vunpack.c.l.b16 %v17563_v58  ;;  %v9188_v19 = vrot.slane %v9186_v56, 1  ;;  %v8303_v26 = vshrl.u32 %v17535_v31, 16  ;;  %v8297_v22 = vor.u32 %v8296_v16, %v8292_v43 }
 0x689   : > { %10378 = vmatpush.bf16.msrb.mxu0 %v13452_v24  ;;  %v13644_v32 = vor.u32 %v14300_v13, %v13643_v54  ;;  %v17580_v41 = vsel %vm393_vm0, %v9137_v42, %v9141_v14  ;;  %v17585_v27 = vsel %vm393_vm0, %v8285_v3, %v17565_v28  ;;  %v8033_v56 = vunpack.c.l.b16 %v13142_v0  ;;  %v13515_v14 = vld [vmem:[#allocation2 + $0xe90] sm:$0xf] }
 0x68a   : > { %v7801_v61 = vpop.f32.mrf.mxu2  ;;  %v7705_v8 = vpop.f32.mrf.mxu0  ;;  %18957 = vst [vmem:[#allocation14_spill] sm:$0xff] %v17580_v41  ;;  %v8035_v31 = vunpack.c.l.b16 %v17572_v5  ;;  %v8093_v43 = vunpack.c.l.b16 %v13152_v44  ;;  %v9192_v16 = vshrl.u32 %v17547_v7, 16  ;;  %v9196_v55 = vrot.slane %v9194_v12, 1 }
 0x68b   : > { %v7802_v6 = vadd.f32 %v7801_v61, %v7753_v2  ;;  %v7850_v15 = vpop.f32.mrf.mxu3  ;;  %v7754_v39 = vpop.f32.mrf.mxu1  ;;  %v7706_v10 = vadd.f32 %v7705_v8, %v17109_v48  ;;  %v8305_v2 = vshrl.u32 %v17537_v38, 16  ;;  %10525 = vmatpush.bf16.msrb.mxu3 %v13644_v32  ;;  %v17592_v48 = vsel %vm393_vm0, %v8297_v22, %v17568_v25  ;;  %v14268_v61 = vld [vmem:[#allocation2 + $0xe94] sm:$0xf0] }
 0x68c   : > { %v17594_v42 = vpack.c.b16 %v8037_v59, %v8037_v59  ;;  %v9189_v38 = vor.u32 %v9188_v19, %v9184_v23  ;;  %v17596_v17 = vshll.u32 %v8303_v26, 16  ;;  %v8036_v3 = vunpack.c.h.b16 %v17572_v5 }
 0x68d   : > { %v7851_v34 = vadd.f32 %v7850_v15, %v7802_v6  ;;  %v8038_v24 = vunpack.c.h.b16 %v17563_v58  ;;  %v7755_v54 = vadd.f32 %v7754_v39, %v7706_v10  ;;  %v9202_v13 = vshll.u32 %v17585_v27, 16 }
 0x68e   : > { %v17601_v7 = vshll.u32 %v8305_v2, 16  ;;  %v13516_v6 = vor.u32 %v14268_v61, %v13515_v14  ;;  %v9214_v8 = vshll.u32 %v17592_v48, 16  ;;  %v17604_v12 = vpack.c.b16 %v8035_v31, %v8033_v56 }
 0x68f   : > { %13106 = vst [vmem:[%s15134_s11 + $0x288] sm:$0xff] %v7851_v34  ;;  %v8109_v59 = vpack.c.b16 %v8035_v31, %v8093_v43  ;;  %v8094_v23 = vunpack.c.h.b16 %v13152_v44  ;;  %v9197_v32 = vor.u32 %v9196_v55, %v9192_v16  ;;  %v8315_v58 = vshll.u32 %v17594_v42, 16 }
 0x690   : > { %10427 = vmatpush.bf16.msrb.mxu1 %v13516_v6  ;;  %v8034_v5 = vunpack.c.h.b16 %v13142_v0  ;;  %v9200_v34 = vshrl.u32 %v17585_v27, 16  ;;  %v9209_v10 = vrot.slane %v17596_v17, 1  ;;  %v17609_v2 = vpack.c.b16 %v8038_v24, %v8038_v24  ;;  %v13571_v6 = vld [vmem:[#allocation2 + $0xf00] sm:$0xf] }
 0x691   : > { %v8110_v56 = vpack.c.b16 %v8036_v3, %v8094_v23  ;;  %v9204_v31 = vrot.slane %v9202_v13, 1  ;;  %v9221_v43 = vrot.slane %v17601_v7, 1  ;;  %v9212_v16 = vshrl.u32 %v17592_v48, 16  ;;  %v14282_v23 = vld [vmem:[#allocation2 + $0xf04] sm:$0xf0] }
 0x692   : > { %v7803_v15 = vpop.f32.mrf.mxu2  ;;  %v7708_v22 = vpop.f32.mrf.mxu0  ;;  %v9216_v55 = vrot.slane %v9214_v8, 1  ;;  %v9266_v0 = vshll.u32 %v17604_v12, 16  ;;  %v8310_v61 = vshll.u32 %v8109_v59, 16  ;;  %v17619_v27 = vrot.slane %v8315_v58, 1 }
 0x693   : > { %v7804_v19 = vadd.f32 %v7803_v15, %v7755_v54  ;;  %v7852_v26 = vpop.f32.mrf.mxu3  ;;  %v7757_v39 = vpop.f32.mrf.mxu1  ;;  %v7709_v44 = vadd.f32 %v7708_v22, %v17125_v1  ;;  %v9264_v1 = vshrl.u32 %v17604_v12, 16  ;;  %v17622_v17 = vpack.c.b16 %v8036_v3, %v8034_v5  ;;  %v14250_v5 = vld [vmem:[#allocation2 + $0xe04] sm:$0xf0] }
 0x694   : > { %v8308_v24 = vshrl.u32 %v8109_v59, 16  ;;  %v8327_v48 = vshll.u32 %v17609_v2, 16  ;;  %v8312_v54 = vrot.slane %v8310_v61, 1  ;;  %v8320_v13 = vshrl.u32 %v8110_v56, 16 }
 0x695   : > { %v7853_v14 = vadd.f32 %v7852_v26, %v7804_v19  ;;  %10209 = vmatmul.bf16.gmra.mxu0 %v17553_v9  ;;  %v8322_v7 = vshll.u32 %v8110_v56, 16  ;;  %v7758_v15 = vadd.f32 %v7757_v39, %v7709_v44  ;;  %v17628_v8 = vsel %vm393_vm0, %v9189_v38, %v17565_v28  ;;  %v13443_v19 = vld [vmem:[#allocation2 + $0xe00] sm:$0xf]  ;;  %v14298_v38 = vld [vmem:[#allocation2 + $0xf84] sm:$0xf0] }
 0x696   : > { %10258 = vmatmul.bf16.gmra.mxu1 %v17557_v53  ;;  %18958 = vst [vmem:[#allocation15_spill] sm:$0xff] %v17628_v8  ;;  %v17631_v26 = vld [vmem:[%s14696_s7 + $0x40] sm:$0x11]  ;;  %v9205_v12 = vor.u32 %v9204_v31, %v9200_v34  ;;  %v9268_v59 = vrot.slane %v9266_v0, 1  ;;  %v13572_v58 = vor.u32 %v14282_v23, %v13571_v6  ;;  %v9217_v44 = vor.u32 %v9216_v55, %v9212_v16  ;;  %v13177_v6 = vld [vmem:[%s14696_s7 + $0x30] sm:$0xee] }
 0x697   : > { %13108 = vst [vmem:[%s15134_s11 + $0x298] sm:$0xff] %v7853_v14  ;;  %10307 = vmatmul.bf16.gmra.mxu2 %v17560_v60  ;;  %v8324_v22 = vrot.slane %v8322_v7, 1  ;;  %v13635_v14 = vld [vmem:[#allocation2 + $0xf80] sm:$0xf]  ;;  %v13444_v28 = vor.u32 %v14250_v5, %v13443_v19  ;;  %v17635_v53 = vsel %vm393_vm0, %v9197_v32, %v17568_v25  ;;  %v17637_v34 = vrot.slane %v8327_v48, 1  ;;  %v17641_v7 = vld [vmem:[%s14696_s7 + $0x38] sm:$0xff] }
 0x698   : > { %10356 = vmatmul.bf16.gmra.mxu3 %v17580_v41  ;;  %v8313_v41 = vor.u32 %v8312_v54, %v8308_v24  ;;  %18959 = vst [vmem:[#allocation20_spill] sm:$0xff] %v17635_v53  ;;  %v9274_v31 = vshll.u32 %v17622_v17, 16  ;;  %10477 = vmatpush.bf16.msrb.mxu2 %v13572_v58  ;;  %v13636_v55 = vor.u32 %v14298_v38, %v13635_v14  ;;  %v8363_v24 = vunpack.c.l.b16 %v17631_v26  ;;  %v13507_v23 = vld [vmem:[#allocation2 + $0xe80] sm:$0xf]  ;;  %v13405_v9 = vld [vmem:[#allocation2 + $0xdb8] sm:$0xf0] }
 0x699   : > { %v8325_v0 = vor.u32 %v8324_v22, %v8320_v13  ;;  %10379 = vmatpush.bf16.msrb.mxu0 %v13444_v28  ;;  %v17647_v25 = vsel %vm393_vm0, %v9205_v12, %v9209_v10  ;;  %v9269_v32 = vor.u32 %v9268_v59, %v9264_v1  ;;  %v9272_v48 = vshrl.u32 %v17622_v17, 16  ;;  %v13153_v17 = vld [vmem:[%s14696_s7 + $0x30] sm:$0xff] }
 0x69a   : > { %v7806_v3 = vpop.f32.mrf.mxu2  ;;  %v7710_v39 = vpop.f32.mrf.mxu0  ;;  %18960 = vst [vmem:[#allocation57_spill] sm:$0xff] %v17647_v25  ;;  %v8331_v54 = vshrl.u32 %v17594_v42, 16  ;;  %v17653_v13 = vsel %vm393_vm0, %v9217_v44, %v9221_v43  ;;  %10526 = vmatpush.bf16.msrb.mxu3 %v13636_v55  ;;  %v8361_v19 = vunpack.c.l.b16 %v17641_v7  ;;  %v9276_v22 = vrot.slane %v9274_v31, 1  ;;  %v14266_v42 = vld [vmem:[#allocation2 + $0xe84] sm:$0xf0] }
 0x69b   : > { %v7807_v56 = vadd.f32 %v7806_v3, %v7758_v15  ;;  %v7855_v61 = vpop.f32.mrf.mxu3  ;;  %v7759_v60 = vpop.f32.mrf.mxu1  ;;  %v7711_v16 = vadd.f32 %v7710_v39, %v17142_v30  ;;  %18961 = vst [vmem:[#allocation17_spill] sm:$0xff] %v17653_v13  ;;  %v8318_v30 = vsel %vm393_vm0, %v8313_v41, %v17619_v27  ;;  %v8447_v3 = vunpack.c.l.b16 %v13177_v6 }
 0x69c   : > { %v17660_v10 = vsel %vm393_vm0, %v8325_v0, %v17637_v34  ;;  %v8333_v1 = vshrl.u32 %v17609_v2, 16  ;;  %v8362_v43 = vunpack.c.h.b16 %v17641_v7  ;;  %v13508_v59 = vor.u32 %v14266_v42, %v13507_v23 }
 0x69d   : > { %v7856_v15 = vadd.f32 %v7855_v61, %v7807_v56  ;;  %v7760_v12 = vadd.f32 %v7759_v60, %v7711_v16  ;;  %v17665_v58 = vpack.c.b16 %v8363_v24, %v8363_v24  ;;  %v8364_v41 = vunpack.c.h.b16 %v17631_v26 }
 0x69e   : > { %v17670_v14 = vsel %vm393_vm0, %v9269_v32, %v17619_v27  ;;  %v9282_v56 = vshll.u32 %v8318_v30, 16  ;;  %v17672_v61 = vshll.u32 %v8331_v54, 16  ;;  %v8448_v39 = vunpack.c.h.b16 %v13177_v6  ;;  %10428 = vmatpush.bf16.msrb.mxu1 %v13508_v59  ;;  %v14231_v59 = vld [vmem:[#allocation2 + $0xd74] sm:$0xf] }
 0x69f   : > { %13110 = vst [vmem:[%s15134_s11 + $0x2a8] sm:$0xff] %v7856_v15  ;;  %v9294_v38 = vshll.u32 %v17660_v10, 16  ;;  %v8359_v60 = vunpack.c.l.b16 %v13153_v17  ;;  %v8463_v31 = vpack.c.b16 %v8361_v19, %v8447_v3  ;;  %v9277_v26 = vor.u32 %v9276_v22, %v9272_v48 }
 0x6a0   : > { %18962 = vst [vmem:[#allocation55_spill] sm:$0xff] %v17670_v14  ;;  %v8360_v7 = vunpack.c.h.b16 %v13153_v17  ;;  %v17675_v15 = vpack.c.b16 %v8364_v41, %v8364_v41  ;;  %v8464_v27 = vpack.c.b16 %v8362_v43, %v8448_v39  ;;  %v17678_v24 = vshll.u32 %v8333_v1, 16 }
 0x6a1   : > { %v8487_v6 = vshll.u32 %v17665_v58, 16  ;;  %v9280_v32 = vshrl.u32 %v8318_v30, 16  ;;  %v9284_v54 = vrot.slane %v9282_v56, 1  ;;  %v9289_v23 = vrot.slane %v17672_v61, 1  ;;  %v13373_v56 = vld [vmem:[#allocation2 + $0xd78] sm:$0xf0] }
 0x6a2   : > { %v7808_v5 = vpop.f32.mrf.mxu2  ;;  %v7713_v28 = vpop.f32.mrf.mxu0  ;;  %v9292_v3 = vshrl.u32 %v17660_v10, 16  ;;  %v9296_v48 = vrot.slane %v9294_v38, 1  ;;  %v17687_v22 = vpack.c.b16 %v8361_v19, %v8359_v60  ;;  %v8482_v1 = vshll.u32 %v8463_v31, 16  ;;  %v14199_v61 = vld [vmem:[#allocation2 + $0xc74] sm:$0xf] }
 0x6a3   : > { %v7809_v2 = vadd.f32 %v7808_v5, %v7760_v12  ;;  %v7857_v44 = vpop.f32.mrf.mxu3  ;;  %v7762_v0 = vpop.f32.mrf.mxu1  ;;  %v7714_v55 = vadd.f32 %v7713_v28, %v17169_v62  ;;  %v8480_v62 = vshrl.u32 %v8463_v31, 16  ;;  %v17690_v42 = vpack.c.b16 %v8362_v43, %v8360_v7  ;;  %v13245_v38 = vld [vmem:[#allocation2 + $0xc78] sm:$0xf0]  ;;  %v14247_v60 = vld [vmem:[#allocation2 + $0xdf4] sm:$0xf] }
 0x6a4   : > { %v8499_v30 = vshll.u32 %v17675_v15, 16  ;;  %v8492_v17 = vshrl.u32 %v8464_v27, 16  ;;  %v8494_v12 = vshll.u32 %v8464_v27, 16  ;;  %v17695_v41 = vsel %vm393_vm0, %v9277_v26, %v17637_v34 }
 0x6a5   : > { %v7858_v16 = vadd.f32 %v7857_v44, %v7809_v2  ;;  %10214 = vmatmul.bf16.gmra.mxu0 %v17628_v8  ;;  %v7763_v10 = vadd.f32 %v7762_v0, %v7714_v55  ;;  %18963 = vst [vmem:[#allocation24_spill] sm:$0xff] %v17695_v41  ;;  %v17697_v5 = vrot.slane %v8487_v6, 1  ;;  %v8484_v19 = vrot.slane %v8482_v1, 1  ;;  %v17705_v1 = vld [vmem:[%s14696_s7 + $0x50] sm:$0xff] }
 0x6a6   : > { %10263 = vmatmul.bf16.gmra.mxu1 %v17635_v53  ;;  %v9285_v2 = vor.u32 %v9284_v54, %v9280_v32  ;;  %v9301_v43 = vrot.slane %v17678_v24, 1  ;;  %v8496_v44 = vrot.slane %v8494_v12, 1  ;;  %v13376_v28 = vor.u32 %v14231_v59, %v13373_v56  ;;  %v13178_v12 = vld [vmem:[%s14696_s7 + $0x48] sm:$0xee]  ;;  %v14239_v8 = vld [vmem:[#allocation2 + $0xdb4] sm:$0xf] }
 0x6a7   : > { %13112 = vst [vmem:[%s15134_s11 + $0x2b8] sm:$0xff] %v7858_v16  ;;  %10312 = vmatmul.bf16.gmra.mxu2 %v17647_v25  ;;  %v9297_v34 = vor.u32 %v9296_v48, %v9292_v3  ;;  %v8746_v26 = vshll.u32 %v17687_v22, 16  ;;  %v8485_v27 = vor.u32 %v8484_v19, %v8480_v62  ;;  %v13437_v16 = vld [vmem:[#allocation2 + $0xdf8] sm:$0xf0]  ;;  %v17701_v6 = vrot.slane %v8499_v30, 1 }
 0x6a8   : > { %10361 = vmatmul.bf16.gmra.mxu3 %v17653_v13  ;;  %v8754_v32 = vshll.u32 %v17690_v42, 16  ;;  %v8497_v24 = vor.u32 %v8496_v44, %v8492_v17  ;;  %10666 = vmatpush.bf16.msra.mxu2 %v13376_v28  ;;  %v13248_v54 = vor.u32 %v14199_v61, %v13245_v38  ;;  %v13440_v62 = vor.u32 %v14247_v60, %v13437_v16  ;;  %v13309_v30 = vld [vmem:[#allocation2 + $0xcf8] sm:$0xf0]  ;;  %v13164_v25 = vld [vmem:[%s14696_s7 + $0x88] sm:$0x11] }
 0x6a9   : > { %v8490_v48 = vsel %vm393_vm0, %v8485_v27, %v17697_v5  ;;  %v17712_v19 = vsel %vm393_vm0, %v9285_v2, %v9289_v23  ;;  %v8744_v17 = vshrl.u32 %v17687_v22, 16  ;;  %v8503_v56 = vshrl.u32 %v17665_v58, 16 }
 0x6aa   : > { %v7811_v39 = vpop.f32.mrf.mxu2  ;;  %v7715_v7 = vpop.f32.mrf.mxu0  ;;  %18964 = vst [vmem:[#allocation21_spill] sm:$0xff] %v17712_v19  ;;  %v8505_v61 = vshrl.u32 %v17675_v15, 16  ;;  %10568 = vmatpush.bf16.msra.mxu0 %v13248_v54  ;;  %10715 = vmatpush.bf16.msra.mxu3 %v13440_v62  ;;  %v8367_v28 = vunpack.c.l.b16 %v17705_v1  ;;  %v8449_v38 = vunpack.c.l.b16 %v13178_v12  ;;  %v17721_v60 = vsel %vm393_vm0, %v9297_v34, %v9301_v43  ;;  %v13156_v15 = vld [vmem:[%s14696_s7 + $0x48] sm:$0xff] }
 0x6ab   : > { %v7812_v31 = vadd.f32 %v7811_v39, %v7763_v10  ;;  %v7860_v0 = vpop.f32.mrf.mxu3  ;;  %v7764_v55 = vpop.f32.mrf.mxu1  ;;  %v7716_v3 = vadd.f32 %v7715_v7, %v17191_v51  ;;  %v14215_v10 = vld [vmem:[#allocation2 + $0xcf4] sm:$0xf]  ;;  %v13158_v39 = vld [vmem:[%s14696_s7 + $0x58] sm:$0x11]  ;;  %v8748_v51 = vrot.slane %v8746_v26, 1  ;;  %18965 = vst [vmem:[#allocation18_spill] sm:$0xff] %v17721_v60  ;;  %v17726_v58 = vsel %vm393_vm0, %v8497_v24, %v17701_v6 }
 0x6ac   : > { %v13312_v44 = vor.u32 %v14215_v10, %v13309_v30  ;;  %v8752_v23 = vshrl.u32 %v17690_v42, 16  ;;  %v8762_v2 = vshll.u32 %v8490_v48, 16  ;;  %v8370_v7 = vunpack.c.h.b16 %v13158_v39 }
 0x6ad   : > { %v7861_v59 = vadd.f32 %v7860_v0, %v7812_v31  ;;  %v7765_v22 = vadd.f32 %v7764_v55, %v7716_v3  ;;  %v8756_v31 = vrot.slane %v8754_v32, 1  ;;  %v8369_v0 = vunpack.c.l.b16 %v13158_v39 }
 0x6ae   : > { %10617 = vmatpush.bf16.msra.mxu1 %v13312_v44  ;;  %v17729_v27 = vshll.u32 %v8503_v56, 16  ;;  %v17731_v16 = vshll.u32 %v8505_v61, 16  ;;  %v8368_v43 = vunpack.c.h.b16 %v17705_v1  ;;  %v8450_v34 = vunpack.c.h.b16 %v13178_v12 }
 0x6af   : > { %13114 = vst [vmem:[%s15134_s11 + $0x2c8] sm:$0xff] %v7861_v59  ;;  %v8774_v24 = vshll.u32 %v17726_v58, 16  ;;  %v8365_v62 = vunpack.c.l.b16 %v13156_v15  ;;  %v17735_v55 = vpack.c.b16 %v8367_v28, %v8449_v38  ;;  %v8749_v3 = vor.u32 %v8748_v51, %v8744_v17 }
 0x6b0   : > { %v8760_v10 = vshrl.u32 %v8490_v48, 16  ;;  %v8764_v30 = vrot.slane %v8762_v2, 1  ;;  %v8366_v56 = vunpack.c.h.b16 %v13156_v15  ;;  %v17738_v44 = vpack.c.b16 %v8369_v0, %v8369_v0  ;;  %v14229_v0 = vld [vmem:[#allocation2 + $0xd64] sm:$0xf] }
 0x6b1   : > { %v17740_v1 = vpack.c.b16 %v8370_v7, %v8370_v7  ;;  %v8757_v12 = vor.u32 %v8756_v31, %v8752_v23  ;;  %v8772_v48 = vshrl.u32 %v17726_v58, 16  ;;  %v17749_v17 = vpack.c.b16 %v8367_v28, %v8365_v62  ;;  %v14197_v62 = vld [vmem:[#allocation2 + $0xc64] sm:$0xf] }
 0x6b2   : > { %v7813_v26 = vpop.f32.mrf.mxu2  ;;  %v7718_v59 = vpop.f32.mrf.mxu0  ;;  %v8510_v51 = vshll.u32 %v17735_v55, 16  ;;  %v8765_v23 = vor.u32 %v8764_v30, %v8760_v10  ;;  %v17753_v2 = vpack.c.b16 %v8368_v43, %v8366_v56  ;;  %v8508_v15 = vshrl.u32 %v17735_v55, 16  ;;  %v13237_v55 = vld [vmem:[#allocation2 + $0xc68] sm:$0xf0] }
 0x6b3   : > { %v7814_v42 = vadd.f32 %v7813_v26, %v7765_v22  ;;  %v7862_v54 = vpop.f32.mrf.mxu3  ;;  %v7767_v32 = vpop.f32.mrf.mxu1  ;;  %v7719_v61 = vadd.f32 %v7718_v59, %v17236_v46  ;;  %v8769_v22 = vrot.slane %v17729_v27, 1  ;;  %v8466_v26 = vpack.c.b16 %v8368_v43, %v8450_v34 }
 0x6b4   : > { %v8776_v46 = vrot.slane %v8774_v24, 1  ;;  %v8515_v27 = vshll.u32 %v17738_v44, 16  ;;  %v8527_v34 = vshll.u32 %v17740_v1, 16  ;;  %v8512_v59 = vrot.slane %v8510_v51, 1 }
 0x6b5   : > { %v7863_v39 = vadd.f32 %v7862_v54, %v7814_v42  ;;  %10219 = vmatmul.bf16.gmra.mxu0 %v17670_v14  ;;  %v8522_v31 = vshll.u32 %v8466_v26, 16  ;;  %v7768_v7 = vadd.f32 %v7767_v32, %v7719_v61  ;;  %v8520_v58 = vshrl.u32 %v8466_v26, 16  ;;  %v13365_v42 = vld [vmem:[#allocation2 + $0xd68] sm:$0xf0] }
 0x6b6   : > { %10268 = vmatmul.bf16.gmra.mxu1 %v17695_v41  ;;  %v17760_v54 = vsel %vm393_vm0, %v8749_v3, %v17697_v5  ;;  %v13368_v43 = vor.u32 %v14229_v0, %v13365_v42  ;;  %v17764_v56 = vsel %vm393_vm0, %v8757_v12, %v17701_v6  ;;  %v8826_v5 = vshll.u32 %v17749_v17, 16  ;;  %v14245_v3 = vld [vmem:[#allocation2 + $0xde4] sm:$0xf]  ;;  %v13429_v61 = vld [vmem:[#allocation2 + $0xde8] sm:$0xf0] }
 0x6b7   : > { %13116 = vst [vmem:[%s15134_s11 + $0x2d8] sm:$0xff] %v7863_v39  ;;  %10317 = vmatmul.bf16.gmra.mxu2 %v17712_v19  ;;  %v8524_v24 = vrot.slane %v8522_v31, 1  ;;  %v8824_v39 = vshrl.u32 %v17749_v17, 16  ;;  %v8777_v51 = vor.u32 %v8776_v46, %v8772_v48  ;;  %v8834_v31 = vshll.u32 %v17753_v2, 16  ;;  %v17771_v42 = vld [vmem:[%s14696_s7 + $0x60] sm:$0xff]  ;;  %v17774_v6 = vld [vmem:[%s14696_s7 + $0x68] sm:$0xff] }
 0x6b8   : > { %10366 = vmatmul.bf16.gmra.mxu3 %v17721_v60  ;;  %18966 = vst [vmem:[#allocation23_spill] sm:$0xff] %v17760_v54  ;;  %v8531_v0 = vshrl.u32 %v17738_v44, 16  ;;  %10667 = vmatpush.bf16.msra.mxu2 %v13368_v43  ;;  %v13179_v12 = vld [vmem:[%s14696_s7 + $0x60] sm:$0xee]  ;;  %v17779_v38 = vsel %vm393_vm0, %v8765_v23, %v8769_v22  ;;  %v13432_v60 = vor.u32 %v14245_v3, %v13429_v61  ;;  %v13301_v46 = vld [vmem:[#allocation2 + $0xce8] sm:$0xf0]  ;;  %v8371_v22 = vunpack.c.l.b16 %v17771_v42 }
 0x6b9   : > { %18967 = vst [vmem:[#allocation27_spill] sm:$0xff] %v17764_v56  ;;  %v14213_v48 = vld [vmem:[#allocation2 + $0xce4] sm:$0xf]  ;;  %v13161_v19 = vld [vmem:[%s14696_s7 + $0x70] sm:$0x11]  ;;  %v17782_v41 = vrot.slane %v8515_v27, 1  ;;  %v8513_v43 = vor.u32 %v8512_v59, %v8508_v15  ;;  %v8451_v27 = vunpack.c.l.b16 %v13179_v12  ;;  %v8452_v59 = vunpack.c.h.b16 %v13179_v12 }
 0x6ba   : > { %v7816_v28 = vpop.f32.mrf.mxu2  ;;  %v7720_v30 = vpop.f32.mrf.mxu0  ;;  %18968 = vst [vmem:[#allocation28_spill] sm:$0xff] %v17779_v38  ;;  %v17784_v44 = vrot.slane %v8527_v34, 1  ;;  %10716 = vmatpush.bf16.msra.mxu3 %v13432_v60  ;;  %v8533_v23 = vshrl.u32 %v17740_v1, 16  ;;  %v8836_v34 = vrot.slane %v8834_v31, 1  ;;  %v17791_v61 = vshll.u32 %v8531_v0, 16 }
 0x6bb   : > { %v7817_v10 = vadd.f32 %v7816_v28, %v7768_v7  ;;  %v7865_v32 = vpop.f32.mrf.mxu3  ;;  %v7769_v26 = vpop.f32.mrf.mxu1  ;;  %v13240_v7 = vor.u32 %v14197_v62, %v13237_v55  ;;  %v7721_v17 = vadd.f32 %v7720_v30, %v17271_v49  ;;  %v8525_v62 = vor.u32 %v8524_v24, %v8520_v58 }
 0x6bc   : > { %v8828_v55 = vrot.slane %v8826_v5, 1  ;;  %v13304_v49 = vor.u32 %v14213_v48, %v13301_v46  ;;  %v8375_v30 = vunpack.c.l.b16 %v13161_v19  ;;  %v8376_v15 = vunpack.c.h.b16 %v13161_v19 }
 0x6bd   : > { %v7866_v28 = vadd.f32 %v7865_v32, %v7817_v10  ;;  %10569 = vmatpush.bf16.msra.mxu0 %v13240_v7  ;;  %v8832_v10 = vshrl.u32 %v17753_v2, 16  ;;  %v8373_v32 = vunpack.c.l.b16 %v17774_v6  ;;  %v7770_v3 = vadd.f32 %v7769_v26, %v7721_v17 }
 0x6be   : > { %10618 = vmatpush.bf16.msra.mxu1 %v13304_v49  ;;  %v17795_v2 = vsel %vm393_vm0, %v8513_v43, %v17782_v41  ;;  %v17799_v60 = vsel %vm393_vm0, %v8525_v62, %v17784_v44  ;;  %v8374_v1 = vunpack.c.h.b16 %v17774_v6  ;;  %v18969_v31 = vrot.slane %v17731_v16, 1 }
 0x6bf   : > { %13118 = vst [vmem:[%s15134_s11 + $0x2e8] sm:$0xff] %v7866_v28  ;;  %v17807_v19 = vpack.c.b16 %v8373_v32, %v8371_v22  ;;  %v17809_v7 = vpack.c.b16 %v8375_v30, %v8375_v30  ;;  %v17812_v48 = vor.u32 %v8828_v55, %v8824_v39  ;;  %v17814_v6 = vshll.u32 %v8533_v23, 16  ;;  %v14195_v22 = vld [vmem:[#allocation2 + $0xc54] sm:$0xf] }
 0x6c0   : > { %v17805_v0 = vsel %vm393_vm0, %v8777_v51, %v18969_v31  ;;  %v8467_v12 = vpack.c.b16 %v8373_v32, %v8451_v27  ;;  %v8842_v43 = vshll.u32 %v17795_v2, 16  ;;  %v8854_v16 = vshll.u32 %v17799_v60, 16 }
 0x6c1   : > { %18970 = vst [vmem:[#allocation62_spill] sm:$0xff] %v17805_v0  ;;  %v17818_v51 = vpack.c.b16 %v8376_v15, %v8376_v15  ;;  %v8837_v49 = vor.u32 %v8836_v34, %v8832_v10  ;;  %v8468_v30 = vpack.c.b16 %v8374_v1, %v8452_v59  ;;  %v8543_v39 = vshll.u32 %v17809_v7, 16  ;;  %v14227_v15 = vld [vmem:[#allocation2 + $0xd54] sm:$0xf] }
 0x6c2   : > { %v7818_v58 = vpop.f32.mrf.mxu2  ;;  %v10185_v26 = vpop.f32.mrf.mxu0  ;;  %v8906_v55 = vshll.u32 %v17807_v19, 16  ;;  %v8372_v23 = vunpack.c.h.b16 %v17771_v42  ;;  %v8536_v27 = vshrl.u32 %v8467_v12, 16  ;;  %v8538_v10 = vshll.u32 %v8467_v12, 16 }
 0x6c3   : > { %v7819_v24 = vadd.f32 %v7818_v58, %v7770_v3  ;;  %v7867_v5 = vpop.f32.mrf.mxu3  ;;  %v10186_v28 = vadd.f32 %v10185_v26, %v14904_v40  ;;  %v10234_v17 = vpop.f32.mrf.mxu1  ;;  %v8555_v32 = vshll.u32 %v17818_v51, 16  ;;  %v8548_v3 = vshrl.u32 %v8468_v30, 16  ;;  %v13357_v26 = vld [vmem:[#allocation2 + $0xd58] sm:$0xf0] }
 0x6c4   : > { %v8550_v34 = vshll.u32 %v8468_v30, 16  ;;  %v8840_v58 = vshrl.u32 %v17795_v2, 16  ;;  %v8844_v59 = vrot.slane %v8842_v43, 1  ;;  %v8540_v42 = vrot.slane %v8538_v10, 1  ;;  %v13229_v2 = vld [vmem:[#allocation2 + $0xc58] sm:$0xf0] }
 0x6c5   : > { %v7868_v46 = vadd.f32 %v7867_v5, %v7819_v24  ;;  %v10235_v62 = vadd.f32 %v10234_v17, %v10186_v28  ;;  %10380 = vmatmul.bf16.vlgmr.msrb.gmra.mxu0 %v17760_v54  ;;  %v8852_v24 = vshrl.u32 %v17799_v60, 16  ;;  %v8856_v5 = vrot.slane %v8854_v16, 1  ;;  %v14243_v60 = vld [vmem:[#allocation2 + $0xdd4] sm:$0xf] }
 0x6c6   : > { %10429 = vmatmul.bf16.vlgmr.msrb.gmra.mxu1 %v17764_v56  ;;  %v8904_v28 = vshrl.u32 %v17807_v19, 16  ;;  %v8552_v17 = vrot.slane %v8550_v34, 1  ;;  %v8545_v30 = vrot.slane %v8543_v39, 1  ;;  %v8908_v56 = vrot.slane %v8906_v55, 1  ;;  %v13421_v34 = vld [vmem:[#allocation2 + $0xdd8] sm:$0xf0] }
 0x6c7   : > { %13120 = vst [vmem:[%s15134_s11 + $0x2f8] sm:$0xff] %v7868_v46  ;;  %10478 = vmatmul.bf16.vlgmr.msrb.gmra.mxu2 %v17779_v38  ;;  %v13360_v46 = vor.u32 %v14227_v15, %v13357_v26  ;;  %v17833_v54 = vpack.c.b16 %v8374_v1, %v8372_v23  ;;  %v17836_v14 = vrot.slane %v8555_v32, 1  ;;  %v8541_v19 = vor.u32 %v8540_v42, %v8536_v27  ;;  %v14211_v55 = vld [vmem:[#allocation2 + $0xcd4] sm:$0xf]  ;;  %v13293_v23 = vld [vmem:[#allocation2 + $0xcd8] sm:$0xf0] }
 0x6c8   : > { %10527 = vmatmul.bf16.vlgmr.msrb.gmra.mxu3 %v17805_v0  ;;  %v8553_v10 = vor.u32 %v8552_v17, %v8548_v3  ;;  %v8845_v39 = vor.u32 %v8844_v59, %v8840_v58  ;;  %v13232_v1 = vor.u32 %v14195_v22, %v13229_v2  ;;  %v13180_v26 = vld [vmem:[%s14696_s7 + $0x78] sm:$0xee]  ;;  %v8857_v13 = vor.u32 %v8856_v5, %v8852_v24 }
 0x6c9   : > { %10668 = vmatpush.bf16.msra.mxu2 %v13360_v46  ;;  %v13424_v32 = vor.u32 %v14243_v60, %v13421_v34  ;;  %v17849_v27 = vsel %vm393_vm0, %v17812_v48, %v17782_v41  ;;  %v8914_v22 = vshll.u32 %v17833_v54, 16  ;;  %v17858_v58 = vsel %vm393_vm0, %v8541_v19, %v8545_v30  ;;  %v17871_v5 = vld [vmem:[%s14696_s7 + $0x78] sm:$0xff] }
 0x6ca   : > { %v10283_v31 = vpop.f32.mrf.mxu2  ;;  %v10187_v38 = vpop.f32.mrf.mxu0  ;;  %18971 = vst [vmem:[#allocation22_spill] sm:$0xff] %v17849_v27  ;;  %10570 = vmatpush.bf16.msra.mxu0 %v13232_v1  ;;  %v13296_v59 = vor.u32 %v14211_v55, %v13293_v23  ;;  %v8453_v41 = vunpack.c.l.b16 %v13180_v26  ;;  %v18973_v48 = vrot.slane %v17791_v61, 1  ;;  %v8559_v24 = vshrl.u32 %v17809_v7, 16 }
 0x6cb   : > { %v10284_v0 = vadd.f32 %v10283_v31, %v10235_v62  ;;  %v10332_v12 = vpop.f32.mrf.mxu3  ;;  %v10188_v43 = vadd.f32 %v10187_v38, %v14904_v40  ;;  %v10236_v16 = vpop.f32.mrf.mxu1  ;;  %v17839_v62 = vld [vmem:[%s14696_s7 + $0x80] sm:$0xff]  ;;  %v8861_v38 = vrot.slane %v17814_v6, 1  ;;  %v17862_v6 = vsel %vm393_vm0, %v8553_v10, %v17836_v14  ;;  %10717 = vmatpush.bf16.msra.mxu3 %v13424_v32 }
 0x6cc   : > { %v8379_v3 = vunpack.c.l.b16 %v17839_v62  ;;  %v8381_v42 = vunpack.c.l.b16 %v13164_v25  ;;  %v8561_v2 = vshrl.u32 %v17818_v51, 16  ;;  %10619 = vmatpush.bf16.msra.mxu1 %v13296_v59  ;;  %v8382_v60 = vunpack.c.h.b16 %v13164_v25 }
 0x6cd   : > { %v17841_v15 = vadd.f32 %v10332_v12, %v10284_v0  ;;  %v10237_v31 = vadd.f32 %v10236_v16, %v10188_v43  ;;  %v17853_v0 = vsel %vm393_vm0, %v8837_v49, %v17784_v44  ;;  %v17867_v44 = vsel %vm393_vm0, %v8845_v39, %v18973_v48 }
 0x6ce   : > { %18972 = vst [vmem:[#allocation31_spill] sm:$0xff] %v17853_v0  ;;  %v8909_v49 = vor.u32 %v8908_v56, %v8904_v28  ;;  %v17874_v46 = vsel %vm393_vm0, %v8857_v13, %v8861_v38  ;;  %v8912_v12 = vshrl.u32 %v17833_v54, 16  ;;  %v8916_v19 = vrot.slane %v8914_v22, 1 }
 0x6cf   : > { %18974 = vst [vmem:[#allocation32_spill] sm:$0xff] %v17867_v44  ;;  %v8922_v56 = vshll.u32 %v17858_v58, 16  ;;  %v8934_v7 = vshll.u32 %v17862_v6, 16  ;;  %v8377_v13 = vunpack.c.l.b16 %v17871_v5  ;;  %v8469_v34 = vpack.c.b16 %v8379_v3, %v8453_v41 }
 0x6d0   : > { %18975 = vst [vmem:[#allocation25_spill] sm:$0xff] %v17874_v46  ;;  %v18642_v54 = vunpack.c.h.b16 %v17839_v62  ;;  %v17886_v25 = vsel %vm393_vm0, %v8909_v49, %v8545_v30  ;;  %v17888_v51 = vshll.u32 %v8559_v24, 16  ;;  %v17890_v1 = vpack.c.b16 %v8381_v42, %v8381_v42  ;;  %v13349_v42 = vld [vmem:[#allocation2 + $0xd48] sm:$0xf0] }
 0x6d1   : > { %18976 = vst [vmem:[#allocation26_spill] sm:$0xff] %v17886_v25  ;;  %v17893_v23 = vshll.u32 %v8561_v2, 16  ;;  %v8454_v38 = vunpack.c.h.b16 %v13180_v26  ;;  %v8917_v32 = vor.u32 %v8916_v19, %v8912_v12  ;;  %v8920_v30 = vshrl.u32 %v17858_v58, 16  ;;  %v14225_v26 = vld [vmem:[#allocation2 + $0xd44] sm:$0xf] }
 0x6d2   : > { %v10285_v17 = vpop.f32.mrf.mxu2  ;;  %v10190_v16 = vpop.f32.mrf.mxu0  ;;  %v8924_v22 = vrot.slane %v8922_v56, 1  ;;  %v8932_v59 = vshrl.u32 %v17862_v6, 16  ;;  %v8936_v41 = vrot.slane %v8934_v7, 1  ;;  %v17902_v48 = vpack.c.b16 %v8379_v3, %v8377_v13  ;;  %v13221_v19 = vld [vmem:[#allocation2 + $0xc48] sm:$0xf0] }
 0x6d3   : > { %v10286_v61 = vadd.f32 %v10285_v17, %v10237_v31  ;;  %v10334_v43 = vpop.f32.mrf.mxu3  ;;  %v10191_v28 = vadd.f32 %v10190_v16, %v14904_v40  ;;  %v10239_v10 = vpop.f32.mrf.mxu1  ;;  %v17895_v31 = vpack.c.b16 %v8382_v60, %v8382_v60  ;;  %v8470_v49 = vpack.c.b16 %v18642_v54, %v8454_v38  ;;  %v14193_v60 = vld [vmem:[#allocation2 + $0xc44] sm:$0xf]  ;;  %v13413_v38 = vld [vmem:[#allocation2 + $0xdc8] sm:$0xf0]  ;;  %v17914_v54 = vld [vmem:[%s14696_s7 + $0x98] sm:$0xff] }
 0x6d4   : > { %v8566_v24 = vshll.u32 %v8469_v34, 16  ;;  %v8929_v17 = vrot.slane %v17888_v51, 1  ;;  %v8571_v12 = vshll.u32 %v17890_v1, 16  ;;  %v8564_v2 = vshrl.u32 %v8469_v34, 16  ;;  %v14241_v34 = vld [vmem:[#allocation2 + $0xdc4] sm:$0xf] }
 0x6d5   : > { %v17883_v39 = vadd.f32 %v10334_v43, %v10286_v61  ;;  %v10240_v55 = vadd.f32 %v10239_v10, %v10191_v28  ;;  %10385 = vmatmul.bf16.gmra.mxu0 %v17849_v27  ;;  %v13352_v58 = vor.u32 %v14225_v26, %v13349_v42  ;;  %v8941_v6 = vrot.slane %v17893_v23, 1 }
 0x6d6   : > { %10434 = vmatmul.bf16.gmra.mxu1 %v17853_v0  ;;  %v8378_v43 = vunpack.c.h.b16 %v17871_v5  ;;  %v8583_v3 = vshll.u32 %v17895_v31, 16  ;;  %v8568_v16 = vrot.slane %v8566_v24, 1  ;;  %v8925_v10 = vor.u32 %v8924_v22, %v8920_v30  ;;  %v17926_v0 = vld [vmem:[%s14696_s7 + $0x90] sm:$0xff] }
 0x6d7   : > { %10483 = vmatmul.bf16.gmra.mxu2 %v17867_v44  ;;  %v8576_v13 = vshrl.u32 %v8470_v49, 16  ;;  %v8578_v51 = vshll.u32 %v8470_v49, 16  ;;  %v8937_v42 = vor.u32 %v8936_v41, %v8932_v59  ;;  %v8986_v5 = vshll.u32 %v17902_v48, 16 }
 0x6d8   : > { %10532 = vmatmul.bf16.gmra.mxu3 %v17874_v46  ;;  %10669 = vmatpush.bf16.msra.mxu2 %v13352_v58  ;;  %v13224_v24 = vor.u32 %v14193_v60, %v13221_v19  ;;  %v17921_v30 = vrot.slane %v8571_v12, 1  ;;  %v8569_v22 = vor.u32 %v8568_v16, %v8564_v2  ;;  %v14209_v58 = vld [vmem:[#allocation2 + $0xcc4] sm:$0xf]  ;;  %v13285_v46 = vld [vmem:[#allocation2 + $0xcc8] sm:$0xf0]  ;;  %v17923_v44 = vrot.slane %v8583_v3, 1 }
 0x6d9   : > { %v8580_v49 = vrot.slane %v8578_v51, 1  ;;  %v13416_v59 = vor.u32 %v14241_v34, %v13413_v38  ;;  %v13288_v41 = vor.u32 %v14209_v58, %v13285_v46  ;;  %v13167_v60 = vld [vmem:[%s14696_s7 + $0xa0] sm:$0x11]  ;;  %v18977_v19 = vunpack.c.h.b16 %v17839_v62 }
 0x6da   : > { %v10288_v61 = vpop.f32.mrf.mxu2  ;;  %v10192_v28 = vpop.f32.mrf.mxu0  ;;  %10571 = vmatpush.bf16.msra.mxu0 %v13224_v24  ;;  %v8587_v12 = vshrl.u32 %v17890_v1, 16  ;;  %v8589_v2 = vshrl.u32 %v17895_v31, 16  ;;  %v17937_v16 = vsel %vm393_vm0, %v8917_v32, %v17836_v14  ;;  %v8984_v3 = vshrl.u32 %v17902_v48, 16 }
 0x6db   : > { %v10289_v56 = vadd.f32 %v10288_v61, %v10240_v55  ;;  %v10337_v7 = vpop.f32.mrf.mxu3  ;;  %v10193_v26 = vadd.f32 %v10192_v28, %v14904_v40  ;;  %v10241_v23 = vpop.f32.mrf.mxu1  ;;  %v17917_v55 = vld [vmem:[%s14696_s7 + $0x90] sm:$0xee]  ;;  %v17931_v27 = vpack.c.b16 %v18977_v19, %v8378_v43  ;;  %18978 = vst [vmem:[#allocation35_spill] sm:$0xff] %v17937_v16  ;;  %10718 = vmatpush.bf16.msra.mxu3 %v13416_v59  ;;  %v8385_v46 = vunpack.c.l.b16 %v17914_v54 }
 0x6dc   : > { %10620 = vmatpush.bf16.msra.mxu1 %v13288_v41  ;;  %v17943_v62 = vsel %vm393_vm0, %v8925_v10, %v8929_v17  ;;  %v17947_v1 = vsel %vm393_vm0, %v8569_v22, %v17921_v30  ;;  %v8383_v31 = vunpack.c.l.b16 %v17926_v0  ;;  %v8387_v43 = vunpack.c.l.b16 %v13167_v60 }
 0x6dd   : > { %v17919_v61 = vadd.f32 %v10337_v7, %v10289_v56  ;;  %v10242_v28 = vadd.f32 %v10241_v23, %v10193_v26  ;;  %v8581_v56 = vor.u32 %v8580_v49, %v8576_v13  ;;  %v8455_v7 = vunpack.c.l.b16 %v17917_v55  ;;  %18979 = vst [vmem:[#allocation36_spill] sm:$0xff] %v17943_v62 }
 0x6de   : > { %v17951_v32 = vsel %vm393_vm0, %v8937_v42, %v8941_v6  ;;  %v8988_v48 = vrot.slane %v8986_v5, 1  ;;  %v8388_v51 = vunpack.c.h.b16 %v13167_v60  ;;  %v8994_v38 = vshll.u32 %v17931_v27, 16 }
 0x6df   : > { %18980 = vst [vmem:[#allocation29_spill] sm:$0xff] %v17951_v32  ;;  %v17955_v13 = vsel %vm393_vm0, %v8581_v56, %v17923_v44  ;;  %v17958_v26 = vshll.u32 %v8587_v12, 16  ;;  %v17960_v23 = vshll.u32 %v8589_v2, 16  ;;  %v9002_v6 = vshll.u32 %v17947_v1, 16 }
 0x6e0   : > { %v8471_v42 = vpack.c.b16 %v8385_v46, %v8455_v7  ;;  %v8386_v5 = vunpack.c.h.b16 %v17914_v54  ;;  %v9014_v58 = vshll.u32 %v17955_v13, 16  ;;  %v17970_v59 = vpack.c.b16 %v8387_v43, %v8387_v43 }
 0x6e1   : > { %v8992_v60 = vshrl.u32 %v17931_v27, 16  ;;  %v17974_v19 = vpack.c.b16 %v8388_v51, %v8388_v51  ;;  %v8456_v12 = vunpack.c.h.b16 %v17917_v55  ;;  %v8996_v54 = vrot.slane %v8994_v38, 1  ;;  %v14223_v38 = vld [vmem:[#allocation2 + $0xd34] sm:$0xf] }
 0x6e2   : > { %v10290_v14 = vpop.f32.mrf.mxu2  ;;  %v10195_v10 = vpop.f32.mrf.mxu0  ;;  %v9000_v56 = vshrl.u32 %v17947_v1, 16  ;;  %v9009_v2 = vrot.slane %v17958_v26, 1  ;;  %v9004_v7 = vrot.slane %v9002_v6, 1  ;;  %v8384_v27 = vunpack.c.h.b16 %v17926_v0  ;;  %v13341_v26 = vld [vmem:[#allocation2 + $0xd38] sm:$0xf0] }
 0x6e3   : > { %v10291_v34 = vadd.f32 %v10290_v14, %v10242_v28  ;;  %v10339_v17 = vpop.f32.mrf.mxu3  ;;  %v10196_v24 = vadd.f32 %v10195_v10, %v14904_v40  ;;  %v10244_v22 = vpop.f32.mrf.mxu1  ;;  %v17968_v28 = vpack.c.b16 %v8385_v46, %v8383_v31  ;;  %v8472_v31 = vpack.c.b16 %v8386_v5, %v8456_v12 }
 0x6e4   : > { %v8594_v43 = vshll.u32 %v8471_v42, 16  ;;  %v9012_v55 = vshrl.u32 %v17955_v13, 16  ;;  %v9016_v14 = vrot.slane %v9014_v58, 1  ;;  %v8599_v51 = vshll.u32 %v17970_v59, 16 }
 0x6e5   : > { %v17965_v49 = vadd.f32 %v10339_v17, %v10291_v34  ;;  %v10245_v41 = vadd.f32 %v10244_v22, %v10196_v24  ;;  %10390 = vmatmul.bf16.gmra.mxu0 %v17886_v25  ;;  %v9066_v34 = vshll.u32 %v17968_v28, 16  ;;  %v8611_v1 = vshll.u32 %v17974_v19, 16 }
 0x6e6   : > { %10439 = vmatmul.bf16.gmra.mxu1 %v17937_v16  ;;  %v8606_v10 = vshll.u32 %v8472_v31, 16  ;;  %v8989_v46 = vor.u32 %v8988_v48, %v8984_v3  ;;  %v8592_v0 = vshrl.u32 %v8471_v42, 16  ;;  %v8596_v12 = vrot.slane %v8594_v43, 1  ;;  %v14207_v48 = vld [vmem:[#allocation2 + $0xcb4] sm:$0xf] }
 0x6e7   : > { %10488 = vmatmul.bf16.gmra.mxu2 %v17943_v62  ;;  %v13213_v62 = vld [vmem:[#allocation2 + $0xc38] sm:$0xf0]  ;;  %v8997_v16 = vor.u32 %v8996_v54, %v8992_v60  ;;  %v8604_v25 = vshrl.u32 %v8472_v31, 16  ;;  %v13344_v3 = vor.u32 %v14223_v38, %v13341_v26  ;;  %v9017_v47 = vor.u32 %v9016_v14, %v9012_v55  ;;  %v17995_v60 = vld [vmem:[%s14696_s7 + $0xb0] sm:$0xff] }
 0x6e8   : > { %10537 = vmatmul.bf16.gmra.mxu3 %v17951_v32  ;;  %v14191_v32 = vld [vmem:[#allocation2 + $0xc34] sm:$0xf]  ;;  %v8608_v53 = vrot.slane %v8606_v10, 1  ;;  %v13277_v42 = vld [vmem:[#allocation2 + $0xcb8] sm:$0xf0]  ;;  %v9064_v18 = vshrl.u32 %v17968_v28, 16  ;;  %v8597_v10 = vor.u32 %v8596_v12, %v8592_v0  ;;  %v18004_v55 = vsel %vm393_vm0, %v8989_v46, %v17921_v30 }
 0x6e9   : > { %v13170_v54 = vld [vmem:[%s14696_s7 + $0xb8] sm:$0x11]  ;;  %v9068_v31 = vrot.slane %v9066_v34, 1  ;;  %10670 = vmatpush.bf16.msra.mxu2 %v13344_v3  ;;  %v13280_v38 = vor.u32 %v14207_v48, %v13277_v42  ;;  %18981 = vst [vmem:[#allocation30_spill] sm:$0xff] %v18004_v55  ;;  %v8391_v28 = vunpack.c.l.b16 %v17995_v60  ;;  %v8617_v34 = vshrl.u32 %v17974_v19, 16  ;;  %v13168_v12 = vld [vmem:[%s14696_s7 + $0xa8] sm:$0xff] }
 0x6ea   : > { %v10293_v17 = vpop.f32.mrf.mxu2  ;;  %v10197_v6 = vpop.f32.mrf.mxu0  ;;  %v8393_v14 = vunpack.c.l.b16 %v13170_v54  ;;  %v8394_v3 = vunpack.c.h.b16 %v13170_v54  ;;  %v14221_v54 = vld [vmem:[#allocation2 + $0xd24] sm:$0xf] }
 0x6eb   : > { %v10294_v24 = vadd.f32 %v10293_v17, %v10245_v41  ;;  %v10342_v22 = vpop.f32.mrf.mxu3  ;;  %v10198_v13 = vadd.f32 %v10197_v6, %v14904_v40  ;;  %v10246_v58 = vpop.f32.mrf.mxu1  ;;  %v9005_v41 = vor.u32 %v9004_v7, %v9000_v56  ;;  %v17991_v17 = vpack.c.b16 %v8386_v5, %v8384_v27  ;;  %v13182_v56 = vld [vmem:[%s14696_s7 + $0xa8] sm:$0xee]  ;;  %10621 = vmatpush.bf16.msra.mxu1 %v13280_v38 }
 0x6ec   : > { %v8601_v6 = vrot.slane %v8599_v51, 1  ;;  %v17999_v7 = vrot.slane %v8611_v1, 1  ;;  %v8615_v5 = vshrl.u32 %v17970_v59, 16  ;;  %v8609_v27 = vor.u32 %v8608_v53, %v8604_v25 }
 0x6ed   : > { %v17989_v33 = vadd.f32 %v10342_v22, %v10294_v24  ;;  %v10247_v43 = vadd.f32 %v10246_v58, %v10198_v13  ;;  %v13216_v24 = vor.u32 %v14191_v32, %v13213_v62  ;;  %v13408_v22 = vor.u32 %v14239_v8, %v13405_v9 }
 0x6ee   : > { %v18009_v9 = vsel %vm393_vm0, %v8997_v16, %v17923_v44  ;;  %v18012_v8 = vsel %vm393_vm0, %v9005_v41, %v9009_v2  ;;  %v9074_v53 = vshll.u32 %v17991_v17, 16  ;;  %v8457_v25 = vunpack.c.l.b16 %v13182_v56 }
 0x6ef   : > { %10572 = vmatpush.bf16.msra.mxu0 %v13216_v24  ;;  %10719 = vmatpush.bf16.msra.mxu3 %v13408_v22  ;;  %18982 = vst [vmem:[#allocation39_spill] sm:$0xff] %v18009_v9  ;;  %v9069_v59 = vor.u32 %v9068_v31, %v9064_v18  ;;  %v18016_v46 = vsel %vm393_vm0, %v8597_v10, %v8601_v6  ;;  %v18984_v2 = vrot.slane %v17960_v23, 1  ;;  %v18025_v26 = vshll.u32 %v8615_v5, 16  ;;  %v13333_v5 = vld [vmem:[#allocation2 + $0xd28] sm:$0xf0] }
 0x6f0   : > { %18983 = vst [vmem:[#allocation40_spill] sm:$0xff] %v18012_v8  ;;  %v18029_v0 = vsel %vm393_vm0, %v8609_v27, %v17999_v7  ;;  %v18034_v13 = vpack.c.b16 %v8393_v14, %v8393_v14  ;;  %v8473_v19 = vpack.c.b16 %v8391_v28, %v8457_v25  ;;  %v8392_v58 = vunpack.c.h.b16 %v17995_v60 }
 0x6f1   : > { %v18023_v1 = vsel %vm393_vm0, %v9017_v47, %v18984_v2  ;;  %v9072_v47 = vshrl.u32 %v17991_v17, 16  ;;  %v9082_v41 = vshll.u32 %v18016_v46, 16  ;;  %v18045_v48 = vsel %vm393_vm0, %v9069_v59, %v8601_v6  ;;  %v14189_v2 = vld [vmem:[#allocation2 + $0xc24] sm:$0xf] }
 0x6f2   : > { %v10295_v51 = vpop.f32.mrf.mxu2  ;;  %v10200_v32 = vpop.f32.mrf.mxu0  ;;  %18985 = vst [vmem:[#allocation33_spill] sm:$0xff] %v18023_v1  ;;  %v9076_v42 = vrot.slane %v9074_v53, 1  ;;  %v8458_v31 = vunpack.c.h.b16 %v13182_v56  ;;  %v9094_v17 = vshll.u32 %v18029_v0, 16  ;;  %v8389_v24 = vunpack.c.l.b16 %v13168_v12 }
 0x6f3   : > { %v10296_v30 = vadd.f32 %v10295_v51, %v10247_v43  ;;  %v10344_v62 = vpop.f32.mrf.mxu3  ;;  %v10201_v44 = vadd.f32 %v10200_v32, %v14904_v40  ;;  %v10249_v16 = vpop.f32.mrf.mxu1  ;;  %18986 = vst [vmem:[#allocation34_spill] sm:$0xff] %v18045_v48  ;;  %v18047_v43 = vshll.u32 %v8617_v34, 16  ;;  %v18052_v22 = vpack.c.b16 %v8394_v3, %v8394_v3  ;;  %v13205_v3 = vld [vmem:[#allocation2 + $0xc28] sm:$0xf0] }
 0x6f4   : > { %v8627_v27 = vshll.u32 %v18034_v13, 16  ;;  %v8474_v38 = vpack.c.b16 %v8392_v58, %v8458_v31  ;;  %v8622_v6 = vshll.u32 %v8473_v19, 16  ;;  %v13336_v14 = vor.u32 %v14221_v54, %v13333_v5 }
 0x6f5   : > { %v18031_v18 = vadd.f32 %v10344_v62, %v10296_v30  ;;  %v10250_v23 = vadd.f32 %v10249_v16, %v10201_v44  ;;  %10395 = vmatmul.bf16.gmra.mxu0 %v18004_v55  ;;  %v9080_v53 = vshrl.u32 %v18016_v46, 16  ;;  %v9084_v56 = vrot.slane %v9082_v41, 1  ;;  %v14237_v41 = vld [vmem:[#allocation2 + $0xda4] sm:$0xf] }
 0x6f6   : > { %10444 = vmatmul.bf16.gmra.mxu1 %v18009_v9  ;;  %v9092_v25 = vshrl.u32 %v18029_v0, 16  ;;  %v8620_v30 = vshrl.u32 %v8473_v19, 16  ;;  %v8390_v34 = vunpack.c.h.b16 %v13168_v12  ;;  %v8639_v44 = vshll.u32 %v18052_v22, 16  ;;  %10671 = vmatpush.bf16.msra.mxu2 %v13336_v14  ;;  %v13397_v0 = vld [vmem:[#allocation2 + $0xda8] sm:$0xf0] }
 0x6f7   : > { %10493 = vmatmul.bf16.gmra.mxu2 %v18012_v8  ;;  %v8624_v16 = vrot.slane %v8622_v6, 1  ;;  %v9077_v5 = vor.u32 %v9076_v42, %v9072_v47  ;;  %v8632_v10 = vshrl.u32 %v8474_v38, 16  ;;  %v8634_v46 = vshll.u32 %v8474_v38, 16  ;;  %v14205_v14 = vld [vmem:[#allocation2 + $0xca4] sm:$0xf] }
 0x6f8   : > { %10542 = vmatmul.bf16.gmra.mxu3 %v18023_v1  ;;  %v9096_v12 = vrot.slane %v9094_v17, 1  ;;  %v18065_v6 = vrot.slane %v8627_v27, 1  ;;  %v13208_v38 = vor.u32 %v14189_v2, %v13205_v3  ;;  %v9085_v1 = vor.u32 %v9084_v56, %v9080_v53  ;;  %v13173_v17 = vld [vmem:[%s14696_s7 + $0xd0] sm:$0x11]  ;;  %v13183_v55 = vld [vmem:[%s14696_s7 + $0xc0] sm:$0xee] }
 0x6f9   : > { %v8625_v47 = vor.u32 %v8624_v16, %v8620_v30  ;;  %v8636_v42 = vrot.slane %v8634_v46, 1  ;;  %v18067_v8 = vpack.c.b16 %v8392_v58, %v8390_v34  ;;  %v13400_v9 = vor.u32 %v14237_v41, %v13397_v0 }
 0x6fa   : > { %v10298_v51 = vpop.f32.mrf.mxu2  ;;  %v10202_v59 = vpop.f32.mrf.mxu0  ;;  %v18076_v60 = vsel %vm393_vm0, %v9077_v5, %v17999_v7  ;;  %10573 = vmatpush.bf16.msra.mxu0 %v13208_v38  ;;  %v9097_v30 = vor.u32 %v9096_v12, %v9092_v25  ;;  %v9101_v58 = vrot.slane %v18047_v43, 1  ;;  %v8399_v16 = vunpack.c.l.b16 %v13173_v17 }
 0x6fb   : > { %v10299_v62 = vadd.f32 %v10298_v51, %v10250_v23  ;;  %v10347_v32 = vpop.f32.mrf.mxu3  ;;  %v10203_v31 = vadd.f32 %v10202_v59, %v14904_v40  ;;  %v10251_v54 = vpop.f32.mrf.mxu1  ;;  %v18063_v23 = vpack.c.b16 %v8391_v28, %v8389_v24  ;;  %v13269_v51 = vld [vmem:[#allocation2 + $0xca8] sm:$0xf0]  ;;  %18987 = vst [vmem:[#allocation43_spill] sm:$0xff] %v18076_v60  ;;  %v18078_v28 = vrot.slane %v8639_v44, 1  ;;  %10720 = vmatpush.bf16.msra.mxu3 %v13400_v9 }
 0x6fc   : > { %v8643_v24 = vshrl.u32 %v18034_v13, 16  ;;  %v8637_v27 = vor.u32 %v8636_v42, %v8632_v10  ;;  %v18086_v7 = vsel %vm393_vm0, %v8625_v47, %v18065_v6  ;;  %v8459_v13 = vunpack.c.l.b16 %v13183_v55 }
 0x6fd   : > { %v18059_v19 = vadd.f32 %v10347_v32, %v10299_v62  ;;  %v10252_v59 = vadd.f32 %v10251_v54, %v10203_v31  ;;  %v13272_v62 = vor.u32 %v14205_v14, %v13269_v51  ;;  %v18070_v32 = vld [vmem:[%s14696_s7 + $0xc8] sm:$0xff]  ;;  %v9144_v53 = vshrl.u32 %v18063_v23, 16 }
 0x6fe   : > { %v9146_v56 = vshll.u32 %v18063_v23, 16  ;;  %v8397_v44 = vunpack.c.l.b16 %v18070_v32  ;;  %v18988_v43 = vrot.slane %v18025_v26, 1  ;;  %v9154_v9 = vshll.u32 %v18067_v8, 16  ;;  %v13171_v23 = vld [vmem:[%s14696_s7 + $0xc0] sm:$0xff] }
 0x6ff   : > { %10622 = vmatpush.bf16.msra.mxu1 %v13272_v62  ;;  %v8645_v31 = vshrl.u32 %v18052_v22, 16  ;;  %v18097_v46 = vshll.u32 %v8643_v24, 16  ;;  %v18101_v41 = vsel %vm393_vm0, %v8637_v27, %v18078_v28  ;;  %v8400_v0 = vunpack.c.h.b16 %v13173_v17 }
 0x700   : > { %v18092_v3 = vsel %vm393_vm0, %v9085_v1, %v18988_v43  ;;  %v18106_v26 = vsel %vm393_vm0, %v9097_v30, %v9101_v58  ;;  %v9162_v1 = vshll.u32 %v18086_v7, 16  ;;  %v8398_v22 = vunpack.c.h.b16 %v18070_v32  ;;  %v13325_v43 = vld [vmem:[#allocation2 + $0xd18] sm:$0xf0] }
 0x701   : > { %18989 = vst [vmem:[#allocation44_spill] sm:$0xff] %v18092_v3  ;;  %v9148_v51 = vrot.slane %v9146_v56, 1  ;;  %v8475_v47 = vpack.c.b16 %v8397_v44, %v8459_v13  ;;  %v9152_v42 = vshrl.u32 %v18067_v8, 16  ;;  %v9156_v38 = vrot.slane %v9154_v9, 1 }
 0x702   : > { %v10300_v34 = vpop.f32.mrf.mxu2  ;;  %v10205_v2 = vpop.f32.mrf.mxu0  ;;  %18991 = vst [vmem:[#allocation38_spill] sm:$0xff] %v18106_v26  ;;  %v9174_v62 = vshll.u32 %v18101_v41, 16  ;;  %v8460_v17 = vunpack.c.h.b16 %v13183_v55  ;;  %v18120_v24 = vshll.u32 %v8645_v31, 16  ;;  %v8395_v27 = vunpack.c.l.b16 %v13171_v23 }
 0x703   : > { %v10301_v10 = vadd.f32 %v10300_v34, %v10252_v59  ;;  %v10349_v25 = vpop.f32.mrf.mxu3  ;;  %v10206_v54 = vadd.f32 %v10205_v2, %v14904_v40  ;;  %v10254_v5 = vpop.f32.mrf.mxu1  ;;  %v18112_v59 = vpack.c.b16 %v8399_v16, %v8399_v16  ;;  %v18122_v30 = vpack.c.b16 %v8400_v0, %v8400_v0  ;;  %v14219_v2 = vld [vmem:[#allocation2 + $0xd14] sm:$0xf] }
 0x704   : > { %v9160_v58 = vshrl.u32 %v18086_v7, 16  ;;  %v9164_v56 = vrot.slane %v9162_v1, 1  ;;  %v9172_v34 = vshrl.u32 %v18101_v41, 16  ;;  %v8476_v16 = vpack.c.b16 %v8398_v22, %v8460_v17  ;;  %v13197_v7 = vld [vmem:[#allocation2 + $0xc18] sm:$0xf0] }
 0x705   : > { %v18103_v12 = vadd.f32 %v10349_v25, %v10301_v10  ;;  %v10255_v14 = vadd.f32 %v10254_v5, %v10206_v54  ;;  %10400 = vmatmul.bf16.gmra.mxu0 %v18045_v48  ;;  %v9149_v13 = vor.u32 %v9148_v51, %v9144_v53  ;;  %v8655_v10 = vshll.u32 %v18112_v59, 16  ;;  %v14235_v51 = vld [vmem:[#allocation2 + $0xd94] sm:$0xf] }
 0x706   : > { %10449 = vmatmul.bf16.gmra.mxu1 %v18076_v60  ;;  %v8396_v55 = vunpack.c.h.b16 %v13171_v23  ;;  %v8650_v25 = vshll.u32 %v8475_v47, 16  ;;  %v9157_v5 = vor.u32 %v9156_v38, %v9152_v42  ;;  %v9176_v0 = vrot.slane %v9174_v62, 1  ;;  %v14203_v38 = vld [vmem:[#allocation2 + $0xc94] sm:$0xf]  ;;  %v13261_v62 = vld [vmem:[#allocation2 + $0xc98] sm:$0xf0] }
 0x707   : > { %18990 = vst [vmem:[#allocation37_spill] sm:$0xff] %v18103_v12  ;;  %10498 = vmatmul.bf16.gmra.mxu2 %v18092_v3  ;;  %v8648_v32 = vshrl.u32 %v8475_v47, 16  ;;  %v18128_v17 = vpack.c.b16 %v8397_v44, %v8395_v27  ;;  %v8667_v53 = vshll.u32 %v18122_v30, 16  ;;  %v13389_v3 = vld [vmem:[#allocation2 + $0xd98] sm:$0xf0]  ;;  %v8662_v42 = vshll.u32 %v8476_v16, 16 }
 0x708   : > { %10547 = vmatmul.bf16.gmra.mxu3 %v18106_v26  ;;  %v14187_v26 = vld [vmem:[#allocation2 + $0xc14] sm:$0xf]  ;;  %v8652_v23 = vrot.slane %v8650_v25, 1  ;;  %v13328_v47 = vor.u32 %v14219_v2, %v13325_v43  ;;  %v18133_v48 = vrot.slane %v8655_v10, 1  ;;  %v18135_v44 = vpack.c.b16 %v8398_v22, %v8396_v55  ;;  %v18138_v27 = vld [vmem:[%s14696_s7 + $0xe0] sm:$0xff] }
 0x709   : > { %v8664_v35 = vrot.slane %v8662_v42, 1  ;;  %v13184_v12 = vld [vmem:[%s14696_s7 + $0xd8] sm:$0xee]  ;;  %v9177_v11 = vor.u32 %v9176_v0, %v9172_v34  ;;  %v18143_v2 = vrot.slane %v8667_v53, 1  ;;  %v13264_v43 = vor.u32 %v14203_v38, %v13261_v62 }
 0x70a   : > { %v10303_v8 = vpop.f32.mrf.mxu2  ;;  %v10207_v54 = vpop.f32.mrf.mxu0  ;;  %v8653_v25 = vor.u32 %v8652_v23, %v8648_v32  ;;  %10672 = vmatpush.bf16.msra.mxu2 %v13328_v47  ;;  %v18668_v32 = vunpack.c.l.b16 %v18138_v27  ;;  %v8461_v34 = vunpack.c.l.b16 %v13184_v12  ;;  %v8673_v23 = vshrl.u32 %v18122_v30, 16 }
 0x70b   : > { %v10304_v9 = vadd.f32 %v10303_v8, %v10255_v14  ;;  %v10352_v31 = vpop.f32.mrf.mxu3  ;;  %v10208_v1 = vadd.f32 %v10207_v54, %v14904_v40  ;;  %v10256_v41 = vpop.f32.mrf.mxu1  ;;  %v8660_v14 = vshrl.u32 %v8476_v16, 16  ;;  %v9165_v54 = vor.u32 %v9164_v56, %v9160_v58  ;;  %10623 = vmatpush.bf16.msra.mxu1 %v13264_v43 }
 0x70c   : > { %v9181_v16 = vrot.slane %v18120_v24, 1  ;;  %v18147_v58 = vsel %vm393_vm0, %v9149_v13, %v18065_v6  ;;  %v18995_v6 = vrot.slane %v18097_v46, 1  ;;  %v9234_v13 = vshll.u32 %v18135_v44, 16 }
 0x70d   : > { %v18131_v60 = vadd.f32 %v10352_v31, %v10304_v9  ;;  %v10257_v8 = vadd.f32 %v10256_v41, %v10208_v1  ;;  %v13200_v9 = vor.u32 %v14187_v26, %v13197_v7  ;;  %v13392_v31 = vor.u32 %v14235_v51, %v13389_v3  ;;  %18993 = vst [vmem:[#allocation48_spill] sm:$0xff] %v18147_v58 }
 0x70e   : > { %v8665_v22 = vor.u32 %v8664_v35, %v8660_v14  ;;  %v18152_v3 = vsel %vm393_vm0, %v9157_v5, %v18078_v28  ;;  %v9226_v26 = vshll.u32 %v18128_v17, 16  ;;  %v18158_v35 = vsel %vm393_vm0, %v9165_v54, %v18995_v6  ;;  %v14217_v6 = vld [vmem:[#allocation2 + $0xd04] sm:$0xf] }
 0x70f   : > { %18992 = vst [vmem:[#allocation47_spill] sm:$0xff] %v18131_v60  ;;  %v13176_v60 = vld [vmem:[%s14696_s7 + $0xe8] sm:$0x11]  ;;  %10574 = vmatpush.bf16.msra.mxu0 %v13200_v9  ;;  %10721 = vmatpush.bf16.msra.mxu3 %v13392_v31  ;;  %v8658_v7 = vsel %vm393_vm0, %v8653_v25, %v18133_v48  ;;  %v18165_v1 = vsel %vm393_vm0, %v9177_v11, %v9181_v16  ;;  %v8671_v41 = vshrl.u32 %v18112_v59, 16  ;;  %v18667_v14 = vunpack.c.h.b16 %v18138_v27 }
 0x710   : > { %18994 = vst [vmem:[#allocation41_spill] sm:$0xff] %v18152_v3  ;;  %v8405_v24 = vunpack.c.l.b16 %v13176_v60  ;;  %v18170_v53 = vsel %vm393_vm0, %v8665_v22, %v18143_v2  ;;  %v8477_v51 = vpack.c.b16 %v18668_v32, %v8461_v34  ;;  %v9242_v11 = vshll.u32 %v8658_v7, 16  ;;  %v13381_v32 = vld [vmem:[#allocation2 + $0xd88] sm:$0xf0] }
 0x711   : > { %18996 = vst [vmem:[#allocation42_spill] sm:$0xff] %v18158_v35  ;;  %v8406_v59 = vunpack.c.h.b16 %v13176_v60  ;;  %v9224_v38 = vshrl.u32 %v18128_v17, 16  ;;  %v9254_v30 = vshll.u32 %v18170_v53, 16  ;;  %v8462_v62 = vunpack.c.h.b16 %v13184_v12 }
 0x712   : > { %v10305_v56 = vpop.f32.mrf.mxu2  ;;  %v10210_v0 = vpop.f32.mrf.mxu0  ;;  %18997 = vst [vmem:[#allocation45_spill] sm:$0xff] %v18165_v1  ;;  %v18179_v47 = vpack.c.b16 %v8405_v24, %v8405_v24  ;;  %v9232_v54 = vshrl.u32 %v18135_v44, 16  ;;  %v9236_v25 = vrot.slane %v9234_v13, 1  ;;  %v18189_v31 = vshll.u32 %v8671_v41, 16  ;;  %v13174_v24 = vld [vmem:[%s14696_s7 + $0xd8] sm:$0xff] }
 0x713   : > { %v10306_v10 = vadd.f32 %v10305_v56, %v10257_v8  ;;  %v10354_v55 = vpop.f32.mrf.mxu3  ;;  %v10211_v28 = vadd.f32 %v10210_v0, %v14904_v40  ;;  %v10259_v5 = vpop.f32.mrf.mxu1  ;;  %v9228_v8 = vrot.slane %v9226_v26, 1  ;;  %v18187_v9 = vpack.c.b16 %v8406_v59, %v8406_v59  ;;  %v13317_v13 = vld [vmem:[#allocation2 + $0xd08] sm:$0xf0] }
 0x714   : > { %v18191_v60 = vshll.u32 %v8673_v23, 16  ;;  %v8478_v16 = vpack.c.b16 %v18667_v14, %v8462_v62  ;;  %v8678_v17 = vshll.u32 %v8477_v51, 16  ;;  %v9240_v22 = vshrl.u32 %v8658_v7, 16  ;;  %v13189_v59 = vld [vmem:[#allocation2 + $0xc08] sm:$0xf0] }
 0x715   : > { %v18172_v46 = vadd.f32 %v10354_v55, %v10306_v10  ;;  %v10260_v42 = vadd.f32 %v10259_v5, %v10211_v28  ;;  %10405 = vmatmul.bf16.gmra.mxu0 %v18147_v58  ;;  %v9244_v56 = vrot.slane %v9242_v11, 1  ;;  %v9252_v12 = vshrl.u32 %v18170_v53, 16  ;;  %v14185_v11 = vld [vmem:[#allocation2 + $0xc04] sm:$0xf] }
 0x716   : > { %10454 = vmatmul.bf16.gmra.mxu1 %v18152_v3  ;;  %v8683_v26 = vshll.u32 %v18179_v47, 16  ;;  %v9256_v55 = vrot.slane %v9254_v30, 1  ;;  %v8676_v0 = vshrl.u32 %v8477_v51, 16  ;;  %v9229_v41 = vor.u32 %v9228_v8, %v9224_v38  ;;  %v14201_v3 = vld [vmem:[#allocation2 + $0xc84] sm:$0xf] }
 0x717   : > { %18998 = vst [vmem:[#allocation46_spill] sm:$0xff] %v18172_v46  ;;  %10503 = vmatmul.bf16.gmra.mxu2 %v18158_v35  ;;  %v8695_v23 = vshll.u32 %v18187_v9, 16  ;;  %v8680_v7 = vrot.slane %v8678_v17, 1  ;;  %v9237_v62 = vor.u32 %v9236_v25, %v9232_v54  ;;  %v8688_v14 = vshrl.u32 %v8478_v16, 16 }
 0x718   : > { %10552 = vmatmul.bf16.gmra.mxu3 %v18165_v1  ;;  %v8401_v51 = vunpack.c.l.b16 %v13174_v24  ;;  %v8402_v1 = vunpack.c.h.b16 %v13174_v24  ;;  %v13320_v35 = vor.u32 %v14217_v6, %v13317_v13  ;;  %v9245_v58 = vor.u32 %v9244_v56, %v9240_v22 }
 0x719   : > { %v9249_v38 = vrot.slane %v18189_v31, 1  ;;  %v13192_v17 = vor.u32 %v14185_v11, %v13189_v59  ;;  %v18203_v46 = vrot.slane %v8683_v26, 1  ;;  %v8681_v54 = vor.u32 %v8680_v7, %v8676_v0  ;;  %v14295_v59 = vld [vmem:[#allocation2 + $0xf74] sm:$0xf] }
 0x71a   : > { %v10308_v43 = vpop.f32.mrf.mxu2  ;;  %v10212_v10 = vpop.f32.mrf.mxu0  ;;  %10673 = vmatpush.bf16.msra.mxu2 %v13320_v35  ;;  %v18999_v22 = vunpack.c.l.b16 %v18138_v27  ;;  %v19000_v31 = vunpack.c.h.b16 %v18138_v27  ;;  %v18218_v35 = vsel %vm393_vm0, %v9237_v62, %v18143_v2  ;;  %v8701_v7 = vshrl.u32 %v18187_v9, 16  ;;  %v13629_v62 = vld [vmem:[#allocation2 + $0xf78] sm:$0xf0] }
 0x71b   : > { %v10309_v44 = vadd.f32 %v10308_v43, %v10260_v42  ;;  %v10357_v34 = vpop.f32.mrf.mxu3  ;;  %v10213_v28 = vadd.f32 %v10212_v10, %v14904_v40  ;;  %v10261_v5 = vpop.f32.mrf.mxu1  ;;  %v8690_v42 = vshll.u32 %v8478_v16, 16  ;;  %v14233_v43 = vld [vmem:[#allocation2 + $0xd84] sm:$0xf]  ;;  %v13253_v10 = vld [vmem:[#allocation2 + $0xc88] sm:$0xf0]  ;;  %v9257_v16 = vor.u32 %v9256_v55, %v9252_v12  ;;  %10575 = vmatpush.bf16.msra.mxu0 %v13192_v17 }
 0x71c   : > { %v13384_v25 = vor.u32 %v14233_v43, %v13381_v32  ;;  %v13256_v24 = vor.u32 %v14201_v3, %v13253_v10  ;;  %v8435_v56 = vpack.c.b16 %v18999_v22, %v8401_v51  ;;  %v8436_v13 = vpack.c.b16 %v19000_v31, %v8402_v1  ;;  %v14311_v51 = vld [vmem:[#allocation2 + $0xff4] sm:$0xf]  ;;  %v13693_v10 = vld [vmem:[#allocation2 + $0xff8] sm:$0xf0] }
 0x71d   : > { %v18200_v53 = vadd.f32 %v10357_v34, %v10309_v44  ;;  %v10262_v30 = vadd.f32 %v10261_v5, %v10213_v28  ;;  %v8692_v8 = vrot.slane %v8690_v42, 1  ;;  %v18205_v44 = vrot.slane %v8695_v23, 1  ;;  %v14263_v42 = vld [vmem:[#allocation2 + $0xe74] sm:$0xf] }
 0x71e   : > { %v9261_v34 = vrot.slane %v18191_v60, 1  ;;  %10722 = vmatpush.bf16.msra.mxu3 %v13384_v25  ;;  %v18214_v32 = vsel %vm393_vm0, %v9229_v41, %v18133_v48  ;;  %10624 = vmatpush.bf16.msra.mxu1 %v13256_v24  ;;  %v18222_v60 = vsel %vm393_vm0, %v9245_v58, %v9249_v38  ;;  %v8686_v27 = vsel %vm393_vm0, %v8681_v54, %v18203_v46 }
 0x71f   : > { %v8693_v28 = vor.u32 %v8692_v8, %v8688_v14  ;;  %v9306_v55 = vshll.u32 %v8435_v56, 16  ;;  %v9314_v0 = vshll.u32 %v8436_v13, 16  ;;  %v8699_v58 = vshrl.u32 %v18179_v47, 16 }
 0x720   : > { %v18231_v48 = vsel %vm393_vm0, %v9257_v16, %v9261_v34  ;;  %v9322_v41 = vshll.u32 %v8686_v27, 16  ;;  %v13632_v43 = vor.u32 %v14295_v59, %v13629_v62  ;;  %v9304_v8 = vshrl.u32 %v8435_v56, 16  ;;  %v14279_v59 = vld [vmem:[#allocation2 + $0xef4] sm:$0xf] }
 0x721   : > { %v8698_v1 = vsel %vm393_vm0, %v8693_v28, %v18205_v44  ;;  %v13696_v54 = vor.u32 %v14311_v51, %v13693_v10  ;;  %v9308_v34 = vrot.slane %v9306_v55, 1  ;;  %v9312_v28 = vshrl.u32 %v8436_v13, 16  ;;  %v13565_v55 = vld [vmem:[#allocation2 + $0xef8] sm:$0xf0] }
 0x722   : > { %v10310_v6 = vpop.f32.mrf.mxu2  ;;  %v10215_v23 = vpop.f32.mrf.mxu0  ;;  %v9334_v11 = vshll.u32 %v8698_v1, 16  ;;  %v9316_v9 = vrot.slane %v9314_v0, 1  ;;  %10862 = vmatpush.bf16.msrb.mxu2 %v13632_v43  ;;  %v9320_v22 = vshrl.u32 %v8686_v27, 16  ;;  %v9324_v31 = vrot.slane %v9322_v41, 1 }
 0x723   : > { %v10311_v26 = vadd.f32 %v10310_v6, %v10262_v30  ;;  %v10359_v5 = vpop.f32.mrf.mxu3  ;;  %v10216_v3 = vadd.f32 %v10215_v23, %v14904_v40  ;;  %v10264_v14 = vpop.f32.mrf.mxu1  ;;  %v13501_v30 = vld [vmem:[#allocation2 + $0xe78] sm:$0xf0]  ;;  %10911 = vmatpush.bf16.msrb.mxu3 %v13696_v54  ;;  %v9332_v56 = vshrl.u32 %v8698_v1, 16 }
 0x724   : > { %v13504_v17 = vor.u32 %v14263_v42, %v13501_v30  ;;  %v9336_v23 = vrot.slane %v9334_v11, 1  ;;  %v9317_v13 = vor.u32 %v9316_v9, %v9312_v28  ;;  %v9325_v0 = vor.u32 %v9324_v31, %v9320_v22  ;;  %v13685_v28 = vld [vmem:[#allocation2 + $0xfe8] sm:$0xf0] }
 0x725   : > { %v18228_v12 = vadd.f32 %v10359_v5, %v10311_v26  ;;  %v10265_v2 = vadd.f32 %v10264_v14, %v10216_v3  ;;  %10410 = vmatmul.bf16.gmra.mxu0 %v18214_v32  ;;  %v9327_v26 = vshll.u32 %v8699_v58, 16  ;;  %v9339_v3 = vshll.u32 %v8701_v7, 16 }
 0x726   : > { %10459 = vmatmul.bf16.gmra.mxu1 %v18218_v35  ;;  %10764 = vmatpush.bf16.msrb.mxu0 %v13504_v17  ;;  %v13568_v42 = vor.u32 %v14279_v59, %v13565_v55  ;;  %v9337_v43 = vor.u32 %v9336_v23, %v9332_v56  ;;  %v18249_v10 = vsel %vm393_vm0, %v9317_v13, %v18205_v44  ;;  %v13621_v44 = vld [vmem:[#allocation2 + $0xf68] sm:$0xf0] }
 0x727   : > { %10508 = vmatmul.bf16.gmra.mxu2 %v18222_v60  ;;  %v9329_v62 = vrot.slane %v9327_v26, 1  ;;  %v9341_v30 = vrot.slane %v9339_v3, 1  ;;  %v13557_v59 = vld [vmem:[#allocation2 + $0xee8] sm:$0xf0] }
 0x728   : > { %10557 = vmatmul.bf16.gmra.mxu3 %v18231_v48  ;;  %10813 = vmatpush.bf16.msrb.mxu1 %v13568_v42 }
 0x729   : > { %v18257_v17 = vsel %vm393_vm0, %v9337_v43, %v9341_v30 }
 0x72a   : > { %v10313_v38 = vpop.f32.mrf.mxu2  ;;  %v10217_v47 = vpop.f32.mrf.mxu0 }
 0x72b   : > { %v10314_v25 = vadd.f32 %v10313_v38, %v10265_v2  ;;  %v10362_v16 = vpop.f32.mrf.mxu3  ;;  %v10218_v24 = vadd.f32 %v10217_v47, %v14904_v40  ;;  %v10266_v6 = vpop.f32.mrf.mxu1  ;;  %v9309_v2 = vor.u32 %v9308_v34, %v9304_v8  ;;  %v18252_v38 = vsel %vm393_vm0, %v9325_v0, %v9329_v62  ;;  %v13493_v47 = vld [vmem:[#allocation2 + $0xe68] sm:$0xf0]  ;;  %v14309_v34 = vld [vmem:[#allocation2 + $0xfe4] sm:$0xf] }
 0x72d   : > { %v18240_v5 = vadd.f32 %v10362_v16, %v10314_v25  ;;  %v10267_v14 = vadd.f32 %v10266_v6, %v10218_v24  ;;  %v18244_v1 = vsel %vm393_vm0, %v9309_v2, %v18203_v46  ;;  %v14293_v46 = vld [vmem:[#allocation2 + $0xf64] sm:$0xf]  ;;  %v13688_v6 = vor.u32 %v14309_v34, %v13685_v28  ;;  %v14275_v34 = vld [vmem:[#allocation2 + $0xed4] sm:$0xf]  ;;  %v13549_v28 = vld [vmem:[#allocation2 + $0xed8] sm:$0xf0] }
 0x72e   : > { %v14261_v25 = vld [vmem:[#allocation2 + $0xe64] sm:$0xf]  ;;  %v13624_v16 = vor.u32 %v14293_v46, %v13621_v44  ;;  %v13677_v46 = vld [vmem:[#allocation2 + $0xfd8] sm:$0xf0] }
 0x72f   : > { %v13496_v24 = vor.u32 %v14261_v25, %v13493_v47  ;;  %10912 = vmatpush.bf16.msrb.mxu3 %v13688_v6  ;;  %v14277_v2 = vld [vmem:[#allocation2 + $0xee4] sm:$0xf] }
 0x730   : > { %10863 = vmatpush.bf16.msrb.mxu2 %v13624_v16  ;;  %v13560_v55 = vor.u32 %v14277_v2, %v13557_v59  ;;  %v13605_v2 = vld [vmem:[#allocation2 + $0xf48] sm:$0xf0]  ;;  %v14257_v59 = vld [vmem:[#allocation2 + $0xe44] sm:$0xf] }
 0x731   : > { %10765 = vmatpush.bf16.msrb.mxu0 %v13496_v24 }
 0x732   : > { %v10315_v27 = vpop.f32.mrf.mxu2  ;;  %v10220_v51 = vpop.f32.mrf.mxu0  ;;  %10814 = vmatpush.bf16.msrb.mxu1 %v13560_v55 }
 0x733   : > { %v10316_v58 = vadd.f32 %v10315_v27, %v10267_v14  ;;  %v10364_v41 = vpop.f32.mrf.mxu3  ;;  %v10221_v7 = vadd.f32 %v10220_v51, %v14904_v40  ;;  %v10269_v11 = vpop.f32.mrf.mxu1 }
 0x735   : > { %v18254_v8 = vadd.f32 %v10364_v41, %v10316_v58  ;;  %v10270_v54 = vadd.f32 %v10269_v11, %v10221_v7  ;;  %10415 = vmatmul.bf16.gmra.mxu0 %v18244_v1  ;;  %v13613_v58 = vld [vmem:[#allocation2 + $0xf58] sm:$0xf0]  ;;  %v14259_v41 = vld [vmem:[#allocation2 + $0xe54] sm:$0xf] }
 0x736   : > { %10464 = vmatmul.bf16.gmra.mxu1 %v18249_v10  ;;  %v13485_v11 = vld [vmem:[#allocation2 + $0xe58] sm:$0xf0] }
 0x737   : > { %10513 = vmatmul.bf16.gmra.mxu2 %v18252_v38  ;;  %v13488_v25 = vor.u32 %v14259_v41, %v13485_v11  ;;  %v14273_v41 = vld [vmem:[#allocation2 + $0xec4] sm:$0xf] }
 0x738   : > { %10562 = vmatmul.bf16.gmra.mxu3 %v18257_v17 }
 0x739   : > { %10766 = vmatpush.bf16.msrb.mxu0 %v13488_v25 }
 0x73a   : > { %v10318_v9 = vpop.f32.mrf.mxu2  ;;  %v10222_v26 = vpop.f32.mrf.mxu0 }
 0x73b   : > { %v10319_v22 = vadd.f32 %v10318_v9, %v10270_v54  ;;  %v10367_v31 = vpop.f32.mrf.mxu3  ;;  %v10223_v56 = vadd.f32 %v10222_v26, %v14904_v40  ;;  %v10271_v23 = vpop.f32.mrf.mxu1  ;;  %v14291_v40 = vld [vmem:[#allocation2 + $0xf54] sm:$0xf]  ;;  %v13552_v9 = vor.u32 %v14275_v34, %v13549_v28 }
 0x73c   : > { %v13616_v7 = vor.u32 %v14291_v40, %v13613_v58  ;;  %v14307_v54 = vld [vmem:[#allocation2 + $0xfd4] sm:$0xf] }
 0x73d   : > { %v18264_v3 = vadd.f32 %v10367_v31, %v10319_v22  ;;  %v10272_v14 = vadd.f32 %v10271_v23, %v10223_v56  ;;  %10815 = vmatpush.bf16.msrb.mxu1 %v13552_v9  ;;  %v13469_v9 = vld [vmem:[#allocation2 + $0xe38] sm:$0xf0] }
 0x73e   : > { %10864 = vmatpush.bf16.msrb.mxu2 %v13616_v7 }
 0x742   : > { %v10320_v13 = vpop.f32.mrf.mxu2  ;;  %v10381_v42 = vpop.f32.mrf.mxu0 }
 0x743   : > { %v10321_v0 = vadd.f32 %v10320_v13, %v10272_v14  ;;  %v10369_v62 = vpop.f32.mrf.mxu3  ;;  %v10430_v43 = vpop.f32.mrf.mxu1  ;;  %v10382_v27 = vadd.f32 %v10381_v42, %v17841_v15  ;;  %v13680_v15 = vor.u32 %v14307_v54, %v13677_v46  ;;  %v13669_v42 = vld [vmem:[#allocation2 + $0xfc8] sm:$0xf0] }
 0x745   : > { %v18266_v30 = vadd.f32 %v10369_v62, %v10321_v0  ;;  %10576 = vmatmul.bf16.vlgmr.msra.gmra.mxu0 %v17188_v20  ;;  %v10431_v51 = vadd.f32 %v10430_v43, %v10382_v27  ;;  %10913 = vmatpush.bf16.msrb.mxu3 %v13680_v15  ;;  %v13477_v0 = vld [vmem:[#allocation2 + $0xe48] sm:$0xf0]  ;;  %v14305_v62 = vld [vmem:[#allocation2 + $0xfc4] sm:$0xf] }
 0x746   : > { %10625 = vmatmul.bf16.vlgmr.msra.gmra.mxu1 %v17209_v21  ;;  %v13672_v27 = vor.u32 %v14305_v62, %v13669_v42 }
 0x747   : > { %10674 = vmatmul.bf16.vlgmr.msra.gmra.mxu2 %v17212_v45 }
 0x748   : > { %10723 = vmatmul.bf16.vlgmr.msra.gmra.mxu3 %v17215_v57 }
 0x749   : > { %10914 = vmatpush.bf16.msrb.mxu3 %v13672_v27 }
 0x74a   : > { %v10479_v44 = vpop.f32.mrf.mxu2  ;;  %v10383_v47 = vpop.f32.mrf.mxu0 }
 0x74b   : > { %v10480_v16 = vadd.f32 %v10479_v44, %v10431_v51  ;;  %v10528_v20 = vpop.f32.mrf.mxu3  ;;  %v10432_v21 = vpop.f32.mrf.mxu1  ;;  %v10384_v57 = vadd.f32 %v10383_v47, %v17883_v39  ;;  %v14289_v39 = vld [vmem:[#allocation2 + $0xf44] sm:$0xf]  ;;  %v13541_v51 = vld [vmem:[#allocation2 + $0xec8] sm:$0xf0] }
 0x74c   : > { %v13608_v13 = vor.u32 %v14289_v39, %v13605_v2  ;;  %v13544_v7 = vor.u32 %v14273_v41, %v13541_v51  ;;  %v19002_v47 = vld [vmem:[#allocation50_spill] sm:$0xff]  ;;  %v14271_v39 = vld [vmem:[#allocation2 + $0xeb4] sm:$0xf]  ;;  %v13533_v2 = vld [vmem:[#allocation2 + $0xeb8] sm:$0xf0] }
 0x74d   : > { %v10529_v45 = vadd.f32 %v10528_v20, %v10480_v16  ;;  %v10433_v24 = vadd.f32 %v10432_v21, %v10384_v57  ;;  %v14287_v21 = vld [vmem:[#allocation2 + $0xf34] sm:$0xf]  ;;  %v13461_v51 = vld [vmem:[#allocation2 + $0xe28] sm:$0xf0] }
 0x74e   : > { %10865 = vmatpush.bf16.msrb.mxu2 %v13608_v13  ;;  %10816 = vmatpush.bf16.msrb.mxu1 %v13544_v7  ;;  %v14255_v57 = vld [vmem:[#allocation2 + $0xe34] sm:$0xf]  ;;  %v14301_v7 = vld [vmem:[#allocation2 + $0xfa4] sm:$0xf] }
 0x74f   : > { %13697 = vst [vmem:[%s15134_s11 + $0x300] sm:$0xff] %v10529_v45  ;;  %v13597_v45 = vld [vmem:[#allocation2 + $0xf38] sm:$0xf0] }
 0x750   : > { %v13600_v28 = vor.u32 %v14287_v21, %v13597_v45  ;;  %v13525_v21 = vld [vmem:[#allocation2 + $0xea8] sm:$0xf0] }
 0x752   : > { %v10481_v6 = vpop.f32.mrf.mxu2  ;;  %v10386_v26 = vpop.f32.mrf.mxu0  ;;  %10866 = vmatpush.bf16.msrb.mxu2 %v13600_v28 }
 0x753   : > { %v10482_v22 = vadd.f32 %v10481_v6, %v10433_v24  ;;  %v10530_v31 = vpop.f32.mrf.mxu3  ;;  %v10435_v56 = vpop.f32.mrf.mxu1  ;;  %v10387_v14 = vadd.f32 %v10386_v26, %v17919_v61  ;;  %v13480_v61 = vor.u32 %v14257_v59, %v13477_v0  ;;  %v14303_v24 = vld [vmem:[#allocation2 + $0xfb4] sm:$0xf]  ;;  %v13661_v6 = vld [vmem:[#allocation2 + $0xfb8] sm:$0xf0]  ;;  %v13536_v59 = vor.u32 %v14271_v39, %v13533_v2 }
 0x754   : > { %v14251_v39 = vld [vmem:[#allocation2 + $0xe14] sm:$0xf] }
 0x755   : > { %v10531_v23 = vadd.f32 %v10530_v31, %v10482_v22  ;;  %10581 = vmatmul.bf16.gmra.mxu0 %v17254_v4  ;;  %v10436_v55 = vadd.f32 %v10435_v56, %v10387_v14  ;;  %v13664_v31 = vor.u32 %v14303_v24, %v13661_v6  ;;  %10817 = vmatpush.bf16.msrb.mxu1 %v13536_v59 }
 0x756   : > { %10630 = vmatmul.bf16.gmra.mxu1 %v17263_v37  ;;  %10767 = vmatpush.bf16.msrb.mxu0 %v13480_v61 }
 0x757   : > { %13699 = vst [vmem:[%s15134_s11 + $0x310] sm:$0xff] %v10531_v23  ;;  %10679 = vmatmul.bf16.gmra.mxu2 %v17315_v52  ;;  %10915 = vmatpush.bf16.msrb.mxu3 %v13664_v31 }
 0x758   : > { %10728 = vmatmul.bf16.gmra.mxu3 %v17320_v63 }
 0x75a   : > { %v10484_v43 = vpop.f32.mrf.mxu2  ;;  %v10388_v58 = vpop.f32.mrf.mxu0 }
 0x75b   : > { %v10485_v4 = vadd.f32 %v10484_v43, %v10436_v55  ;;  %v10533_v40 = vpop.f32.mrf.mxu3  ;;  %v10437_v37 = vpop.f32.mrf.mxu1  ;;  %v10389_v63 = vadd.f32 %v10388_v58, %v17965_v49  ;;  %v19001_v49 = vld [vmem:[#allocation49_spill] sm:$0xff]  ;;  %v14285_v58 = vld [vmem:[#allocation2 + $0xf24] sm:$0xf] }
 0x75d   : > { %v10534_v52 = vadd.f32 %v10533_v40, %v10485_v4  ;;  %v10438_v11 = vadd.f32 %v10437_v37, %v10389_v63  ;;  %v19003_v4 = vld [vmem:[#allocation51_spill] sm:$0xff]  ;;  %v19005_v40 = vld [vmem:[#allocation53_spill] sm:$0xff] }
 0x75e   : > { %v13589_v37 = vld [vmem:[#allocation2 + $0xf28] sm:$0xf0] }
 0x75f   : > { %13701 = vst [vmem:[%s15134_s11 + $0x320] sm:$0xff] %v10534_v52  ;;  %v14253_v52 = vld [vmem:[#allocation2 + $0xe24] sm:$0xf]  ;;  %v13592_v41 = vor.u32 %v14285_v58, %v13589_v37 }
 0x760   : > { %v19012_v58 = vld [vmem:[#allocation46_spill] sm:$0xff] }
 0x761   : > { %10867 = vmatpush.bf16.msrb.mxu2 %v13592_v41 }
 0x762   : > { %v10486_v54 = vpop.f32.mrf.mxu2  ;;  %v10391_v25 = vpop.f32.mrf.mxu0 }
 0x763   : > { %v10487_v46 = vadd.f32 %v10486_v54, %v10438_v11  ;;  %v10535_v44 = vpop.f32.mrf.mxu3  ;;  %v10440_v15 = vpop.f32.mrf.mxu1  ;;  %v10392_v20 = vadd.f32 %v10391_v25, %v17989_v33  ;;  %v13472_v33 = vor.u32 %v14255_v57, %v13469_v9  ;;  %v13653_v11 = vld [vmem:[#allocation2 + $0xfa8] sm:$0xf0] }
 0x765   : > { %v10536_v16 = vadd.f32 %v10535_v44, %v10487_v46  ;;  %10586 = vmatmul.bf16.gmra.mxu0 %v17347_v36  ;;  %v10441_v34 = vadd.f32 %v10440_v15, %v10392_v20  ;;  %v13656_v46 = vor.u32 %v14301_v7, %v13653_v11  ;;  %v19006_v20 = vld [vmem:[#allocation37_spill] sm:$0xff] }
 0x766   : > { %10635 = vmatmul.bf16.gmra.mxu1 %v17351_v50  ;;  %10768 = vmatpush.bf16.msrb.mxu0 %v13472_v33  ;;  %v19007_v33 = vld [vmem:[#allocation47_spill] sm:$0xff] }
 0x767   : > { %13703 = vst [vmem:[%s15134_s11 + $0x330] sm:$0xff] %v10536_v16  ;;  %10684 = vmatmul.bf16.gmra.mxu2 %v19001_v49  ;;  %10916 = vmatpush.bf16.msrb.mxu3 %v13656_v46 }
 0x768   : > { %10733 = vmatmul.bf16.gmra.mxu3 %v19002_v47  ;;  %v14269_v47 = vld [vmem:[#allocation2 + $0xea4] sm:$0xf] }
 0x769   : > { %v13528_v45 = vor.u32 %v14269_v47, %v13525_v21  ;;  %v13573_v47 = vld [vmem:[#allocation2 + $0xf08] sm:$0xf0]  ;;  %v14249_v21 = vld [vmem:[#allocation2 + $0xe04] sm:$0xf] }
 0x76a   : > { %v10489_v22 = vpop.f32.mrf.mxu2  ;;  %v10393_v56 = vpop.f32.mrf.mxu0 }
 0x76b   : > { %v10490_v36 = vadd.f32 %v10489_v22, %v10441_v34  ;;  %v10538_v26 = vpop.f32.mrf.mxu3  ;;  %v10442_v50 = vpop.f32.mrf.mxu1  ;;  %v10394_v14 = vadd.f32 %v10393_v56, %v18031_v18  ;;  %v19004_v18 = vld [vmem:[#allocation52_spill] sm:$0xff]  ;;  %10818 = vmatpush.bf16.msrb.mxu1 %v13528_v45  ;;  %v19010_v56 = vld [vmem:[#allocation58_spill] sm:$0xff] }
 0x76d   : > { %v10539_v23 = vadd.f32 %v10538_v26, %v10490_v36  ;;  %v10443_v55 = vadd.f32 %v10442_v50, %v10394_v14  ;;  %v19008_v36 = vld [vmem:[#allocation54_spill] sm:$0xff]  ;;  %v19009_v26 = vld [vmem:[#allocation56_spill] sm:$0xff]  ;;  %v19011_v50 = vld [vmem:[#allocation59_spill] sm:$0xff] }
 0x76e   : > { %v13581_v14 = vld [vmem:[#allocation2 + $0xf18] sm:$0xf0] }
 0x76f   : > { %13705 = vst [vmem:[%s15134_s11 + $0x340] sm:$0xff] %v10539_v23  ;;  %v14283_v23 = vld [vmem:[#allocation2 + $0xf14] sm:$0xf] }
 0x770   : > { %v13584_v59 = vor.u32 %v14283_v23, %v13581_v14  ;;  %v13509_v23 = vld [vmem:[#allocation2 + $0xe88] sm:$0xf0] }
 0x772   : > { %v10491_v13 = vpop.f32.mrf.mxu2  ;;  %v10396_v42 = vpop.f32.mrf.mxu0  ;;  %10868 = vmatpush.bf16.msrb.mxu2 %v13584_v59 }
 0x773   : > { %v10492_v0 = vadd.f32 %v10491_v13, %v10443_v55  ;;  %v10540_v62 = vpop.f32.mrf.mxu3  ;;  %v10445_v43 = vpop.f32.mrf.mxu1  ;;  %v10397_v27 = vadd.f32 %v10396_v42, %v18059_v19  ;;  %v13464_v19 = vor.u32 %v14253_v52, %v13461_v51  ;;  %v13453_v55 = vld [vmem:[#allocation2 + $0xe18] sm:$0xf0]  ;;  %v14299_v13 = vld [vmem:[#allocation2 + $0xf94] sm:$0xf] }
 0x774   : > { %v13456_v42 = vor.u32 %v14251_v39, %v13453_v55  ;;  %v14267_v52 = vld [vmem:[#allocation2 + $0xe94] sm:$0xf] }
 0x775   : > { %v10541_v61 = vadd.f32 %v10540_v62, %v10492_v0  ;;  %10591 = vmatmul.bf16.gmra.mxu0 %v17430_v29  ;;  %v10446_v63 = vadd.f32 %v10445_v43, %v10397_v27  ;;  %v13645_v0 = vld [vmem:[#allocation2 + $0xf98] sm:$0xf0] }
 0x776   : > { %10640 = vmatmul.bf16.gmra.mxu1 %v19003_v4  ;;  %10769 = vmatpush.bf16.msrb.mxu0 %v13464_v19  ;;  %v13648_v43 = vor.u32 %v14299_v13, %v13645_v0 }
 0x777   : > { %13707 = vst [vmem:[%s15134_s11 + $0x350] sm:$0xff] %v10541_v61  ;;  %10689 = vmatmul.bf16.gmra.mxu2 %v19004_v18 }
 0x778   : > { %10738 = vmatmul.bf16.gmra.mxu3 %v19005_v40 }
 0x779   : > { %10917 = vmatpush.bf16.msrb.mxu3 %v13648_v43  ;;  %v19017_v43 = vld [vmem:[#allocation15_spill] sm:$0xff] }
 0x77a   : > { %v10494_v54 = vpop.f32.mrf.mxu2  ;;  %v10398_v25 = vpop.f32.mrf.mxu0  ;;  %10770 = vmatpush.bf16.msrb.mxu0 %v13456_v42 }
 0x77b   : > { %v10495_v29 = vadd.f32 %v10494_v54, %v10446_v63  ;;  %v10543_v44 = vpop.f32.mrf.mxu3  ;;  %v10447_v15 = vpop.f32.mrf.mxu1  ;;  %v10399_v49 = vadd.f32 %v10398_v25, %v19006_v20  ;;  %v13517_v63 = vld [vmem:[#allocation2 + $0xe98] sm:$0xf0]  ;;  %v19013_v25 = vld [vmem:[#allocation60_spill] sm:$0xff]  ;;  %v19016_v20 = vld [vmem:[#allocation14_spill] sm:$0xff] }
 0x77c   : > { %v13520_v41 = vor.u32 %v14267_v52, %v13517_v63 }
 0x77d   : > { %v10544_v16 = vadd.f32 %v10543_v44, %v10495_v29  ;;  %v10448_v57 = vadd.f32 %v10447_v15, %v10399_v49  ;;  %v19014_v15 = vld [vmem:[#allocation61_spill] sm:$0xff]  ;;  %v14281_v49 = vld [vmem:[#allocation2 + $0xf04] sm:$0xf] }
 0x77e   : > { %10819 = vmatpush.bf16.msrb.mxu1 %v13520_v41 }
 0x77f   : > { %13709 = vst [vmem:[%s15134_s11 + $0x360] sm:$0xff] %v10544_v16  ;;  %v19015_v16 = vld [vmem:[#allocation19_spill] sm:$0xff] }
 0x782   : > { %v10496_v34 = vpop.f32.mrf.mxu2  ;;  %v10401_v24 = vpop.f32.mrf.mxu0 }
 0x783   : > { %v10497_v28 = vadd.f32 %v10496_v34, %v10448_v57  ;;  %v10545_v9 = vpop.f32.mrf.mxu3  ;;  %v10450_v6 = vpop.f32.mrf.mxu1  ;;  %v10402_v31 = vadd.f32 %v10401_v24, %v19007_v33  ;;  %v13576_v57 = vor.u32 %v14281_v49, %v13573_v47  ;;  %v13445_v34 = vld [vmem:[#allocation2 + $0xe08] sm:$0xf0] }
 0x785   : > { %v10546_v22 = vadd.f32 %v10545_v9, %v10497_v28  ;;  %10596 = vmatmul.bf16.gmra.mxu0 %v19008_v36  ;;  %v10451_v2 = vadd.f32 %v10450_v6, %v10402_v31  ;;  %v14297_v28 = vld [vmem:[#allocation2 + $0xf84] sm:$0xf]  ;;  %v13637_v9 = vld [vmem:[#allocation2 + $0xf88] sm:$0xf0]  ;;  %10869 = vmatpush.bf16.msrb.mxu2 %v13576_v57 }
 0x786   : > { %10645 = vmatmul.bf16.gmra.mxu1 %v19009_v26  ;;  %v13640_v6 = vor.u32 %v14297_v28, %v13637_v9 }
 0x787   : > { %13711 = vst [vmem:[%s15134_s11 + $0x370] sm:$0xff] %v10546_v22  ;;  %10694 = vmatmul.bf16.gmra.mxu2 %v19010_v56 }
 0x788   : > { %10743 = vmatmul.bf16.gmra.mxu3 %v19011_v50  ;;  %v14265_v50 = vld [vmem:[#allocation2 + $0xe84] sm:$0xf] }
 0x789   : > { %10918 = vmatpush.bf16.msrb.mxu3 %v13640_v6  ;;  %v13512_v14 = vor.u32 %v14265_v50, %v13509_v23  ;;  %v19025_v6 = vld [vmem:[#allocation16_spill] sm:$0xff]  ;;  %v19029_v23 = vld [vmem:[#allocation62_spill] sm:$0xff] }
 0x78a   : > { %v10499_v62 = vpop.f32.mrf.mxu2  ;;  %v10403_v4 = vpop.f32.mrf.mxu0  ;;  %v19028_v50 = vld [vmem:[#allocation28_spill] sm:$0xff] }
 0x78b   : > { %v10500_v61 = vadd.f32 %v10499_v62, %v10451_v2  ;;  %v10548_v27 = vpop.f32.mrf.mxu3  ;;  %v10452_v18 = vpop.f32.mrf.mxu1  ;;  %v10404_v37 = vadd.f32 %v10403_v4, %v19012_v58  ;;  %10820 = vmatpush.bf16.msrb.mxu1 %v13512_v14 }
 0x78d   : > { %v10549_v40 = vadd.f32 %v10548_v27, %v10500_v61  ;;  %v10453_v51 = vadd.f32 %v10452_v18, %v10404_v37  ;;  %v19018_v61 = vld [vmem:[#allocation20_spill] sm:$0xff]  ;;  %v19020_v27 = vld [vmem:[#allocation17_spill] sm:$0xff] }
 0x78f   : > { %13713 = vst [vmem:[%s15134_s11 + $0x380] sm:$0xff] %v10549_v40 }
 0x792   : > { %v10501_v7 = vpop.f32.mrf.mxu2  ;;  %v10406_v19 = vpop.f32.mrf.mxu0 }
 0x793   : > { %v10502_v11 = vadd.f32 %v10501_v7, %v10453_v51  ;;  %v10550_v54 = vpop.f32.mrf.mxu3  ;;  %v10455_v46 = vpop.f32.mrf.mxu1  ;;  %v10407_v44 = vadd.f32 %v10406_v19, %v18200_v53  ;;  %v13448_v53 = vor.u32 %v14249_v21, %v13445_v34 }
 0x795   : > { %v10551_v29 = vadd.f32 %v10550_v54, %v10502_v11  ;;  %10601 = vmatmul.bf16.gmra.mxu0 %v19013_v25  ;;  %v10456_v45 = vadd.f32 %v10455_v46, %v10407_v44  ;;  %v19021_v44 = vld [vmem:[#allocation55_spill] sm:$0xff]  ;;  %v19022_v25 = vld [vmem:[#allocation24_spill] sm:$0xff] }
 0x796   : > { %10650 = vmatmul.bf16.gmra.mxu1 %v19014_v15  ;;  %10771 = vmatpush.bf16.msrb.mxu0 %v13448_v53  ;;  %v19023_v15 = vld [vmem:[#allocation21_spill] sm:$0xff] }
 0x797   : > { %13715 = vst [vmem:[%s15134_s11 + $0x390] sm:$0xff] %v10551_v29  ;;  %10699 = vmatmul.bf16.gmra.mxu2 %v19015_v16  ;;  %v19024_v16 = vld [vmem:[#allocation18_spill] sm:$0xff] }
 0x798   : > { %10748 = vmatmul.bf16.gmra.mxu3 %v19016_v20 }
 0x79a   : > { %v10504_v24 = vpop.f32.mrf.mxu2  ;;  %v10408_v31 = vpop.f32.mrf.mxu0 }
 0x79b   : > { %v10505_v22 = vadd.f32 %v10504_v24, %v10456_v45  ;;  %v10553_v33 = vpop.f32.mrf.mxu3  ;;  %v10457_v36 = vpop.f32.mrf.mxu1  ;;  %v10409_v56 = vadd.f32 %v10408_v31, %v18228_v12  ;;  %v19019_v12 = vld [vmem:[#allocation57_spill] sm:$0xff] }
 0x79d   : > { %v10554_v26 = vadd.f32 %v10553_v33, %v10505_v22  ;;  %v10458_v39 = vadd.f32 %v10457_v36, %v10409_v56  ;;  %v19027_v56 = vld [vmem:[#allocation27_spill] sm:$0xff] }
 0x79f   : > { %13717 = vst [vmem:[%s15134_s11 + $0x3a0] sm:$0xff] %v10554_v26  ;;  %v19026_v26 = vld [vmem:[#allocation23_spill] sm:$0xff] }
 0x7a2   : > { %v10506_v2 = vpop.f32.mrf.mxu2  ;;  %v10411_v13 = vpop.f32.mrf.mxu0 }
 0x7a3   : > { %v10507_v59 = vadd.f32 %v10506_v2, %v10458_v39  ;;  %v10555_v55 = vpop.f32.mrf.mxu3  ;;  %v10460_v0 = vpop.f32.mrf.mxu1  ;;  %v10412_v42 = vadd.f32 %v10411_v13, %v18240_v5 }
 0x7a5   : > { %v10556_v62 = vadd.f32 %v10555_v55, %v10507_v59  ;;  %10606 = vmatmul.bf16.gmra.mxu0 %v19017_v43  ;;  %v10461_v4 = vadd.f32 %v10460_v0, %v10412_v42 }
 0x7a6   : > { %10655 = vmatmul.bf16.gmra.mxu1 %v19018_v61 }
 0x7a7   : > { %13719 = vst [vmem:[%s15134_s11 + $0x3b0] sm:$0xff] %v10556_v62  ;;  %10704 = vmatmul.bf16.gmra.mxu2 %v19019_v12 }
 0x7a8   : > { %10753 = vmatmul.bf16.gmra.mxu3 %v19020_v27 }
 0x7aa   : > { %v10509_v18 = vpop.f32.mrf.mxu2  ;;  %v10413_v37 = vpop.f32.mrf.mxu0 }
 0x7ab   : > { %v10510_v40 = vadd.f32 %v10509_v18, %v10461_v4  ;;  %v10558_v58 = vpop.f32.mrf.mxu3  ;;  %v10462_v52 = vpop.f32.mrf.mxu1  ;;  %v10414_v41 = vadd.f32 %v10413_v37, %v18254_v8  ;;  %v19032_v37 = vld [vmem:[#allocation32_spill] sm:$0xff] }
 0x7ad   : > { %v10559_v63 = vadd.f32 %v10558_v58, %v10510_v40  ;;  %v10463_v5 = vadd.f32 %v10462_v52, %v10414_v41  ;;  %v19030_v40 = vld [vmem:[#allocation22_spill] sm:$0xff]  ;;  %v19031_v58 = vld [vmem:[#allocation31_spill] sm:$0xff]  ;;  %v19033_v52 = vld [vmem:[#allocation25_spill] sm:$0xff] }
 0x7af   : > { %13721 = vst [vmem:[%s15134_s11 + $0x3c0] sm:$0xff] %v10559_v63 }
 0x7b2   : > { %v10511_v51 = vpop.f32.mrf.mxu2  ;;  %v10416_v54 = vpop.f32.mrf.mxu0 }
 0x7b3   : > { %v10512_v7 = vadd.f32 %v10511_v51, %v10463_v5  ;;  %v10560_v11 = vpop.f32.mrf.mxu3  ;;  %v10465_v19 = vpop.f32.mrf.mxu1  ;;  %v10417_v29 = vadd.f32 %v10416_v54, %v18264_v3 }
 0x7b5   : > { %v10561_v46 = vadd.f32 %v10560_v11, %v10512_v7  ;;  %10611 = vmatmul.bf16.gmra.mxu0 %v19021_v44  ;;  %v10466_v8 = vadd.f32 %v10465_v19, %v10417_v29 }
 0x7b6   : > { %10660 = vmatmul.bf16.gmra.mxu1 %v19022_v25 }
 0x7b7   : > { %13723 = vst [vmem:[%s15134_s11 + $0x3d0] sm:$0xff] %v10561_v46  ;;  %10709 = vmatmul.bf16.gmra.mxu2 %v19023_v15 }
 0x7b8   : > { %10758 = vmatmul.bf16.gmra.mxu3 %v19024_v16 }
 0x7ba   : > { %v10514_v20 = vpop.f32.mrf.mxu2  ;;  %v10418_v21 = vpop.f32.mrf.mxu0 }
 0x7bb   : > { %v10515_v49 = vadd.f32 %v10514_v20, %v10466_v8  ;;  %v10563_v47 = vpop.f32.mrf.mxu3  ;;  %v10467_v45 = vpop.f32.mrf.mxu1  ;;  %v10419_v34 = vadd.f32 %v10418_v21, %v18266_v30  ;;  %v19036_v21 = vld [vmem:[#allocation36_spill] sm:$0xff] }
 0x7bd   : > { %v10564_v57 = vadd.f32 %v10563_v47, %v10515_v49  ;;  %v10468_v3 = vadd.f32 %v10467_v45, %v10419_v34  ;;  %v19034_v49 = vld [vmem:[#allocation26_spill] sm:$0xff]  ;;  %v19035_v47 = vld [vmem:[#allocation35_spill] sm:$0xff]  ;;  %v19037_v45 = vld [vmem:[#allocation29_spill] sm:$0xff] }
 0x7bf   : > { %13725 = vst [vmem:[%s15134_s11 + $0x3e0] sm:$0xff] %v10564_v57 }
 0x7c2   : > { %v10516_v28 = vpop.f32.mrf.mxu2  ;;  %v10577_v53 = vpop.f32.mrf.mxu0 }
 0x7c3   : > { %v10517_v9 = vadd.f32 %v10516_v28, %v10468_v3  ;;  %v10565_v24 = vpop.f32.mrf.mxu3  ;;  %v10578_v22 = vadd.f32 %v10577_v53, %v19025_v6  ;;  %v10626_v33 = vpop.f32.mrf.mxu1 }
 0x7c5   : > { %v10566_v31 = vadd.f32 %v10565_v24, %v10517_v9  ;;  %v10627_v36 = vadd.f32 %v10626_v33, %v10578_v22  ;;  %10772 = vmatmul.bf16.vlgmr.msrb.gmra.mxu0 %v19026_v26 }
 0x7c6   : > { %10821 = vmatmul.bf16.vlgmr.msrb.gmra.mxu1 %v19027_v56 }
 0x7c7   : > { %13727 = vst [vmem:[%s15134_s11 + $0x3f0] sm:$0xff] %v10566_v31  ;;  %10870 = vmatmul.bf16.vlgmr.msrb.gmra.mxu2 %v19028_v50 }
 0x7c8   : > { %10919 = vmatmul.bf16.vlgmr.msrb.gmra.mxu3 %v19029_v23 }
 0x7ca   : > { %v10675_v30 = vpop.f32.mrf.mxu2  ;;  %v10579_v2 = vpop.f32.mrf.mxu0 }
 0x7cb   : > { %v10676_v14 = vadd.f32 %v10675_v30, %v10627_v36  ;;  %v10724_v39 = vpop.f32.mrf.mxu3  ;;  %v10580_v59 = vadd.f32 %v10579_v2, %v19025_v6  ;;  %v10628_v55 = vpop.f32.mrf.mxu1  ;;  %v19040_v2 = vld [vmem:[#allocation40_spill] sm:$0xff] }
 0x7cd   : > { %v18338_v13 = vadd.f32 %v10724_v39, %v10676_v14  ;;  %v10629_v0 = vadd.f32 %v10628_v55, %v10580_v59  ;;  %v19038_v14 = vld [vmem:[#allocation30_spill] sm:$0xff]  ;;  %v19039_v39 = vld [vmem:[#allocation39_spill] sm:$0xff]  ;;  %v19041_v59 = vld [vmem:[#allocation33_spill] sm:$0xff] }
 0x7d2   : > { %v10677_v62 = vpop.f32.mrf.mxu2  ;;  %v10582_v61 = vpop.f32.mrf.mxu0 }
 0x7d3   : > { %v10678_v42 = vadd.f32 %v10677_v62, %v10629_v0  ;;  %v10726_v43 = vpop.f32.mrf.mxu3  ;;  %v10583_v12 = vadd.f32 %v10582_v61, %v19025_v6  ;;  %v10631_v27 = vpop.f32.mrf.mxu1 }
 0x7d5   : > { %v18341_v4 = vadd.f32 %v10726_v43, %v10678_v42  ;;  %v10632_v18 = vadd.f32 %v10631_v27, %v10583_v12  ;;  %10777 = vmatmul.bf16.gmra.mxu0 %v19030_v40 }
 0x7d6   : > { %10826 = vmatmul.bf16.gmra.mxu1 %v19031_v58 }
 0x7d7   : > { %10875 = vmatmul.bf16.gmra.mxu2 %v19032_v37 }
 0x7d8   : > { %10924 = vmatmul.bf16.gmra.mxu3 %v19033_v52 }
 0x7da   : > { %v10680_v63 = vpop.f32.mrf.mxu2  ;;  %v10584_v51 = vpop.f32.mrf.mxu0 }
 0x7db   : > { %v10681_v41 = vadd.f32 %v10680_v63, %v10632_v18  ;;  %v10729_v5 = vpop.f32.mrf.mxu3  ;;  %v10585_v7 = vadd.f32 %v10584_v51, %v19025_v6  ;;  %v10633_v11 = vpop.f32.mrf.mxu1  ;;  %v19042_v51 = vld [vmem:[#allocation34_spill] sm:$0xff] }
 0x7dd   : > { %v18348_v54 = vadd.f32 %v10729_v5, %v10681_v41  ;;  %v10634_v19 = vadd.f32 %v10633_v11, %v10585_v7  ;;  %v19043_v7 = vld [vmem:[#allocation43_spill] sm:$0xff]  ;;  %v19044_v11 = vld [vmem:[#allocation44_spill] sm:$0xff] }
 0x7e2   : > { %v10682_v46 = vpop.f32.mrf.mxu2  ;;  %v10587_v25 = vpop.f32.mrf.mxu0 }
 0x7e3   : > { %v10683_v29 = vadd.f32 %v10682_v46, %v10634_v19  ;;  %v10731_v44 = vpop.f32.mrf.mxu3  ;;  %v10588_v15 = vadd.f32 %v10587_v25, %v19025_v6  ;;  %v10636_v16 = vpop.f32.mrf.mxu1  ;;  %v19045_v19 = vld [vmem:[#allocation38_spill] sm:$0xff] }
 0x7e5   : > { %v18351_v8 = vadd.f32 %v10731_v44, %v10683_v29  ;;  %v10637_v20 = vadd.f32 %v10636_v16, %v10588_v15  ;;  %10782 = vmatmul.bf16.gmra.mxu0 %v19034_v49 }
 0x7e6   : > { %10831 = vmatmul.bf16.gmra.mxu1 %v19035_v47 }
 0x7e7   : > { %10880 = vmatmul.bf16.gmra.mxu2 %v19036_v21 }
 0x7e8   : > { %10929 = vmatmul.bf16.gmra.mxu3 %v19037_v45 }
 0x7ea   : > { %v10685_v57 = vpop.f32.mrf.mxu2  ;;  %v10589_v28 = vpop.f32.mrf.mxu0 }
 0x7eb   : > { %v10686_v34 = vadd.f32 %v10685_v57, %v10637_v20  ;;  %v10734_v3 = vpop.f32.mrf.mxu3  ;;  %v10590_v9 = vadd.f32 %v10589_v28, %v19025_v6  ;;  %v10638_v24 = vpop.f32.mrf.mxu1 }
 0x7ed   : > { %v18358_v53 = vadd.f32 %v10734_v3, %v10686_v34  ;;  %v10639_v22 = vadd.f32 %v10638_v24, %v10590_v9  ;;  %v19046_v24 = vld [vmem:[#allocation48_spill] sm:$0xff] }
 0x7f2   : > { %v10687_v33 = vpop.f32.mrf.mxu2  ;;  %v10592_v26 = vpop.f32.mrf.mxu0 }
 0x7f3   : > { %v10688_v31 = vadd.f32 %v10687_v33, %v10639_v22  ;;  %v10736_v36 = vpop.f32.mrf.mxu3  ;;  %v10593_v56 = vadd.f32 %v10592_v26, %v19025_v6  ;;  %v10641_v50 = vpop.f32.mrf.mxu1  ;;  %v19047_v22 = vld [vmem:[#allocation41_spill] sm:$0xff]  ;;  %v19048_v33 = vld [vmem:[#allocation42_spill] sm:$0xff] }
 0x7f5   : > { %v18361_v23 = vadd.f32 %v10736_v36, %v10688_v31  ;;  %v10642_v30 = vadd.f32 %v10641_v50, %v10593_v56  ;;  %10787 = vmatmul.bf16.gmra.mxu0 %v19038_v14  ;;  %v19049_v31 = vld [vmem:[#allocation45_spill] sm:$0xff] }
 0x7f6   : > { %10836 = vmatmul.bf16.gmra.mxu1 %v19039_v39 }
 0x7f7   : > { %10885 = vmatmul.bf16.gmra.mxu2 %v19040_v2 }
 0x7f8   : > { %10934 = vmatmul.bf16.gmra.mxu3 %v19041_v59 }
 0x7fa   : > { %v10690_v55 = vpop.f32.mrf.mxu2  ;;  %v10594_v42 = vpop.f32.mrf.mxu0 }
 0x7fb   : > { %v10691_v0 = vadd.f32 %v10690_v55, %v10642_v30  ;;  %v10739_v62 = vpop.f32.mrf.mxu3  ;;  %v10595_v43 = vadd.f32 %v10594_v42, %v19025_v6  ;;  %v10643_v61 = vpop.f32.mrf.mxu1 }
 0x7fd   : > { %v18368_v12 = vadd.f32 %v10739_v62, %v10691_v0  ;;  %v10644_v27 = vadd.f32 %v10643_v61, %v10595_v43 }
 0x802   : > { %v10692_v18 = vpop.f32.mrf.mxu2  ;;  %v10597_v37 = vpop.f32.mrf.mxu0 }
 0x803   : > { %v10693_v40 = vadd.f32 %v10692_v18, %v10644_v27  ;;  %v10741_v58 = vpop.f32.mrf.mxu3  ;;  %v10598_v52 = vadd.f32 %v10597_v37, %v19025_v6  ;;  %v10646_v63 = vpop.f32.mrf.mxu1 }
 0x805   : > { %v18371_v41 = vadd.f32 %v10741_v58, %v10693_v40  ;;  %v10647_v5 = vadd.f32 %v10646_v63, %v10598_v52  ;;  %10792 = vmatmul.bf16.gmra.mxu0 %v19042_v51 }
 0x806   : > { %10841 = vmatmul.bf16.gmra.mxu1 %v19043_v7 }
 0x807   : > { %10890 = vmatmul.bf16.gmra.mxu2 %v19044_v11 }
 0x808   : > { %10939 = vmatmul.bf16.gmra.mxu3 %v19045_v19 }
 0x80a   : > { %v10695_v46 = vpop.f32.mrf.mxu2  ;;  %v10599_v25 = vpop.f32.mrf.mxu0 }
 0x80b   : > { %v10696_v29 = vadd.f32 %v10695_v46, %v10647_v5  ;;  %v10744_v44 = vpop.f32.mrf.mxu3  ;;  %v10600_v15 = vadd.f32 %v10599_v25, %v19025_v6  ;;  %v10648_v16 = vpop.f32.mrf.mxu1 }
 0x80d   : > { %v18378_v20 = vadd.f32 %v10744_v44, %v10696_v29  ;;  %v10649_v49 = vadd.f32 %v10648_v16, %v10600_v15 }
 0x812   : > { %v10697_v47 = vpop.f32.mrf.mxu2  ;;  %v10602_v57 = vpop.f32.mrf.mxu0 }
 0x813   : > { %v10698_v21 = vadd.f32 %v10697_v47, %v10649_v49  ;;  %v10746_v45 = vpop.f32.mrf.mxu3  ;;  %v10603_v34 = vadd.f32 %v10602_v57, %v19025_v6  ;;  %v10651_v3 = vpop.f32.mrf.mxu1 }
 0x815   : > { %v18381_v28 = vadd.f32 %v10746_v45, %v10698_v21  ;;  %v10652_v9 = vadd.f32 %v10651_v3, %v10603_v34  ;;  %10797 = vmatmul.bf16.gmra.mxu0 %v19046_v24 }
 0x816   : > { %10846 = vmatmul.bf16.gmra.mxu1 %v19047_v22 }
 0x817   : > { %10895 = vmatmul.bf16.gmra.mxu2 %v19048_v33 }
 0x818   : > { %10944 = vmatmul.bf16.gmra.mxu3 %v19049_v31 }
 0x81a   : > { %v10700_v36 = vpop.f32.mrf.mxu2  ;;  %v10604_v50 = vpop.f32.mrf.mxu0 }
 0x81b   : > { %v10701_v26 = vadd.f32 %v10700_v36, %v10652_v9  ;;  %v10749_v56 = vpop.f32.mrf.mxu3  ;;  %v10605_v30 = vadd.f32 %v10604_v50, %v19025_v6  ;;  %v10653_v14 = vpop.f32.mrf.mxu1 }
 0x81d   : > { %v18388_v39 = vadd.f32 %v10749_v56, %v10701_v26  ;;  %v10654_v2 = vadd.f32 %v10653_v14, %v10605_v30 }
 0x822   : > { %v10702_v59 = vpop.f32.mrf.mxu2  ;;  %v10607_v62 = vpop.f32.mrf.mxu0 }
 0x823   : > { %v10703_v55 = vadd.f32 %v10702_v59, %v10654_v2  ;;  %v10751_v0 = vpop.f32.mrf.mxu3  ;;  %v10608_v42 = vadd.f32 %v10607_v62, %v19025_v6  ;;  %v10656_v43 = vpop.f32.mrf.mxu1 }
 0x825   : > { %v18391_v61 = vadd.f32 %v10751_v0, %v10703_v55  ;;  %v10657_v27 = vadd.f32 %v10656_v43, %v10608_v42  ;;  %10802 = vmatmul.bf16.gmra.mxu0 %v18214_v32 }
 0x826   : > { %10851 = vmatmul.bf16.gmra.mxu1 %v18218_v35 }
 0x827   : > { %10900 = vmatmul.bf16.gmra.mxu2 %v18222_v60 }
 0x828   : > { %10949 = vmatmul.bf16.gmra.mxu3 %v18231_v48 }
 0x82a   : > { %v10705_v18 = vpop.f32.mrf.mxu2  ;;  %v10609_v37 = vpop.f32.mrf.mxu0 }
 0x82b   : > { %v10706_v40 = vadd.f32 %v10705_v18, %v10657_v27  ;;  %v10754_v58 = vpop.f32.mrf.mxu3  ;;  %v10610_v52 = vadd.f32 %v10609_v37, %v19025_v6  ;;  %v10658_v63 = vpop.f32.mrf.mxu1 }
 0x82d   : > { %v18398_v5 = vadd.f32 %v10754_v58, %v10706_v40  ;;  %v10659_v51 = vadd.f32 %v10658_v63, %v10610_v52 }
 0x832   : > { %v10707_v7 = vpop.f32.mrf.mxu2  ;;  %v10612_v32 = vpop.f32.mrf.mxu0 }
 0x833   : > { %v10708_v11 = vadd.f32 %v10707_v7, %v10659_v51  ;;  %v10756_v19 = vpop.f32.mrf.mxu3  ;;  %v10613_v35 = vadd.f32 %v10612_v32, %v19025_v6  ;;  %v10661_v46 = vpop.f32.mrf.mxu1 }
 0x835   : > { %v18401_v60 = vadd.f32 %v10756_v19, %v10708_v11  ;;  %v10662_v48 = vadd.f32 %v10661_v46, %v10613_v35  ;;  %10807 = vmatmul.bf16.gmra.mxu0 %v18244_v1 }
 0x836   : > { %10856 = vmatmul.bf16.gmra.mxu1 %v18249_v10 }
 0x837   : > { %10905 = vmatmul.bf16.gmra.mxu2 %v18252_v38 }
 0x838   : > { %10954 = vmatmul.bf16.gmra.mxu3 %v18257_v17 }
 0x83a   : > { %v10710_v29 = vpop.f32.mrf.mxu2  ;;  %v10614_v15 = vpop.f32.mrf.mxu0 }
 0x83b   : > { %v10711_v44 = vadd.f32 %v10710_v29, %v10662_v48  ;;  %v10759_v25 = vpop.f32.mrf.mxu3  ;;  %v10615_v16 = vadd.f32 %v10614_v15, %v19025_v6  ;;  %v10663_v49 = vpop.f32.mrf.mxu1 }
 0x83d   : > { %v18408_v47 = vadd.f32 %v10759_v25, %v10711_v44  ;;  %v10664_v21 = vadd.f32 %v10663_v49, %v10615_v16 }
 0x842   : > { %v10712_v45 = vpop.f32.mrf.mxu2  ;;  %v10773_v34 = vpop.f32.mrf.mxu0 }
 0x843   : > { %v10713_v57 = vadd.f32 %v10712_v45, %v10664_v21  ;;  %v10761_v1 = vpop.f32.mrf.mxu3  ;;  %v10822_v10 = vpop.f32.mrf.mxu1  ;;  %v10774_v38 = vadd.f32 %v10773_v34, %v18338_v13 }
 0x845   : > { %v18410_v3 = vadd.f32 %v10761_v1, %v10713_v57  ;;  %v10823_v17 = vadd.f32 %v10822_v10, %v10774_v38 }
 0x84a   : > { %v10871_v9 = vpop.f32.mrf.mxu2  ;;  %v10775_v6 = vpop.f32.mrf.mxu0 }
 0x84b   : > { %v10872_v24 = vadd.f32 %v10871_v9, %v10823_v17  ;;  %v10920_v22 = vpop.f32.mrf.mxu3  ;;  %v10824_v33 = vpop.f32.mrf.mxu1  ;;  %v10776_v36 = vadd.f32 %v10775_v6, %v18341_v4 }
 0x84d   : > { %v10921_v31 = vadd.f32 %v10920_v22, %v10872_v24  ;;  %v10825_v26 = vadd.f32 %v10824_v33, %v10776_v36 }
 0x84f   : > { %13698 = vst [vmem:[%s15134_s11 + $0x308] sm:$0xff] %v10921_v31 }
 0x852   : > { %v10873_v56 = vpop.f32.mrf.mxu2  ;;  %v10778_v14 = vpop.f32.mrf.mxu0 }
 0x853   : > { %v10874_v50 = vadd.f32 %v10873_v56, %v10825_v26  ;;  %v10922_v30 = vpop.f32.mrf.mxu3  ;;  %v10827_v2 = vpop.f32.mrf.mxu1  ;;  %v10779_v13 = vadd.f32 %v10778_v14, %v18348_v54 }
 0x855   : > { %v10923_v59 = vadd.f32 %v10922_v30, %v10874_v50  ;;  %v10828_v55 = vadd.f32 %v10827_v2, %v10779_v13 }
 0x857   : > { %13700 = vst [vmem:[%s15134_s11 + $0x318] sm:$0xff] %v10923_v59 }
 0x85a   : > { %v10876_v0 = vpop.f32.mrf.mxu2  ;;  %v10780_v43 = vpop.f32.mrf.mxu0 }
 0x85b   : > { %v10877_v62 = vadd.f32 %v10876_v0, %v10828_v55  ;;  %v10925_v42 = vpop.f32.mrf.mxu3  ;;  %v10829_v27 = vpop.f32.mrf.mxu1  ;;  %v10781_v18 = vadd.f32 %v10780_v43, %v18351_v8 }
 0x85d   : > { %v10926_v4 = vadd.f32 %v10925_v42, %v10877_v62  ;;  %v10830_v40 = vadd.f32 %v10829_v27, %v10781_v18 }
 0x85f   : > { %13702 = vst [vmem:[%s15134_s11 + $0x328] sm:$0xff] %v10926_v4 }
 0x862   : > { %v10878_v58 = vpop.f32.mrf.mxu2  ;;  %v10783_v63 = vpop.f32.mrf.mxu0 }
 0x863   : > { %v10879_v37 = vadd.f32 %v10878_v58, %v10830_v40  ;;  %v10927_v52 = vpop.f32.mrf.mxu3  ;;  %v10832_v51 = vpop.f32.mrf.mxu1  ;;  %v10784_v7 = vadd.f32 %v10783_v63, %v18358_v53 }
 0x865   : > { %v10928_v54 = vadd.f32 %v10927_v52, %v10879_v37  ;;  %v10833_v11 = vadd.f32 %v10832_v51, %v10784_v7 }
 0x867   : > { %13704 = vst [vmem:[%s15134_s11 + $0x338] sm:$0xff] %v10928_v54 }
 0x86a   : > { %v10881_v19 = vpop.f32.mrf.mxu2  ;;  %v10785_v46 = vpop.f32.mrf.mxu0 }
 0x86b   : > { %v10882_v32 = vadd.f32 %v10881_v19, %v10833_v11  ;;  %v10930_v35 = vpop.f32.mrf.mxu3  ;;  %v10834_v48 = vpop.f32.mrf.mxu1  ;;  %v10786_v29 = vadd.f32 %v10785_v46, %v18361_v23 }
 0x86d   : > { %v10931_v8 = vadd.f32 %v10930_v35, %v10882_v32  ;;  %v10835_v44 = vadd.f32 %v10834_v48, %v10786_v29 }
 0x86f   : > { %13706 = vst [vmem:[%s15134_s11 + $0x348] sm:$0xff] %v10931_v8 }
 0x872   : > { %v10883_v25 = vpop.f32.mrf.mxu2  ;;  %v10788_v49 = vpop.f32.mrf.mxu0 }
 0x873   : > { %v10884_v15 = vadd.f32 %v10883_v25, %v10835_v44  ;;  %v10932_v16 = vpop.f32.mrf.mxu3  ;;  %v10837_v21 = vpop.f32.mrf.mxu1  ;;  %v10789_v45 = vadd.f32 %v10788_v49, %v18368_v12 }
 0x875   : > { %v10933_v53 = vadd.f32 %v10932_v16, %v10884_v15  ;;  %v10838_v57 = vadd.f32 %v10837_v21, %v10789_v45 }
 0x877   : > { %13708 = vst [vmem:[%s15134_s11 + $0x358] sm:$0xff] %v10933_v53 }
 0x87a   : > { %v10886_v1 = vpop.f32.mrf.mxu2  ;;  %v10790_v38 = vpop.f32.mrf.mxu0 }
 0x87b   : > { %v10887_v34 = vadd.f32 %v10886_v1, %v10838_v57  ;;  %v10935_v10 = vpop.f32.mrf.mxu3  ;;  %v10839_v17 = vpop.f32.mrf.mxu1  ;;  %v10791_v9 = vadd.f32 %v10790_v38, %v18371_v41 }
 0x87d   : > { %v10936_v23 = vadd.f32 %v10935_v10, %v10887_v34  ;;  %v10840_v24 = vadd.f32 %v10839_v17, %v10791_v9 }
 0x87f   : > { %13710 = vst [vmem:[%s15134_s11 + $0x368] sm:$0xff] %v10936_v23 }
 0x882   : > { %v10888_v22 = vpop.f32.mrf.mxu2  ;;  %v10793_v31 = vpop.f32.mrf.mxu0 }
 0x883   : > { %v10889_v6 = vadd.f32 %v10888_v22, %v10840_v24  ;;  %v10937_v33 = vpop.f32.mrf.mxu3  ;;  %v10842_v36 = vpop.f32.mrf.mxu1  ;;  %v10794_v26 = vadd.f32 %v10793_v31, %v18378_v20 }
 0x885   : > { %v10938_v12 = vadd.f32 %v10937_v33, %v10889_v6  ;;  %v10843_v56 = vadd.f32 %v10842_v36, %v10794_v26 }
 0x887   : > { %13712 = vst [vmem:[%s15134_s11 + $0x378] sm:$0xff] %v10938_v12 }
 0x88a   : > { %v10891_v50 = vpop.f32.mrf.mxu2  ;;  %v10795_v2 = vpop.f32.mrf.mxu0 }
 0x88b   : > { %v10892_v30 = vadd.f32 %v10891_v50, %v10843_v56  ;;  %v10940_v14 = vpop.f32.mrf.mxu3  ;;  %v10844_v59 = vpop.f32.mrf.mxu1  ;;  %v10796_v13 = vadd.f32 %v10795_v2, %v18381_v28 }
 0x88d   : > { %v10941_v41 = vadd.f32 %v10940_v14, %v10892_v30  ;;  %v10845_v55 = vadd.f32 %v10844_v59, %v10796_v13 }
 0x88f   : > { %13714 = vst [vmem:[%s15134_s11 + $0x388] sm:$0xff] %v10941_v41 }
 0x892   : > { %v10893_v0 = vpop.f32.mrf.mxu2  ;;  %v10798_v43 = vpop.f32.mrf.mxu0 }
 0x893   : > { %v10894_v62 = vadd.f32 %v10893_v0, %v10845_v55  ;;  %v10942_v42 = vpop.f32.mrf.mxu3  ;;  %v10847_v27 = vpop.f32.mrf.mxu1  ;;  %v10799_v4 = vadd.f32 %v10798_v43, %v18388_v39 }
 0x895   : > { %v10943_v20 = vadd.f32 %v10942_v42, %v10894_v62  ;;  %v10848_v18 = vadd.f32 %v10847_v27, %v10799_v4 }
 0x897   : > { %13716 = vst [vmem:[%s15134_s11 + $0x398] sm:$0xff] %v10943_v20 }
 0x89a   : > { %v10896_v40 = vpop.f32.mrf.mxu2  ;;  %v10800_v52 = vpop.f32.mrf.mxu0 }
 0x89b   : > { %v10897_v58 = vadd.f32 %v10896_v40, %v10848_v18  ;;  %v10945_v37 = vpop.f32.mrf.mxu3  ;;  %v10849_v63 = vpop.f32.mrf.mxu1  ;;  %v10801_v51 = vadd.f32 %v10800_v52, %v18391_v61 }
 0x89d   : > { %v10946_v28 = vadd.f32 %v10945_v37, %v10897_v58  ;;  %v10850_v54 = vadd.f32 %v10849_v63, %v10801_v51 }
 0x89f   : > { %13718 = vst [vmem:[%s15134_s11 + $0x3a8] sm:$0xff] %v10946_v28 }
 0x8a2   : > { %v10898_v7 = vpop.f32.mrf.mxu2  ;;  %v10803_v32 = vpop.f32.mrf.mxu0 }
 0x8a3   : > { %v10899_v11 = vadd.f32 %v10898_v7, %v10850_v54  ;;  %v10947_v19 = vpop.f32.mrf.mxu3  ;;  %v10852_v35 = vpop.f32.mrf.mxu1  ;;  %v10804_v46 = vadd.f32 %v10803_v32, %v18398_v5 }
 0x8a5   : > { %v10948_v39 = vadd.f32 %v10947_v19, %v10899_v11  ;;  %v10853_v48 = vadd.f32 %v10852_v35, %v10804_v46 }
 0x8a7   : > { %13720 = vst [vmem:[%s15134_s11 + $0x3b8] sm:$0xff] %v10948_v39 }
 0x8aa   : > { %v10901_v8 = vpop.f32.mrf.mxu2  ;;  %v10805_v25 = vpop.f32.mrf.mxu0 }
 0x8ab   : > { %v10902_v29 = vadd.f32 %v10901_v8, %v10853_v48  ;;  %v10950_v44 = vpop.f32.mrf.mxu3  ;;  %v10854_v15 = vpop.f32.mrf.mxu1  ;;  %v10806_v16 = vadd.f32 %v10805_v25, %v18401_v60 }
 0x8ad   : > { %v10951_v61 = vadd.f32 %v10950_v44, %v10902_v29  ;;  %v10855_v49 = vadd.f32 %v10854_v15, %v10806_v16 }
 0x8af   : > { %13722 = vst [vmem:[%s15134_s11 + $0x3c8] sm:$0xff] %v10951_v61 }
 0x8b2   : > { %v10903_v21 = vpop.f32.mrf.mxu2  ;;  %v10808_v57 = vpop.f32.mrf.mxu0 }
 0x8b3   : > { %v10904_v53 = vadd.f32 %v10903_v21, %v10855_v49  ;;  %v10952_v45 = vpop.f32.mrf.mxu3  ;;  %v10809_v5 = vadd.f32 %v10808_v57, %v18408_v47  ;;  %v10857_v34 = vpop.f32.mrf.mxu1 }
 0x8b5   : > { %v10953_v1 = vadd.f32 %v10952_v45, %v10904_v53  ;;  %v10858_v10 = vadd.f32 %v10857_v34, %v10809_v5 }
 0x8b7   : > { %13724 = vst [vmem:[%s15134_s11 + $0x3d8] sm:$0xff] %v10953_v1 }
 0x8ba   : > { %v10906_v38 = vpop.f32.mrf.mxu2  ;;  %v10810_v9 = vpop.f32.mrf.mxu0 }
 0x8bb   : > { %v10907_v17 = vadd.f32 %v10906_v38, %v10858_v10  ;;  %v10955_v23 = vpop.f32.mrf.mxu3  ;;  %v10811_v24 = vadd.f32 %v10810_v9, %v18410_v3  ;;  %v10859_v22 = vpop.f32.mrf.mxu1 }
 0x8bd   : > { %v10956_v60 = vadd.f32 %v10955_v23, %v10907_v17  ;;  %v10860_v6 = vadd.f32 %v10859_v22, %v10811_v24 }
 0x8bf   : > { %13726 = vst [vmem:[%s15134_s11 + $0x3e8] sm:$0xff] %v10956_v60 }
 0x8c2   : > { %v10908_v33 = vpop.f32.mrf.mxu2 }
 0x8c3   : > { %v10909_v31 = vadd.f32 %v10908_v33, %v10860_v6  ;;  %v10957_v36 = vpop.f32.mrf.mxu3 }
 0x8c5   : > { %v10958_v12 = vadd.f32 %v10957_v36, %v10909_v31 }
 0x8c7   : > { %13728 = vst [vmem:[%s15134_s11 + $0x3f8] sm:$0xff] %v10958_v12 }
 0x8c8   : > { %s14313_s21 = sshll.u32 %s14540_s15, 5  ;;  %s13732_s25 = sshll.u32 %s14544_s16, 8 }
 0x8c9   : > { %s11006_s28 = sadd.s32 %s14313_s21, %s13732_s25  ;;  %s11019_s29 = sshll.u32 %s15134_s11, 4  ;;  %s11020_s29 = int_to_ptr.vmem [resolvable:$true] %s11019_s29 }
 0x8ca   : > { %s13733_s24 = sshll.u32 %s11006_s28, 3  ;;  %s14562_s6 = smov 4096  }
 0x8cb   : > { %s11008_s4 = scalar_lea.hbm %s18497_s3, %s13733_s24  ;;  %14323 = sst [smem:[#allocation9]] (%p14640_p3), %s14562_s6 }
 0x8cc   : > { %s11021_s5 = sshll.u32 %s11008_s4, 4  ;;  %s14563_s7 = smov 8192   ;;  %s11022_s5 = int_to_ptr.hbm [resolvable:$true] %s11021_s5 }
 0x8cd   : > { %14324 = sst [smem:[#allocation9 + $0x1]] (%p14640_p3), %s14563_s7  ;;  %s14564_s15 = smov 16  }
 0x8ce   : > { %14325 = sst [smem:[#allocation9 + $0x2]] (%p14640_p3), %s14564_s15  ;;  %s14565_s16 = smov 256  }
 0x8cf   : > { %14326 = sst [smem:[#allocation9 + $0x3]] (%p14640_p3), %s14565_s16  ;;  %s14566_s9 = smov [#allocation8]  }
 0x8d0   : > { %14327 = sst [smem:[#allocation9 + $0x4]] (%p14640_p3), %s14565_s16  ;;  %s14567_s10 = smov 0  }
 0x8d1   : > { %14328 = sst [smem:[#allocation9 + $0x5]] (%p14640_p3), %s14564_s15 }
 0x8d2   : > { %14329 = dma.general (%p14640_p3), %s11020_s29, 16384, %s11022_s5, %s10994_s20, %s14566_s9, [#allocation9], %s14567_s10, 0  }
 0x8d3 PF: > { %p14346_p2 = scmp.ge.s32.totalorder %s14556_s19, 2  ;;  %s11049_s11 = sand.u32 1, %s14528_s12  }
 0x8d4   : > { %s11050_s21 = scalar_lea.sflag [#allocation4], %s11049_s11 }
 0x8d5   : > { %p14339_p4 = pnand %p14346_p2, %p14649_p8 }
 0x8d7   : > { %p14340_p5 = pneg %p14339_p4 }
 0x8d9   : > { %14523 = dma.done.wait (%p14340_p5), %s11050_s21, 16384  }
 0x8da   : > { %14525 = vsyncadd (%p14340_p5), %s11050_s21, 4294950912  ;;  %s18_s19 = sadd.s32 1, %s14556_s19   ;;  %s19050_s26 = sld [smem:[#allocation13_spill]] }
 0x8db   : > { %p15_p6 = scmp.ge.s32.totalorder %s18_s19, 6   ;;  %s19051_s12 = smov %s14532_s13 }
 0x8dc   : > { %s19052_s13 = smov %s14536_s14  ;;  %s19053_s14 = smov %s14670_s8 }
 0x8dd   : > { %s19054_s15 = smov %s14548_s17  ;;  %s19055_s16 = smov %s14552_s18 }
 0x8de   : > { %s19056_s17 = smov %s19059_s22  ;;  %17 = sbr.rel (!%p15_p6) target bundleno = 7 (0x7), region = 90 }
 0x8e0   : > { %s19057_s18 = smov %s19050_s26 }
 0x8e3   :  { %11056 = vsyncpa [#allocation3], 1 }
 0x8e4   :  { %11058 = vsyncpa [#allocation3 + $0x1], 1 }
 0x8e5   :  { %11059 = vsyncpa [#allocation6], 1 }
 0x8e6   :  { %11060 = vsyncpa [#allocation4], 1 }
 0x8e7   :  { %11062 = vsyncpa [#allocation4 + $0x1], 1 }

</bundles_post_ra>
